<compile_context>
chip_gen: v6e
topology: v6e:2x2x1
jax: 0.10.0
libtpu: 0.0.40
codegen_flags: <defaults>
</compile_context>

<pallas_src>
import functools

import jax
import jax.numpy as jnp
from jax import lax
from jax.experimental import pallas as pl
from jax.experimental.pallas import tpu as pltpu

EPS = 1e-5                # PyTorch BatchNorm2d default eps
_LPAD = 8                 # left W padding of the halo buffers (aligned interior store)
_PER_TAP_MIN_CIN = 128    # >=: per-tap accumulating matmuls; <: fused K=9*Cin im2col


def _round_up(v, m):
    return (v + m - 1) // m * m


def _vmem_limit_bytes():
    """v5e/v6e: raise the scoped limit well above the 16/32 MiB defaults
    (128 MiB physical); v7x: cap at ~3/4 of its 64 MiB physical VMEM."""
    try:
        cap = int(pltpu.get_tpu_info().vmem_capacity_bytes)
    except Exception:
        cap = 64 * 1024 * 1024
    return max(32 * 1024 * 1024, min(100 * 1024 * 1024, cap * 3 // 4))


# ---------------------------------------------------------------------------
# In-kernel 3x3 convolution over a zero-halo'd bf16 VMEM buffer
# ---------------------------------------------------------------------------
def _conv3x3(ap_ref, w_ref, cin, cout, stride, oh, ow):
    """ap_ref: (Hp, Wp, Cin) bf16 scratch; activation (r, c) lives at
    [r + 1, c + _LPAD] with a zero 1-px halo around it.
    w_ref: (9*Cin, Cout) bf16 im2col weights, tap-major ((kh*3+kw)*Cin + ci).

    Returns (y, center_tap):
      y          (oh*ow, Cout) f32  conv output
      center_tap (oh*ow, Cin)  bf16 the (kh=1,kw=1) tap == the stride-subsampled
                                    activation (reused for the 1x1 shortcut).
    """
    w0 = _LPAD - 1
    taps = []
    for kh in range(3):
        for kw in range(3):
            if stride == 1:
                t = ap_ref[kh:kh + oh, kw + w0:kw + w0 + ow, :]
            else:
                # Native strided loads straight from the VMEM scratch.
                t = ap_ref[pl.ds(kh, oh, stride), pl.ds(kw + w0, ow, stride), :]
            taps.append(t.reshape(oh * ow, cin))

    if cin < _PER_TAP_MIN_CIN:
        # Narrow channels: one fused K=9*Cin matmul fills the MXU better than
        # nine tiny K=Cin matmuls.
        y = jnp.dot(jnp.concatenate(taps, axis=-1), w_ref[...],
                    preferred_element_type=jnp.float32)
    else:
        # Wide channels: per-tap accumulation — the 9x im2col patch is never
        # materialized and tap (k+1) loads overlap tap k's matmul.
        y = None
        for k, tap in enumerate(taps):
            d = jnp.dot(tap, w_ref[k * cin:(k + 1) * cin, :],
                        preferred_element_type=jnp.float32)
            y = d if y is None else y + d
    return y, taps[4]


# ---------------------------------------------------------------------------
# Fused BasicBlock kernel (one batch element per grid step)
# ---------------------------------------------------------------------------
def _basic_block_kernel(x_ref, s1_ref, t1_ref, w1_ref, b2_ref, w2_ref, *rest,
                        stride, equal_in_out, oh, ow):
    """
      x_ref  : (1, H, W, Cin)    f32  input image
      s1/t1  : (1, Cin)          f32  folded bn1 scale / shift
      w1_ref : (9*Cin, Cout)     bf16 conv1 weights with bn2 scale folded in
      b2_ref : (1, Cout)         f32  folded bn2 shift (acts as conv1 bias)
      w2_ref : (9*Cout, Cout)    bf16 conv2 weights
      ws_ref : (Cin, Cout)       bf16 1x1 shortcut weights (projection path only)
      o_ref  : (1, OH*OW, Cout)  f32  output slab
      ap1/ap2: bf16 VMEM scratch holding the zero-halo'd conv inputs
    """
    if equal_in_out:
        o_ref, ap1_ref, ap2_ref = rest
        ws_ref = None
    else:
        ws_ref, o_ref, ap1_ref, ap2_ref = rest

    _, h, w, cin = x_ref.shape
    cout = w2_ref.shape[1]
    wp1 = ap1_ref.shape[1]
    wp2 = ap2_ref.shape[1]
    bf16 = jnp.bfloat16

    x = x_ref[0]                                                  # (H, W, Cin) f32
    # bn1 + relu (eval-mode BN folded at trace time); cast ONCE to bf16 before
    # padding so all scratch traffic / tap loads move half the bytes.
    a = jnp.maximum(x * s1_ref[...] + t1_ref[...], 0.0).astype(bf16)

    # ---- conv1 (3x3, stride) fused with folded bn2 + relu -------------------
    # Zero only the 1-px halo; the interior is fully overwritten each step.
    # (Re-zeroed every step: scratch is per-TensorCore, so a program_id==0-gated
    #  one-time init would be wrong when the "parallel" batch axis is split.)
    zrow1 = jnp.zeros((1, wp1, cin), bf16)
    zcol1 = jnp.zeros((h, 1, cin), bf16)
    ap1_ref[0:1, :, :] = zrow1
    ap1_ref[h + 1:h + 2, :, :] = zrow1
    ap1_ref[1:h + 1, _LPAD - 1:_LPAD, :] = zcol1
    ap1_ref[1:h + 1, w + _LPAD:w + _LPAD + 1, :] = zcol1
    ap1_ref[1:h + 1, _LPAD:_LPAD + w, :] = a                      # aligned store

    y1, center = _conv3x3(ap1_ref, w1_ref, cin, cout, stride, oh, ow)
    hidden = jnp.maximum(y1 + b2_ref[...], 0.0).astype(bf16)      # (OH*OW, Cout)
    # droprate == 0.0 -> dropout is the identity.
    # TODO(synk): F.dropout for droprate > 0 (training) not implemented.

    # ---- conv2 (3x3, stride 1) ----------------------------------------------
    zrow2 = jnp.zeros((1, wp2, cout), bf16)
    zcol2 = jnp.zeros((oh, 1, cout), bf16)
    ap2_ref[0:1, :, :] = zrow2
    ap2_ref[oh + 1:oh + 2, :, :] = zrow2
    ap2_ref[1:oh + 1, _LPAD - 1:_LPAD, :] = zcol2
    ap2_ref[1:oh + 1, ow + _LPAD:ow + _LPAD + 1, :] = zcol2
    ap2_ref[1:oh + 1, _LPAD:_LPAD + ow, :] = hidden.reshape(oh, ow, cout)

    y2, _ = _conv3x3(ap2_ref, w2_ref, cout, cout, 1, oh, ow)

    # ---- residual ------------------------------------------------------------
    if equal_in_out:
        res = x.reshape(oh * ow, cout)                            # raw input, f32
    else:
        # 1x1 (strided) projection of the post-bn1-relu activation; reuse the
        # centre tap of conv1 instead of re-gathering a strided slice.
        res = jnp.dot(center, ws_ref[...], preferred_element_type=jnp.float32)

    o_ref[0] = y2 + res


# ---------------------------------------------------------------------------
# Wrapper: trace-time BN folding + pallas_call
# ---------------------------------------------------------------------------
def _prep_params(p):
    """Fold eval-mode BatchNorm into scales / conv weights (trace time)."""
    scale1 = p["bn1_g"] * lax.rsqrt(p["bn1_v"] + EPS)             # (1, Cin)
    shift1 = p["bn1_b"] - p["bn1_m"] * scale1
    scale2 = p["bn2_g"] * lax.rsqrt(p["bn2_v"] + EPS)             # (1, Cout)
    b2 = p["bn2_b"] - p["bn2_m"] * scale2
    _, _, cin, cout = p["conv1_w"].shape
    w1 = (p["conv1_w"] * scale2.reshape(1, 1, 1, cout)).reshape(9 * cin, cout)
    w2 = p["conv2_w"].reshape(9 * cout, cout)
    return dict(scale1=scale1, shift1=shift1, b2=b2,
                w1=w1.astype(jnp.bfloat16),
                w2=w2.astype(jnp.bfloat16),
                ws=p["convs_w"].astype(jnp.bfloat16))


@functools.partial(jax.jit, static_argnames=("stride", "equal_in_out"))
def basic_block_forward(x_nchw, params, *, stride, equal_in_out):
    assert stride in (1, 2)
    prep = _prep_params(params)
    x = jnp.transpose(x_nchw, (0, 2, 3, 1)).astype(jnp.float32)   # NCHW -> NHWC
    n, h, w, cin = x.shape
    cout = prep["w2"].shape[-1]
    oh = (h - 1) // stride + 1
    ow = (w - 1) // stride + 1
    if equal_in_out:
        assert stride == 1 and cin == cout

    wp1 = _round_up(w + _LPAD + 1, 8)
    wp2 = _round_up(ow + _LPAD + 1, 8)

    kernel = functools.partial(_basic_block_kernel, stride=stride,
                               equal_in_out=equal_in_out, oh=oh, ow=ow)

    inputs = [x, prep["scale1"], prep["shift1"], prep["w1"], prep["b2"],
              prep["w2"]]
    in_specs = [
        pl.BlockSpec((1, h, w, cin), lambda i: (i, 0, 0, 0)),
        pl.BlockSpec((1, cin), lambda i: (0, 0)),
        pl.BlockSpec((1, cin), lambda i: (0, 0)),
        pl.BlockSpec((9 * cin, cout), lambda i: (0, 0)),
        pl.BlockSpec((1, cout), lambda i: (0, 0)),
        pl.BlockSpec((9 * cout, cout), lambda i: (0, 0)),
    ]
    if not equal_in_out:                      # identity path: skip the ws DMA
        inputs.append(prep["ws"])
        in_specs.append(pl.BlockSpec((cin, cout), lambda i: (0, 0)))

    out = pl.pallas_call(
        kernel,
        out_shape=jax.ShapeDtypeStruct((n, oh * ow, cout), jnp.float32),
        grid=(n,),
        in_specs=in_specs,
        out_specs=pl.BlockSpec((1, oh * ow, cout), lambda i: (i, 0, 0)),
        scratch_shapes=[
            pltpu.VMEM((h + 2, wp1, cin), jnp.bfloat16),
            pltpu.VMEM((oh + 2, wp2, cout), jnp.bfloat16),
        ],
        compiler_params=pltpu.CompilerParams(
            dimension_semantics=("parallel",),    # shard batch across TCs (v7x)
            vmem_limit_bytes=_vmem_limit_bytes(),
        ),
    )(*inputs)

    out = out.reshape(n, oh, ow, cout)
    return jnp.transpose(out, (0, 3, 1, 2))                       # NHWC -> NCHW


# ---------------------------------------------------------------------------
# Deterministic parameter init + pure-JAX references
# ---------------------------------------------------------------------------
def init_params(key, cin, cout):
    ks = jax.random.split(key, 5)

    def bn(k, c):
        k1, k2, k3, k4 = jax.random.split(k, 4)
        return (jax.random.uniform(k1, (1, c), jnp.float32, 0.5, 1.5),   # gamma
                jax.random.normal(k2, (1, c), jnp.float32) * 0.1,        # beta
                jax.random.normal(k3, (1, c), jnp.float32) * 0.1,        # mean
                jax.random.uniform(k4, (1, c), jnp.float32, 0.5, 1.5))   # var

    g1, b1, m1, v1 = bn(ks[0], cin)
    g2, b2, m2, v2 = bn(ks[1], cout)
    conv1_w = jax.random.normal(ks[2], (3, 3, cin, cout), jnp.float32) \
        * (2.0 / (9 * cin)) ** 0.5
    conv2_w = jax.random.normal(ks[3], (3, 3, cout, cout), jnp.float32) \
        * (2.0 / (9 * cout)) ** 0.5
    convs_w = jax.random.normal(ks[4], (cin, cout), jnp.float32) \
        * (2.0 / cin) ** 0.5
    return dict(bn1_g=g1, bn1_b=b1, bn1_m=m1, bn1_v=v1,
                bn2_g=g2, bn2_b=b2, bn2_m=m2, bn2_v=v2,
                conv1_w=conv1_w, conv2_w=conv2_w, convs_w=convs_w)


def reference_forward(x_nchw, params, *, stride, equal_in_out):
    """Pure-XLA reference mirroring the kernel's math: eval-mode BN folding +
    bf16 operands at every conv/matmul with f32 accumulation."""
    prep = _prep_params(params)
    x = jnp.transpose(x_nchw, (0, 2, 3, 1)).astype(jnp.float32)
    n, _, _, cin = x.shape
    cout = prep["b2"].shape[-1]

    a = jnp.maximum(x * prep["scale1"] + prep["shift1"], 0.0)
    a16 = a.astype(jnp.bfloat16)

    w1 = prep["w1"].reshape(3, 3, cin, cout)
    y1 = lax.conv_general_dilated(
        a16, w1, (stride, stride), ((1, 1), (1, 1)),
        dimension_numbers=("NHWC", "HWIO", "NHWC"),
        preferred_element_type=jnp.float32)
    hidden = jnp.maximum(y1 + prep["b2"], 0.0)

    w2 = prep["w2"].reshape(3, 3, cout, cout)
    y2 = lax.conv_general_dilated(
        hidden.astype(jnp.bfloat16), w2, (1, 1), ((1, 1), (1, 1)),
        dimension_numbers=("NHWC", "HWIO", "NHWC"),
        preferred_element_type=jnp.float32)

    if equal_in_out:
        res = x
    else:
        a_s = a16[:, ::stride, ::stride, :]
        oh, ow = a_s.shape[1], a_s.shape[2]
        res = jnp.dot(a_s.reshape(-1, cin), prep["ws"],
                      preferred_element_type=jnp.float32
                      ).reshape(n, oh, ow, cout)
    return jnp.transpose(y2 + res, (0, 3, 1, 2))


def reference_forward_f32(x_nchw, p, *, stride, equal_in_out):
    """PyTorch-faithful f32 reference (no BN folding, no bf16)."""
    x = jnp.transpose(x_nchw, (0, 2, 3, 1)).astype(jnp.float32)

    def bn_relu(v, g, b, m, var):
        return jnp.maximum((v - m) * lax.rsqrt(var + EPS) * g + b, 0.0)

    def conv3(v, w, s):
        return lax.conv_general_dilated(
            v, w, (s, s), ((1, 1), (1, 1)),
            dimension_numbers=("NHWC", "HWIO", "NHWC"),
            precision=lax.Precision.HIGHEST)

    a = bn_relu(x, p["bn1_g"], p["bn1_b"], p["bn1_m"], p["bn1_v"])
    out = bn_relu(conv3(a, p["conv1_w"], stride),
                  p["bn2_g"], p["bn2_b"], p["bn2_m"], p["bn2_v"])
    out = conv3(out, p["conv2_w"], 1)
    if equal_in_out:
        res = x
    else:
        res = jnp.einsum("nhwc,cd->nhwd", a[:, ::stride, ::stride, :],
                         p["convs_w"], precision=lax.Precision.HIGHEST)
    return jnp.transpose(res + out, (0, 3, 1, 2))


# ---------------------------------------------------------------------------
if __name__ == "__main__":
    key = jax.random.PRNGKey(0)

    # (name, N, C_in, C_out, H, W, stride) — covers projection & identity
    # residuals and both conv strategies (fused narrow / per-tap wide).
    configs = [
        ("narrow, projection shortcut", 2, 4, 8, 16, 16, 1),
        ("narrow, identity shortcut",   2, 8, 8, 16, 16, 1),
        ("wide (per-tap), identity",    2, 128, 128, 8, 8, 1),
        ("wide (per-tap), projection",  1, 128, 256, 8, 8, 1),
    ]
    for name, n, cin, cout, h, w, stride in configs:
        key, k_x, k_p = jax.random.split(key, 3)
        x = jax.random.normal(k_x, (n, cin, h, w), jnp.float32)
        params = init_params(k_p, cin, cout)
        equal = (cin == cout)

        y = jax.block_until_ready(
            basic_block_forward(x, params, stride=stride, equal_in_out=equal))
        oh = (h - 1) // stride + 1
        ow = (w - 1) // stride + 1
        assert y.shape == (n, cout, oh, ow), (name, y.shape)
        assert y.dtype == jnp.float32

        # Tight check vs a reference with identical bf16-at-the-MXU rounding.
        y_ref = reference_forward(x, params, stride=stride, equal_in_out=equal)
        if not bool(jnp.allclose(y, y_ref, atol=5e-3, rtol=5e-3)):
            raise AssertionError(
                f"{name}: mismatch vs bf16-mirrored reference, "
                f"max abs err = {float(jnp.max(jnp.abs(y - y_ref)))}")

        # Loose sanity check vs the PyTorch-faithful f32 reference (difference
        # is bounded by the bf16 rounding of the MXU operands).
        y_f32 = reference_forward_f32(x, params, stride=stride,
                                      equal_in_out=equal)
        if not bool(jnp.allclose(y, y_f32, atol=1e-1, rtol=1e-1)):
            raise AssertionError(
                f"{name}: mismatch vs f32 reference, "
                f"max abs err = {float(jnp.max(jnp.abs(y - y_f32)))}")

    print("KERNEL_OK")
</pallas_src>

<mosaic_0001>
module attributes {stable_mosaic.version = 11 : i64} {
  func.func @_basic_block_kernel(%arg0: i32, %arg1: memref<1x16x16x4xf32, #tpu.memory_space<vmem>>, %arg2: memref<1x4xf32, #tpu.memory_space<vmem>>, %arg3: memref<1x4xf32, #tpu.memory_space<vmem>>, %arg4: memref<36x8xbf16, #tpu.memory_space<vmem>>, %arg5: memref<1x8xf32, #tpu.memory_space<vmem>>, %arg6: memref<72x8xbf16, #tpu.memory_space<vmem>>, %arg7: memref<4x8xbf16, #tpu.memory_space<vmem>>, %arg8: memref<1x256x8xf32, #tpu.memory_space<vmem>>, %arg9: memref<18x32x4xbf16, #tpu.memory_space<vmem>>, %arg10: memref<18x32x8xbf16, #tpu.memory_space<vmem>>) attributes {dimension_semantics = [#tpu.dimension_semantics<parallel>], iteration_bounds = array<i64: 2>, scalar_prefetch = 0 : i64, scratch_operands = 2 : i64, tpu.core_type = #tpu.core_type<tc>, window_params = [{transform_indices = @transform_0, window_bounds = array<i64: 1, 16, 16, 4>}, {pipeline_mode = #tpu.pipeline_mode<synchronous>, transform_indices = @transform_1, window_bounds = array<i64: 1, 4>}, {pipeline_mode = #tpu.pipeline_mode<synchronous>, transform_indices = @transform_2, window_bounds = array<i64: 1, 4>}, {pipeline_mode = #tpu.pipeline_mode<synchronous>, transform_indices = @transform_3, window_bounds = array<i64: 36, 8>}, {pipeline_mode = #tpu.pipeline_mode<synchronous>, transform_indices = @transform_4, window_bounds = array<i64: 1, 8>}, {pipeline_mode = #tpu.pipeline_mode<synchronous>, transform_indices = @transform_5, window_bounds = array<i64: 72, 8>}, {pipeline_mode = #tpu.pipeline_mode<synchronous>, transform_indices = @transform_6, window_bounds = array<i64: 4, 8>}, {transform_indices = @transform_7, window_bounds = array<i64: 1, 256, 8>}]} {
    %c0 = arith.constant 0 : index
    %c0_0 = arith.constant 0 : index
    %c0_1 = arith.constant 0 : index
    %c0_2 = arith.constant 0 : index
    %0 = vector.load %arg1[%c0, %c0_0, %c0_1, %c0_2] : memref<1x16x16x4xf32, #tpu.memory_space<vmem>>, vector<1x16x16x4xf32>
    %1 = vector.shape_cast %0 : vector<1x16x16x4xf32> to vector<16x16x4xf32>
    %c0_3 = arith.constant 0 : index
    %c0_4 = arith.constant 0 : index
    %2 = vector.load %arg2[%c0_3, %c0_4] : memref<1x4xf32, #tpu.memory_space<vmem>>, vector<1x4xf32>
    %3 = vector.shape_cast %2 : vector<1x4xf32> to vector<1x1x4xf32>
    %4 = vector.broadcast %3 : vector<1x1x4xf32> to vector<16x16x4xf32>
    %5 = arith.mulf %1, %4 : vector<16x16x4xf32>
    %c0_5 = arith.constant 0 : index
    %c0_6 = arith.constant 0 : index
    %6 = vector.load %arg3[%c0_5, %c0_6] : memref<1x4xf32, #tpu.memory_space<vmem>>, vector<1x4xf32>
    %7 = vector.shape_cast %6 : vector<1x4xf32> to vector<1x1x4xf32>
    %8 = vector.broadcast %7 : vector<1x1x4xf32> to vector<16x16x4xf32>
    %9 = arith.addf %5, %8 : vector<16x16x4xf32>
    %cst = arith.constant 0.000000e+00 : f32
    %10 = vector.broadcast %cst : f32 to vector<16x16x4xf32>
    %11 = arith.maximumf %9, %10 : vector<16x16x4xf32>
    %12 = arith.truncf %11 : vector<16x16x4xf32> to vector<16x16x4xbf16>
    %cst_7 = arith.constant 0.000000e+00 : bf16
    %13 = vector.broadcast %cst_7 : bf16 to vector<1x32x4xbf16>
    %cst_8 = arith.constant 0.000000e+00 : bf16
    %14 = vector.broadcast %cst_8 : bf16 to vector<16x1x4xbf16>
    %c0_9 = arith.constant 0 : index
    %c0_10 = arith.constant 0 : index
    %c0_11 = arith.constant 0 : index
    %15 = vector.load %arg9[%c0_9, %c0_10, %c0_11] : memref<18x32x4xbf16, #tpu.memory_space<vmem>>, vector<1x32x4xbf16>
    tpu.vector_store %arg9[%c0_9, %c0_10, %c0_11], %13 {strides = array<i32>} : memref<18x32x4xbf16, #tpu.memory_space<vmem>>, vector<1x32x4xbf16>,
    %c17 = arith.constant 17 : index
    %c0_12 = arith.constant 0 : index
    %c0_13 = arith.constant 0 : index
    %16 = vector.load %arg9[%c17, %c0_12, %c0_13] : memref<18x32x4xbf16, #tpu.memory_space<vmem>>, vector<1x32x4xbf16>
    tpu.vector_store %arg9[%c17, %c0_12, %c0_13], %13 {strides = array<i32>} : memref<18x32x4xbf16, #tpu.memory_space<vmem>>, vector<1x32x4xbf16>,
    %c1 = arith.constant 1 : index
    %c7 = arith.constant 7 : index
    %c0_14 = arith.constant 0 : index
    %17 = vector.load %arg9[%c1, %c7, %c0_14] : memref<18x32x4xbf16, #tpu.memory_space<vmem>>, vector<16x1x4xbf16>
    tpu.vector_store %arg9[%c1, %c7, %c0_14], %14 {strides = array<i32>} : memref<18x32x4xbf16, #tpu.memory_space<vmem>>, vector<16x1x4xbf16>,
    %c1_15 = arith.constant 1 : index
    %c24 = arith.constant 24 : index
    %c0_16 = arith.constant 0 : index
    %18 = vector.load %arg9[%c1_15, %c24, %c0_16] : memref<18x32x4xbf16, #tpu.memory_space<vmem>>, vector<16x1x4xbf16>
    tpu.vector_store %arg9[%c1_15, %c24, %c0_16], %14 {strides = array<i32>} : memref<18x32x4xbf16, #tpu.memory_space<vmem>>, vector<16x1x4xbf16>,
    %c1_17 = arith.constant 1 : index
    %c8 = arith.constant 8 : index
    %c0_18 = arith.constant 0 : index
    %19 = vector.load %arg9[%c1_17, %c8, %c0_18] : memref<18x32x4xbf16, #tpu.memory_space<vmem>>, vector<16x16x4xbf16>
    tpu.vector_store %arg9[%c1_17, %c8, %c0_18], %12 {strides = array<i32>} : memref<18x32x4xbf16, #tpu.memory_space<vmem>>, vector<16x16x4xbf16>,
    %c0_19 = arith.constant 0 : index
    %c7_20 = arith.constant 7 : index
    %c0_21 = arith.constant 0 : index
    %20 = vector.load %arg9[%c0_19, %c7_20, %c0_21] : memref<18x32x4xbf16, #tpu.memory_space<vmem>>, vector<16x16x4xbf16>
    %21 = vector.shape_cast %20 : vector<16x16x4xbf16> to vector<256x4xbf16>
    %c0_22 = arith.constant 0 : index
    %c8_23 = arith.constant 8 : index
    %c0_24 = arith.constant 0 : index
    %22 = vector.load %arg9[%c0_22, %c8_23, %c0_24] : memref<18x32x4xbf16, #tpu.memory_space<vmem>>, vector<16x16x4xbf16>
    %23 = vector.shape_cast %22 : vector<16x16x4xbf16> to vector<256x4xbf16>
    %c0_25 = arith.constant 0 : index
    %c9 = arith.constant 9 : index
    %c0_26 = arith.constant 0 : index
    %24 = vector.load %arg9[%c0_25, %c9, %c0_26] : memref<18x32x4xbf16, #tpu.memory_space<vmem>>, vector<16x16x4xbf16>
    %25 = vector.shape_cast %24 : vector<16x16x4xbf16> to vector<256x4xbf16>
    %c1_27 = arith.constant 1 : index
    %c7_28 = arith.constant 7 : index
    %c0_29 = arith.constant 0 : index
    %26 = vector.load %arg9[%c1_27, %c7_28, %c0_29] : memref<18x32x4xbf16, #tpu.memory_space<vmem>>, vector<16x16x4xbf16>
    %27 = vector.shape_cast %26 : vector<16x16x4xbf16> to vector<256x4xbf16>
    %c1_30 = arith.constant 1 : index
    %c8_31 = arith.constant 8 : index
    %c0_32 = arith.constant 0 : index
    %28 = vector.load %arg9[%c1_30, %c8_31, %c0_32] : memref<18x32x4xbf16, #tpu.memory_space<vmem>>, vector<16x16x4xbf16>
    %29 = vector.shape_cast %28 : vector<16x16x4xbf16> to vector<256x4xbf16>
    %c1_33 = arith.constant 1 : index
    %c9_34 = arith.constant 9 : index
    %c0_35 = arith.constant 0 : index
    %30 = vector.load %arg9[%c1_33, %c9_34, %c0_35] : memref<18x32x4xbf16, #tpu.memory_space<vmem>>, vector<16x16x4xbf16>
    %31 = vector.shape_cast %30 : vector<16x16x4xbf16> to vector<256x4xbf16>
    %c2 = arith.constant 2 : index
    %c7_36 = arith.constant 7 : index
    %c0_37 = arith.constant 0 : index
    %32 = vector.load %arg9[%c2, %c7_36, %c0_37] : memref<18x32x4xbf16, #tpu.memory_space<vmem>>, vector<16x16x4xbf16>
    %33 = vector.shape_cast %32 : vector<16x16x4xbf16> to vector<256x4xbf16>
    %c2_38 = arith.constant 2 : index
    %c8_39 = arith.constant 8 : index
    %c0_40 = arith.constant 0 : index
    %34 = vector.load %arg9[%c2_38, %c8_39, %c0_40] : memref<18x32x4xbf16, #tpu.memory_space<vmem>>, vector<16x16x4xbf16>
    %35 = vector.shape_cast %34 : vector<16x16x4xbf16> to vector<256x4xbf16>
    %c2_41 = arith.constant 2 : index
    %c9_42 = arith.constant 9 : index
    %c0_43 = arith.constant 0 : index
    %36 = vector.load %arg9[%c2_41, %c9_42, %c0_43] : memref<18x32x4xbf16, #tpu.memory_space<vmem>>, vector<16x16x4xbf16>
    %37 = vector.shape_cast %36 : vector<16x16x4xbf16> to vector<256x4xbf16>
    %38 = tpu.concatenate %21, %23, %25, %27, %29, %31, %33, %35, %37 in 1 : vector<256x4xbf16>, vector<256x4xbf16>, vector<256x4xbf16>, vector<256x4xbf16>, vector<256x4xbf16>, vector<256x4xbf16>, vector<256x4xbf16>, vector<256x4xbf16>, vector<256x4xbf16> -> vector<256x36xbf16>
    %c0_44 = arith.constant 0 : index
    %c0_45 = arith.constant 0 : index
    %39 = vector.load %arg4[%c0_44, %c0_45] : memref<36x8xbf16, #tpu.memory_space<vmem>>, vector<36x8xbf16>
    %cst_46 = arith.constant dense<0.000000e+00> : vector<256x8xf32>
    %40 = tpu.matmul %38, %39, %cst_46 {dimension_numbers = #tpu.dot_dimension_numbers<[1], [0], [0], [1], [0, 0, 1, 1], [], []>} : vector<256x36xbf16>, vector<36x8xbf16>, vector<256x8xf32> -> vector<256x8xf32>
    %c0_47 = arith.constant 0 : index
    %c0_48 = arith.constant 0 : index
    %41 = vector.load %arg5[%c0_47, %c0_48] : memref<1x8xf32, #tpu.memory_space<vmem>>, vector<1x8xf32>
    %42 = vector.broadcast %41 : vector<1x8xf32> to vector<256x8xf32>
    %43 = arith.addf %40, %42 : vector<256x8xf32>
    %cst_49 = arith.constant 0.000000e+00 : f32
    %44 = vector.broadcast %cst_49 : f32 to vector<256x8xf32>
    %45 = arith.maximumf %43, %44 : vector<256x8xf32>
    %46 = arith.truncf %45 : vector<256x8xf32> to vector<256x8xbf16>
    %cst_50 = arith.constant 0.000000e+00 : bf16
    %47 = vector.broadcast %cst_50 : bf16 to vector<1x32x8xbf16>
    %cst_51 = arith.constant 0.000000e+00 : bf16
    %48 = vector.broadcast %cst_51 : bf16 to vector<16x1x8xbf16>
    %c0_52 = arith.constant 0 : index
    %c0_53 = arith.constant 0 : index
    %c0_54 = arith.constant 0 : index
    %49 = vector.load %arg10[%c0_52, %c0_53, %c0_54] : memref<18x32x8xbf16, #tpu.memory_space<vmem>>, vector<1x32x8xbf16>
    tpu.vector_store %arg10[%c0_52, %c0_53, %c0_54], %47 {strides = array<i32>} : memref<18x32x8xbf16, #tpu.memory_space<vmem>>, vector<1x32x8xbf16>,
    %c17_55 = arith.constant 17 : index
    %c0_56 = arith.constant 0 : index
    %c0_57 = arith.constant 0 : index
    %50 = vector.load %arg10[%c17_55, %c0_56, %c0_57] : memref<18x32x8xbf16, #tpu.memory_space<vmem>>, vector<1x32x8xbf16>
    tpu.vector_store %arg10[%c17_55, %c0_56, %c0_57], %47 {strides = array<i32>} : memref<18x32x8xbf16, #tpu.memory_space<vmem>>, vector<1x32x8xbf16>,
    %c1_58 = arith.constant 1 : index
    %c7_59 = arith.constant 7 : index
    %c0_60 = arith.constant 0 : index
    %51 = vector.load %arg10[%c1_58, %c7_59, %c0_60] : memref<18x32x8xbf16, #tpu.memory_space<vmem>>, vector<16x1x8xbf16>
    tpu.vector_store %arg10[%c1_58, %c7_59, %c0_60], %48 {strides = array<i32>} : memref<18x32x8xbf16, #tpu.memory_space<vmem>>, vector<16x1x8xbf16>,
    %c1_61 = arith.constant 1 : index
    %c24_62 = arith.constant 24 : index
    %c0_63 = arith.constant 0 : index
    %52 = vector.load %arg10[%c1_61, %c24_62, %c0_63] : memref<18x32x8xbf16, #tpu.memory_space<vmem>>, vector<16x1x8xbf16>
    tpu.vector_store %arg10[%c1_61, %c24_62, %c0_63], %48 {strides = array<i32>} : memref<18x32x8xbf16, #tpu.memory_space<vmem>>, vector<16x1x8xbf16>,
    %53 = vector.shape_cast %46 : vector<256x8xbf16> to vector<16x16x8xbf16>
    %c1_64 = arith.constant 1 : index
    %c8_65 = arith.constant 8 : index
    %c0_66 = arith.constant 0 : index
    %54 = vector.load %arg10[%c1_64, %c8_65, %c0_66] : memref<18x32x8xbf16, #tpu.memory_space<vmem>>, vector<16x16x8xbf16>
    tpu.vector_store %arg10[%c1_64, %c8_65, %c0_66], %53 {strides = array<i32>} : memref<18x32x8xbf16, #tpu.memory_space<vmem>>, vector<16x16x8xbf16>,
    %c0_67 = arith.constant 0 : index
    %c7_68 = arith.constant 7 : index
    %c0_69 = arith.constant 0 : index
    %55 = vector.load %arg10[%c0_67, %c7_68, %c0_69] : memref<18x32x8xbf16, #tpu.memory_space<vmem>>, vector<16x16x8xbf16>
    %56 = vector.shape_cast %55 : vector<16x16x8xbf16> to vector<256x8xbf16>
    %c0_70 = arith.constant 0 : index
    %c8_71 = arith.constant 8 : index
    %c0_72 = arith.constant 0 : index
    %57 = vector.load %arg10[%c0_70, %c8_71, %c0_72] : memref<18x32x8xbf16, #tpu.memory_space<vmem>>, vector<16x16x8xbf16>
    %58 = vector.shape_cast %57 : vector<16x16x8xbf16> to vector<256x8xbf16>
    %c0_73 = arith.constant 0 : index
    %c9_74 = arith.constant 9 : index
    %c0_75 = arith.constant 0 : index
    %59 = vector.load %arg10[%c0_73, %c9_74, %c0_75] : memref<18x32x8xbf16, #tpu.memory_space<vmem>>, vector<16x16x8xbf16>
    %60 = vector.shape_cast %59 : vector<16x16x8xbf16> to vector<256x8xbf16>
    %c1_76 = arith.constant 1 : index
    %c7_77 = arith.constant 7 : index
    %c0_78 = arith.constant 0 : index
    %61 = vector.load %arg10[%c1_76, %c7_77, %c0_78] : memref<18x32x8xbf16, #tpu.memory_space<vmem>>, vector<16x16x8xbf16>
    %62 = vector.shape_cast %61 : vector<16x16x8xbf16> to vector<256x8xbf16>
    %c1_79 = arith.constant 1 : index
    %c8_80 = arith.constant 8 : index
    %c0_81 = arith.constant 0 : index
    %63 = vector.load %arg10[%c1_79, %c8_80, %c0_81] : memref<18x32x8xbf16, #tpu.memory_space<vmem>>, vector<16x16x8xbf16>
    %64 = vector.shape_cast %63 : vector<16x16x8xbf16> to vector<256x8xbf16>
    %c1_82 = arith.constant 1 : index
    %c9_83 = arith.constant 9 : index
    %c0_84 = arith.constant 0 : index
    %65 = vector.load %arg10[%c1_82, %c9_83, %c0_84] : memref<18x32x8xbf16, #tpu.memory_space<vmem>>, vector<16x16x8xbf16>
    %66 = vector.shape_cast %65 : vector<16x16x8xbf16> to vector<256x8xbf16>
    %c2_85 = arith.constant 2 : index
    %c7_86 = arith.constant 7 : index
    %c0_87 = arith.constant 0 : index
    %67 = vector.load %arg10[%c2_85, %c7_86, %c0_87] : memref<18x32x8xbf16, #tpu.memory_space<vmem>>, vector<16x16x8xbf16>
    %68 = vector.shape_cast %67 : vector<16x16x8xbf16> to vector<256x8xbf16>
    %c2_88 = arith.constant 2 : index
    %c8_89 = arith.constant 8 : index
    %c0_90 = arith.constant 0 : index
    %69 = vector.load %arg10[%c2_88, %c8_89, %c0_90] : memref<18x32x8xbf16, #tpu.memory_space<vmem>>, vector<16x16x8xbf16>
    %70 = vector.shape_cast %69 : vector<16x16x8xbf16> to vector<256x8xbf16>
    %c2_91 = arith.constant 2 : index
    %c9_92 = arith.constant 9 : index
    %c0_93 = arith.constant 0 : index
    %71 = vector.load %arg10[%c2_91, %c9_92, %c0_93] : memref<18x32x8xbf16, #tpu.memory_space<vmem>>, vector<16x16x8xbf16>
    %72 = vector.shape_cast %71 : vector<16x16x8xbf16> to vector<256x8xbf16>
    %73 = tpu.concatenate %56, %58, %60, %62, %64, %66, %68, %70, %72 in 1 : vector<256x8xbf16>, vector<256x8xbf16>, vector<256x8xbf16>, vector<256x8xbf16>, vector<256x8xbf16>, vector<256x8xbf16>, vector<256x8xbf16>, vector<256x8xbf16>, vector<256x8xbf16> -> vector<256x72xbf16>
    %c0_94 = arith.constant 0 : index
    %c0_95 = arith.constant 0 : index
    %74 = vector.load %arg6[%c0_94, %c0_95] : memref<72x8xbf16, #tpu.memory_space<vmem>>, vector<72x8xbf16>
    %cst_96 = arith.constant dense<0.000000e+00> : vector<256x8xf32>
    %75 = tpu.matmul %73, %74, %cst_96 {dimension_numbers = #tpu.dot_dimension_numbers<[1], [0], [0], [1], [0, 0, 1, 1], [], []>} : vector<256x72xbf16>, vector<72x8xbf16>, vector<256x8xf32> -> vector<256x8xf32>
    %c0_97 = arith.constant 0 : index
    %c0_98 = arith.constant 0 : index
    %76 = vector.load %arg7[%c0_97, %c0_98] : memref<4x8xbf16, #tpu.memory_space<vmem>>, vector<4x8xbf16>
    %cst_99 = arith.constant dense<0.000000e+00> : vector<256x8xf32>
    %77 = tpu.matmul %29, %76, %cst_99 {dimension_numbers = #tpu.dot_dimension_numbers<[1], [0], [0], [1], [0, 0, 1, 1], [], []>} : vector<256x4xbf16>, vector<4x8xbf16>, vector<256x8xf32> -> vector<256x8xf32>
    %78 = arith.addf %75, %77 : vector<256x8xf32>
    %c0_100 = arith.constant 0 : index
    %c0_101 = arith.constant 0 : index
    %c0_102 = arith.constant 0 : index
    %79 = vector.load %arg8[%c0_100, %c0_101, %c0_102] : memref<1x256x8xf32, #tpu.memory_space<vmem>>, vector<1x256x8xf32>
    %80 = vector.shape_cast %79 : vector<1x256x8xf32> to vector<256x8xf32>
    %81 = vector.shape_cast %78 : vector<256x8xf32> to vector<1x256x8xf32>
    tpu.vector_store %arg8[%c0_100, %c0_101, %c0_102], %81 {strides = array<i32>} : memref<1x256x8xf32, #tpu.memory_space<vmem>>, vector<1x256x8xf32>,
    return
  }
  func.func @transform_0(%arg0: i32) -> (i32, i32, i32, i32) {
    %c0_i32 = arith.constant 0 : i32
    %c0_i32_0 = arith.constant 0 : i32
    %c0_i32_1 = arith.constant 0 : i32
    %c0_i32_2 = arith.constant 0 : i32
    return %arg0, %c0_i32, %c0_i32_0, %c0_i32_1 : i32, i32, i32, i32
  }
  func.func @transform_1(%arg0: i32) -> (i32, i32) {
    %c0_i32 = arith.constant 0 : i32
    %c0_i32_0 = arith.constant 0 : i32
    %c0_i32_1 = arith.constant 0 : i32
    return %c0_i32, %c0_i32_0 : i32, i32
  }
  func.func @transform_2(%arg0: i32) -> (i32, i32) {
    %c0_i32 = arith.constant 0 : i32
    %c0_i32_0 = arith.constant 0 : i32
    %c0_i32_1 = arith.constant 0 : i32
    return %c0_i32, %c0_i32_0 : i32, i32
  }
  func.func @transform_3(%arg0: i32) -> (i32, i32) {
    %c0_i32 = arith.constant 0 : i32
    %c0_i32_0 = arith.constant 0 : i32
    %c0_i32_1 = arith.constant 0 : i32
    return %c0_i32, %c0_i32_0 : i32, i32
  }
  func.func @transform_4(%arg0: i32) -> (i32, i32) {
    %c0_i32 = arith.constant 0 : i32
    %c0_i32_0 = arith.constant 0 : i32
    %c0_i32_1 = arith.constant 0 : i32
    return %c0_i32, %c0_i32_0 : i32, i32
  }
  func.func @transform_5(%arg0: i32) -> (i32, i32) {
    %c0_i32 = arith.constant 0 : i32
    %c0_i32_0 = arith.constant 0 : i32
    %c0_i32_1 = arith.constant 0 : i32
    return %c0_i32, %c0_i32_0 : i32, i32
  }
  func.func @transform_6(%arg0: i32) -> (i32, i32) {
    %c0_i32 = arith.constant 0 : i32
    %c0_i32_0 = arith.constant 0 : i32
    %c0_i32_1 = arith.constant 0 : i32
    return %c0_i32, %c0_i32_0 : i32, i32
  }
  func.func @transform_7(%arg0: i32) -> (i32, i32, i32) {
    %c0_i32 = arith.constant 0 : i32
    %c0_i32_0 = arith.constant 0 : i32
    %c0_i32_1 = arith.constant 0 : i32
    return %arg0, %c0_i32, %c0_i32_0 : i32, i32, i32
  }
}

</mosaic_0001>

<bundles_post_ra>
// kernel: basic_block_forward.1
= control target key start
LH: loop header
LB: loop body
LE: loop exit
PB: predicated region body
PF: predicated region fallthrough
CT: control target
= control target key end

     0   :  { %s8665_s24 = smov 0   ;;  %s13897_s0 = inlined_call_operand.vmem [shape: f32[2,16,16,4], index: 0, kind: input, shape index: {}]   ;;  %s13898_s1 = inlined_call_operand.vmem [shape: f32[1,4], index: 1, kind: input, shape index: {}]   ;;  %s13899_s2 = inlined_call_operand.vmem [shape: f32[1,4], index: 2, kind: input, shape index: {}]   ;;  %s13900_s3 = inlined_call_operand.vmem [shape: bf16[36,8], index: 3, kind: input, shape index: {}]   ;;  %s13901_s4 = inlined_call_operand.vmem [shape: f32[1,8], index: 4, kind: input, shape index: {}]   ;;  %s13902_s5 = inlined_call_operand.vmem [shape: bf16[72,8], index: 5, kind: input, shape index: {}]   ;;  %s13903_s6 = inlined_call_operand.vmem [shape: bf16[4,8], index: 6, kind: input, shape index: {}]   ;;  %s13904_s7 = inlined_call_operand.vmem [shape: f32[2,256,8], index: 7, kind: output, shape index: {}]  }
   0x1 LB: > { %s7728_s25 = sadd.s32 4294967295, %s8610_s24   ;;  %p7732_p0 = scmp.ge.s32.totalorder %s8610_s24, 1  ;;  %s8610_s24 = sphi %s8665_s24, %s17_s24  }
   0x2   : > { %p237_p1 = scmp.lt.s32.totalorder %s8610_s24, 3 }
   0x4   : > { %p238_p2 = pnand %p7732_p0, %p237_p1 }
   0x6   : > { %241 = sbr.rel (%p238_p2) target bundleno = 1171 (0x493), region = 48 }
   0xb   : > { %vm438_vm0 = vcmask 27648   ;;  %v13905_v0 = vmov 0   ;;  %p269_p3 = scmp.lt.s32.totalorder %s7728_s25, 1  ;;  %vm449_vm1 = vcmask 27651   ;;  %vm450_vm2 = vsmask.f32 7950 }
   0xc   : > { %440 = vst.msk [vmem:[#allocation2 + $0x4] sm:$0xf] %vm438_vm0, %v13905_v0  ;;  %441 = vst.msk [vmem:[#allocation2 + $0x8] sm:$0xf] %vm438_vm0, %v13905_v0  ;;  %v14082_v1 = vmov 0  ;;  %vm500_vm7 = vcmask 24576  }
   0xd   : > { %439 = vst.msk [vmem:[#allocation2] sm:$0xf] %vm438_vm0, %v13905_v0  ;;  %442 = vst.msk [vmem:[#allocation2 + $0xc] sm:$0xf] %vm438_vm0, %v13905_v0  ;;  %s14565_s25 = smov (!%p269_p3, %s7728_s25), 1  ;;  %v14087_v10 = vmov 0 }
   0xe   : > { %444 = vst.msk [vmem:[#allocation2 + $0x110] sm:$0xf] %vm438_vm0, %v13905_v0  ;;  %445 = vst.msk [vmem:[#allocation2 + $0x114] sm:$0xf] %vm438_vm0, %v13905_v0  ;;  %v452_v2 = vld [vmem:[#allocation2 + $0x10] sm:$0x8] }
   0xf   : > { %446 = vst.msk [vmem:[#allocation2 + $0x118] sm:$0xf] %vm438_vm0, %v13905_v0  ;;  %447 = vst.msk [vmem:[#allocation2 + $0x11c] sm:$0xf] %vm438_vm0, %v13905_v0  ;;  %vm501_vm4 = vsmask.f32 256 }
  0x10   : > { %vm8692_vm3 = vmand %vm449_vm1, %vm450_vm2  ;;  %vm1113_vm5 = vsmask.f32 3328  ;;  %vm1114_vm6 = vsmask.f32 7440  ;;  %v8699_v3 = vld [vmem:[%s13898_s1] ss:$0 sm:$0xff] }
  0x11   : > { %v14083_v1 = vsel %vm8692_vm3, 4294967295, %v14082_v1  ;;  %14085 = vst [vmem:[#allocation5_spill] sm:$0xff] %v8699_v3  ;;  %v453_v4 = vsel %vm8692_vm3, 0, %v452_v2  ;;  %v455_v5 = vld [vmem:[#allocation2 + $0x20] sm:$0x8]  ;;  %s8246_s28 = sshll.u32 %s14565_s25, 8  ;;  %vm8721_vm8 = vmand %vm500_vm7, %vm501_vm4 }
  0x12   : > { %14084 = vst [vmem:[#allocation4_spill] sm:$0xff] %v14083_v1  ;;  %v8707_v6 = vld [vmem:[%s13899_s2] ss:$0 sm:$0xff]  ;;  %454 = vst [vmem:[#allocation2 + $0x10] sm:$0x8] %v453_v4  ;;  %v456_v7 = vsel %vm8692_vm3, 0, %v455_v5  ;;  %s8716_s10 = scalar_lea.vmem %s13897_s0, %s8246_s28 }
  0x13   : > { %14086 = vst [vmem:[#allocation6_spill] sm:$0xff] %v8707_v6  ;;  %v458_v8 = vld [vmem:[#allocation2 + $0x30] sm:$0x8]  ;;  %457 = vst [vmem:[#allocation2 + $0x20] sm:$0x8] %v456_v7  ;;  %v14088_v10 = vsel %vm8721_vm8, 4294967295, %v14087_v10 }
  0x14   : > { %v459_v9 = vsel %vm8692_vm3, 0, %v458_v8  ;;  %14089 = vst [vmem:[#allocation7_spill] sm:$0xff] %v14088_v10  ;;  %v503_v11 = vld [vmem:[#allocation2 + $0x1c] sm:$0x1]  ;;  %v506_v12 = vld [vmem:[#allocation2 + $0x2c] sm:$0x1]  ;;  %vm8752_vm9 = vmor %vm1113_vm5, %vm1114_vm6 }
  0x15   : > { %v282_v13 = vld [vmem:[%s8716_s10 + $0x10] sm:$0xff]  ;;  %v283_v14 = vld [vmem:[%s8716_s10 + $0x18] sm:$0xff]  ;;  %v280_v15 = vld [vmem:[%s8716_s10] sm:$0xff]  ;;  %460 = vst [vmem:[#allocation2 + $0x30] sm:$0x8] %v459_v9  ;;  %v504_v16 = vsel %vm8721_vm8, 0, %v503_v11 }
  0x16   : > { %v507_v17 = vsel %vm8721_vm8, 0, %v506_v12  ;;  %v696_v18 = vld [vmem:[#allocation2 + $0x4] sm:$0xf]  ;;  %v697_v19 = vld [vmem:[#allocation2 + $0x8] sm:$0xf]  ;;  %v321_v21 = vmul.f32 %v8699_v3, %v282_v13  ;;  %v322_v22 = vmul.f32 %v8699_v3, %v283_v14  ;;  %v319_v23 = vmul.f32 %v8699_v3, %v280_v15  ;;  %s8613_s11 = smov 4  }
  0x17   : > { %v1097_v20 = vld [vmem:[#allocation2 + $0xc] sm:$0x1]  ;;  %505 = vst [vmem:[#allocation2 + $0x1c] sm:$0x1] %v504_v16  ;;  %508 = vst [vmem:[#allocation2 + $0x2c] sm:$0x1] %v507_v17  ;;  %v7835_v26 = vcombine.low %v696_v18, %v697_v19 }
  0x18   : > { %v760_v24 = vshrl.u32 %v697_v19, 16  ;;  %v763_v25 = vshll.u32 %v697_v19, 16  ;;  %v751_v27 = vshrl.u32 %v696_v18, 16  ;;  %v754_v28 = vshll.u32 %v696_v18, 16  ;;  %v281_v36 = vld [vmem:[%s8716_s10 + $0x8] sm:$0xff]  ;;  %v284_v41 = vld [vmem:[%s8716_s10 + $0x20] sm:$0xff] }
  0x19   : > { %v1126_v29 = vshll.u32 %v1097_v20, 16  ;;  %v360_v30 = vadd.f32 %v8707_v6, %v321_v21  ;;  %v361_v31 = vadd.f32 %v8707_v6, %v322_v22  ;;  %2749 = vrot.lane.b32.xlu0 %v7835_v26, %s8613_s11  ;;  %v285_v42 = vld [vmem:[%s8716_s10 + $0x28] sm:$0xff]  ;;  %v1340_v47 = vld [vmem:[#allocation2 + $0x10] sm:$0x8]  ;;  %v320_v51 = vmul.f32 %v8699_v3, %v281_v36  ;;  %v509_v8 = vld [vmem:[#allocation2 + $0x3c] sm:$0x1] }
  0x1a   : > { %v762_v32 = vrot.slane %v760_v24, 7  ;;  %v1122_v33 = vrot.slane %v760_v24, 4  ;;  %v8738_v34 = vrot.slane %v751_v27, 7  ;;  %v1116_v35 = vrot.slane %v751_v27, 4  ;;  %v1343_v52 = vld [vmem:[#allocation2 + $0x20] sm:$0x8] }
  0x1b   : > { %v1117_v37 = vrot.slane %v754_v28, 5  ;;  %v1120_v38 = vrot.slane %v763_v25, 5  ;;  %v1128_v39 = vrot.slane %v1126_v29, 5  ;;  %v392_v40 = vmax.f32 %v360_v30, 0.0  ;;  %v1981_v5 = vld [vmem:[#allocation2 + $0x20] sm:$0x8] }
  0x1c   : > { %14090 = vst [vmem:[#allocation8_spill] sm:$0xff] %v8738_v34  ;;  %v8743_v43 = vor.u32 %v763_v25, %v762_v32  ;;  %v8746_v44 = vor.u32 %v754_v28, %v8738_v34  ;;  %v393_v46 = vmax.f32 %v361_v31, 0.0  ;;  %v358_v55 = vadd.f32 %v8707_v6, %v319_v23  ;;  %v1984_v7 = vld [vmem:[#allocation2 + $0x30] sm:$0x8]  ;;  %v287_v26 = vld [vmem:[%s8716_s10 + $0x38] sm:$0xff]  ;;  %v288_v27 = vld [vmem:[%s8716_s10 + $0x40] sm:$0xff] }
  0x1d   : > { %v1118_v48 = vor.u32 %v1117_v37, %v1116_v35  ;;  %v1123_v49 = vor.u32 %v1122_v33, %v1120_v38  ;;  %v8250_v50 = vpack.c.bf16 %v392_v40, %v392_v40  ;;  %v323_v56 = vmul.f32 %v8699_v3, %v284_v41  ;;  %v286_v21 = vld [vmem:[%s8716_s10 + $0x30] sm:$0xff]  ;;  %v289_v28 = vld [vmem:[%s8716_s10 + $0x48] sm:$0xff]  ;;  %s8614_s12 = smov 8   ;;  %v291_v35 = vld [vmem:[%s8716_s10 + $0x58] sm:$0xff]  ;;  %s8615_s13 = smov 16  }
  0x1e   : > { %14091 = vst [vmem:[#allocation9_spill] sm:$0xff] %v8743_v43  ;;  %14092 = vst [vmem:[#allocation10_spill] sm:$0xff] %v8746_v44  ;;  %v8251_v54 = vpack.c.bf16 %v393_v46, %v393_v46  ;;  %v324_v57 = vmul.f32 %v8699_v3, %v285_v42  ;;  %v359_v60 = vadd.f32 %v8707_v6, %v320_v51  ;;  %v1389_v61 = vshrl.u32 %v1340_v47, 16  ;;  %v8770_v14 = vld [vmem:[#allocation2 + $0x1c] sm:$0x1]  ;;  %v290_v33 = vld [vmem:[%s8716_s10 + $0x50] sm:$0xff] }
  0x1f   : > { %v1119_v58 = vrot.slane %v1118_v48, 4  ;;  %v1124_v59 = vrot.slane %v1123_v49, 4  ;;  %665 = vst.msk [vmem:[#allocation2 + $0x24] sm:$0xf] %vm438_vm0, %v8250_v50  ;;  %v390_v62 = vmax.f32 %v358_v55, 0.0  ;;  %v362_v63 = vadd.f32 %v8707_v6, %v323_v56  ;;  %s8616_s14 = smov 28  }
  0x20   : > { %666 = vst.msk [vmem:[#allocation2 + $0x28] sm:$0xf] %vm438_vm0, %v8251_v54  ;;  %v363_v2 = vadd.f32 %v8707_v6, %v324_v57  ;;  %v1411_v4 = vshrl.u32 %v1343_v52, 16  ;;  %v391_v12 = vmax.f32 %v359_v60, 0.0  ;;  %v8768_v13 = vrot.slane %v1389_v61, 11  ;;  %s8617_s15 = smov 12  }
  0x21   : > { %v1121_v9 = vsel %vm8752_vm9, %v1119_v58, %v1120_v38  ;;  %v1129_v11 = vsel %vm8752_vm9, %v1124_v59, %v1128_v39  ;;  %v8772_v15 = vld [vmem:[#allocation2 + $0x2c] sm:$0x1]  ;;  %v8248_v17 = vpack.c.bf16 %v390_v62, %v390_v62  ;;  %v394_v18 = vmax.f32 %v362_v63, 0.0  ;;  %v8774_v20 = vld [vmem:[#allocation2 + $0x1c] sm:$0x1]  ;;  %s8618_s16 = smov 24  }
  0x22   : > { %v7851_v16 = vcombine.low %v1121_v9, %v1129_v11  ;;  %v395_v19 = vmax.f32 %v363_v2, 0.0  ;;  %v8249_v22 = vpack.c.bf16 %v391_v12, %v391_v12  ;;  %v8777_v23 = vrot.slane %v1411_v4, 11  ;;  %s8619_s17 = smov 20   ;;  %s8620_s18 = smov 32  }
  0x23   : > { %v2030_v24 = vshrl.u32 %v1981_v5, 16  ;;  %v2052_v25 = vshrl.u32 %v1984_v7, 16  ;;  %663 = vst.msk [vmem:[#allocation2 + $0x14] sm:$0xf] %vm438_vm0, %v8248_v17  ;;  %v8252_v29 = vpack.c.bf16 %v394_v18, %v394_v18  ;;  %v510_v39 = vsel %vm8721_vm8, 0, %v509_v8  ;;  %s8624_s26 = smov 40  }
  0x24   : > { %2829 = vrot.lane.b32.xlu1 %v7851_v16, %s8614_s12  ;;  %v8253_v30 = vpack.c.bf16 %v395_v19, %v395_v19  ;;  %664 = vst.msk [vmem:[#allocation2 + $0x18] sm:$0xf] %vm438_vm0, %v8249_v22  ;;  %511 = vst [vmem:[#allocation2 + $0x3c] sm:$0x1] %v510_v39  ;;  %v8803_v46 = vmul.f32 %v8699_v3, %v286_v21  ;;  %v8806_v47 = vmul.f32 %v8699_v3, %v287_v26  ;;  %vm743_vm10 = vsmask.f32 4368 }
  0x25   : > { %v8789_v36 = vrot.slane %v2030_v24, 11  ;;  %v8791_v37 = vrot.slane %v2052_v25, 11  ;;  %667 = vst.msk [vmem:[#allocation2 + $0x34] sm:$0xf] %vm438_vm0, %v8252_v29  ;;  %v8809_v48 = vmul.f32 %v8699_v3, %v288_v27  ;;  %v8812_v49 = vmul.f32 %v8699_v3, %v289_v28  ;;  %vm8952_vm11 = vmor %vm501_vm4, %vm743_vm10 }
  0x26   : > { %v1344_v40 = vld [vmem:[#allocation2 + $0x24] sm:$0xf]  ;;  %668 = vst.msk [vmem:[#allocation2 + $0x38] sm:$0xf] %vm438_vm0, %v8253_v30  ;;  %14095 = vst [vmem:[#allocation11_spill] sm:$0xff] %v8806_v47  ;;  %v8819_v55 = vmul.f32 %v8699_v3, %v290_v33  ;;  %v8822_v56 = vmul.f32 %v8699_v3, %v291_v35  ;;  %vm3405_vm12 = vcmask 31744  }
  0x27   : > { %v8798_v41 = vld [vmem:[#allocation2 + $0x24] sm:$0xf]  ;;  %14096 = vst [vmem:[#allocation12_spill] sm:$0xff] %v8809_v48  ;;  %14097 = vst [vmem:[#allocation13_spill] sm:$0xff] %v8812_v49  ;;  %v8814_v50 = vld [vmem:[#allocation2 + $0x28] sm:$0xf] }
  0x28   : > { %v8800_v42 = vld [vmem:[#allocation2 + $0x24] sm:$0xf]  ;;  %v1416_v51 = vshrl.u32 %v1344_v40, 16  ;;  %v1419_v52 = vshll.u32 %v1344_v40, 16  ;;  %v8816_v54 = vld [vmem:[#allocation2 + $0x28] sm:$0xf]  ;;  %v8827_v59 = vcombine.low %v1344_v40, %v8814_v50 }
  0x29   : > { %14098 = vst [vmem:[#allocation14_spill] sm:$0xff] %v8819_v55  ;;  %14099 = vst [vmem:[#allocation15_spill] sm:$0xff] %v8822_v56  ;;  %v1425_v57 = vshrl.u32 %v8814_v50, 16  ;;  %v804_v60 = vshrl.u32 %v8816_v54, 16  ;;  %v8830_v61 = vld [vmem:[#allocation2 + $0x28] sm:$0xf] }
  0x2a   : > { %14100 = vst [vmem:[#allocation16_spill] sm:$0xff] %v8827_v59  ;;  %v8832_v62 = vrot.slane %v1416_v51, 7  ;;  %v8834_v63 = vrot.slane %v1416_v51, 4  ;;  %v8836_v2 = vrot.slane %v1419_v52, 5  ;;  %v13907_v4 = vshll.u32 %v8816_v54, 16  ;;  %3023 = vrot.lane.b32.xlu1 %v8827_v59, %s8615_s13 }
  0x2b   : > { %v8839_v5 = vrot.slane %v1425_v57, 7  ;;  %v8841_v7 = vrot.slane %v1425_v57, 4  ;;  %v806_v8 = vrot.slane %v804_v60, 7  ;;  %v8845_v9 = vrot.slane %v804_v60, 4  ;;  %v699_v11 = vld [vmem:[#allocation2 + $0x14] sm:$0xf] }
  0x2c   : > { %v8847_v12 = vld [vmem:[#allocation2 + $0x14] sm:$0xf]  ;;  %v795_v17 = vshrl.u32 %v8798_v41, 16  ;;  %v798_v18 = vshll.u32 %v8798_v41, 16  ;;  %v7931_v19 = vcombine.low %v8800_v42, %v8830_v61  ;;  %v8855_v21 = vld [vmem:[#allocation2 + $0x18] sm:$0xf]  ;;  %v8864_v27 = vor.u32 %v1419_v52, %v8832_v62 }
  0x2d   : > { %v773_v22 = vshrl.u32 %v699_v11, 16  ;;  %v776_v24 = vshll.u32 %v699_v11, 16  ;;  %v8857_v25 = vld [vmem:[#allocation2 + $0x18] sm:$0xf]  ;;  %v8861_v26 = vor.u32 %v13907_v4, %v806_v8  ;;  %v782_v28 = vshrl.u32 %v8855_v21, 16 }
  0x2e   : > { %v13908_v29 = vshll.u32 %v8855_v21, 16  ;;  %v7836_v30 = vcombine.low %v699_v11, %v8855_v21  ;;  %v8869_v33 = vld [vmem:[#allocation2 + $0x34] sm:$0xf]  ;;  %v8873_v35 = vcombine.low %v8847_v12, %v8857_v25  ;;  %v8881_v52 = vld [vmem:[#allocation2 + $0x38] sm:$0xf]  ;;  %v1394_v58 = vshrl.u32 %v8847_v12, 16 }
  0x2f   : > { %14101 = vst [vmem:[#allocation17_spill] sm:$0xff] %v8861_v26  ;;  %v8875_v39 = vrot.slane %v773_v22, 7  ;;  %v8877_v40 = vrot.slane %v773_v22, 4  ;;  %v8879_v51 = vrot.slane %v776_v24, 5  ;;  %v2057_v57 = vshrl.u32 %v8869_v33, 16 }
  0x30   : > { %14102 = vst [vmem:[#allocation18_spill] sm:$0xff] %v8873_v35  ;;  %v784_v60 = vrot.slane %v782_v28, 7  ;;  %v8884_v8 = vrot.slane %v782_v28, 4  ;;  %2751 = vrot.lane.b32.xlu0 %v7836_v30, %s8613_s11  ;;  %v13909_v11 = vshll.u32 %v8869_v33, 16  ;;  %v2066_v0 = vshrl.u32 %v8881_v52, 16 }
  0x31   : > { %14103 = vst [vmem:[#allocation19_spill] sm:$0xff] %v8875_v39  ;;  %v8890_v45 = vor.u32 %v776_v24, %v8875_v39  ;;  %v8892_v22 = vrot.slane %v2057_v57, 7  ;;  %v8895_v38 = vrot.slane %v2057_v57, 4  ;;  %v7932_v24 = vcombine.low %v8869_v33, %v8881_v52  ;;  %v8931_v39 = vld [vmem:[#allocation2 + $0x38] sm:$0xf] }
  0x32   : > { %v8899_v32 = vor.u32 %v13908_v29, %v784_v60  ;;  %v8901_v28 = vrot.slane %v2066_v0, 7  ;;  %v8905_v30 = vrot.slane %v13909_v11, 5  ;;  %v8907_v31 = vrot.slane %v2066_v0, 4 }
  0x33   : > { %14104 = vst [vmem:[#allocation20_spill] sm:$0xff] %v8890_v45  ;;  %v1397_v57 = vshll.u32 %v8847_v12, 16  ;;  %v1403_v4 = vshrl.u32 %v8857_v25, 16  ;;  %v8917_v29 = vrot.slane %v795_v17, 7  ;;  %v8919_v11 = vrot.slane %v795_v17, 4  ;;  %3295 = vrot.lane.b32.xlu1 %v7932_v24, %s8616_s14 }
  0x34   : > { %14105 = vst [vmem:[#allocation21_spill] sm:$0xff] %v8899_v32  ;;  %3021 = vrot.lane.b32.xlu0 %v8873_v35, %s8615_s13  ;;  %v8921_v0 = vrot.slane %v798_v18, 5  ;;  %v1396_v16 = vrot.slane %v1394_v58, 7  ;;  %v1756_v26 = vrot.slane %v1394_v58, 4  ;;  %v705_v32 = vld [vmem:[#allocation2 + $0x34] sm:$0xf]  ;;  %v1422_v47 = vsel %vm8952_vm11, %v8777_v23, %v8864_v27 }
  0x35   : > { %14106 = vst [vmem:[#allocation22_spill] sm:$0xff] %v8917_v29  ;;  %v1405_v59 = vrot.slane %v1403_v4, 7  ;;  %v1757_v12 = vrot.slane %v1397_v57, 5  ;;  %v8924_v45 = vrot.slane %v1403_v4, 4  ;;  %v8927_v60 = vor.u32 %v798_v18, %v8917_v29 }
  0x36   : > { %v2035_v35 = vshrl.u32 %v8800_v42, 16  ;;  %v2038_v17 = vshll.u32 %v8800_v42, 16  ;;  %v2044_v44 = vshrl.u32 %v8830_v61, 16  ;;  %v2047_v24 = vshll.u32 %v8830_v61, 16 }
  0x37   : > { %14107 = vst [vmem:[#allocation23_spill] sm:$0xff] %v8927_v60  ;;  %v817_v34 = vshrl.u32 %v705_v32, 16  ;;  %v820_v43 = vshll.u32 %v705_v32, 16  ;;  %v826_v4 = vshrl.u32 %v8931_v39, 16  ;;  %v14108_v18 = vcombine.low %v8798_v41, %v8816_v54 }
  0x38   : > { %v2037_v58 = vrot.slane %v2035_v35, 7  ;;  %v2397_v3 = vrot.slane %v2035_v35, 4  ;;  %v2398_v56 = vrot.slane %v2038_v17, 5  ;;  %3293 = vrot.lane.b32.xlu0 %v7931_v19, %s8616_s14  ;;  %v2046_v42 = vrot.slane %v2044_v44, 7 }
  0x39   : > { %2753 = vrot.lane.b32.xlu1 %v14108_v18, %s8613_s11  ;;  %v2403_v60 = vrot.slane %v2044_v44, 4  ;;  %v8941_v29 = vrot.slane %v817_v34, 7  ;;  %v828_v55 = vrot.slane %v826_v4, 7  ;;  %v8944_v49 = vrot.slane %v817_v34, 4 }
  0x3a   : > { %v8946_v35 = vrot.slane %v820_v43, 5  ;;  %v8948_v48 = vrot.slane %v826_v4, 4  ;;  %v7838_v44 = vcombine.low %v705_v32, %v8931_v39  ;;  %v1399_v18 = vor.u32 %v1397_v57, %v1396_v16 }
  0x3b   : > { %v8957_v41 = vor.u32 %v820_v43, %v8941_v29  ;;  %v1401_v61 = vrot.slane %v1396_v16, 4  ;;  %v14111_v34 = vshll.u32 %v8931_v39, 16  ;;  %v14112_v4 = vshll.u32 %v8857_v25, 16 }
  0x3c   : > { %v1423_v6 = vrot.slane %v8832_v62, 4  ;;  %v1400_v43 = vsel %vm8952_vm11, %v8768_v13, %v1399_v18  ;;  %v14113_v32 = vshll.u32 %v8814_v50, 16  ;;  %v2040_v16 = vor.u32 %v2038_v17, %v2037_v58 }
  0x3d   : > { %v8962_v10 = vor.u32 %v14111_v34, %v828_v55  ;;  %v1408_v1 = vor.u32 %v14112_v4, %v1405_v59  ;;  %2755 = vrot.lane.b32.xlu1 %v7838_v44, %s8613_s11  ;;  %v2042_v57 = vrot.slane %v2037_v58, 4  ;;  %v2049_v34 = vor.u32 %v2047_v24, %v2046_v42 }
  0x3e   : > { %v1430_v55 = vor.u32 %v14113_v32, %v8839_v5  ;;  %v14114_v23 = vshll.u32 %v8869_v33, 16  ;;  %v2064_v27 = vrot.slane %v8892_v22, 4  ;;  %v2041_v5 = vsel %vm8952_vm11, %v8789_v36, %v2040_v16 }
  0x3f   : > { %v1409_v59 = vsel %vm8952_vm11, %v1401_v61, %v1408_v1  ;;  %v14115_v17 = vshll.u32 %v8881_v52, 16  ;;  %v2050_v42 = vsel %vm8952_vm11, %v2042_v57, %v2049_v34  ;;  %v14116_v61 = vmov %v14112_v4 }
  0x40   : > { %v2062_v62 = vor.u32 %v14114_v23, %v8892_v22  ;;  %v7867_v44 = vcombine.low %v1400_v43, %v1409_v59  ;;  %v1431_v13 = vsel %vm8952_vm11, %v1423_v6, %v1430_v55  ;;  %v1758_v22 = vor.u32 %v1757_v12, %v1756_v26  ;;  %v2382_v59 = vld [vmem:[#allocation2 + $0x3c] sm:$0x1] }
  0x41   : > { %v2071_v58 = vor.u32 %v14115_v17, %v8901_v28  ;;  %v7868_v1 = vcombine.low %v1422_v47, %v1431_v13  ;;  %v7915_v6 = vcombine.low %v2041_v5, %v2050_v42  ;;  %v1760_v18 = vrot.slane %v14116_v61, 5  ;;  %v1741_v5 = vld [vmem:[#allocation2 + $0x2c] sm:$0x1] }
  0x42   : > { %v2063_v33 = vsel %vm8952_vm11, %v8791_v37, %v2062_v62  ;;  %2909 = vrot.lane.b32.xlu0 %v7867_v44, %s8617_s15  ;;  %v14117_v47 = vshll.u32 %v8770_v14, 16  ;;  %v1759_v43 = vrot.slane %v1758_v22, 4  ;;  %v2399_v32 = vor.u32 %v2398_v56, %v2397_v3 }
  0x43   : > { %v2072_v36 = vsel %vm8952_vm11, %v2064_v27, %v2071_v58  ;;  %2911 = vrot.lane.b32.xlu1 %v7868_v1, %s8617_s15  ;;  %v2401_v37 = vrot.slane %v2047_v24, 5  ;;  %v1763_v26 = vor.u32 %v8924_v45, %v1760_v18  ;;  %v14118_v12 = vshll.u32 %v8772_v15, 16  ;;  %v1099_v1 = vld [vmem:[#allocation2 + $0x2c] sm:$0x1] }
  0x44   : > { %v1768_v28 = vrot.slane %v14117_v47, 5  ;;  %v7916_v4 = vcombine.low %v2063_v33, %v2072_v36  ;;  %v1132_v16 = vor.u32 %v8879_v51, %v8877_v40  ;;  %v14119_v25 = vshll.u32 %v8855_v21, 16 }
  0x45   : > { %v2409_v55 = vrot.slane %v14118_v12, 5  ;;  %v1761_v14 = vsel %vm8752_vm9, %v1759_v43, %v1760_v18  ;;  %v2400_v34 = vrot.slane %v2399_v32, 4  ;;  %v2404_v23 = vor.u32 %v2403_v60, %v2401_v37  ;;  %v1346_v12 = vld [vmem:[#allocation2 + $0x30] sm:$0x8] }
  0x46   : > { %v1134_v57 = vrot.slane %v14119_v25, 5  ;;  %v14120_v3 = vshll.u32 %v8774_v20, 16  ;;  %3181 = vrot.lane.b32.xlu0 %v7915_v6, %s8618_s16  ;;  %v1764_v45 = vrot.slane %v1763_v26, 4  ;;  %v1133_v15 = vrot.slane %v1132_v16, 4  ;;  %v1100_v26 = vld [vmem:[#allocation2 + $0x3c] sm:$0x1] }
  0x47   : > { %v2413_v21 = vor.u32 %v8905_v30, %v8895_v38  ;;  %3183 = vrot.lane.b32.xlu1 %v7916_v4, %s8618_s16  ;;  %v2402_v40 = vsel %vm8752_vm9, %v2400_v34, %v2401_v37  ;;  %v2405_v51 = vrot.slane %v2404_v23, 4  ;;  %v14121_v60 = vmov %v14115_v17  ;;  %v1347_v16 = vld [vmem:[#allocation2 + $0x34] sm:$0xf] }
  0x48   : > { %v1142_v56 = vrot.slane %v14120_v3, 5  ;;  %v1137_v24 = vor.u32 %v8884_v8, %v1134_v57  ;;  %v2415_v20 = vrot.slane %v14121_v60, 5  ;;  %v2421_v62 = vshll.u32 %v2382_v59, 16 }
  0x49   : > { %v1769_v27 = vsel %vm8752_vm9, %v1764_v45, %v1768_v28  ;;  %v1135_v44 = vsel %vm8752_vm9, %v1133_v15, %v1134_v57  ;;  %v2414_v13 = vrot.slane %v2413_v21, 4  ;;  %v2410_v30 = vsel %vm8752_vm9, %v2405_v51, %v2409_v55  ;;  %v1348_v45 = vld [vmem:[#allocation2 + $0x38] sm:$0xf]  ;;  %v461_v51 = vld [vmem:[#allocation2 + $0x40] sm:$0x8] }
  0x4a   : > { %v1138_v8 = vrot.slane %v1137_v24, 4  ;;  %v7899_v38 = vcombine.low %v1761_v14, %v1769_v27  ;;  %v2418_v17 = vor.u32 %v8907_v31, %v2415_v20  ;;  %v2423_v58 = vrot.slane %v2421_v62, 5 }
  0x4b   : > { %v7947_v52 = vcombine.low %v2402_v40, %v2410_v30  ;;  %v2416_v33 = vsel %vm8752_vm9, %v2414_v13, %v2415_v20  ;;  %v1772_v22 = vor.u32 %v8836_v2, %v8834_v63  ;;  %v14122_v61 = vshll.u32 %v8814_v50, 16 }
  0x4c   : > { %v1143_v42 = vsel %vm8752_vm9, %v1138_v8, %v1142_v56  ;;  %3101 = vrot.lane.b32.xlu0 %v7899_v38, %s8619_s17  ;;  %v2419_v36 = vrot.slane %v2418_v17, 4  ;;  %v1780_v18 = vshll.u32 %v1741_v5, 16  ;;  %v1146_v28 = vor.u32 %v8921_v0, %v8919_v11  ;;  %v14126_v5 = vld [vmem:[#allocation11_spill] sm:$0xff] }
  0x4d   : > { %v7852_v6 = vcombine.low %v1135_v44, %v1143_v42  ;;  %v1774_v31 = vrot.slane %v14122_v61, 5  ;;  %v1773_v47 = vrot.slane %v1772_v22, 4  ;;  %v14123_v4 = vshll.u32 %v8816_v54, 16  ;;  %v512_v42 = vld [vmem:[#allocation2 + $0x4c] sm:$0x1] }
  0x4e   : > { %v1154_v32 = vshll.u32 %v1099_v1, 16  ;;  %v2424_v63 = vsel %vm8752_vm9, %v2419_v36, %v2423_v58  ;;  %v1782_v37 = vrot.slane %v1780_v18, 5  ;;  %v1160_v50 = vor.u32 %v8946_v35, %v8944_v49  ;;  %v1742_v61 = vld [vmem:[#allocation2 + $0x3c] sm:$0x1] }
  0x4f   : > { %v1148_v43 = vrot.slane %v14123_v4, 5  ;;  %2831 = vrot.lane.b32.xlu1 %v7852_v6, %s8614_s12  ;;  %v1777_v2 = vor.u32 %v8841_v7, %v1774_v31  ;;  %v7948_v55 = vcombine.low %v2416_v33, %v2424_v63  ;;  %v1775_v11 = vsel %vm8752_vm9, %v1773_v47, %v1774_v31 }
  0x50   : > { %v1147_v54 = vrot.slane %v1146_v28, 4  ;;  %3373 = vrot.lane.b32.xlu0 %v7947_v52, %s8620_s18  ;;  %v1156_v57 = vrot.slane %v1154_v32, 5  ;;  %v1161_v7 = vrot.slane %v1160_v50, 4  ;;  %v14124_v59 = vshll.u32 %v8931_v39, 16  ;;  %v464_v28 = vld [vmem:[#allocation2 + $0x50] sm:$0x8] }
  0x51   : > { %v1151_v0 = vor.u32 %v8845_v9, %v1148_v43  ;;  %v1778_v25 = vrot.slane %v1777_v2, 4  ;;  %v1168_v34 = vshll.u32 %v1100_v26, 16  ;;  %v1433_v23 = vshrl.u32 %v1346_v12, 16 }
  0x52   : > { %v1162_v14 = vrot.slane %v14124_v59, 5  ;;  %v1149_v49 = vsel %vm8752_vm9, %v1147_v54, %v1148_v43  ;;  %v1438_v15 = vshrl.u32 %v1347_v16, 16  ;;  %v1441_v27 = vshll.u32 %v1347_v16, 16  ;;  %v14130_v54 = vld [vmem:[#allocation12_spill] sm:$0xff] }
  0x53   : > { %v1152_v35 = vrot.slane %v1151_v0, 4  ;;  %v1783_v3 = vsel %vm8752_vm9, %v1778_v25, %v1782_v37  ;;  %v1170_v21 = vrot.slane %v1168_v34, 5  ;;  %v7789_v40 = vrot.slane %v1433_v23, 11 }
  0x54   : > { %v1163_v9 = vsel %vm8752_vm9, %v1161_v7, %v1162_v14  ;;  %v1165_v56 = vor.u32 %v8948_v48, %v1162_v14  ;;  %v7900_v24 = vcombine.low %v1775_v11, %v1783_v3  ;;  %3375 = vrot.lane.b32.xlu0 %v7948_v55, %s8620_s18  ;;  %v1440_v62 = vrot.slane %v1438_v15, 7  ;;  %v14125_v48 = vld [vmem:[#allocation6_spill] sm:$0xff]  ;;  %v515_v55 = vld [vmem:[#allocation2 + $0x5c] sm:$0x1]  ;;  %v467_v7 = vld [vmem:[#allocation2 + $0x60] sm:$0x8] }
  0x55   : > { %v1157_v39 = vsel %vm8752_vm9, %v1152_v35, %v1156_v57  ;;  %v1447_v44 = vshrl.u32 %v1348_v45, 16  ;;  %v1450_v8 = vshll.u32 %v1348_v45, 16  ;;  %v364_v13 = vadd.f32 %v14125_v48, %v8803_v46 }
  0x56   : > { %v7853_v60 = vcombine.low %v1149_v49, %v1157_v39  ;;  %v1166_v20 = vrot.slane %v1165_v56, 4  ;;  %3103 = vrot.lane.b32.xlu1 %v7900_v24, %s8619_s17  ;;  %v365_v38 = vadd.f32 %v14125_v48, %v14126_v5  ;;  %v1443_v17 = vor.u32 %v1441_v27, %v1440_v62  ;;  %v294_v5 = vld [vmem:[%s8716_s10 + $0x70] sm:$0xff] }
  0x57   : > { %v1445_v58 = vrot.slane %v1440_v62, 4  ;;  %v462_v52 = vsel %vm8692_vm3, 0, %v461_v51  ;;  %v1449_v22 = vrot.slane %v1447_v44, 7  ;;  %v396_v6 = vmax.f32 %v364_v13, 0.0  ;;  %v14133_v51 = vld [vmem:[#allocation15_spill] sm:$0xff]  ;;  %v293_v13 = vld [vmem:[%s8716_s10 + $0x68] sm:$0xff] }
  0x58   : > { %v1171_v30 = vsel %vm8752_vm9, %v1166_v20, %v1170_v21  ;;  %v397_v36 = vmax.f32 %v365_v38, 0.0  ;;  %463 = vst [vmem:[#allocation2 + $0x40] sm:$0x8] %v462_v52  ;;  %2833 = vrot.lane.b32.xlu0 %v7853_v60, %s8614_s12  ;;  %v1444_v46 = vsel %vm8952_vm11, %v7789_v40, %v1443_v17  ;;  %v9079_v31 = vcombine.low %v1347_v16, %v1348_v45  ;;  %v14131_v16 = vld [vmem:[#allocation13_spill] sm:$0xff] }
  0x59   : > { %v7854_v33 = vcombine.low %v1163_v9, %v1171_v30  ;;  %v1784_v18 = vrot.slane %v1438_v15, 4  ;;  %v1785_v47 = vrot.slane %v1441_v27, 5  ;;  %v1452_v4 = vor.u32 %v1450_v8, %v1449_v22  ;;  %v14132_v9 = vld [vmem:[#allocation14_spill] sm:$0xff]  ;;  %v518_v45 = vld [vmem:[#allocation2 + $0x6c] sm:$0x1]  ;;  %v292_v15 = vld [vmem:[%s8716_s10 + $0x60] sm:$0xff] }
  0x5a   : > { %14128 = vst [vmem:[#allocation6_spill] sm:$0xff] %v9079_v31  ;;  %v8254_v43 = vpack.c.bf16 %v396_v6, %v396_v6  ;;  %v8255_v32 = vpack.c.bf16 %v397_v36, %v397_v36  ;;  %v1788_v63 = vrot.slane %v1450_v8, 5  ;;  %v1790_v37 = vrot.slane %v1447_v44, 4 }
  0x5b   : > { %2835 = vrot.lane.b32.xlu1 %v7854_v33, %s8614_s12  ;;  %v1786_v2 = vor.u32 %v1785_v47, %v1784_v18  ;;  %v1794_v26 = vshll.u32 %v1742_v61, 16  ;;  %v513_v12 = vsel %vm8721_vm8, 0, %v512_v42  ;;  %v1453_v11 = vsel %vm8952_vm11, %v1445_v58, %v1452_v4  ;;  %v14134_v33 = vld [vmem:[#allocation5_spill] sm:$0xff] }
  0x5c   : > { %669 = vst.msk [vmem:[#allocation2 + $0x44] sm:$0xf] %vm438_vm0, %v8254_v43  ;;  %670 = vst.msk [vmem:[#allocation2 + $0x48] sm:$0xf] %vm438_vm0, %v8255_v32  ;;  %v366_v0 = vadd.f32 %v14125_v48, %v14130_v54  ;;  %v367_v25 = vadd.f32 %v14125_v48, %v14131_v16  ;;  %v465_v57 = vsel %vm8692_vm3, 0, %v464_v28  ;;  %v7869_v59 = vcombine.low %v1444_v46, %v1453_v11 }
  0x5d   : > { %514 = vst [vmem:[#allocation2 + $0x4c] sm:$0x1] %v513_v12  ;;  %v1787_v14 = vrot.slane %v1786_v2, 4  ;;  %v1791_v49 = vor.u32 %v1790_v37, %v1788_v63  ;;  %v1796_v35 = vrot.slane %v1794_v26, 5  ;;  %466 = vst [vmem:[#allocation2 + $0x50] sm:$0x8] %v465_v57  ;;  %v368_v56 = vadd.f32 %v14125_v48, %v14132_v9 }
  0x5e   : > { %v398_v34 = vmax.f32 %v366_v0, 0.0  ;;  %v399_v23 = vmax.f32 %v367_v25, 0.0  ;;  %v516_v3 = vsel %vm8721_vm8, 0, %v515_v55  ;;  %2913 = vrot.lane.b32.xlu0 %v7869_v59, %s8617_s15  ;;  %v369_v60 = vadd.f32 %v14125_v48, %v14133_v51 }
  0x5f   : > { %v1349_v24 = vld [vmem:[#allocation2 + $0x40] sm:$0x8]  ;;  %v1789_v39 = vsel %vm8752_vm9, %v1787_v14, %v1788_v63  ;;  %v1792_v21 = vrot.slane %v1791_v49, 4  ;;  %517 = vst [vmem:[#allocation2 + $0x5c] sm:$0x1] %v516_v3  ;;  %v468_v20 = vsel %vm8692_vm3, 0, %v467_v7  ;;  %v9117_v22 = vmul.f32 %v14134_v33, %v292_v15 }
  0x60   : > { %v1987_v40 = vld [vmem:[#allocation2 + $0x40] sm:$0x8]  ;;  %v1455_v62 = vshrl.u32 %v1349_v24, 16  ;;  %v8256_v44 = vpack.c.bf16 %v398_v34, %v398_v34  ;;  %v8257_v8 = vpack.c.bf16 %v399_v23, %v399_v23  ;;  %469 = vst [vmem:[#allocation2 + $0x60] sm:$0x8] %v468_v20  ;;  %v400_v30 = vmax.f32 %v368_v56, 0.0 }
  0x61   : > { %v2074_v27 = vshrl.u32 %v1987_v40, 16  ;;  %v1797_v38 = vsel %vm8752_vm9, %v1792_v21, %v1796_v35  ;;  %v401_v17 = vmax.f32 %v369_v60, 0.0  ;;  %v519_v58 = vsel %vm8721_vm8, 0, %v518_v45 }
  0x62   : > { %v7790_v52 = vrot.slane %v1455_v62, 11  ;;  %v7901_v48 = vcombine.low %v1789_v39, %v1797_v38  ;;  %671 = vst.msk [vmem:[#allocation2 + $0x54] sm:$0xf] %vm438_vm0, %v8256_v44  ;;  %672 = vst.msk [vmem:[#allocation2 + $0x58] sm:$0xf] %vm438_vm0, %v8257_v8  ;;  %3025 = vrot.lane.b32.xlu0 %v9079_v31, %s8615_s13  ;;  %v8258_v46 = vpack.c.bf16 %v400_v30, %v400_v30  ;;  %vm3454_vm13 = vcmask 64512  }
  0x63   : > { %v9112_v42 = vrot.slane %v2074_v27, 11  ;;  %520 = vst [vmem:[#allocation2 + $0x6c] sm:$0x1] %v519_v58  ;;  %v1350_v6 = vld [vmem:[#allocation2 + $0x44] sm:$0xf]  ;;  %v8259_v18 = vpack.c.bf16 %v401_v17, %v401_v17  ;;  %v9122_v47 = vmul.f32 %v14134_v33, %v293_v13  ;;  %v9125_v28 = vmul.f32 %v14134_v33, %v294_v5 }
  0x64   : > { %v1351_v36 = vld [vmem:[#allocation2 + $0x48] sm:$0xf]  ;;  %v1743_v61 = vld [vmem:[#allocation2 + $0x4c] sm:$0x1]  ;;  %v1460_v4 = vshrl.u32 %v1350_v6, 16  ;;  %v1463_v43 = vshll.u32 %v1350_v6, 16 }
  0x65   : > { %v1469_v32 = vshrl.u32 %v1351_v36, 16  ;;  %v1472_v63 = vshll.u32 %v1351_v36, 16  ;;  %v9127_v2 = vld [vmem:[#allocation2 + $0x44] sm:$0xf]  ;;  %v9129_v37 = vcombine.low %v1350_v6, %v1351_v36  ;;  %v1808_v26 = vshll.u32 %v1743_v61, 16 }
  0x66   : > { %v2079_v12 = vshrl.u32 %v9127_v2, 16  ;;  %v2082_v55 = vshll.u32 %v9127_v2, 16  ;;  %673 = vst.msk [vmem:[#allocation2 + $0x64] sm:$0xf] %vm438_vm0, %v8258_v46  ;;  %674 = vst.msk [vmem:[#allocation2 + $0x68] sm:$0xf] %vm438_vm0, %v8259_v18  ;;  %3105 = vrot.lane.b32.xlu0 %v7901_v48, %s8619_s17 }
  0x67   : > { %14135 = vst [vmem:[#allocation11_spill] sm:$0xff] %v9129_v37  ;;  %v1462_v11 = vrot.slane %v1460_v4, 7  ;;  %v1471_v54 = vrot.slane %v1469_v32, 7  ;;  %v1798_v0 = vrot.slane %v1460_v4, 4  ;;  %v1799_v16 = vrot.slane %v1463_v43, 5 }
  0x68   : > { %v9135_v25 = vld [vmem:[#allocation2 + $0x48] sm:$0xf]  ;;  %v1802_v57 = vrot.slane %v1472_v63, 5  ;;  %v1804_v7 = vrot.slane %v1469_v32, 4  ;;  %v1810_v59 = vrot.slane %v1808_v26, 5  ;;  %v2081_v14 = vrot.slane %v2079_v12, 7 }
  0x69   : > { %v1465_v49 = vor.u32 %v1463_v43, %v1462_v11  ;;  %v1467_v35 = vrot.slane %v1462_v11, 4  ;;  %v1474_v34 = vor.u32 %v1472_v63, %v1471_v54  ;;  %v1800_v23 = vor.u32 %v1799_v16, %v1798_v0  ;;  %v1990_v15 = vld [vmem:[#allocation2 + $0x50] sm:$0x8]  ;;  %v9139_v24 = vld [vmem:[#allocation2 + $0x54] sm:$0xf] }
  0x6a   : > { %v1805_v3 = vor.u32 %v1804_v7, %v1802_v57  ;;  %v2084_v9 = vor.u32 %v2082_v55, %v2081_v14  ;;  %v2086_v56 = vrot.slane %v2081_v14, 4  ;;  %v2088_v45 = vshrl.u32 %v9135_v25, 16  ;;  %v9146_v60 = vld [vmem:[#allocation2 + $0x58] sm:$0xf]  ;;  %v2383_v36 = vld [vmem:[#allocation2 + $0x4c] sm:$0x1] }
  0x6b   : > { %v1466_v39 = vsel %vm8952_vm11, %v7790_v52, %v1465_v49  ;;  %v1475_v21 = vsel %vm8952_vm11, %v1467_v35, %v1474_v34  ;;  %v1801_v40 = vrot.slane %v1800_v23, 4  ;;  %v2091_v51 = vshll.u32 %v9135_v25, 16  ;;  %v9166_v43 = vld [vmem:[#allocation2 + $0x44] sm:$0xf]  ;;  %v9168_v54 = vld [vmem:[#allocation2 + $0x48] sm:$0xf] }
  0x6c   : > { %v7870_v20 = vcombine.low %v1466_v39, %v1475_v21  ;;  %v1806_v62 = vrot.slane %v1805_v3, 4  ;;  %v2085_v27 = vsel %vm8952_vm11, %v9112_v42, %v2084_v9  ;;  %v2090_v44 = vrot.slane %v2088_v45, 7  ;;  %v2384_v21 = vld [vmem:[#allocation2 + $0x5c] sm:$0x1] }
  0x6d   : > { %v1803_v8 = vsel %vm8752_vm9, %v1801_v40, %v1802_v57  ;;  %v2096_v13 = vshrl.u32 %v1990_v15, 16  ;;  %v2101_v5 = vshrl.u32 %v9139_v24, 16  ;;  %v2104_v38 = vshll.u32 %v9139_v24, 16 }
  0x6e   : > { %2915 = vrot.lane.b32.xlu1 %v7870_v20, %s8617_s15  ;;  %v1811_v30 = vsel %vm8752_vm9, %v1806_v62, %v1810_v59  ;;  %v2093_v17 = vor.u32 %v2091_v51, %v2090_v44  ;;  %v2110_v58 = vshrl.u32 %v9146_v60, 16  ;;  %v2113_v52 = vshll.u32 %v9146_v60, 16  ;;  %v9194_v44 = vld [vmem:[#allocation2 + $0x58] sm:$0xf] }
  0x6f   : > { %v7902_v48 = vcombine.low %v1803_v8, %v1811_v30  ;;  %v7806_v42 = vrot.slane %v2096_v13, 11  ;;  %v2103_v33 = vrot.slane %v2101_v5, 7  ;;  %v7933_v6 = vcombine.low %v9127_v2, %v9135_v25 }
  0x70   : > { %v2094_v61 = vsel %vm8952_vm11, %v2086_v56, %v2093_v17  ;;  %v2112_v46 = vrot.slane %v2110_v58, 7  ;;  %v7934_v18 = vcombine.low %v9139_v24, %v9146_v60  ;;  %v2425_v4 = vrot.slane %v2079_v12, 4 }
  0x71   : > { %v7917_v32 = vcombine.low %v2085_v27, %v2094_v61  ;;  %v2106_v63 = vor.u32 %v2104_v38, %v2103_v33  ;;  %v2108_v26 = vrot.slane %v2103_v33, 4  ;;  %v2426_v11 = vrot.slane %v2082_v55, 5  ;;  %v9192_v27 = vld [vmem:[#allocation2 + $0x54] sm:$0xf] }
  0x72   : > { %3027 = vrot.lane.b32.xlu1 %v9129_v37, %s8615_s13  ;;  %v2115_v2 = vor.u32 %v2113_v52, %v2112_v46  ;;  %v2429_v0 = vrot.slane %v2091_v51, 5  ;;  %v2431_v16 = vrot.slane %v2088_v45, 4  ;;  %v2435_v25 = vshll.u32 %v2383_v36, 16 }
  0x73   : > { %3185 = vrot.lane.b32.xlu0 %v7917_v32, %s8618_s16  ;;  %v2107_v12 = vsel %vm8952_vm11, %v7806_v42, %v2106_v63  ;;  %v2427_v57 = vor.u32 %v2426_v11, %v2425_v4  ;;  %v839_v7 = vshrl.u32 %v9166_v43, 16  ;;  %v842_v59 = vshll.u32 %v9166_v43, 16  ;;  %v1101_v11 = vld [vmem:[#allocation2 + $0x4c] sm:$0x1] }
  0x74   : > { %v2116_v55 = vsel %vm8952_vm11, %v2108_v26, %v2115_v2  ;;  %v2432_v14 = vor.u32 %v2431_v16, %v2429_v0  ;;  %v2437_v49 = vrot.slane %v2435_v25, 5  ;;  %v848_v35 = vshrl.u32 %v9168_v54, 16  ;;  %v1102_v25 = vld [vmem:[#allocation2 + $0x5c] sm:$0x1] }
  0x75   : > { %v7918_v34 = vcombine.low %v2107_v12, %v2116_v55  ;;  %v2428_v23 = vrot.slane %v2427_v57, 4  ;;  %v9180_v3 = vrot.slane %v839_v7, 7  ;;  %v851_v9 = vshll.u32 %v9168_v54, 16  ;;  %v1352_v55 = vld [vmem:[#allocation2 + $0x50] sm:$0x8] }
  0x76   : > { %3107 = vrot.lane.b32.xlu1 %v7902_v48, %s8619_s17  ;;  %v2433_v56 = vrot.slane %v2432_v14, 4  ;;  %v850_v45 = vrot.slane %v848_v35, 7  ;;  %v1172_v15 = vrot.slane %v839_v7, 4  ;;  %v1173_v39 = vrot.slane %v842_v59, 5 }
  0x77   : > { %3297 = vrot.lane.b32.xlu0 %v7933_v6, %s8616_s14  ;;  %v2430_v40 = vsel %vm8752_vm9, %v2428_v23, %v2429_v0  ;;  %v9188_v51 = vor.u32 %v842_v59, %v9180_v3  ;;  %v1178_v20 = vrot.slane %v848_v35, 4  ;;  %v7839_v62 = vcombine.low %v9166_v43, %v9168_v54  ;;  %v1353_v23 = vld [vmem:[#allocation2 + $0x54] sm:$0xf] }
  0x78   : > { %v2438_v8 = vsel %vm8752_vm9, %v2433_v56, %v2437_v49  ;;  %v9198_v13 = vor.u32 %v851_v9, %v850_v45  ;;  %v2439_v30 = vrot.slane %v2101_v5, 4  ;;  %v2440_v17 = vrot.slane %v2104_v38, 5  ;;  %v1354_v45 = vld [vmem:[#allocation2 + $0x58] sm:$0xf] }
  0x79   : > { %v7949_v48 = vcombine.low %v2430_v40, %v2438_v8  ;;  %v2443_v42 = vrot.slane %v2113_v52, 5  ;;  %v2445_v33 = vrot.slane %v2110_v58, 4  ;;  %v2449_v6 = vshll.u32 %v2384_v21, 16 }
  0x7a   : > { %3187 = vrot.lane.b32.xlu1 %v7918_v34, %s8618_s16  ;;  %v2441_v36 = vor.u32 %v2440_v17, %v2439_v30  ;;  %v861_v61 = vshrl.u32 %v9192_v27, 16  ;;  %v864_v46 = vshll.u32 %v9192_v27, 16  ;;  %v870_v4 = vshrl.u32 %v9194_v44, 16  ;;  %v1356_v17 = vld [vmem:[#allocation2 + $0x64] sm:$0xf] }
  0x7b   : > { %3377 = vrot.lane.b32.xlu0 %v7949_v48, %s8620_s18  ;;  %v2446_v43 = vor.u32 %v2445_v33, %v2443_v42  ;;  %v2451_v32 = vrot.slane %v2449_v6, 5  ;;  %v873_v5 = vshll.u32 %v9194_v44, 16  ;;  %v7840_v38 = vcombine.low %v9192_v27, %v9194_v44 }
  0x7c   : > { %v2442_v58 = vrot.slane %v2441_v36, 4  ;;  %v9208_v52 = vrot.slane %v861_v61, 7  ;;  %v872_v63 = vrot.slane %v870_v4, 7  ;;  %v1186_v26 = vrot.slane %v861_v61, 4 }
  0x7d   : > { %v2447_v54 = vrot.slane %v2446_v43, 4  ;;  %v1187_v2 = vrot.slane %v864_v46, 5  ;;  %v1192_v0 = vrot.slane %v870_v4, 4  ;;  %v1174_v16 = vor.u32 %v1173_v39, %v1172_v15  ;;  %v1357_v43 = vld [vmem:[#allocation2 + $0x68] sm:$0xf] }
  0x7e   : > { %3299 = vrot.lane.b32.xlu1 %v7934_v18, %s8616_s14  ;;  %v2444_v12 = vsel %vm8752_vm9, %v2442_v58, %v2443_v42  ;;  %v9217_v57 = vor.u32 %v864_v46, %v9208_v52  ;;  %v9219_v7 = vor.u32 %v873_v5, %v872_v63  ;;  %v1176_v59 = vrot.slane %v851_v9, 5  ;;  %v1355_v9 = vld [vmem:[#allocation2 + $0x60] sm:$0x8] }
  0x7f   : > { %v2452_v14 = vsel %vm8752_vm9, %v2447_v54, %v2451_v32  ;;  %v1175_v49 = vrot.slane %v1174_v16, 4  ;;  %v1182_v35 = vshll.u32 %v1101_v11, 16  ;;  %v1188_v34 = vor.u32 %v1187_v2, %v1186_v26 }
  0x80   : > { %14136 = vst [vmem:[#allocation4_spill] sm:$0xff] %v9217_v57  ;;  %14137 = vst [vmem:[#allocation7_spill] sm:$0xff] %v9219_v7  ;;  %v7950_v56 = vcombine.low %v2444_v12, %v2452_v14  ;;  %v1179_v24 = vor.u32 %v1178_v20, %v1176_v59  ;;  %v1190_v60 = vrot.slane %v873_v5, 5  ;;  %v1196_v18 = vshll.u32 %v1102_v25, 16 }
  0x81   : > { %v1177_v15 = vsel %vm8752_vm9, %v1175_v49, %v1176_v59  ;;  %v1184_v39 = vrot.slane %v1182_v35, 5  ;;  %v1189_v21 = vrot.slane %v1188_v34, 4  ;;  %v1477_v40 = vshrl.u32 %v1352_v55, 16 }
  0x82   : > { %2757 = vrot.lane.b32.xlu1 %v7839_v62, %s8613_s11  ;;  %3379 = vrot.lane.b32.xlu0 %v7950_v56, %s8620_s18  ;;  %v1180_v27 = vrot.slane %v1179_v24, 4  ;;  %v1193_v44 = vor.u32 %v1192_v0, %v1190_v60  ;;  %v1198_v8 = vrot.slane %v1196_v18, 5  ;;  %v1482_v30 = vshrl.u32 %v1353_v23, 16 }
  0x83   : > { %v1191_v20 = vsel %vm8752_vm9, %v1189_v21, %v1190_v60  ;;  %v7791_v48 = vrot.slane %v1477_v40, 11  ;;  %v1485_v42 = vshll.u32 %v1353_v23, 16  ;;  %v1491_v33 = vshrl.u32 %v1354_v45, 16  ;;  %v1745_v21 = vld [vmem:[#allocation2 + $0x6c] sm:$0x1] }
  0x84   : > { %v1185_v6 = vsel %vm8752_vm9, %v1180_v27, %v1184_v39  ;;  %v1194_v36 = vrot.slane %v1193_v44, 4  ;;  %v1484_v61 = vrot.slane %v1482_v30, 7  ;;  %v1494_v46 = vshll.u32 %v1354_v45, 16 }
  0x85   : > { %v7855_v62 = vcombine.low %v1177_v15, %v1185_v6  ;;  %v1493_v4 = vrot.slane %v1491_v33, 7  ;;  %v1499_v32 = vshrl.u32 %v1355_v9, 16  ;;  %v1504_v5 = vshrl.u32 %v1356_v17, 16 }
  0x86   : > { %2759 = vrot.lane.b32.xlu1 %v7840_v38, %s8613_s11  ;;  %v1199_v58 = vsel %vm8752_vm9, %v1194_v36, %v1198_v8  ;;  %v1487_v63 = vor.u32 %v1485_v42, %v1484_v61  ;;  %v1489_v26 = vrot.slane %v1484_v61, 4  ;;  %v1507_v11 = vshll.u32 %v1356_v17, 16  ;;  %v1744_v38 = vld [vmem:[#allocation2 + $0x5c] sm:$0x1]  ;;  %v1993_v8 = vld [vmem:[#allocation2 + $0x60] sm:$0x8] }
  0x87   : > { %2837 = vrot.lane.b32.xlu0 %v7855_v62, %s8614_s12  ;;  %v7856_v54 = vcombine.low %v1191_v20, %v1199_v58  ;;  %v1496_v2 = vor.u32 %v1494_v46, %v1493_v4  ;;  %v7792_v0 = vrot.slane %v1499_v32, 11  ;;  %v1506_v16 = vrot.slane %v1504_v5, 7 }
  0x88   : > { %v1488_v25 = vsel %vm8952_vm11, %v7791_v48, %v1487_v63  ;;  %v1513_v12 = vshrl.u32 %v1357_v43, 16  ;;  %v1516_v59 = vshll.u32 %v1357_v43, 16  ;;  %v9237_v55 = vcombine.low %v1353_v23, %v1354_v45 }
  0x89   : > { %v1497_v14 = vsel %vm8952_vm11, %v1489_v26, %v1496_v2  ;;  %v1509_v49 = vor.u32 %v1507_v11, %v1506_v16  ;;  %v1511_v35 = vrot.slane %v1506_v16, 4  ;;  %v9241_v34 = vcombine.low %v1356_v17, %v1357_v43  ;;  %v9251_v43 = vld [vmem:[#allocation2 + $0x68] sm:$0xf] }
  0x8a   : > { %14138 = vst [vmem:[#allocation12_spill] sm:$0xff] %v9237_v55  ;;  %2839 = vrot.lane.b32.xlu1 %v7856_v54, %s8614_s12  ;;  %v7871_v56 = vcombine.low %v1488_v25, %v1497_v14  ;;  %v1515_v24 = vrot.slane %v1513_v12, 7  ;;  %v1812_v60 = vrot.slane %v1482_v30, 4  ;;  %v1813_v18 = vrot.slane %v1485_v42, 5  ;;  %v9247_v30 = vld [vmem:[#allocation2 + $0x64] sm:$0xf] }
  0x8b   : > { %14139 = vst [vmem:[#allocation13_spill] sm:$0xff] %v9241_v34  ;;  %v1510_v15 = vsel %vm8952_vm11, %v7792_v0, %v1509_v49  ;;  %v1816_v39 = vrot.slane %v1494_v46, 5  ;;  %v1818_v23 = vrot.slane %v1491_v33, 4  ;;  %v1822_v45 = vshll.u32 %v1744_v38, 16  ;;  %v470_v38 = vld [vmem:[#allocation2 + $0x70] sm:$0x8] }
  0x8c   : > { %2917 = vrot.lane.b32.xlu0 %v7871_v56, %s8617_s15  ;;  %v1518_v40 = vor.u32 %v1516_v59, %v1515_v24  ;;  %v1814_v9 = vor.u32 %v1813_v18, %v1812_v60  ;;  %v1826_v27 = vrot.slane %v1504_v5, 4  ;;  %v1827_v44 = vrot.slane %v1507_v11, 5 }
  0x8d   : > { %v1819_v17 = vor.u32 %v1818_v23, %v1816_v39  ;;  %v1824_v20 = vrot.slane %v1822_v45, 5  ;;  %v1830_v48 = vrot.slane %v1516_v59, 5  ;;  %v1832_v6 = vrot.slane %v1513_v12, 4  ;;  %v2385_v23 = vld [vmem:[#allocation2 + $0x6c] sm:$0x1] }
  0x8e   : > { %v1519_v42 = vsel %vm8952_vm11, %v1511_v35, %v1518_v40  ;;  %v1815_v36 = vrot.slane %v1814_v9, 4  ;;  %v1828_v33 = vor.u32 %v1827_v44, %v1826_v27  ;;  %v1836_v61 = vshll.u32 %v1745_v21, 16  ;;  %v9271_v35 = vld [vmem:[%s13899_s2] ss:$0 sm:$0xff]  ;;  %v9284_v9 = vld [vmem:[#allocation2 + $0x64] sm:$0xf] }
  0x8f   : > { %v7872_v46 = vcombine.low %v1510_v15, %v1519_v42  ;;  %v1820_v62 = vrot.slane %v1819_v17, 4  ;;  %v1833_v4 = vor.u32 %v1832_v6, %v1830_v48  ;;  %v2118_v32 = vshrl.u32 %v1993_v8, 16  ;;  %v9288_v17 = vld [vmem:[#allocation2 + $0x68] sm:$0xf] }
  0x90   : > { %3029 = vrot.lane.b32.xlu0 %v9237_v55, %s8615_s13  ;;  %v1817_v5 = vsel %vm8752_vm9, %v1815_v36, %v1816_v39  ;;  %v1829_v58 = vrot.slane %v1828_v33, 4  ;;  %v1838_v63 = vrot.slane %v1836_v61, 5  ;;  %v2123_v26 = vshrl.u32 %v9247_v30, 16 }
  0x91   : > { %2919 = vrot.lane.b32.xlu1 %v7872_v46, %s8617_s15  ;;  %v1825_v11 = vsel %vm8752_vm9, %v1820_v62, %v1824_v20  ;;  %v1834_v54 = vrot.slane %v1833_v4, 4  ;;  %v7807_v2 = vrot.slane %v2118_v32, 11  ;;  %v2126_v0 = vshll.u32 %v9247_v30, 16 }
  0x92   : > { %v7903_v16 = vcombine.low %v1817_v5, %v1825_v11  ;;  %v1831_v25 = vsel %vm8752_vm9, %v1829_v58, %v1830_v48  ;;  %v2125_v12 = vrot.slane %v2123_v26, 7  ;;  %v2132_v59 = vshrl.u32 %v9251_v43, 16 }
  0x93   : > { %v1839_v14 = vsel %vm8752_vm9, %v1834_v54, %v1838_v63  ;;  %v2135_v49 = vshll.u32 %v9251_v43, 16  ;;  %v370_v56 = vadd.f32 %v9271_v35, %v9117_v22  ;;  %v371_v24 = vadd.f32 %v9271_v35, %v9122_v47 }
  0x94   : > { %3109 = vrot.lane.b32.xlu0 %v7903_v16, %s8619_s17  ;;  %v7904_v60 = vcombine.low %v1831_v25, %v1839_v14  ;;  %v2128_v18 = vor.u32 %v2126_v0, %v2125_v12  ;;  %v2130_v15 = vrot.slane %v2125_v12, 4  ;;  %v2134_v39 = vrot.slane %v2132_v59, 7  ;;  %v1103_v16 = vld [vmem:[#allocation2 + $0x6c] sm:$0x1]  ;;  %v295_v14 = vld [vmem:[%s8716_s10 + $0x78] sm:$0xff] }
  0x95   : > { %3031 = vrot.lane.b32.xlu1 %v9241_v34, %s8615_s13  ;;  %v402_v45 = vmax.f32 %v370_v56, 0.0  ;;  %v403_v21 = vmax.f32 %v371_v24, 0.0  ;;  %v471_v40 = vsel %vm8692_vm3, 0, %v470_v38  ;;  %v7935_v22 = vcombine.low %v9247_v30, %v9251_v43 }
  0x96   : > { %v2129_v47 = vsel %vm8952_vm11, %v7807_v2, %v2128_v18  ;;  %v2137_v27 = vor.u32 %v2135_v49, %v2134_v39  ;;  %472 = vst [vmem:[#allocation2 + $0x70] sm:$0x8] %v471_v40  ;;  %v2453_v44 = vrot.slane %v2123_v26, 4  ;;  %v2454_v8 = vrot.slane %v2126_v0, 5  ;;  %v521_v26 = vld [vmem:[#allocation2 + $0x7c] sm:$0x1] }
  0x97   : > { %v8260_v20 = vpack.c.bf16 %v402_v45, %v402_v45  ;;  %v8261_v48 = vpack.c.bf16 %v403_v21, %v403_v21  ;;  %v2457_v6 = vrot.slane %v2135_v49, 5  ;;  %v2459_v42 = vrot.slane %v2132_v59, 4 }
  0x98   : > { %v2138_v36 = vsel %vm8952_vm11, %v2130_v15, %v2137_v27  ;;  %v2455_v33 = vor.u32 %v2454_v8, %v2453_v44  ;;  %v2463_v30 = vshll.u32 %v2385_v23, 16  ;;  %v883_v61 = vshrl.u32 %v9284_v9, 16  ;;  %v9329_v27 = vld [vmem:[%s13898_s1] ss:$0 sm:$0xff] }
  0x99   : > { %3111 = vrot.lane.b32.xlu1 %v7904_v60, %s8619_s17  ;;  %v7919_v46 = vcombine.low %v2129_v47, %v2138_v36  ;;  %675 = vst.msk [vmem:[#allocation2 + $0x74] sm:$0xf] %vm438_vm0, %v8260_v20  ;;  %676 = vst.msk [vmem:[#allocation2 + $0x78] sm:$0xf] %vm438_vm0, %v8261_v48  ;;  %v2460_v62 = vor.u32 %v2459_v42, %v2457_v6  ;;  %v886_v4 = vshll.u32 %v9284_v9, 16  ;;  %v892_v43 = vshrl.u32 %v9288_v17, 16  ;;  %v9346_v36 = vpop.permute.xlu0 %2749 }
  0x9a   : > { %v2456_v32 = vrot.slane %v2455_v33, 4  ;;  %v2465_v5 = vrot.slane %v2463_v30, 5  ;;  %v9298_v58 = vrot.slane %v883_v61, 7  ;;  %v895_v63 = vshll.u32 %v9288_v17, 16  ;;  %v14143_v33 = vld [vmem:[#allocation9_spill] sm:$0xff]  ;;  %v14144_v30 = vld [vmem:[#allocation8_spill] sm:$0xff] }
  0x9b   : > { %3189 = vrot.lane.b32.xlu0 %v7919_v46, %s8618_s16  ;;  %v2461_v11 = vrot.slane %v2460_v62, 4  ;;  %v894_v54 = vrot.slane %v892_v43, 7  ;;  %v1200_v2 = vrot.slane %v883_v61, 4  ;;  %v1201_v0 = vrot.slane %v886_v4, 5 }
  0x9c   : > { %14140 = vst [vmem:[#allocation14_spill] sm:$0xff] %v9298_v58  ;;  %v2458_v25 = vsel %vm8752_vm9, %v2456_v32, %v2457_v6  ;;  %v9305_v12 = vor.u32 %v886_v4, %v9298_v58  ;;  %v9307_v59 = vrot.slane %v892_v43, 4  ;;  %v522_v60 = vsel %vm8721_vm8, 0, %v521_v26 }
  0x9d   : > { %v1996_v49 = vld [vmem:[#allocation2 + $0x70] sm:$0x8]  ;;  %v2466_v56 = vsel %vm8752_vm9, %v2461_v11, %v2465_v5  ;;  %v9314_v24 = vor.u32 %v895_v63, %v894_v54  ;;  %v1202_v18 = vor.u32 %v1201_v0, %v1200_v2  ;;  %523 = vst [vmem:[#allocation2 + $0x7c] sm:$0x1] %v522_v60  ;;  %v9320_v45 = vrot.slane %v895_v63, 5 }
  0x9e   : > { %14141 = vst [vmem:[#allocation15_spill] sm:$0xff] %v9305_v12  ;;  %v9318_v15 = vld [vmem:[#allocation2 + $0x70] sm:$0x8]  ;;  %v2140_v39 = vshrl.u32 %v1996_v49, 16  ;;  %v7951_v23 = vcombine.low %v2458_v25, %v2466_v56  ;;  %v1210_v21 = vshll.u32 %v1103_v16, 16  ;;  %v9332_v44 = vmul.f32 %v9329_v27, %v295_v14 }
  0x9f   : > { %14142 = vst [vmem:[#allocation5_spill] sm:$0xff] %v9314_v24  ;;  %3301 = vrot.lane.b32.xlu0 %v7935_v22, %s8616_s14  ;;  %v9323_v40 = vrot.slane %v1202_v18, 4  ;;  %v9336_v8 = vadd.f32 %v9271_v35, %v9125_v28  ;;  %v1207_v6 = vor.u32 %v9307_v59, %v9320_v45  ;;  %v14145_v61 = vrot.slane %v14144_v30, 4 }
  0xa0   : > { %v9338_v20 = vld [vmem:[#allocation2 + $0x74] sm:$0xf]  ;;  %v9340_v48 = vld [vmem:[#allocation2 + $0x78] sm:$0xf]  ;;  %v7808_v22 = vrot.slane %v2140_v39, 11  ;;  %v9344_v42 = vrot.slane %v1210_v21, 5 }
  0xa1   : > { %v9353_v46 = vsel %vm8952_vm11, %v14145_v61, %v14143_v33  ;;  %v2145_v28 = vshrl.u32 %v9338_v20, 16  ;;  %v2148_v62 = vshll.u32 %v9338_v20, 16  ;;  %v2154_v4 = vshrl.u32 %v9340_v48, 16  ;;  %v9359_v32 = vld [vmem:[#allocation2 + $0x74] sm:$0xf] }
  0xa2   : > { %v2157_v43 = vshll.u32 %v9340_v48, 16  ;;  %v7936_v5 = vcombine.low %v9338_v20, %v9340_v48  ;;  %v9363_v63 = vld [vmem:[#allocation2 + $0x78] sm:$0xf]  ;;  %v905_v26 = vshrl.u32 %v9359_v32, 16  ;;  %v908_v11 = vshll.u32 %v9359_v32, 16  ;;  %v9375_v48 = vpop.permute.xlu1 %2829  ;;  %v9380_v30 = vpop.permute.xlu0 %2751 }
  0xa3   : > { %v1205_v54 = vsel %vm8752_vm9, %v9323_v40, %v9320_v45  ;;  %v2147_v2 = vrot.slane %v2145_v28, 7  ;;  %v2156_v0 = vrot.slane %v2154_v4, 7  ;;  %3381 = vrot.lane.b32.xlu0 %v7951_v23, %s8620_s18  ;;  %v2467_v16 = vrot.slane %v2145_v28, 4  ;;  %v1359_v34 = vld [vmem:[#allocation2 + $0x74] sm:$0xf] }
  0xa4   : > { %v2468_v25 = vrot.slane %v2148_v62, 5  ;;  %v2471_v59 = vrot.slane %v2157_v43, 5  ;;  %v2473_v14 = vrot.slane %v2154_v4, 4  ;;  %v9372_v49 = vrot.slane %v905_v26, 7  ;;  %v2386_v21 = vld [vmem:[#allocation2 + $0x7c] sm:$0x1] }
  0xa5   : > { %v914_v56 = vshrl.u32 %v9363_v63, 16  ;;  %v2150_v60 = vor.u32 %v2148_v62, %v2147_v2  ;;  %v2152_v18 = vrot.slane %v2147_v2, 4  ;;  %v2159_v39 = vor.u32 %v2157_v43, %v2156_v0 }
  0xa6   : > { %14146 = vst [vmem:[#allocation9_spill] sm:$0xff] %v9372_v49  ;;  %v2469_v20 = vor.u32 %v2468_v25, %v2467_v16  ;;  %v2474_v45 = vor.u32 %v2473_v14, %v2471_v59  ;;  %v2477_v40 = vshll.u32 %v2386_v21, 16  ;;  %v9378_v33 = vor.u32 %v908_v11, %v9372_v49  ;;  %v1104_v25 = vld [vmem:[#allocation2 + $0x7c] sm:$0x1] }
  0xa7   : > { %v916_v23 = vrot.slane %v914_v56, 7  ;;  %v2151_v61 = vsel %vm8952_vm11, %v7808_v22, %v2150_v60  ;;  %v2160_v28 = vsel %vm8952_vm11, %v2152_v18, %v2159_v39  ;;  %v917_v4 = vshll.u32 %v9363_v63, 16 }
  0xa8   : > { %14147 = vst [vmem:[#allocation8_spill] sm:$0xff] %v9378_v33  ;;  %v2470_v62 = vrot.slane %v2469_v20, 4  ;;  %v7920_v43 = vcombine.low %v2151_v61, %v2160_v28  ;;  %v2475_v2 = vrot.slane %v2474_v45, 4  ;;  %v2479_v0 = vrot.slane %v2477_v40, 5 }
  0xa9   : > { %v1214_v16 = vrot.slane %v905_v26, 4  ;;  %v9389_v21 = vor.u32 %v917_v4, %v916_v23  ;;  %v1215_v38 = vrot.slane %v908_v11, 5  ;;  %v1220_v47 = vrot.slane %v914_v56, 4  ;;  %v1360_v26 = vld [vmem:[#allocation2 + $0x78] sm:$0xf]  ;;  %v9398_v11 = vpop.permute.xlu1 %3023  ;;  %v9400_v56 = vpop.permute.xlu0 %3021 }
  0xaa   : > { %v2472_v14 = vsel %vm8752_vm9, %v2470_v62, %v2471_v59  ;;  %3191 = vrot.lane.b32.xlu1 %v7920_v43, %s8618_s16  ;;  %v2480_v22 = vsel %vm8752_vm9, %v2475_v2, %v2479_v0  ;;  %v7842_v60 = vcombine.low %v9359_v32, %v9363_v63  ;;  %v1208_v18 = vrot.slane %v1207_v6, 4  ;;  %v473_v6 = vld [vmem:[#allocation2 + $0x80] sm:$0x8] }
  0xab   : > { %14148 = vst [vmem:[#allocation24_spill] sm:$0xff] %v9389_v21  ;;  %v1218_v39 = vrot.slane %v917_v4, 5  ;;  %v7952_v20 = vcombine.low %v2472_v14, %v2480_v22  ;;  %v1216_v45 = vor.u32 %v1215_v38, %v1214_v16  ;;  %v1224_v40 = vshll.u32 %v1104_v25, 16 }
  0xac   : > { %v14149_v59 = vshrl.u32 %v9318_v15, 16  ;;  %v1213_v61 = vsel %vm8752_vm9, %v1208_v18, %v9344_v42  ;;  %v1526_v62 = vshrl.u32 %v1359_v34, 16  ;;  %v1529_v43 = vshll.u32 %v1359_v34, 16 }
  0xad   : > { %v1221_v28 = vor.u32 %v1220_v47, %v1218_v39  ;;  %3383 = vrot.lane.b32.xlu0 %v7952_v20, %s8620_s18  ;;  %v7857_v4 = vcombine.low %v1205_v54, %v1213_v61  ;;  %v1217_v38 = vrot.slane %v1216_v45, 4  ;;  %v1226_v2 = vrot.slane %v1224_v40, 5  ;;  %v1746_v40 = vld [vmem:[#allocation2 + $0x7c] sm:$0x1] }
  0xae   : > { %v7793_v23 = vrot.slane %v14149_v59, 11  ;;  %v1535_v0 = vshrl.u32 %v1360_v26, 16  ;;  %3303 = vrot.lane.b32.xlu1 %v7936_v5, %s8616_s14  ;;  %v1528_v16 = vrot.slane %v1526_v62, 7  ;;  %v1538_v25 = vshll.u32 %v1360_v26, 16 }
  0xaf   : > { %v1222_v15 = vrot.slane %v1221_v28, 4  ;;  %v373_v14 = vadd.f32 %v9271_v35, %v9332_v44  ;;  %v1219_v47 = vsel %vm8752_vm9, %v1217_v38, %v1218_v39  ;;  %v404_v22 = vmax.f32 %v9336_v8, 0.0  ;;  %v524_v8 = vld [vmem:[#allocation2 + $0x8c] sm:$0x1]  ;;  %v9417_v28 = vpop.permute.xlu1 %3295 }
  0xb0   : > { %v1537_v42 = vrot.slane %v1535_v0, 7  ;;  %v474_v54 = vsel %vm8692_vm3, 0, %v473_v6  ;;  %v1531_v20 = vor.u32 %v1529_v43, %v1528_v16  ;;  %v1533_v5 = vrot.slane %v1528_v16, 4  ;;  %v9419_v6 = vpop.permute.xlu0 %3293 }
  0xb1   : > { %v1227_v18 = vsel %vm8752_vm9, %v1222_v15, %v1226_v2  ;;  %v405_v45 = vmax.f32 %v373_v14, 0.0  ;;  %475 = vst [vmem:[#allocation2 + $0x80] sm:$0x8] %v474_v54  ;;  %2841 = vrot.lane.b32.xlu0 %v7857_v4, %s8614_s12  ;;  %v8262_v39 = vpack.c.bf16 %v404_v22, %v404_v22  ;;  %v7889_v61 = vcombine.low %v1359_v34, %v1360_v26  ;;  %v695_v34 = vld [vmem:[#allocation2] sm:$0x8] }
  0xb2   : > { %v7858_v44 = vcombine.low %v1219_v47, %v1227_v18  ;;  %v1540_v59 = vor.u32 %v1538_v25, %v1537_v42  ;;  %v14150_v38 = vcombine.low %v9284_v9, %v9288_v17  ;;  %v1532_v2 = vsel %vm8952_vm11, %v7793_v23, %v1531_v20  ;;  %v296_v26 = vld [vmem:[%s8716_s10 + $0x80] sm:$0xff]  ;;  %v297_v9 = vld [vmem:[%s8716_s10 + $0x88] sm:$0xff]  ;;  %v476_v17 = vld [vmem:[#allocation2 + $0x90] sm:$0x8] }
  0xb3   : > { %v8263_v15 = vpack.c.bf16 %v405_v45, %v405_v45  ;;  %v1840_v4 = vrot.slane %v1526_v62, 4  ;;  %v1841_v16 = vrot.slane %v1529_v43, 5  ;;  %677 = vst.msk [vmem:[#allocation2 + $0x84] sm:$0xf] %vm438_vm0, %v8262_v39  ;;  %v1844_v47 = vrot.slane %v1538_v25, 5  ;;  %v298_v43 = vld [vmem:[%s8716_s10 + $0x90] sm:$0xff]  ;;  %8421 = vmatprep.mubr.msk.bf16.mxu1 %vm3405_vm12, %v7889_v61 }
  0xb4   : > { %2761 = vrot.lane.b32.xlu1 %v14150_v38, %s8613_s11  ;;  %v1541_v14 = vsel %vm8952_vm11, %v1533_v5, %v1540_v59  ;;  %v1846_v42 = vrot.slane %v1535_v0, 4  ;;  %v1850_v22 = vshll.u32 %v1746_v40, 16  ;;  %v525_v62 = vsel %vm8721_vm8, 0, %v524_v8  ;;  %v299_v18 = vld [vmem:[%s8716_s10 + $0x98] sm:$0xff]  ;;  %v9447_v39 = vld [vmem:[#allocation2 + $0x10] sm:$0x8]  ;;  %v9451_v32 = vpop.permute.xlu0 %2909 }
  0xb5   : > { %v7873_v54 = vcombine.low %v1532_v2, %v1541_v14  ;;  %678 = vst.msk [vmem:[#allocation2 + $0x88] sm:$0xf] %vm438_vm0, %v8263_v15  ;;  %v1842_v23 = vor.u32 %v1841_v16, %v1840_v4  ;;  %526 = vst [vmem:[#allocation2 + $0x8c] sm:$0x1] %v525_v62  ;;  %v746_v5 = vshrl.u32 %v695_v34, 16  ;;  %v335_v25 = vmul.f32 %v9329_v27, %v296_v26  ;;  %v9449_v4 = vpop.permute.xlu1 %2753 }
  0xb6   : > { %v1847_v20 = vor.u32 %v1846_v42, %v1844_v47  ;;  %v1852_v45 = vrot.slane %v1850_v22, 5  ;;  %v336_v40 = vmul.f32 %v9329_v27, %v297_v9  ;;  %v477_v59 = vsel %vm8692_vm3, 0, %v476_v17  ;;  %v14151_v22 = vld [vmem:[#allocation10_spill] sm:$0xff] }
  0xb7   : > { %2921 = vrot.lane.b32.xlu0 %v7873_v54, %s8617_s15  ;;  %v1843_v0 = vrot.slane %v1842_v23, 4  ;;  %v7771_v2 = vrot.slane %v746_v5, 11  ;;  %478 = vst [vmem:[#allocation2 + $0x90] sm:$0x8] %v477_v59  ;;  %v337_v63 = vmul.f32 %v9329_v27, %v298_v43  ;;  %v374_v14 = vadd.f32 %v9271_v35, %v335_v25 }
  0xb8   : > { %2763 = vrot.lane.b32.xlu1 %v7842_v60, %s8613_s11  ;;  %v1361_v8 = vld [vmem:[#allocation2 + $0x80] sm:$0x8]  ;;  %v1848_v38 = vrot.slane %v1847_v20, 4  ;;  %v338_v60 = vmul.f32 %v9329_v27, %v299_v18  ;;  %v9464_v17 = vadd.f32 %v9271_v35, %v336_v40  ;;  %vm3487_vm14 = vcmask 97280  }
  0xb9   : > { %v1999_v15 = vld [vmem:[#allocation2 + $0x80] sm:$0x8]  ;;  %v1543_v16 = vshrl.u32 %v1361_v8, 16  ;;  %v1845_v34 = vsel %vm8752_vm9, %v1843_v0, %v1844_v47  ;;  %v757_v9 = vsel %vm8952_vm11, %v7771_v2, %v14151_v22  ;;  %v9472_v0 = vpop.permute.xlu0 %3181  ;;  %v9475_v25 = vadd.f32 %v9271_v35, %v337_v63 }
  0xba   : > { %v2162_v26 = vshrl.u32 %v1999_v15, 16  ;;  %v1853_v42 = vsel %vm8752_vm9, %v1848_v38, %v1852_v45  ;;  %v1362_v23 = vld [vmem:[#allocation2 + $0x84] sm:$0xf]  ;;  %v7819_v43 = vcombine.low %v757_v9, %v9353_v46  ;;  %v9478_v40 = vadd.f32 %v9271_v35, %v338_v60 }
  0xbb   : > { %v7794_v62 = vrot.slane %v1543_v16, 11  ;;  %3033 = vrot.lane.b32.xlu0 %v7889_v61, %s8615_s13  ;;  %v7905_v47 = vcombine.low %v1845_v34, %v1853_v42  ;;  %v1548_v45 = vshrl.u32 %v1362_v23, 16  ;;  %v1551_v5 = vshll.u32 %v1362_v23, 16  ;;  %v9484_v34 = vld [vmem:[#allocation2 + $0x84] sm:$0xf] }
  0xbc   : > { %2843 = vrot.lane.b32.xlu1 %v7858_v44, %s8614_s12  ;;  %v9470_v18 = vrot.slane %v2162_v26, 11  ;;  %v1363_v20 = vld [vmem:[#allocation2 + $0x88] sm:$0xf]  ;;  %v1747_v61 = vld [vmem:[#allocation2 + $0x8c] sm:$0x1]  ;;  %v3408_v46 = vsel %vm3405_vm12, %v7819_v43, %v9346_v36  ;;  %v9486_v26 = vpop.permute.xlu1 %2755  ;;  %v2170_v54 = vshll.u32 %v9484_v34, 16 }
  0xbd   : > { %v1557_v44 = vshrl.u32 %v1363_v20, 16  ;;  %v1560_v59 = vshll.u32 %v1363_v20, 16  ;;  %v9480_v8 = vcombine.low %v1362_v23, %v1363_v20  ;;  %v1550_v38 = vrot.slane %v1548_v45, 7  ;;  %v9493_v22 = vld [vmem:[#allocation2 + $0x88] sm:$0xf] }
  0xbe   : > { %v1854_v2 = vrot.slane %v1548_v45, 4  ;;  %v1855_v15 = vrot.slane %v1551_v5, 5  ;;  %v1864_v16 = vshll.u32 %v1747_v61, 16  ;;  %v9491_v42 = vsel %vm3454_vm13, %v3408_v46, %v9375_v48  ;;  %v9497_v55 = vpop.permute.xlu0 %3101 }
  0xbf   : > { %14152 = vst [vmem:[#allocation10_spill] sm:$0xff] %v9480_v8  ;;  %v1559_v63 = vrot.slane %v1557_v44, 7  ;;  %3113 = vrot.lane.b32.xlu0 %v7905_v47, %s8619_s17  ;;  %v1858_v35 = vrot.slane %v1560_v59, 5  ;;  %v1860_v60 = vrot.slane %v1557_v44, 4  ;;  %v1553_v36 = vor.u32 %v1551_v5, %v1550_v38 }
  0xc0   : > { %v1555_v9 = vrot.slane %v1550_v38, 4  ;;  %v1856_v23 = vor.u32 %v1855_v15, %v1854_v2  ;;  %v1866_v43 = vrot.slane %v1864_v16, 5  ;;  %v2167_v61 = vshrl.u32 %v9484_v34, 16  ;;  %v2002_v15 = vld [vmem:[#allocation2 + $0x90] sm:$0x8] }
  0xc1   : > { %v1562_v20 = vor.u32 %v1560_v59, %v1559_v63  ;;  %v1861_v45 = vor.u32 %v1860_v60, %v1858_v35  ;;  %v1554_v47 = vsel %vm8952_vm11, %v7794_v62, %v1553_v36  ;;  %v2176_v48 = vshrl.u32 %v9493_v22, 16  ;;  %v9508_v62 = vpop.permute.xlu1 %2911 }
  0xc2   : > { %v1857_v44 = vrot.slane %v1856_v23, 4  ;;  %v2179_v46 = vshll.u32 %v9493_v22, 16  ;;  %v2169_v59 = vrot.slane %v2167_v61, 7  ;;  %v406_v2 = vmax.f32 %v374_v14, 0.0 }
  0xc3   : > { %v1563_v5 = vsel %vm8952_vm11, %v1555_v9, %v1562_v20  ;;  %v1862_v38 = vrot.slane %v1861_v45, 4  ;;  %v2178_v60 = vrot.slane %v2176_v48, 7  ;;  %v407_v37 = vmax.f32 %v9464_v17, 0.0  ;;  %v9512_v9 = vpop.permute.xlu0 %3373 }
  0xc4   : > { %v7874_v16 = vcombine.low %v1554_v47, %v1563_v5  ;;  %v1859_v63 = vsel %vm8752_vm9, %v1857_v44, %v1858_v35  ;;  %v2172_v23 = vor.u32 %v2170_v54, %v2169_v59  ;;  %v2174_v31 = vrot.slane %v2169_v59, 4  ;;  %v14154_v44 = vld [vmem:[#allocation19_spill] sm:$0xff]  ;;  %v2387_v59 = vld [vmem:[#allocation2 + $0x8c] sm:$0x1] }
  0xc5   : > { %v1867_v36 = vsel %vm8752_vm9, %v1862_v38, %v1866_v43  ;;  %v8264_v33 = vpack.c.bf16 %v406_v2, %v406_v2  ;;  %v2181_v20 = vor.u32 %v2179_v46, %v2178_v60  ;;  %v8265_v45 = vpack.c.bf16 %v407_v37, %v407_v37  ;;  %v9524_v2 = vld [vmem:[#allocation2 + $0x84] sm:$0xf] }
  0xc6   : > { %2923 = vrot.lane.b32.xlu1 %v7874_v16, %s8617_s15  ;;  %v7906_v14 = vcombine.low %v1859_v63, %v1867_v36  ;;  %v2184_v47 = vshrl.u32 %v2002_v15, 16  ;;  %v2173_v17 = vsel %vm8952_vm11, %v9470_v18, %v2172_v23  ;;  %v14153_v35 = vshrl.u32 %v9447_v39, 16  ;;  %v9531_v16 = vld [vmem:[#allocation2 + $0x88] sm:$0xf]  ;;  %v14155_v63 = vld [vmem:[#allocation20_spill] sm:$0xff] }
  0xc7   : > { %679 = vst.msk [vmem:[#allocation2 + $0x94] sm:$0xf] %vm438_vm0, %v8264_v33  ;;  %v780_v5 = vrot.slane %v14154_v44, 4  ;;  %v7937_v38 = vcombine.low %v9484_v34, %v9493_v22  ;;  %v2182_v37 = vsel %vm8952_vm11, %v2174_v31, %v2181_v20  ;;  %680 = vst.msk [vmem:[#allocation2 + $0x98] sm:$0xf] %vm438_vm0, %v8265_v45  ;;  %v2481_v18 = vrot.slane %v2167_v61, 4  ;;  %v9539_v23 = vpop.permute.xlu0 %3375  ;;  %v9543_v45 = vpop.permute.xlu1 %3183 }
  0xc8   : > { %v7772_v43 = vrot.slane %v14153_v35, 11  ;;  %v9529_v15 = vrot.slane %v2184_v47, 11  ;;  %v2482_v33 = vrot.slane %v2170_v54, 5  ;;  %v7921_v39 = vcombine.low %v2173_v17, %v2182_v37  ;;  %v14156_v34 = vld [vmem:[#allocation21_spill] sm:$0xff] }
  0xc9   : > { %v788_v22 = vsel %vm8952_vm11, %v780_v5, %v14156_v34  ;;  %v2485_v36 = vrot.slane %v2179_v46, 5  ;;  %v2487_v54 = vrot.slane %v2176_v48, 4  ;;  %v2491_v20 = vshll.u32 %v2387_v59, 16 }
  0xca   : > { %v779_v60 = vsel %vm8952_vm11, %v7772_v43, %v14155_v63  ;;  %3035 = vrot.lane.b32.xlu1 %v9480_v8, %s8615_s13  ;;  %v2483_v61 = vor.u32 %v2482_v33, %v2481_v18  ;;  %3193 = vrot.lane.b32.xlu0 %v7921_v39, %s8618_s16  ;;  %v927_v47 = vshrl.u32 %v9524_v2, 16  ;;  %v930_v17 = vshll.u32 %v9524_v2, 16 }
  0xcb   : > { %v7820_v31 = vcombine.low %v779_v60, %v788_v22  ;;  %v936_v35 = vshrl.u32 %v9531_v16, 16  ;;  %v13929_v46 = vshll.u32 %v9531_v16, 16  ;;  %v2488_v5 = vor.u32 %v2487_v54, %v2485_v36  ;;  %v701_v22 = vld [vmem:[#allocation2 + $0x20] sm:$0x8]  ;;  %v9589_v8 = vpop.permute.xlu1 %2831 }
  0xcc   : > { %v2484_v44 = vrot.slane %v2483_v61, 4  ;;  %v2493_v48 = vrot.slane %v2491_v20, 5  ;;  %v9554_v59 = vrot.slane %v927_v47, 7  ;;  %v9556_v18 = vrot.slane %v927_v47, 4  ;;  %v527_v47 = vld [vmem:[#allocation2 + $0x9c] sm:$0x1] }
  0xcd   : > { %v9552_v43 = vsel %vm3405_vm12, %v7820_v31, %v9380_v30  ;;  %v938_v37 = vrot.slane %v936_v35, 7  ;;  %v9558_v33 = vrot.slane %v930_v17, 5  ;;  %v2489_v60 = vrot.slane %v2488_v5, 4  ;;  %v9569_v31 = vpop.permute.xlu0 %2833 }
  0xce   : > { %14157 = vst [vmem:[#allocation19_spill] sm:$0xff] %v9554_v59  ;;  %3115 = vrot.lane.b32.xlu1 %v7906_v14, %s8619_s17  ;;  %v9561_v39 = vld [vmem:[#allocation2 + $0x94] sm:$0xf]  ;;  %v2486_v63 = vsel %vm8752_vm9, %v2484_v44, %v2485_v36  ;;  %v9565_v30 = vrot.slane %v936_v35, 4  ;;  %v9571_v61 = vld [vmem:[#allocation2 + $0x98] sm:$0xf]  ;;  %3305 = vrot.lane.b32.xlu0 %v7937_v38, %s8616_s14  ;;  %v9577_v20 = vor.u32 %v930_v17, %v9554_v59 }
  0xcf   : > { %v2189_v54 = vshrl.u32 %v9561_v39, 16  ;;  %v2192_v14 = vshll.u32 %v9561_v39, 16  ;;  %v9581_v36 = vor.u32 %v13929_v46, %v938_v37  ;;  %v2198_v35 = vshrl.u32 %v9571_v61, 16  ;;  %v14160_v59 = vld [vmem:[#allocation22_spill] sm:$0xff]  ;;  %v9600_v57 = vld [vmem:[#allocation2 + $0x98] sm:$0xf] }
  0xd0   : > { %14158 = vst [vmem:[#allocation20_spill] sm:$0xff] %v9577_v20  ;;  %v2201_v44 = vshll.u32 %v9571_v61, 16  ;;  %v2494_v34 = vsel %vm8752_vm9, %v2489_v60, %v2493_v48  ;;  %v790_v20 = vshrl.u32 %v701_v22, 16  ;;  %v802_v21 = vrot.slane %v14160_v59, 4  ;;  %v9594_v12 = vld [vmem:[#allocation2 + $0x94] sm:$0xf] }
  0xd1   : > { %14159 = vst [vmem:[#allocation21_spill] sm:$0xff] %v9581_v36  ;;  %v2191_v38 = vrot.slane %v2189_v54, 7  ;;  %v7953_v17 = vcombine.low %v2486_v63, %v2494_v34  ;;  %v2200_v37 = vrot.slane %v2198_v35, 7  ;;  %v528_v46 = vsel %vm8721_vm8, 0, %v527_v47  ;;  %v14161_v60 = vld [vmem:[#allocation17_spill] sm:$0xff]  ;;  %v14162_v47 = vld [vmem:[#allocation23_spill] sm:$0xff] }
  0xd2   : > { %v2495_v36 = vrot.slane %v2189_v54, 4  ;;  %v2496_v49 = vrot.slane %v2192_v14, 5  ;;  %v7773_v48 = vrot.slane %v790_v20, 11  ;;  %v810_v63 = vsel %vm8952_vm11, %v802_v21, %v14161_v60  ;;  %529 = vst [vmem:[#allocation2 + $0x9c] sm:$0x1] %v528_v46  ;;  %v9602_v54 = vpop.permute.xlu0 %2913 }
  0xd3   : > { %v2194_v24 = vor.u32 %v2192_v14, %v2191_v38  ;;  %v2196_v5 = vrot.slane %v2191_v38, 4  ;;  %3385 = vrot.lane.b32.xlu0 %v7953_v17, %s8620_s18  ;;  %v2203_v34 = vor.u32 %v2201_v44, %v2200_v37  ;;  %v2499_v22 = vrot.slane %v2201_v44, 5  ;;  %v9614_v44 = vpop.permute.xlu1 %3103 }
  0xd4   : > { %v2497_v59 = vor.u32 %v2496_v49, %v2495_v36  ;;  %v2501_v58 = vrot.slane %v2198_v35, 4  ;;  %v801_v20 = vsel %vm8952_vm11, %v7773_v48, %v14162_v47  ;;  %v949_v38 = vshrl.u32 %v9594_v12, 16  ;;  %v704_v48 = vld [vmem:[#allocation2 + $0x30] sm:$0x8] }
  0xd5   : > { %v2195_v14 = vsel %vm8952_vm11, %v9529_v15, %v2194_v24  ;;  %v952_v21 = vshll.u32 %v9594_v12, 16  ;;  %v2204_v49 = vsel %vm8952_vm11, %v2196_v5, %v2203_v34  ;;  %v7821_v46 = vcombine.low %v801_v20, %v810_v63  ;;  %v1105_v20 = vld [vmem:[#allocation2 + $0x8c] sm:$0x1] }
  0xd6   : > { %v2498_v36 = vrot.slane %v2497_v59, 4  ;;  %v2502_v35 = vor.u32 %v2501_v58, %v2499_v22  ;;  %v7922_v17 = vcombine.low %v2195_v14, %v2204_v49  ;;  %v9616_v37 = vrot.slane %v949_v38, 7 }
  0xd7   : > { %v958_v24 = vshrl.u32 %v9600_v57, 16  ;;  %v961_v15 = vshll.u32 %v9600_v57, 16  ;;  %v9622_v60 = vsel %vm3405_vm12, %v7821_v46, %v9449_v4  ;;  %v1242_v34 = vrot.slane %v949_v38, 4 }
  0xd8   : > { %v2500_v5 = vsel %vm8752_vm9, %v2498_v36, %v2499_v22  ;;  %v2503_v63 = vrot.slane %v2502_v35, 4  ;;  %3195 = vrot.lane.b32.xlu1 %v7922_v17, %s8618_s16  ;;  %v9628_v58 = vor.u32 %v952_v21, %v9616_v37  ;;  %v1243_v14 = vrot.slane %v952_v21, 5  ;;  %v9633_v22 = vpop.permute.xlu0 %3025 }
  0xd9   : > { %v960_v59 = vrot.slane %v958_v24, 7  ;;  %v1248_v47 = vrot.slane %v958_v24, 4  ;;  %v2388_v49 = vld [vmem:[#allocation2 + $0x9c] sm:$0x1]  ;;  %v7844_v7 = vcombine.low %v9594_v12, %v9600_v57  ;;  %v812_v4 = vshrl.u32 %v704_v48, 16 }
  0xda   : > { %14163 = vst [vmem:[#allocation22_spill] sm:$0xff] %v9628_v58  ;;  %v824_v46 = vrot.slane %v8941_v29, 4  ;;  %v2505_v38 = vshll.u32 %v2388_v49, 16  ;;  %v9640_v35 = vsel %vm3487_vm14, %v9491_v42, %v9451_v32  ;;  %v1230_v21 = vor.u32 %v9558_v33, %v9556_v18  ;;  %v1106_v17 = vld [vmem:[#allocation2 + $0x9c] sm:$0x1] }
  0xdb   : > { %v9635_v36 = vor.u32 %v961_v15, %v960_v59  ;;  %v7774_v24 = vrot.slane %v812_v4, 11  ;;  %v14165_v57 = vshll.u32 %v9531_v16, 16  ;;  %v1238_v48 = vshll.u32 %v1105_v20, 16  ;;  %v9649_v59 = vpop.permute.xlu1 %2835  ;;  %v1364_v20 = vld [vmem:[#allocation2 + $0x90] sm:$0x8] }
  0xdc   : > { %v832_v29 = vsel %vm8952_vm11, %v824_v46, %v8962_v10  ;;  %v14166_v32 = vcombine.low %v9561_v39, %v9571_v61  ;;  %v2507_v42 = vrot.slane %v2505_v38, 5  ;;  %v1231_v49 = vrot.slane %v1230_v21, 4  ;;  %v9659_v58 = vld [vmem:[#allocation2 + $0x94] sm:$0xf] }
  0xdd   : > { %14164 = vst [vmem:[#allocation17_spill] sm:$0xff] %v9635_v36  ;;  %v1232_v12 = vrot.slane %v14165_v57, 5  ;;  %v1244_v18 = vor.u32 %v1243_v14, %v1242_v34  ;;  %v1246_v33 = vrot.slane %v961_v15, 5  ;;  %v823_v4 = vsel %vm8952_vm11, %v7774_v24, %v8957_v41  ;;  %v9665_v15 = vld [vmem:[#allocation2 + $0x98] sm:$0xf] }
  0xde   : > { %3307 = vrot.lane.b32.xlu1 %v14166_v32, %s8616_s14  ;;  %v1240_v46 = vrot.slane %v1238_v48, 5  ;;  %v1252_v57 = vshll.u32 %v1106_v17, 16  ;;  %v2508_v36 = vsel %vm8752_vm9, %v2503_v63, %v2507_v42  ;;  %v7822_v39 = vcombine.low %v823_v4, %v832_v29 }
  0xdf   : > { %v1235_v10 = vor.u32 %v9565_v30, %v1232_v12  ;;  %v1233_v61 = vsel %vm8752_vm9, %v1231_v49, %v1232_v12  ;;  %v1245_v34 = vrot.slane %v1244_v18, 4  ;;  %v7954_v14 = vcombine.low %v2500_v5, %v2508_v36  ;;  %v9667_v30 = vpop.permute.xlu0 %3105 }
  0xe0   : > { %v1249_v41 = vor.u32 %v1248_v47, %v1246_v33  ;;  %v1254_v21 = vrot.slane %v1252_v57, 5  ;;  %v14167_v17 = vcombine.low %v9524_v2, %v9531_v16  ;;  %v9675_v63 = vsel %vm3405_vm12, %v7822_v39, %v9486_v26  ;;  %v479_v16 = vld [vmem:[#allocation2 + $0xa0] sm:$0x8]  ;;  %v9685_v48 = vpop.permute.xlu1 %2915 }
  0xe1   : > { %v1236_v38 = vrot.slane %v1235_v10, 4  ;;  %v1247_v24 = vsel %vm8752_vm9, %v1245_v34, %v1246_v33  ;;  %v1565_v29 = vshrl.u32 %v1364_v20, 16  ;;  %v1570_v5 = vshrl.u32 %v9659_v58, 16  ;;  %3387 = vrot.lane.b32.xlu0 %v7954_v14, %s8620_s18 }
  0xe2   : > { %2765 = vrot.lane.b32.xlu1 %v14167_v17, %s8613_s11  ;;  %v1250_v36 = vrot.slane %v1249_v41, 4  ;;  %v1573_v12 = vshll.u32 %v9659_v58, 16  ;;  %v1579_v2 = vshrl.u32 %v9665_v15, 16  ;;  %v1582_v49 = vshll.u32 %v9665_v15, 16  ;;  %v8532_v41 = vld [vmem:[%s13900_s3 + $0x8] sm:$0xff]  }
  0xe3   : > { %v1241_v47 = vsel %vm8752_vm9, %v1236_v38, %v1240_v46  ;;  %v7795_v32 = vrot.slane %v1565_v29, 11  ;;  %v1572_v42 = vrot.slane %v1570_v5, 7  ;;  %v408_v4 = vmax.f32 %v9475_v25, 0.0 }
  0xe4   : > { %v7859_v26 = vcombine.low %v1233_v61, %v1241_v47  ;;  %v1255_v18 = vsel %vm8752_vm9, %v1250_v36, %v1254_v21  ;;  %v1581_v33 = vrot.slane %v1579_v2, 7  ;;  %v409_v10 = vmax.f32 %v9478_v40, 0.0  ;;  %v8530_v61 = vld [vmem:[%s13900_s3 + $0x10] ss:$0 sps:$4 sm:$0x33]  }
  0xe5   : > { %v7860_v46 = vcombine.low %v1247_v24, %v1255_v18  ;;  %v1575_v57 = vor.u32 %v1573_v12, %v1572_v42  ;;  %v1577_v20 = vrot.slane %v1572_v42, 4  ;;  %v480_v39 = vsel %vm8692_vm3, 0, %v479_v16  ;;  %v9699_v40 = vpop.permute.xlu0 %3185  ;;  %v9719_v24 = vpop.permute.xlu1 %3027  ;;  %v530_v16 = vld [vmem:[#allocation2 + $0xac] sm:$0x1] }
  0xe6   : > { %2767 = vrot.lane.b32.xlu1 %v7844_v7, %s8613_s11  ;;  %2845 = vrot.lane.b32.xlu0 %v7859_v26, %s8614_s12  ;;  %v1584_v34 = vor.u32 %v1582_v49, %v1581_v33  ;;  %481 = vst [vmem:[#allocation2 + $0xa0] sm:$0x8] %v480_v39  ;;  %v8266_v14 = vpack.c.bf16 %v408_v4, %v408_v4  ;;  %vm3520_vm15 = vcmask 130048   ;;  %vm3553_vm1 = vcmask 162816  }
  0xe7   : > { %v8267_v25 = vpack.c.bf16 %v409_v10, %v409_v10  ;;  %v1576_v7 = vsel %vm8952_vm11, %v7795_v32, %v1575_v57  ;;  %v3522_v38 = vsel %vm3520_vm15, %v9640_v35, %v9400_v56  ;;  %vm3586_vm5 = vcmask 195584   ;;  %v1748_v35 = vld [vmem:[#allocation2 + $0x9c] sm:$0x1] }
  0xe8   : > { %v1585_v21 = vsel %vm8952_vm11, %v1577_v20, %v1584_v34  ;;  %681 = vst.msk [vmem:[#allocation2 + $0xa4] sm:$0xf] %vm438_vm0, %v8266_v14  ;;  %v3555_v17 = vsel %vm3553_vm1, %v3522_v38, %v9497_v55  ;;  %vm13932_vm6 = vcmask 1041408   ;;  %v9717_v56 = vcombine.low %v9659_v58, %v9665_v15 }
  0xe9   : > { %682 = vst.msk [vmem:[#allocation2 + $0xa8] sm:$0xf] %vm438_vm0, %v8267_v25  ;;  %v7875_v29 = vcombine.low %v1576_v7, %v1585_v21  ;;  %v3588_v47 = vsel %vm3586_vm5, %v3555_v17, %v9472_v0  ;;  %8485 = vmatprep.subr.msk.bf16.mxu0 %vm13932_vm6, %v8530_v61  ;;  %v3747_v36 = vsel %vm13932_vm6, %v8530_v61, 0  ;;  %v3458_v55 = vsel %vm3454_vm13, %v9552_v43, %v9589_v8  ;;  %v8533_v8 = vld [vmem:[%s13900_s3] sm:$0xff]   ;;  %v9750_v34 = vpop.permute.xlu1 %3107 }
  0xea   : > { %14168 = vst [vmem:[#allocation23_spill] sm:$0xff] %v9717_v56  ;;  %2847 = vrot.lane.b32.xlu1 %v7860_v46, %s8614_s12  ;;  %8370 = vmatpush3.bf16.msra.mxu0 %v3747_v36  ;;  %v3491_v58 = vsel %vm3487_vm14, %v3458_v55, %v9508_v62  ;;  %v1868_v15 = vrot.slane %v1570_v5, 4  ;;  %v1869_v26 = vrot.slane %v1573_v12, 5  ;;  %v1872_v32 = vrot.slane %v1582_v49, 5  ;;  %v300_v5 = vld [vmem:[%s8716_s10 + $0xa0] sm:$0xff]  ;;  %v301_v12 = vld [vmem:[%s8716_s10 + $0xa8] sm:$0xff]  ;;  %v9741_v49 = vpop.permute.xlu0 %3297 }
  0xeb   : > { %2925 = vrot.lane.b32.xlu0 %v7875_v29, %s8617_s15  ;;  %8371 = vmatprep.subr.bf16.mxu0 %v8532_v41  ;;  %v1874_v0 = vrot.slane %v1579_v2, 4  ;;  %v1878_v42 = vshll.u32 %v1748_v35, 16  ;;  %vm3619_vm7 = vcmask 228352   ;;  %vm3652_vm10 = vcmask 261120  }
  0xec   : > { %v1870_v43 = vor.u32 %v1869_v26, %v1868_v15  ;;  %v3621_v18 = vsel %vm3619_vm7, %v3588_v47, %v9419_v6  ;;  %vm3712_vm6 = vcmask 293888   ;;  %v531_v62 = vsel %vm8721_vm8, 0, %v530_v16 }
  0xed   : > { %v1367_v2 = vld [vmem:[#allocation2 + $0xa0] sm:$0x8]  ;;  %v1875_v33 = vor.u32 %v1874_v0, %v1872_v32  ;;  %v1880_v4 = vrot.slane %v1878_v42, 5  ;;  %v3654_v10 = vsel %vm3652_vm10, %v3621_v18, %v9512_v9  ;;  %532 = vst [vmem:[#allocation2 + $0xac] sm:$0x1] %v531_v62  ;;  %v3524_v46 = vsel %vm3520_vm15, %v3491_v58, %v9398_v11 }
  0xee   : > { %v2005_v57 = vld [vmem:[#allocation2 + $0xa0] sm:$0x8]  ;;  %v1587_v6 = vshrl.u32 %v1367_v2, 16  ;;  %8372 = vmatpush3.bf16.msra.mxu0 %v8532_v41  ;;  %v1871_v20 = vrot.slane %v1870_v43, 4  ;;  %8375 = vmatprep.mubr.msk.bf16.mxu0 %vm3712_vm6, %v3654_v10  ;;  %v3557_v39 = vsel %vm3553_vm1, %v3524_v46, %v9614_v44  ;;  %v339_v7 = vmul.f32 %v9329_v27, %v300_v5 }
  0xef   : > { %v2206_v61 = vshrl.u32 %v2005_v57, 16  ;;  %v1368_v14 = vld [vmem:[#allocation2 + $0xa4] sm:$0xf]  ;;  %3037 = vrot.lane.b32.xlu0 %v9717_v56, %s8615_s13  ;;  %v1876_v9 = vrot.slane %v1875_v33, 4  ;;  %v9756_v11 = vsel %vm3586_vm5, %v3557_v39, %v9543_v45  ;;  %8373 = vmatprep.subr.bf16.mxu0 %v8533_v8  ;;  %v340_v38 = vmul.f32 %v9329_v27, %v301_v12  ;;  %v9768_v27 = vpop.permute.xlu0 %3377  ;;  %v9774_v33 = vpop.permute.xlu1 %3187 }
  0xf0   : > { %v1369_v25 = vld [vmem:[#allocation2 + $0xa8] sm:$0xf]  ;;  %v7796_v41 = vrot.slane %v1587_v6, 11  ;;  %v1592_v44 = vshrl.u32 %v1368_v14, 16  ;;  %v1595_v21 = vshll.u32 %v1368_v14, 16  ;;  %v1873_v47 = vsel %vm8752_vm9, %v1871_v20, %v1872_v32 }
  0xf1   : > { %v1601_v17 = vshrl.u32 %v1369_v25, 16  ;;  %v1604_v35 = vshll.u32 %v1369_v25, 16  ;;  %v9760_v29 = vcombine.low %v1368_v14, %v1369_v25  ;;  %v1881_v36 = vsel %vm8752_vm9, %v1876_v9, %v1880_v4  ;;  %v9766_v45 = vld [vmem:[#allocation2 + $0xa4] sm:$0xf]  ;;  %v9770_v43 = vld [vmem:[#allocation2 + $0xa8] sm:$0xf] }
  0xf2   : > { %v1594_v55 = vrot.slane %v1592_v44, 7  ;;  %v7907_v58 = vcombine.low %v1873_v47, %v1881_v36  ;;  %v1882_v15 = vrot.slane %v1592_v44, 4  ;;  %8374 = vmatpush3.bf16.msra.mxu0 %v8533_v8  ;;  %v1883_v26 = vrot.slane %v1595_v21, 5  ;;  %v482_v44 = vld [vmem:[#allocation2 + $0xb0] sm:$0x8] }
  0xf3   : > { %14169 = vst [vmem:[#allocation25_spill] sm:$0xff] %v9760_v29  ;;  %v1603_v16 = vrot.slane %v1601_v17, 7  ;;  %v1886_v0 = vrot.slane %v1604_v35, 5  ;;  %v1888_v42 = vrot.slane %v1601_v17, 4  ;;  %v7811_v18 = vrot.slane %v2206_v61, 11 }
  0xf4   : > { %v1597_v62 = vor.u32 %v1595_v21, %v1594_v55  ;;  %v1599_v32 = vrot.slane %v1594_v55, 4  ;;  %3117 = vrot.lane.b32.xlu0 %v7907_v58, %s8619_s17  ;;  %v1749_v12 = vld [vmem:[#allocation2 + $0xac] sm:$0x1]  ;;  %v2211_v2 = vshrl.u32 %v9766_v45, 16  ;;  %v1884_v4 = vor.u32 %v1883_v26, %v1882_v15  ;;  %v9783_v36 = vpop.permute.xlu0 %3379 }
  0xf5   : > { %v1606_v5 = vor.u32 %v1604_v35, %v1603_v16  ;;  %v1889_v8 = vor.u32 %v1888_v42, %v1886_v0  ;;  %v1892_v10 = vshll.u32 %v1749_v12, 16  ;;  %v2214_v46 = vshll.u32 %v9766_v45, 16  ;;  %v9793_v16 = vld [vmem:[%s13899_s2] ss:$0 sm:$0xff] }
  0xf6   : > { %v1598_v57 = vsel %vm8952_vm11, %v7796_v41, %v1597_v62  ;;  %v2213_v20 = vrot.slane %v2211_v2, 7  ;;  %v2220_v39 = vshrl.u32 %v9770_v43, 16  ;;  %v1885_v14 = vrot.slane %v1884_v4, 4 }
  0xf7   : > { %v1607_v6 = vsel %vm8952_vm11, %v1599_v32, %v1606_v5  ;;  %v1890_v25 = vrot.slane %v1889_v8, 4  ;;  %v1894_v9 = vrot.slane %v1892_v10, 5  ;;  %v2223_v47 = vshll.u32 %v9770_v43, 16  ;;  %v9801_v32 = vpop.permute.xlu1 %3299 }
  0xf8   : > { %v7876_v61 = vcombine.low %v1598_v57, %v1607_v6  ;;  %v2216_v21 = vor.u32 %v2214_v46, %v2213_v20  ;;  %v2218_v17 = vrot.slane %v2213_v20, 4  ;;  %v2222_v35 = vrot.slane %v2220_v39, 7  ;;  %v2389_v57 = vld [vmem:[#allocation2 + $0xac] sm:$0x1]  ;;  %v9818_v6 = vld [vmem:[#allocation2 + $0xa4] sm:$0xf] }
  0xf9   : > { %v1887_v41 = vsel %vm8752_vm9, %v1885_v14, %v1886_v0  ;;  %v1895_v55 = vsel %vm8752_vm9, %v1890_v25, %v1894_v9  ;;  %v378_v58 = vadd.f32 %v9793_v16, %v339_v7  ;;  %v379_v15 = vadd.f32 %v9793_v16, %v340_v38  ;;  %v9824_v20 = vld [vmem:[#allocation2 + $0xa8] sm:$0xf] }
  0xfa   : > { %2927 = vrot.lane.b32.xlu1 %v7876_v61, %s8617_s15  ;;  %v7908_v26 = vcombine.low %v1887_v41, %v1895_v55  ;;  %v2217_v42 = vsel %vm8952_vm11, %v7811_v18, %v2216_v21  ;;  %v2225_v62 = vor.u32 %v2223_v47, %v2222_v35  ;;  %v483_v0 = vsel %vm8692_vm3, 0, %v482_v44 }
  0xfb   : > { %v410_v5 = vmax.f32 %v378_v58, 0.0  ;;  %v411_v12 = vmax.f32 %v379_v15, 0.0  ;;  %484 = vst [vmem:[#allocation2 + $0xb0] sm:$0x8] %v483_v0  ;;  %v3460_v4 = vsel %vm3454_vm13, %v9622_v60, %v9569_v31  ;;  %v3462_v7 = vsel %vm3454_vm13, %v9675_v63, %v9649_v59  ;;  %v9840_v44 = vpop.permute.xlu1 %2757 }
  0xfc   : > { %v2226_v38 = vsel %vm8952_vm11, %v2218_v17, %v2225_v62  ;;  %v3623_v18 = vsel %vm3619_vm7, %v9756_v11, %v9417_v28  ;;  %v7939_v8 = vcombine.low %v9766_v45, %v9770_v43  ;;  %v3493_v10 = vsel %vm3487_vm14, %v3460_v4, %v9602_v54  ;;  %v9829_v43 = vpop.permute.xlu0 %2837 }
  0xfd   : > { %v7923_v31 = vcombine.low %v2217_v42, %v2226_v38  ;;  %v8268_v60 = vpack.c.bf16 %v410_v5, %v410_v5  ;;  %v8269_v59 = vpack.c.bf16 %v411_v12, %v411_v12  ;;  %v3656_v63 = vsel %vm3652_vm10, %v3623_v18, %v9539_v23 }
  0xfe   : > { %3039 = vrot.lane.b32.xlu1 %v9760_v29, %s8615_s13  ;;  %8376 = vmatmul.mubr.msk.bf16.vlgmr.msra.gmra.mxu0 %vm3712_vm6, %v3656_v63  ;;  %v3495_v28 = vsel %vm3487_vm14, %v3462_v7, %v9685_v48  ;;  %v2509_v54 = vrot.slane %v2211_v2, 4  ;;  %v2510_v11 = vrot.slane %v2214_v46, 5  ;;  %v2513_v45 = vrot.slane %v2223_v47, 5  ;;  %v533_v47 = vld [vmem:[#allocation2 + $0xbc] sm:$0x1] }
  0xff   : > { %3197 = vrot.lane.b32.xlu0 %v7923_v31, %s8618_s16  ;;  %683 = vst.msk [vmem:[#allocation2 + $0xb4] sm:$0xf] %vm438_vm0, %v8268_v60  ;;  %684 = vst.msk [vmem:[#allocation2 + $0xb8] sm:$0xf] %vm438_vm0, %v8269_v59  ;;  %v2515_v61 = vrot.slane %v2220_v39, 4  ;;  %v2519_v23 = vshll.u32 %v2389_v57, 16  ;;  %v3526_v5 = vsel %vm3520_vm15, %v3493_v10, %v9633_v22  ;;  %v3528_v7 = vsel %vm3520_vm15, %v3495_v28, %v9719_v24 }
 0x100   : > { %v971_v14 = vshrl.u32 %v9818_v6, 16  ;;  %v974_v25 = vshll.u32 %v9818_v6, 16  ;;  %v2511_v9 = vor.u32 %v2510_v11, %v2509_v54  ;;  %v980_v48 = vshrl.u32 %v9824_v20, 16  ;;  %v9867_v18 = vpop.permute.xlu0 %2917  ;;  %v9891_v54 = vpop.permute.xlu1 %2759  ;;  %v707_v29 = vld [vmem:[#allocation2 + $0x40] sm:$0x8] }
 0x101   : > { %v983_v2 = vshll.u32 %v9824_v20, 16  ;;  %v2516_v21 = vor.u32 %v2515_v61, %v2513_v45  ;;  %v2521_v17 = vrot.slane %v2519_v23, 5  ;;  %v534_v38 = vsel %vm8721_vm8, 0, %v533_v47 }
 0x102   : > { %3119 = vrot.lane.b32.xlu1 %v7908_v26, %s8619_s17  ;;  %v9843_v39 = vrot.slane %v971_v14, 7  ;;  %v9845_v35 = vrot.slane %v971_v14, 4  ;;  %v2008_v41 = vld [vmem:[#allocation2 + $0xb0] sm:$0x8]  ;;  %v2512_v55 = vrot.slane %v2511_v9, 4  ;;  %v982_v58 = vrot.slane %v980_v48, 7 }
 0x103   : > { %v9847_v15 = vrot.slane %v974_v25, 5  ;;  %v9849_v42 = vrot.slane %v980_v48, 4  ;;  %v2228_v62 = vshrl.u32 %v2008_v41, 16  ;;  %3309 = vrot.lane.b32.xlu0 %v7939_v8, %s8616_s14  ;;  %v2517_v0 = vrot.slane %v2516_v21, 4  ;;  %535 = vst [vmem:[#allocation2 + $0xbc] sm:$0x1] %v534_v38 }
 0x104   : > { %v9853_v26 = vor.u32 %v974_v25, %v9843_v39  ;;  %v2514_v12 = vsel %vm8752_vm9, %v2512_v55, %v2513_v45  ;;  %v9861_v4 = vor.u32 %v983_v2, %v982_v58  ;;  %v3559_v22 = vsel %vm3553_vm1, %v3526_v5, %v9667_v30  ;;  %v9907_v58 = vpop.permute.xlu0 %3029 }
 0x105   : > { %v7812_v8 = vrot.slane %v2228_v62, 11  ;;  %v2522_v57 = vsel %vm8752_vm9, %v2517_v0, %v2521_v17  ;;  %v3561_v10 = vsel %vm3553_vm1, %v3528_v7, %v9750_v34  ;;  %v1258_v63 = vor.u32 %v9847_v15, %v9845_v35 }
 0x106   : > { %v9875_v31 = vld [vmem:[#allocation2 + $0xb4] sm:$0xf]  ;;  %v9877_v60 = vld [vmem:[#allocation2 + $0xb8] sm:$0xf]  ;;  %v7955_v24 = vcombine.low %v2514_v12, %v2522_v57  ;;  %v9885_v28 = vsel %vm3586_vm5, %v3559_v22, %v9699_v40  ;;  %v9889_v30 = vsel %vm3586_vm5, %v3561_v10, %v9774_v33  ;;  %v9913_v10 = vpop.permute.xlu1 %2839 }
 0x107   : > { %v9879_v59 = vld [vmem:[#allocation2 + $0xb4] sm:$0xf]  ;;  %v2233_v34 = vshrl.u32 %v9875_v31, 16  ;;  %v2236_v11 = vshll.u32 %v9875_v31, 16  ;;  %v2242_v45 = vshrl.u32 %v9877_v60, 16  ;;  %v2245_v61 = vshll.u32 %v9877_v60, 16 }
 0x108   : > { %v9897_v23 = vld [vmem:[#allocation2 + $0xb8] sm:$0xf]  ;;  %v7940_v40 = vcombine.low %v9875_v31, %v9877_v60  ;;  %3389 = vrot.lane.b32.xlu0 %v7955_v24, %s8620_s18  ;;  %v993_v33 = vshrl.u32 %v9879_v59, 16  ;;  %v996_v14 = vshll.u32 %v9879_v59, 16 }
 0x109   : > { %v1002_v25 = vshrl.u32 %v9897_v23, 16  ;;  %v2235_v9 = vrot.slane %v2233_v34, 7  ;;  %v2244_v48 = vrot.slane %v2242_v45, 7  ;;  %v2523_v21 = vrot.slane %v2233_v34, 4 }
 0x10a   : > { %v2524_v17 = vrot.slane %v2236_v11, 5  ;;  %v2527_v35 = vrot.slane %v2245_v61, 5  ;;  %v2529_v47 = vrot.slane %v2242_v45, 4  ;;  %v9905_v41 = vrot.slane %v993_v33, 7  ;;  %v2390_v12 = vld [vmem:[#allocation2 + $0xbc] sm:$0x1] }
 0x10b   : > { %v1004_v55 = vrot.slane %v1002_v25, 7  ;;  %v2238_v15 = vor.u32 %v2236_v11, %v2235_v9  ;;  %v2240_v62 = vrot.slane %v2235_v9, 4  ;;  %v2247_v0 = vor.u32 %v2245_v61, %v2244_v48  ;;  %v1107_v11 = vld [vmem:[#allocation2 + $0xac] sm:$0x1] }
 0x10c   : > { %v2525_v5 = vor.u32 %v2524_v17, %v2523_v21  ;;  %v2530_v7 = vor.u32 %v2529_v47, %v2527_v35  ;;  %v9910_v38 = vor.u32 %v996_v14, %v9905_v41  ;;  %v1005_v57 = vshll.u32 %v9897_v23, 16  ;;  %v1108_v21 = vld [vmem:[#allocation2 + $0xbc] sm:$0x1]  ;;  %v1370_v17 = vld [vmem:[#allocation2 + $0xb0] sm:$0x8] }
 0x10d   : > { %v1270_v22 = vrot.slane %v993_v33, 4  ;;  %v2239_v31 = vsel %vm8952_vm11, %v7812_v8, %v2238_v15  ;;  %v2248_v60 = vsel %vm8952_vm11, %v2240_v62, %v2247_v0  ;;  %v2533_v34 = vshll.u32 %v2390_v12, 16 }
 0x10e   : > { %14170 = vst [vmem:[#allocation26_spill] sm:$0xff] %v9910_v38  ;;  %v2526_v24 = vrot.slane %v2525_v5, 4  ;;  %v7924_v45 = vcombine.low %v2239_v31, %v2248_v60  ;;  %v2531_v61 = vrot.slane %v2530_v7, 4  ;;  %v9919_v9 = vor.u32 %v1005_v57, %v1004_v55  ;;  %v9930_v5 = vpop.permute.xlu0 %3109  ;;  %v9934_v7 = vld [vmem:[#allocation2 + $0xb8] sm:$0xf] }
 0x10f   : > { %v1271_v48 = vrot.slane %v996_v14, 5  ;;  %v2535_v47 = vrot.slane %v2533_v34, 5  ;;  %v1276_v46 = vrot.slane %v1002_v25, 4  ;;  %v1259_v15 = vrot.slane %v1258_v63, 4  ;;  %v9928_v14 = vld [vmem:[#allocation2 + $0xb4] sm:$0xf]  ;;  %v9940_v34 = vpop.permute.xlu1 %2919 }
 0x110   : > { %v2528_v33 = vsel %vm8752_vm9, %v2526_v24, %v2527_v35  ;;  %3199 = vrot.lane.b32.xlu1 %v7924_v45, %s8618_s16  ;;  %v1260_v62 = vrot.slane %v983_v2, 5  ;;  %v1266_v55 = vshll.u32 %v1107_v11, 16  ;;  %v1274_v35 = vrot.slane %v1005_v57, 5  ;;  %v302_v24 = vld [vmem:[%s8716_s10 + $0xb0] sm:$0xff] }
 0x111   : > { %v1272_v0 = vor.u32 %v1271_v48, %v1270_v22  ;;  %v2536_v25 = vsel %vm8752_vm9, %v2531_v61, %v2535_v47  ;;  %v1280_v12 = vshll.u32 %v1108_v21, 16  ;;  %v1609_v31 = vshrl.u32 %v1370_v17, 16  ;;  %v303_v61 = vld [vmem:[%s8716_s10 + $0xb8] sm:$0xff] }
 0x112   : > { %v7956_v60 = vcombine.low %v2528_v33, %v2536_v25  ;;  %v1261_v63 = vsel %vm8752_vm9, %v1259_v15, %v1260_v62  ;;  %v1263_v2 = vor.u32 %v9849_v42, %v1260_v62  ;;  %v1268_v22 = vrot.slane %v1266_v55, 5  ;;  %v485_v33 = vld [vmem:[#allocation2 + $0xc0] sm:$0x8] }
 0x113   : > { %v1273_v11 = vrot.slane %v1272_v0, 4  ;;  %v1277_v45 = vor.u32 %v1276_v46, %v1274_v35  ;;  %v1282_v48 = vrot.slane %v1280_v12, 5  ;;  %v7797_v8 = vrot.slane %v1609_v31, 11  ;;  %v9960_v31 = vpop.permute.xlu0 %3189 }
 0x114   : > { %3311 = vrot.lane.b32.xlu1 %v7940_v40, %s8616_s14  ;;  %3391 = vrot.lane.b32.xlu0 %v7956_v60, %s8620_s18  ;;  %v1264_v57 = vrot.slane %v1263_v2, 4  ;;  %v1614_v21 = vshrl.u32 %v9928_v14, 16  ;;  %v1617_v17 = vshll.u32 %v9928_v14, 16  ;;  %v1623_v42 = vshrl.u32 %v9934_v7, 16  ;;  %v9954_v40 = vld [vmem:[%s13898_s1] ss:$0 sm:$0xff] }
 0x115   : > { %v1275_v47 = vsel %vm8752_vm9, %v1273_v11, %v1274_v35  ;;  %v1278_v15 = vrot.slane %v1277_v45, 4  ;;  %v1626_v46 = vshll.u32 %v9934_v7, 16  ;;  %v341_v62 = vmul.f32 %v9954_v40, %v302_v24 }
 0x116   : > { %v1269_v55 = vsel %vm8752_vm9, %v1264_v57, %v1268_v22  ;;  %v1616_v0 = vrot.slane %v1614_v21, 7  ;;  %v1625_v25 = vrot.slane %v1623_v42, 7  ;;  %v342_v12 = vmul.f32 %v9954_v40, %v303_v61 }
 0x117   : > { %v7861_v35 = vcombine.low %v1261_v63, %v1269_v55  ;;  %v1283_v60 = vsel %vm8752_vm9, %v1278_v15, %v1282_v48  ;;  %v380_v2 = vadd.f32 %v9793_v16, %v341_v62  ;;  %v486_v11 = vsel %vm8692_vm3, 0, %v485_v33  ;;  %v9971_v63 = vpop.permute.xlu1 %3031 }
 0x118   : > { %v14171_v24 = vcombine.low %v9818_v6, %v9824_v20  ;;  %v7862_v22 = vcombine.low %v1275_v47, %v1283_v60  ;;  %v1619_v45 = vor.u32 %v1617_v17, %v1616_v0  ;;  %v1621_v57 = vrot.slane %v1616_v0, 4  ;;  %487 = vst [vmem:[#allocation2 + $0xc0] sm:$0x8] %v486_v11  ;;  %v1750_v0 = vld [vmem:[#allocation2 + $0xbc] sm:$0x1]  ;;  %v9997_v60 = vpop.permute.xlu0 %3301 }
 0x119   : > { %v1628_v61 = vor.u32 %v1626_v46, %v1625_v25  ;;  %2849 = vrot.lane.b32.xlu0 %v7861_v35, %s8614_s12  ;;  %v381_v48 = vadd.f32 %v9793_v16, %v342_v12  ;;  %v412_v15 = vmax.f32 %v380_v2, 0.0  ;;  %v3625_v33 = vsel %vm3619_vm7, %v9885_v28, %v9741_v49  ;;  %v536_v35 = vld [vmem:[#allocation2 + $0xcc] sm:$0x1] }
 0x11a   : > { %2769 = vrot.lane.b32.xlu1 %v14171_v24, %s8613_s11  ;;  %v3627_v6 = vsel %vm3619_vm7, %v9889_v30, %v9801_v32  ;;  %v1620_v20 = vsel %vm8952_vm11, %v7797_v8, %v1619_v45  ;;  %v9987_v62 = vcombine.low %v9928_v14, %v9934_v7  ;;  %v3658_v55 = vsel %vm3652_vm10, %v3625_v33, %v9768_v27  ;;  %v710_v27 = vld [vmem:[#allocation2 + $0x50] sm:$0x8] }
 0x11b   : > { %v1629_v47 = vsel %vm8952_vm11, %v1621_v57, %v1628_v61  ;;  %v413_v49 = vmax.f32 %v381_v48, 0.0  ;;  %v8270_v28 = vpack.c.bf16 %v412_v15, %v412_v15  ;;  %v834_v12 = vshrl.u32 %v707_v29, 16  ;;  %8379 = vmatprep.mubr.msk.bf16.mxu0 %vm3712_vm6, %v3658_v55 }
 0x11c   : > { %14172 = vst [vmem:[#allocation27_spill] sm:$0xff] %v9987_v62  ;;  %v7877_v25 = vcombine.low %v1620_v20, %v1629_v47  ;;  %v14173_v32 = vcombine.low %v9879_v59, %v9897_v23  ;;  %v846_v30 = vrot.slane %v9180_v3, 4  ;;  %v1896_v8 = vrot.slane %v1614_v21, 4  ;;  %v305_v20 = vld [vmem:[%s8716_s10 + $0xc8] sm:$0xff] }
 0x11d   : > { %v1897_v14 = vrot.slane %v1617_v17, 5  ;;  %v1900_v7 = vrot.slane %v1626_v46, 5  ;;  %v8271_v29 = vpack.c.bf16 %v413_v49, %v413_v49  ;;  %685 = vst.msk [vmem:[#allocation2 + $0xc4] sm:$0xf] %vm438_vm0, %v8270_v28  ;;  %v7775_v2 = vrot.slane %v834_v12, 11  ;;  %v304_v17 = vld [vmem:[%s8716_s10 + $0xc0] sm:$0xff]  ;;  %v10009_v46 = vpop.permute.xlu1 %3111 }
 0x11e   : > { %2771 = vrot.lane.b32.xlu1 %v14173_v32, %s8613_s11  ;;  %2929 = vrot.lane.b32.xlu0 %v7877_v25, %s8617_s15  ;;  %v1902_v11 = vrot.slane %v1623_v42, 4  ;;  %v1906_v24 = vshll.u32 %v1750_v0, 16  ;;  %v854_v59 = vsel %vm8952_vm11, %v846_v30, %v9198_v13  ;;  %v537_v23 = vsel %vm8721_vm8, 0, %v536_v35  ;;  %v488_v25 = vld [vmem:[#allocation2 + $0xd0] sm:$0x8]  ;;  %v14174_v12 = vld [vmem:[#allocation7_spill] sm:$0xff]  ;;  %v10029_v35 = vpop.permute.xlu0 %3381 }
 0x11f   : > { %v1898_v3 = vor.u32 %v1897_v14, %v1896_v8  ;;  %v3660_v21 = vsel %vm3652_vm10, %v3627_v6, %v9783_v36  ;;  %686 = vst.msk [vmem:[#allocation2 + $0xc8] sm:$0xf] %vm438_vm0, %v8271_v29  ;;  %v1373_v45 = vld [vmem:[#allocation2 + $0xc0] sm:$0x8]  ;;  %v845_v42 = vsel %vm8952_vm11, %v7775_v2, %v9188_v51  ;;  %538 = vst [vmem:[#allocation2 + $0xcc] sm:$0x1] %v537_v23 }
 0x120   : > { %v1903_v57 = vor.u32 %v1902_v11, %v1900_v7  ;;  %v1908_v13 = vrot.slane %v1906_v24, 5  ;;  %v856_v61 = vshrl.u32 %v710_v27, 16  ;;  %v2011_v48 = vld [vmem:[#allocation2 + $0xc0] sm:$0x8]  ;;  %8380 = vmatmul.mubr.msk.bf16.gmra.mxu0 %vm3712_vm6, %v3660_v21  ;;  %v1631_v36 = vshrl.u32 %v1373_v45, 16  ;;  %v306_v27 = vld [vmem:[%s8716_s10 + $0xd0] sm:$0xff] }
 0x121   : > { %v7823_v15 = vcombine.low %v845_v42, %v854_v59  ;;  %v1899_v33 = vrot.slane %v1898_v3, 4  ;;  %v868_v6 = vrot.slane %v9208_v52, 4  ;;  %v2250_v55 = vshrl.u32 %v2011_v48, 16  ;;  %v14175_v30 = vld [vmem:[#allocation4_spill] sm:$0xff]  ;;  %v10045_v3 = vpop.permute.xlu1 %3191 }
 0x122   : > { %2851 = vrot.lane.b32.xlu1 %v7862_v22, %s8614_s12  ;;  %3041 = vrot.lane.b32.xlu0 %v9987_v62, %s8615_s13  ;;  %v1904_v51 = vrot.slane %v1903_v57, 4  ;;  %v7776_v47 = vrot.slane %v856_v61, 11  ;;  %v343_v0 = vmul.f32 %v9954_v40, %v304_v17  ;;  %v7798_v49 = vrot.slane %v1631_v36, 11 }
 0x123   : > { %v3420_v22 = vsel %vm3405_vm12, %v7823_v15, %v9840_v44  ;;  %v1901_v28 = vsel %vm8752_vm9, %v1899_v33, %v1900_v7  ;;  %v876_v52 = vsel %vm8952_vm11, %v868_v6, %v14174_v12  ;;  %v10036_v14 = vrot.slane %v2250_v55, 11 }
 0x124   : > { %v1909_v32 = vsel %vm8752_vm9, %v1904_v51, %v1908_v13  ;;  %v867_v8 = vsel %vm8952_vm11, %v7776_v47, %v14175_v30  ;;  %v344_v44 = vmul.f32 %v9954_v40, %v305_v20  ;;  %v1374_v29 = vld [vmem:[#allocation2 + $0xc4] sm:$0xf]  ;;  %v382_v24 = vadd.f32 %v9793_v16, %v343_v0 }
 0x125   : > { %v7909_v7 = vcombine.low %v1901_v28, %v1909_v32  ;;  %v7824_v2 = vcombine.low %v867_v8, %v876_v52  ;;  %v10040_v11 = vld [vmem:[#allocation2 + $0xc4] sm:$0xf]  ;;  %v489_v59 = vsel %vm8692_vm3, 0, %v488_v25  ;;  %v1636_v23 = vshrl.u32 %v1374_v29, 16  ;;  %v10064_v25 = vpop.permute.xlu0 %3383 }
 0x126   : > { %v1639_v21 = vshll.u32 %v1374_v29, 16  ;;  %v2255_v17 = vshrl.u32 %v10040_v11, 16  ;;  %v2258_v45 = vshll.u32 %v10040_v11, 16  ;;  %490 = vst [vmem:[#allocation2 + $0xd0] sm:$0x8] %v489_v59  ;;  %v383_v61 = vadd.f32 %v9793_v16, %v344_v44  ;;  %v10068_v44 = vpop.permute.xlu1 %3303 }
 0x127   : > { %v1375_v42 = vld [vmem:[#allocation2 + $0xc8] sm:$0xf]  ;;  %3121 = vrot.lane.b32.xlu0 %v7909_v7, %s8619_s17  ;;  %v1751_v57 = vld [vmem:[#allocation2 + $0xcc] sm:$0x1]  ;;  %v3423_v13 = vsel %vm3405_vm12, %v7824_v2, %v9891_v54  ;;  %v3464_v48 = vsel %vm3454_vm13, %v3420_v22, %v9829_v43  ;;  %v10056_v36 = vmul.f32 %v9954_v40, %v306_v27  ;;  %v1638_v15 = vrot.slane %v1636_v23, 7 }
 0x128   : > { %v1645_v33 = vshrl.u32 %v1375_v42, 16  ;;  %v1648_v6 = vshll.u32 %v1375_v42, 16  ;;  %v10058_v20 = vcombine.low %v1374_v29, %v1375_v42  ;;  %v1910_v51 = vrot.slane %v1636_v23, 4  ;;  %v10060_v0 = vld [vmem:[#allocation2 + $0xc8] sm:$0xf] }
 0x129   : > { %v1911_v47 = vrot.slane %v1639_v21, 5  ;;  %v1920_v55 = vshll.u32 %v1751_v57, 16  ;;  %v2257_v54 = vrot.slane %v2255_v17, 7  ;;  %v1641_v28 = vor.u32 %v1639_v21, %v1638_v15 }
 0x12a   : > { %14176 = vst [vmem:[#allocation7_spill] sm:$0xff] %v10058_v20  ;;  %v1643_v43 = vrot.slane %v1638_v15, 4  ;;  %v1647_v22 = vrot.slane %v1645_v33, 7  ;;  %v1914_v12 = vrot.slane %v1648_v6, 5  ;;  %v1916_v32 = vrot.slane %v1645_v33, 4 }
 0x12b   : > { %v1912_v52 = vor.u32 %v1911_v47, %v1910_v51  ;;  %v1922_v30 = vrot.slane %v1920_v55, 5  ;;  %v2260_v8 = vor.u32 %v2258_v45, %v2257_v54  ;;  %v1642_v27 = vsel %vm8952_vm11, %v7798_v49, %v1641_v28  ;;  %v10081_v28 = vpop.permute.xlu0 %2841 }
 0x12c   : > { %v1650_v29 = vor.u32 %v1648_v6, %v1647_v22  ;;  %v2262_v7 = vrot.slane %v2257_v54, 4  ;;  %v2264_v2 = vshrl.u32 %v10060_v0, 16  ;;  %v1917_v23 = vor.u32 %v1916_v32, %v1914_v12 }
 0x12d   : > { %v1913_v59 = vrot.slane %v1912_v52, 4  ;;  %v2261_v21 = vsel %vm8952_vm11, %v10036_v14, %v2260_v8  ;;  %v2267_v42 = vshll.u32 %v10060_v0, 16  ;;  %v2014_v57 = vld [vmem:[#allocation2 + $0xd0] sm:$0x8]  ;;  %v414_v51 = vmax.f32 %v382_v24, 0.0 }
 0x12e   : > { %v1651_v15 = vsel %vm8952_vm11, %v1643_v43, %v1650_v29  ;;  %v2266_v33 = vrot.slane %v2264_v2, 7  ;;  %v415_v47 = vmax.f32 %v383_v61, 0.0  ;;  %v1918_v55 = vrot.slane %v1917_v23, 4  ;;  %v10085_v8 = vld [vmem:[#allocation2 + $0xc4] sm:$0xf] }
 0x12f   : > { %v7878_v49 = vcombine.low %v1642_v27, %v1651_v15  ;;  %v1915_v6 = vsel %vm8752_vm9, %v1913_v59, %v1914_v12  ;;  %v2272_v54 = vshrl.u32 %v2014_v57, 16  ;;  %v8272_v52 = vpack.c.bf16 %v414_v51, %v414_v51  ;;  %v2391_v27 = vld [vmem:[#allocation2 + $0xcc] sm:$0x1]  ;;  %v10096_v29 = vld [vmem:[#allocation2 + $0xc8] sm:$0xf]  ;;  %v10098_v59 = vpop.permute.xlu1 %2761 }
 0x130   : > { %v2269_v22 = vor.u32 %v2267_v42, %v2266_v33  ;;  %v8273_v14 = vpack.c.bf16 %v415_v47, %v415_v47  ;;  %v3466_v32 = vsel %vm3454_vm13, %v3423_v13, %v9913_v10  ;;  %v1923_v24 = vsel %vm8752_vm9, %v1918_v55, %v1922_v30 }
 0x131   : > { %2931 = vrot.lane.b32.xlu1 %v7878_v49, %s8617_s15  ;;  %v10090_v61 = vrot.slane %v2272_v54, 11  ;;  %v7941_v43 = vcombine.low %v10040_v11, %v10060_v0  ;;  %v3497_v12 = vsel %vm3487_vm14, %v3464_v48, %v9867_v18  ;;  %v7910_v10 = vcombine.low %v1915_v6, %v1923_v24  ;;  %687 = vst.msk [vmem:[#allocation2 + $0xd4] sm:$0xf] %vm438_vm0, %v8272_v52  ;;  %v539_v6 = vld [vmem:[#allocation2 + $0xdc] sm:$0x1] }
 0x132   : > { %v2270_v13 = vsel %vm8952_vm11, %v2262_v7, %v2269_v22  ;;  %688 = vst.msk [vmem:[#allocation2 + $0xd8] sm:$0xf] %vm438_vm0, %v8273_v14  ;;  %v3499_v30 = vsel %vm3487_vm14, %v3466_v32, %v9940_v34  ;;  %v2537_v0 = vrot.slane %v2255_v17, 4  ;;  %v2538_v48 = vrot.slane %v2258_v45, 5  ;;  %v10119_v45 = vpop.permute.xlu0 %2921 }
 0x133   : > { %v7925_v18 = vcombine.low %v2261_v21, %v2270_v13  ;;  %v2541_v23 = vrot.slane %v2267_v42, 5  ;;  %v2543_v57 = vrot.slane %v2264_v2, 4  ;;  %v2547_v15 = vshll.u32 %v2391_v27, 16  ;;  %v10129_v14 = vpop.permute.xlu1 %2763 }
 0x134   : > { %v1015_v33 = vshrl.u32 %v10085_v8, 16  ;;  %v1018_v7 = vshll.u32 %v10085_v8, 16  ;;  %v1024_v51 = vshrl.u32 %v10096_v29, 16  ;;  %v2539_v34 = vor.u32 %v2538_v48, %v2537_v0 }
 0x135   : > { %3043 = vrot.lane.b32.xlu1 %v10058_v20, %s8615_s13  ;;  %3201 = vrot.lane.b32.xlu0 %v7925_v18, %s8618_s16  ;;  %v2544_v17 = vor.u32 %v2543_v57, %v2541_v23  ;;  %v1027_v21 = vshll.u32 %v10096_v29, 16  ;;  %v2549_v2 = vrot.slane %v2547_v15, 5  ;;  %v3530_v13 = vsel %vm3520_vm15, %v3497_v12, %v9907_v58 }
 0x136   : > { %v10121_v42 = vrot.slane %v1015_v33, 7  ;;  %v1026_v47 = vrot.slane %v1024_v51, 7  ;;  %v10123_v49 = vrot.slane %v1015_v33, 4  ;;  %v2540_v55 = vrot.slane %v2539_v34, 4 }
 0x137   : > { %v2545_v54 = vrot.slane %v2544_v17, 4  ;;  %v10125_v22 = vrot.slane %v1018_v7, 5  ;;  %v10127_v52 = vrot.slane %v1027_v21, 5  ;;  %v10136_v27 = vrot.slane %v1024_v51, 4 }
 0x138   : > { %v10132_v32 = vor.u32 %v1018_v7, %v10121_v42  ;;  %v10134_v24 = vor.u32 %v1027_v21, %v1026_v47  ;;  %v10141_v0 = vld [vmem:[#allocation2 + $0xd4] sm:$0xf]  ;;  %v2542_v48 = vsel %vm8752_vm9, %v2540_v55, %v2541_v23  ;;  %v540_v58 = vsel %vm8721_vm8, 0, %v539_v6  ;;  %v10166_v21 = vpop.permute.xlu0 %3033 }
 0x139   : > { %3123 = vrot.lane.b32.xlu1 %v7910_v10, %s8619_s17  ;;  %v10143_v18 = vld [vmem:[#allocation2 + $0xd8] sm:$0xf]  ;;  %3313 = vrot.lane.b32.xlu0 %v7941_v43, %s8616_s14  ;;  %v2550_v57 = vsel %vm8752_vm9, %v2545_v54, %v2549_v2  ;;  %v1286_v15 = vor.u32 %v10125_v22, %v10123_v49  ;;  %v2277_v12 = vshrl.u32 %v10141_v0, 16  ;;  %v2280_v10 = vshll.u32 %v10141_v0, 16  ;;  %541 = vst [vmem:[#allocation2 + $0xdc] sm:$0x1] %v540_v58 }
 0x13a   : > { %14177 = vst [vmem:[#allocation4_spill] sm:$0xff] %v10132_v32  ;;  %14178 = vst [vmem:[#allocation28_spill] sm:$0xff] %v10134_v24  ;;  %v2286_v33 = vshrl.u32 %v10143_v18, 16  ;;  %v2289_v43 = vshll.u32 %v10143_v18, 16  ;;  %v10158_v7 = vld [vmem:[#allocation2 + $0xd4] sm:$0xf]  ;;  %v7942_v23 = vcombine.low %v10141_v0, %v10143_v18  ;;  %v7957_v51 = vcombine.low %v2542_v48, %v2550_v57 }
 0x13b   : > { %v1291_v34 = vor.u32 %v10136_v27, %v10127_v52  ;;  %v3532_v17 = vsel %vm3520_vm15, %v3499_v30, %v9971_v63  ;;  %v2279_v2 = vrot.slane %v2277_v12, 7  ;;  %v2551_v49 = vrot.slane %v2277_v12, 4  ;;  %v10168_v55 = vld [vmem:[#allocation2 + $0xd8] sm:$0xf]  ;;  %v10173_v27 = vpop.permute.xlu1 %2843 }
 0x13c   : > { %v2288_v47 = vrot.slane %v2286_v33, 7  ;;  %v2552_v6 = vrot.slane %v2280_v10, 5  ;;  %v2555_v54 = vrot.slane %v2289_v43, 5  ;;  %v2557_v22 = vrot.slane %v2286_v33, 4 }
 0x13d   : > { %3393 = vrot.lane.b32.xlu0 %v7957_v51, %s8620_s18  ;;  %v1037_v0 = vshrl.u32 %v10158_v7, 16  ;;  %v1040_v18 = vshll.u32 %v10158_v7, 16  ;;  %v2282_v48 = vor.u32 %v2280_v10, %v2279_v2  ;;  %v2284_v63 = vrot.slane %v2279_v2, 4 }
 0x13e   : > { %v2291_v30 = vor.u32 %v2289_v43, %v2288_v47  ;;  %v2553_v57 = vor.u32 %v2552_v6, %v2551_v49  ;;  %v2558_v58 = vor.u32 %v2557_v22, %v2555_v54  ;;  %v1046_v12 = vshrl.u32 %v10168_v55, 16  ;;  %v1109_v6 = vld [vmem:[#allocation2 + $0xcc] sm:$0x1]  ;;  %v10187_v22 = vpop.permute.xlu0 %3113 }
 0x13f   : > { %v10175_v11 = vrot.slane %v1037_v0, 7  ;;  %v1049_v20 = vshll.u32 %v10168_v55, 16  ;;  %v2283_v33 = vsel %vm8952_vm11, %v10090_v61, %v2282_v48  ;;  %v1298_v56 = vrot.slane %v1037_v0, 4 }
 0x140   : > { %v2292_v51 = vsel %vm8952_vm11, %v2284_v63, %v2291_v30  ;;  %v2554_v62 = vrot.slane %v2553_v57, 4  ;;  %v2392_v2 = vld [vmem:[#allocation2 + $0xdc] sm:$0x1]  ;;  %v2559_v43 = vrot.slane %v2558_v58, 4  ;;  %v1048_v49 = vrot.slane %v1046_v12, 7  ;;  %v10198_v58 = vpop.permute.xlu1 %2923 }
 0x141   : > { %v7926_v10 = vcombine.low %v2283_v33, %v2292_v51  ;;  %v10185_v47 = vor.u32 %v1040_v18, %v10175_v11  ;;  %v2561_v38 = vshll.u32 %v2392_v2, 16  ;;  %v1299_v61 = vrot.slane %v1040_v18, 5  ;;  %v1110_v24 = vld [vmem:[#allocation2 + $0xdc] sm:$0x1]  ;;  %v1376_v18 = vld [vmem:[#allocation2 + $0xd0] sm:$0x8] }
 0x142   : > { %v2556_v32 = vsel %vm8752_vm9, %v2554_v62, %v2555_v54  ;;  %v1302_v48 = vrot.slane %v1049_v20, 5  ;;  %v10192_v0 = vor.u32 %v1049_v20, %v1048_v49  ;;  %v1304_v63 = vrot.slane %v1046_v12, 4  ;;  %v1377_v12 = vld [vmem:[#allocation2 + $0xd4] sm:$0xf] }
 0x143   : > { %3203 = vrot.lane.b32.xlu1 %v7926_v10, %s8618_s16  ;;  %v7848_v30 = vcombine.low %v10158_v7, %v10168_v55  ;;  %v3563_v57 = vsel %vm3553_vm1, %v3530_v13, %v9930_v5  ;;  %v2563_v33 = vrot.slane %v2561_v38, 5  ;;  %v1300_v51 = vor.u32 %v1299_v61, %v1298_v56  ;;  %v307_v61 = vld [vmem:[%s8716_s10 + $0xd8] sm:$0xff] }
 0x144   : > { %v3565_v62 = vsel %vm3553_vm1, %v3532_v17, %v10009_v46  ;;  %v1287_v54 = vrot.slane %v1286_v15, 4  ;;  %v1305_v2 = vor.u32 %v1304_v63, %v1302_v48  ;;  %v1292_v10 = vrot.slane %v1291_v34, 4  ;;  %v1378_v46 = vld [vmem:[#allocation2 + $0xd8] sm:$0xf]  ;;  %v10210_v17 = vpop.permute.xlu0 %3193 }
 0x145   : > { %v1294_v20 = vshll.u32 %v1109_v6, 16  ;;  %v1308_v49 = vshll.u32 %v1110_v24, 16  ;;  %v2564_v7 = vsel %vm8752_vm9, %v2559_v43, %v2563_v33  ;;  %v1301_v38 = vrot.slane %v1300_v51, 4  ;;  %v10222_v33 = vpop.permute.xlu1 %3035 }
 0x146   : > { %v1289_v5 = vsel %vm8752_vm9, %v1287_v54, %v10127_v52  ;;  %v3596_v56 = vsel %vm3586_vm5, %v3563_v57, %v9960_v31  ;;  %v7958_v13 = vcombine.low %v2556_v32, %v2564_v7  ;;  %v1306_v34 = vrot.slane %v1305_v2, 4  ;;  %v491_v57 = vld [vmem:[#allocation2 + $0xe0] sm:$0x8] }
 0x147   : > { %3315 = vrot.lane.b32.xlu1 %v7942_v23, %s8616_s14  ;;  %v1296_v15 = vrot.slane %v1294_v20, 5  ;;  %v1310_v24 = vrot.slane %v1308_v49, 5  ;;  %v1303_v55 = vsel %vm8752_vm9, %v1301_v38, %v1302_v48  ;;  %v3598_v43 = vsel %vm3586_vm5, %v3565_v62, %v10045_v3  ;;  %v713_v49 = vld [vmem:[#allocation2 + $0x60] sm:$0x8] }
 0x148   : > { %v1653_v52 = vshrl.u32 %v1376_v18, 16  ;;  %v1658_v6 = vshrl.u32 %v1377_v12, 16  ;;  %3395 = vrot.lane.b32.xlu0 %v7958_v13, %s8620_s18  ;;  %v1661_v23 = vshll.u32 %v1377_v12, 16  ;;  %v1667_v63 = vshrl.u32 %v1378_v46, 16 }
 0x149   : > { %v1297_v31 = vsel %vm8752_vm9, %v1292_v10, %v1296_v15  ;;  %v1311_v32 = vsel %vm8752_vm9, %v1306_v34, %v1310_v24  ;;  %v14179_v62 = vcombine.low %v10085_v8, %v10096_v29  ;;  %v1670_v2 = vshll.u32 %v1378_v46, 16 }
 0x14a   : > { %v7863_v48 = vcombine.low %v1289_v5, %v1297_v31  ;;  %v7864_v51 = vcombine.low %v1303_v55, %v1311_v32  ;;  %v7799_v54 = vrot.slane %v1653_v52, 11  ;;  %v1660_v3 = vrot.slane %v1658_v6, 7  ;;  %v14181_v31 = vld [vmem:[#allocation14_spill] sm:$0xff]  ;;  %v542_v32 = vld [vmem:[#allocation2 + $0xec] sm:$0x1] }
 0x14b   : > { %2773 = vrot.lane.b32.xlu1 %v14179_v62, %s8613_s11  ;;  %v1669_v18 = vrot.slane %v1667_v63, 7  ;;  %v346_v10 = vmul.f32 %v9954_v40, %v307_v61  ;;  %v384_v20 = vadd.f32 %v9793_v16, %v10056_v36  ;;  %v492_v5 = vsel %vm8692_vm3, 0, %v491_v57  ;;  %v10239_v36 = vpop.permute.xlu0 %3305 }
 0x14c   : > { %v1663_v7 = vor.u32 %v1661_v23, %v1660_v3  ;;  %v1665_v38 = vrot.slane %v1660_v3, 4  ;;  %v3629_v13 = vsel %vm3619_vm7, %v3596_v56, %v9997_v60  ;;  %2853 = vrot.lane.b32.xlu0 %v7863_v48, %s8614_s12  ;;  %493 = vst [vmem:[#allocation2 + $0xe0] sm:$0x8] %v492_v5  ;;  %v3631_v34 = vsel %vm3619_vm7, %v3598_v43, %v10068_v44  ;;  %v1752_v43 = vld [vmem:[#allocation2 + $0xdc] sm:$0x1]  ;;  %v14182_v3 = vld [vmem:[#allocation5_spill] sm:$0xff] }
 0x14d   : > { %v1672_v8 = vor.u32 %v1670_v2, %v1669_v18  ;;  %v385_v29 = vadd.f32 %v9793_v16, %v346_v10  ;;  %v416_v15 = vmax.f32 %v384_v20, 0.0  ;;  %v10243_v55 = vcombine.low %v1377_v12, %v1378_v46  ;;  %v10252_v12 = vpop.permute.xlu1 %3115  ;;  %v308_v20 = vld [vmem:[%s8716_s10 + $0xe0] sm:$0xff] }
 0x14e   : > { %v1664_v24 = vsel %vm8952_vm11, %v7799_v54, %v1663_v7  ;;  %v3662_v60 = vsel %vm3652_vm10, %v3629_v13, %v10029_v35  ;;  %v878_v56 = vshrl.u32 %v713_v49, 16  ;;  %v890_v44 = vrot.slane %v14181_v31, 4  ;;  %v716_v54 = vld [vmem:[#allocation2 + $0x70] sm:$0x8]  ;;  %v14183_v49 = vld [vmem:[#allocation15_spill] sm:$0xff] }
 0x14f   : > { %14180 = vst [vmem:[#allocation29_spill] sm:$0xff] %v10243_v55  ;;  %2775 = vrot.lane.b32.xlu1 %v7848_v30, %s8613_s11  ;;  %v1673_v16 = vsel %vm8952_vm11, %v1665_v38, %v1672_v8  ;;  %v417_v52 = vmax.f32 %v385_v29, 0.0  ;;  %v8274_v61 = vpack.c.bf16 %v416_v15, %v416_v15  ;;  %8383 = vmatprep.mubr.msk.bf16.mxu0 %vm3712_vm6, %v3662_v60  ;;  %v1924_v35 = vrot.slane %v1658_v6, 4  ;;  %v309_v8 = vld [vmem:[%s8716_s10 + $0xe8] sm:$0xff]  ;;  %v10270_v29 = vpop.permute.xlu0 %3385 }
 0x150   : > { %v7879_v46 = vcombine.low %v1664_v24, %v1673_v16  ;;  %v7777_v57 = vrot.slane %v878_v56, 11  ;;  %v1925_v48 = vrot.slane %v1661_v23, 5  ;;  %v898_v62 = vsel %vm8952_vm11, %v890_v44, %v14182_v3  ;;  %v14184_v56 = vld [vmem:[#allocation9_spill] sm:$0xff]  ;;  %v10295_v3 = vld [vmem:[%s13899_s2] ss:$0 sm:$0xff] }
 0x151   : > { %v8275_v30 = vpack.c.bf16 %v417_v52, %v417_v52  ;;  %689 = vst.msk [vmem:[#allocation2 + $0xe4] sm:$0xf] %vm438_vm0, %v8274_v61  ;;  %v1928_v18 = vrot.slane %v1670_v2, 5  ;;  %v1930_v10 = vrot.slane %v1667_v63, 4  ;;  %v1934_v23 = vshll.u32 %v1752_v43, 16  ;;  %v10277_v44 = vpop.permute.xlu1 %3195 }
 0x152   : > { %2933 = vrot.lane.b32.xlu0 %v7879_v46, %s8617_s15  ;;  %v889_v7 = vsel %vm8952_vm11, %v7777_v57, %v14183_v49  ;;  %v1926_v6 = vor.u32 %v1925_v48, %v1924_v35  ;;  %v543_v38 = vsel %vm8721_vm8, 0, %v542_v32  ;;  %v3664_v63 = vsel %vm3652_vm10, %v3631_v34, %v10064_v25  ;;  %v14185_v32 = vld [vmem:[#allocation24_spill] sm:$0xff] }
 0x153   : > { %2855 = vrot.lane.b32.xlu1 %v7864_v51, %s8614_s12  ;;  %690 = vst.msk [vmem:[#allocation2 + $0xe8] sm:$0xf] %vm438_vm0, %v8275_v30  ;;  %v7825_v5 = vcombine.low %v889_v7, %v898_v62  ;;  %v1931_v13 = vor.u32 %v1930_v10, %v1928_v18  ;;  %544 = vst [vmem:[#allocation2 + $0xec] sm:$0x1] %v543_v38  ;;  %v900_v2 = vshrl.u32 %v716_v54, 16  ;;  %v1936_v60 = vrot.slane %v1934_v23, 5 }
 0x154   : > { %v1379_v15 = vld [vmem:[#allocation2 + $0xe0] sm:$0x8]  ;;  %v1927_v24 = vrot.slane %v1926_v6, 4  ;;  %v912_v16 = vrot.slane %v14184_v56, 4  ;;  %v347_v52 = vmul.f32 %v9954_v40, %v308_v20  ;;  %8384 = vmatmul.mubr.msk.bf16.gmra.mxu0 %vm3712_vm6, %v3664_v63  ;;  %v348_v35 = vmul.f32 %v9954_v40, %v309_v8  ;;  %v311_v10 = vld [vmem:[%s8716_s10 + $0xf8] sm:$0xff]  ;;  %v10307_v8 = vpop.permute.xlu0 %3387 }
 0x155   : > { %v1675_v51 = vshrl.u32 %v1379_v15, 16  ;;  %v3426_v61 = vsel %vm3405_vm12, %v7825_v5, %v10098_v59  ;;  %v1932_v25 = vrot.slane %v1931_v13, 4  ;;  %v7778_v34 = vrot.slane %v900_v2, 11  ;;  %v2017_v31 = vld [vmem:[#allocation2 + $0xe0] sm:$0x8] }
 0x156   : > { %3045 = vrot.lane.b32.xlu0 %v10243_v55, %s8615_s13  ;;  %v1929_v43 = vsel %vm8752_vm9, %v1927_v24, %v1928_v18  ;;  %v920_v46 = vsel %vm8952_vm11, %v912_v16, %v14185_v32  ;;  %v2294_v57 = vshrl.u32 %v2017_v31, 16  ;;  %v14186_v54 = vld [vmem:[#allocation8_spill] sm:$0xff]  ;;  %v386_v62 = vadd.f32 %v10295_v3, %v347_v52  ;;  %v310_v18 = vld [vmem:[%s8716_s10 + $0xf0] sm:$0xff] }
 0x157   : > { %v7800_v59 = vrot.slane %v1675_v51, 11  ;;  %v1937_v48 = vsel %vm8752_vm9, %v1932_v25, %v1936_v60  ;;  %v911_v30 = vsel %vm8952_vm11, %v7778_v34, %v14186_v54  ;;  %v387_v38 = vadd.f32 %v10295_v3, %v348_v35 }
 0x158   : > { %v1380_v20 = vld [vmem:[#allocation2 + $0xe4] sm:$0xf]  ;;  %v7911_v49 = vcombine.low %v1929_v43, %v1937_v48  ;;  %v7826_v7 = vcombine.low %v911_v30, %v920_v46  ;;  %v10302_v23 = vrot.slane %v2294_v57, 11  ;;  %v3468_v56 = vsel %vm3454_vm13, %v3426_v61, %v10081_v28  ;;  %v10322_v43 = vpop.permute.xlu1 %3307 }
 0x159   : > { %v10300_v6 = vld [vmem:[#allocation2 + $0xe4] sm:$0xf]  ;;  %v1680_v5 = vshrl.u32 %v1380_v20, 16  ;;  %v1683_v13 = vshll.u32 %v1380_v20, 16  ;;  %v10315_v16 = vmul.f32 %v9954_v40, %v310_v18  ;;  %v10318_v52 = vmul.f32 %v9954_v40, %v311_v10 }
 0x15a   : > { %v2299_v63 = vshrl.u32 %v10300_v6, 16  ;;  %v13937_v2 = vshll.u32 %v10300_v6, 16  ;;  %v1381_v15 = vld [vmem:[#allocation2 + $0xe8] sm:$0xf]  ;;  %3125 = vrot.lane.b32.xlu0 %v7911_v49, %s8619_s17  ;;  %v1753_v24 = vld [vmem:[#allocation2 + $0xec] sm:$0x1]  ;;  %v3429_v60 = vsel %vm3405_vm12, %v7826_v7, %v10129_v14 }
 0x15b   : > { %v1682_v51 = vrot.slane %v1680_v5, 7  ;;  %v1689_v25 = vshrl.u32 %v1381_v15, 16  ;;  %v1692_v34 = vshll.u32 %v1381_v15, 16  ;;  %v10320_v31 = vcombine.low %v1380_v20, %v1381_v15  ;;  %v10324_v14 = vld [vmem:[#allocation2 + $0xe8] sm:$0xf] }
 0x15c   : > { %v1938_v32 = vrot.slane %v1680_v5, 4  ;;  %v1939_v46 = vrot.slane %v1683_v13, 5  ;;  %v1948_v57 = vshll.u32 %v1753_v24, 16  ;;  %v2301_v28 = vrot.slane %v2299_v63, 7  ;;  %v494_v15 = vld [vmem:[#allocation2 + $0xf0] sm:$0x8]  ;;  %v10333_v24 = vpop.permute.xlu0 %2845 }
 0x15d   : > { %14187 = vst [vmem:[#allocation14_spill] sm:$0xff] %v10320_v31  ;;  %v1685_v61 = vor.u32 %v1683_v13, %v1682_v51  ;;  %v1687_v35 = vrot.slane %v1682_v51, 4  ;;  %v1691_v48 = vrot.slane %v1689_v25, 7  ;;  %v1942_v40 = vrot.slane %v1692_v34, 5 }
 0x15e   : > { %v1940_v54 = vor.u32 %v1939_v46, %v1938_v32  ;;  %v1944_v30 = vrot.slane %v1689_v25, 4  ;;  %v1950_v18 = vrot.slane %v1948_v57, 5  ;;  %v2304_v10 = vor.u32 %v13937_v2, %v2301_v28 }
 0x15f   : > { %v1686_v20 = vsel %vm8952_vm11, %v7800_v59, %v1685_v61  ;;  %v1694_v49 = vor.u32 %v1692_v34, %v1691_v48  ;;  %v2306_v7 = vrot.slane %v2301_v28, 4  ;;  %v2308_v5 = vshrl.u32 %v10324_v14, 16  ;;  %v10341_v28 = vpop.permute.xlu1 %2765 }
 0x160   : > { %v1941_v13 = vrot.slane %v1940_v54, 4  ;;  %v1945_v51 = vor.u32 %v1944_v30, %v1942_v40  ;;  %v2305_v25 = vsel %vm8952_vm11, %v10302_v23, %v2304_v10  ;;  %v2311_v32 = vshll.u32 %v10324_v14, 16 }
 0x161   : > { %v1695_v46 = vsel %vm8952_vm11, %v1687_v35, %v1694_v49  ;;  %v2310_v57 = vrot.slane %v2308_v5, 7  ;;  %v418_v59 = vmax.f32 %v386_v62, 0.0  ;;  %v419_v34 = vmax.f32 %v387_v38, 0.0  ;;  %v2393_v49 = vld [vmem:[#allocation2 + $0xec] sm:$0x1] }
 0x162   : > { %v7880_v61 = vcombine.low %v1686_v20, %v1695_v46  ;;  %v1943_v48 = vsel %vm8752_vm9, %v1941_v13, %v1942_v40  ;;  %v1946_v54 = vrot.slane %v1945_v51, 4  ;;  %v495_v30 = vsel %vm8692_vm3, 0, %v494_v15  ;;  %v10358_v15 = vld [vmem:[#allocation2 + $0xe4] sm:$0xf]  ;;  %v10360_v13 = vld [vmem:[#allocation2 + $0xe8] sm:$0xf] }
 0x163   : > { %v2313_v2 = vor.u32 %v2311_v32, %v2310_v57  ;;  %496 = vst [vmem:[#allocation2 + $0xf0] sm:$0x8] %v495_v30  ;;  %v8276_v23 = vpack.c.bf16 %v418_v59, %v418_v59  ;;  %v8277_v10 = vpack.c.bf16 %v419_v34, %v419_v34  ;;  %v3470_v35 = vsel %vm3454_vm13, %v3429_v60, %v10173_v27 }
 0x164   : > { %2935 = vrot.lane.b32.xlu1 %v7880_v61, %s8617_s15  ;;  %v1951_v62 = vsel %vm8752_vm9, %v1946_v54, %v1950_v18  ;;  %v7943_v38 = vcombine.low %v10300_v6, %v10324_v14  ;;  %v3501_v40 = vsel %vm3487_vm14, %v3468_v56, %v10119_v45  ;;  %v3503_v20 = vsel %vm3487_vm14, %v3470_v35, %v10198_v58  ;;  %v10370_v18 = vpop.permute.xlu0 %2925  ;;  %v545_v61 = vld [vmem:[#allocation2 + $0xfc] sm:$0x1] }
 0x165   : > { %v7912_v27 = vcombine.low %v1943_v48, %v1951_v62  ;;  %v2314_v60 = vsel %vm8952_vm11, %v2306_v7, %v2313_v2  ;;  %691 = vst.msk [vmem:[#allocation2 + $0xf4] sm:$0xf] %vm438_vm0, %v8276_v23  ;;  %692 = vst.msk [vmem:[#allocation2 + $0xf8] sm:$0xf] %vm438_vm0, %v8277_v10  ;;  %v2565_v14 = vrot.slane %v2299_v63, 4  ;;  %v14188_v45 = vshll.u32 %v10300_v6, 16  ;;  %v10375_v48 = vpop.permute.xlu1 %2767 }
 0x166   : > { %v7927_v58 = vcombine.low %v2305_v25, %v2314_v60  ;;  %v2569_v51 = vrot.slane %v2311_v32, 5  ;;  %v2571_v46 = vrot.slane %v2308_v5, 4  ;;  %v2575_v57 = vshll.u32 %v2393_v49, 16 }
 0x167   : > { %v2566_v56 = vrot.slane %v14188_v45, 5  ;;  %v13940_v34 = vshrl.u32 %v10358_v15, 16  ;;  %v13939_v2 = vshll.u32 %v10358_v15, 16  ;;  %v13938_v7 = vshrl.u32 %v10360_v13, 16 }
 0x168   : > { %3047 = vrot.lane.b32.xlu1 %v10320_v31, %s8615_s13  ;;  %3205 = vrot.lane.b32.xlu0 %v7927_v58, %s8618_s16  ;;  %v2572_v6 = vor.u32 %v2571_v46, %v2569_v51  ;;  %v2577_v63 = vrot.slane %v2575_v57, 5  ;;  %v13944_v5 = vshll.u32 %v10360_v13, 16  ;;  %v3534_v49 = vsel %vm3520_vm15, %v3501_v40, %v10166_v21  ;;  %v10409_v46 = vpop.permute.xlu0 %3037 }
 0x169   : > { %v2567_v59 = vor.u32 %v2566_v56, %v2565_v14  ;;  %v10385_v54 = vrot.slane %v13940_v34, 4  ;;  %v10389_v30 = vrot.slane %v13939_v2, 5  ;;  %v10393_v23 = vrot.slane %v13938_v7, 4 }
 0x16a   : > { %v2020_v10 = vld [vmem:[#allocation2 + $0xf0] sm:$0x8]  ;;  %v2573_v35 = vrot.slane %v2572_v6, 4  ;;  %v3536_v62 = vsel %vm3520_vm15, %v3503_v20, %v10222_v33  ;;  %v546_v60 = vsel %vm8721_vm8, 0, %v545_v61  ;;  %v3567_v56 = vsel %vm3553_vm1, %v3534_v49, %v10187_v22  ;;  %v10432_v61 = vpop.permute.xlu1 %2847 }
 0x16b   : > { %v2568_v32 = vrot.slane %v2567_v59, 4  ;;  %v2316_v14 = vshrl.u32 %v2020_v10, 16  ;;  %547 = vst [vmem:[#allocation2 + $0xfc] sm:$0x1] %v546_v60  ;;  %v10407_v58 = vsel %vm3553_vm1, %v3536_v62, %v10252_v12  ;;  %v1314_v22 = vor.u32 %v10389_v30, %v10385_v54 }
 0x16c   : > { %3127 = vrot.lane.b32.xlu1 %v7912_v27, %s8619_s17  ;;  %v10412_v21 = vld [vmem:[#allocation2 + $0xf4] sm:$0xf]  ;;  %v10414_v33 = vld [vmem:[#allocation2 + $0xf8] sm:$0xf]  ;;  %3317 = vrot.lane.b32.xlu0 %v7943_v38, %s8616_s14  ;;  %v2578_v40 = vsel %vm8752_vm9, %v2573_v35, %v2577_v63  ;;  %v10425_v12 = vsel %vm3586_vm5, %v3567_v56, %v10210_v17 }
 0x16d   : > { %v2570_v45 = vsel %vm8752_vm9, %v2568_v32, %v2569_v51  ;;  %v10419_v20 = vld [vmem:[#allocation2 + $0xf4] sm:$0xf]  ;;  %v7816_v51 = vrot.slane %v2316_v14, 11  ;;  %v2321_v27 = vshrl.u32 %v10412_v21, 16  ;;  %v2324_v57 = vshll.u32 %v10412_v21, 16 }
 0x16e   : > { %v2330_v59 = vshrl.u32 %v10414_v33, 16  ;;  %v10430_v38 = vld [vmem:[#allocation2 + $0xf8] sm:$0xf]  ;;  %v2333_v6 = vshll.u32 %v10414_v33, 16  ;;  %v7944_v63 = vcombine.low %v10412_v21, %v10414_v33  ;;  %v7959_v32 = vcombine.low %v2570_v45, %v2578_v40  ;;  %v10441_v21 = vpop.permute.xlu0 %3117 }
 0x16f   : > { %v13941_v17 = vshrl.u32 %v10419_v20, 16  ;;  %v2323_v54 = vrot.slane %v2321_v27, 7  ;;  %v2579_v10 = vrot.slane %v2321_v27, 4  ;;  %v2580_v35 = vrot.slane %v2324_v57, 5 }
 0x170   : > { %v2332_v30 = vrot.slane %v2330_v59, 7  ;;  %3397 = vrot.lane.b32.xlu0 %v7959_v32, %s8620_s18  ;;  %v2583_v49 = vrot.slane %v2333_v6, 5  ;;  %v2585_v62 = vrot.slane %v2330_v59, 4  ;;  %v13942_v60 = vshll.u32 %v10419_v20, 16 }
 0x171   : > { %v13943_v14 = vshrl.u32 %v10430_v38, 16  ;;  %v2326_v56 = vor.u32 %v2324_v57, %v2323_v54  ;;  %v2328_v7 = vrot.slane %v2323_v54, 4  ;;  %v2581_v34 = vor.u32 %v2580_v35, %v2579_v10  ;;  %v10452_v35 = vpop.permute.xlu1 %2927 }
 0x172   : > { %v2335_v2 = vor.u32 %v2333_v6, %v2332_v30  ;;  %v2394_v45 = vld [vmem:[#allocation2 + $0xfc] sm:$0x1]  ;;  %v2586_v33 = vor.u32 %v2585_v62, %v2583_v49  ;;  %v1326_v27 = vrot.slane %v13941_v17, 4  ;;  %v1327_v59 = vrot.slane %v13942_v60, 5  ;;  %v1111_v30 = vld [vmem:[#allocation2 + $0xec] sm:$0x1] }
 0x173   : > { %v2327_v32 = vsel %vm8952_vm11, %v7816_v51, %v2326_v56  ;;  %v2582_v6 = vrot.slane %v2581_v34, 4  ;;  %v2589_v54 = vshll.u32 %v2394_v45, 16  ;;  %v1112_v10 = vld [vmem:[#allocation2 + $0xfc] sm:$0x1]  ;;  %v1332_v17 = vrot.slane %v13943_v14, 4 }
 0x174   : > { %v2336_v57 = vsel %vm8952_vm11, %v2328_v7, %v2335_v2  ;;  %v2587_v25 = vrot.slane %v2586_v33, 4  ;;  %v1315_v40 = vrot.slane %v1314_v22, 4  ;;  %v1316_v34 = vrot.slane %v13944_v5, 5  ;;  %v1382_v2 = vld [vmem:[#allocation2 + $0xf0] sm:$0x8] }
 0x175   : > { %v7928_v62 = vcombine.low %v2327_v32, %v2336_v57  ;;  %v2584_v51 = vsel %vm8752_vm9, %v2582_v6, %v2583_v49  ;;  %v2591_v56 = vrot.slane %v2589_v54, 5  ;;  %v1322_v7 = vshll.u32 %v1111_v30, 16  ;;  %v10465_v14 = vld [vmem:[#allocation2 + $0xf4] sm:$0xf]  ;;  %v1384_v54 = vld [vmem:[#allocation2 + $0xf8] sm:$0xf] }
 0x176   : > { %v1328_v45 = vor.u32 %v1327_v59, %v1326_v27  ;;  %v14189_v33 = vshll.u32 %v10430_v38, 16  ;;  %v1336_v57 = vshll.u32 %v1112_v10, 16  ;;  %v1317_v22 = vsel %vm8752_vm9, %v1315_v40, %v1316_v34  ;;  %v10475_v27 = vpop.permute.xlu0 %3197 }
 0x177   : > { %3207 = vrot.lane.b32.xlu1 %v7928_v62, %s8618_s16  ;;  %v2592_v60 = vsel %vm8752_vm9, %v2587_v25, %v2591_v56  ;;  %v1319_v49 = vor.u32 %v10393_v23, %v1316_v34  ;;  %v3602_v6 = vsel %vm3586_vm5, %v10407_v58, %v10277_v44  ;;  %v1324_v30 = vrot.slane %v1322_v7, 5  ;;  %v10478_v56 = vpop.permute.xlu1 %3039 }
 0x178   : > { %v1330_v32 = vrot.slane %v14189_v33, 5  ;;  %v7960_v59 = vcombine.low %v2584_v51, %v2592_v60  ;;  %v1329_v10 = vrot.slane %v1328_v45, 4  ;;  %v1338_v5 = vrot.slane %v1336_v57, 5 }
 0x179   : > { %v1320_v33 = vrot.slane %v1319_v49, 4  ;;  %v1697_v31 = vshrl.u32 %v1382_v2, 16  ;;  %v1702_v25 = vshrl.u32 %v10465_v14, 16  ;;  %v1705_v58 = vshll.u32 %v10465_v14, 16  ;;  %v497_v2 = vld [vmem:[#allocation2 + $0x100] sm:$0x8] }
 0x17a   : > { %v1333_v62 = vor.u32 %v1332_v17, %v1330_v32  ;;  %3399 = vrot.lane.b32.xlu0 %v7960_v59, %s8620_s18  ;;  %v1331_v44 = vsel %vm8752_vm9, %v1329_v10, %v1330_v32  ;;  %v1711_v60 = vshrl.u32 %v1384_v54, 16  ;;  %v1714_v34 = vshll.u32 %v1384_v54, 16 }
 0x17b   : > { %3319 = vrot.lane.b32.xlu1 %v7944_v63, %s8616_s14  ;;  %v1325_v17 = vsel %vm8752_vm9, %v1320_v33, %v1324_v30  ;;  %v7801_v40 = vrot.slane %v1697_v31, 11  ;;  %v1704_v51 = vrot.slane %v1702_v25, 7  ;;  %v388_v57 = vadd.f32 %v10295_v3, %v10315_v16  ;;  %v10493_v30 = vpop.permute.xlu0 %3309 }
 0x17c   : > { %v1334_v23 = vrot.slane %v1333_v62, 4  ;;  %v7865_v7 = vcombine.low %v1317_v22, %v1325_v17  ;;  %v1713_v45 = vrot.slane %v1711_v60, 7  ;;  %v389_v10 = vadd.f32 %v10295_v3, %v10318_v52  ;;  %v719_v62 = vld [vmem:[#allocation2 + $0x80] sm:$0x8]  ;;  %v10512_v17 = vpop.permute.xlu1 %3119 }
 0x17d   : > { %v1707_v49 = vor.u32 %v1705_v58, %v1704_v51  ;;  %v1709_v59 = vrot.slane %v1704_v51, 4  ;;  %v14190_v31 = vcombine.low %v10358_v15, %v10360_v13  ;;  %v420_v22 = vmax.f32 %v388_v57, 0.0 }
 0x17e   : > { %v1339_v63 = vsel %vm8752_vm9, %v1334_v23, %v1338_v5  ;;  %2857 = vrot.lane.b32.xlu0 %v7865_v7, %s8614_s12  ;;  %v1716_v5 = vor.u32 %v1714_v34, %v1713_v45  ;;  %v498_v16 = vsel %vm8692_vm3, 0, %v497_v2  ;;  %v3633_v33 = vsel %vm3619_vm7, %v10425_v12, %v10239_v36  ;;  %v1754_v2 = vld [vmem:[#allocation2 + $0xfc] sm:$0x1] }
 0x17f   : > { %v7866_v32 = vcombine.low %v1331_v44, %v1339_v63  ;;  %2777 = vrot.lane.b32.xlu1 %v14190_v31, %s8613_s11  ;;  %v1708_v3 = vsel %vm8952_vm11, %v7801_v40, %v1707_v49  ;;  %v421_v52 = vmax.f32 %v389_v10, 0.0  ;;  %499 = vst [vmem:[#allocation2 + $0x100] sm:$0x8] %v498_v16  ;;  %v3635_v44 = vsel %vm3619_vm7, %v3602_v6, %v10322_v43  ;;  %v548_v40 = vld [vmem:[#allocation2 + $0x10c] sm:$0x1]  ;;  %v14192_v45 = vld [vmem:[#allocation19_spill] sm:$0xff] }
 0x180   : > { %v10510_v23 = vcombine.low %v10465_v14, %v1384_v54  ;;  %v1717_v1 = vsel %vm8952_vm11, %v1709_v59, %v1716_v5  ;;  %v8278_v51 = vpack.c.bf16 %v420_v22, %v420_v22  ;;  %v3666_v36 = vsel %vm3652_vm10, %v3633_v33, %v10270_v29  ;;  %v722_v14 = vld [vmem:[#allocation2 + $0x90] sm:$0x8]  ;;  %v10534_v16 = vld [vmem:[#allocation2 + $0x114] sm:$0xf] }
 0x181   : > { %v922_v12 = vshrl.u32 %v719_v62, 16  ;;  %v7881_v7 = vcombine.low %v1708_v3, %v1717_v1  ;;  %v8279_v63 = vpack.c.bf16 %v421_v52, %v421_v52  ;;  %v934_v57 = vrot.slane %v14192_v45, 4  ;;  %8387 = vmatprep.mubr.msk.bf16.mxu0 %vm3712_vm6, %v3666_v36  ;;  %v2026_v10 = vld [vmem:[#allocation2 + $0x110] sm:$0x8] }
 0x182   : > { %14191 = vst [vmem:[#allocation5_spill] sm:$0xff] %v10510_v23  ;;  %v1952_v43 = vrot.slane %v1702_v25, 4  ;;  %v14193_v6 = vcombine.low %v10419_v20, %v10430_v38  ;;  %693 = vst.msk [vmem:[#allocation2 + $0x104] sm:$0xf] %vm438_vm0, %v8278_v51  ;;  %v1953_v29 = vrot.slane %v1705_v58, 5  ;;  %v1956_v49 = vrot.slane %v1714_v34, 5  ;;  %v10536_v58 = vpop.permute.xlu0 %3389 }
 0x183   : > { %v7779_v54 = vrot.slane %v922_v12, 11  ;;  %v1958_v59 = vrot.slane %v1711_v60, 4  ;;  %2937 = vrot.lane.b32.xlu0 %v7881_v7, %s8617_s15  ;;  %694 = vst.msk [vmem:[#allocation2 + $0x108] sm:$0xf] %vm438_vm0, %v8279_v63  ;;  %v14194_v25 = vld [vmem:[#allocation21_spill] sm:$0xff]  ;;  %v1962_v31 = vshll.u32 %v1754_v2, 16  ;;  %v3668_v22 = vsel %vm3652_vm10, %v3635_v44, %v10307_v8  ;;  %v10543_v8 = vpop.permute.xlu1 %3199 }
 0x184   : > { %2779 = vrot.lane.b32.xlu1 %v14193_v6, %s8613_s11  ;;  %v942_v62 = vsel %vm8952_vm11, %v934_v57, %v14194_v25  ;;  %v549_v5 = vsel %vm8721_vm8, 0, %v548_v40  ;;  %v14195_v60 = vld [vmem:[#allocation20_spill] sm:$0xff]  ;;  %v1954_v33 = vor.u32 %v1953_v29, %v1952_v43  ;;  %v944_v52 = vshrl.u32 %v722_v14, 16  ;;  %8388 = vmatmul.mubr.msk.bf16.gmra.mxu0 %vm3712_vm6, %v3668_v22  ;;  %v14196_v57 = vld [vmem:[#allocation17_spill] sm:$0xff] }
 0x185   : > { %v933_v34 = vsel %vm8952_vm11, %v7779_v54, %v14195_v60  ;;  %v1959_v3 = vor.u32 %v1958_v59, %v1956_v49  ;;  %550 = vst [vmem:[#allocation2 + $0x10c] sm:$0x1] %v549_v5  ;;  %v1964_v50 = vrot.slane %v1962_v31, 5  ;;  %v956_v51 = vrot.slane %v9616_v37, 4  ;;  %v14197_v54 = vld [vmem:[#allocation22_spill] sm:$0xff] }
 0x186   : > { %v7827_v1 = vcombine.low %v933_v34, %v942_v62  ;;  %v2360_v36 = vshrl.u32 %v2026_v10, 16  ;;  %v1385_v44 = vld [vmem:[#allocation2 + $0x100] sm:$0x8]  ;;  %v1955_v12 = vrot.slane %v1954_v33, 4  ;;  %v7780_v40 = vrot.slane %v944_v52, 11  ;;  %v10569_v22 = vpop.permute.xlu0 %3391 }
 0x187   : > { %v1960_v2 = vrot.slane %v1959_v3, 4  ;;  %v13946_v7 = vshrl.u32 %v10534_v16, 16  ;;  %v1719_v63 = vshrl.u32 %v1385_v44, 16  ;;  %3049 = vrot.lane.b32.xlu0 %v10510_v23, %s8615_s13  ;;  %v964_v37 = vsel %vm8952_vm11, %v956_v51, %v14196_v57  ;;  %v2023_v43 = vld [vmem:[#allocation2 + $0x100] sm:$0x8]  ;;  %v10580_v44 = vpop.permute.xlu1 %3311 }
 0x188   : > { %2859 = vrot.lane.b32.xlu1 %v7866_v32, %s8614_s12  ;;  %v3432_v45 = vsel %vm3405_vm12, %v7827_v1, %v10341_v28  ;;  %v10554_v14 = vrot.slane %v2360_v36, 11  ;;  %v1957_v32 = vsel %vm8752_vm9, %v1955_v12, %v1956_v49  ;;  %v955_v29 = vsel %vm8952_vm11, %v7780_v40, %v14197_v54  ;;  %v10563_v31 = vld [vmem:[#allocation2 + $0x118] sm:$0xf] }
 0x189   : > { %v1965_v6 = vsel %vm8752_vm9, %v1960_v2, %v1964_v50  ;;  %v2338_v59 = vshrl.u32 %v2023_v43, 16  ;;  %v1386_v10 = vld [vmem:[#allocation2 + $0x104] sm:$0xf]  ;;  %v7802_v28 = vrot.slane %v1719_v63, 11  ;;  %v7828_v62 = vcombine.low %v955_v29, %v964_v37 }
 0x18a   : > { %v7913_v25 = vcombine.low %v1957_v32, %v1965_v6  ;;  %v10567_v5 = vrot.slane %v13946_v7, 7  ;;  %v1387_v49 = vld [vmem:[#allocation2 + $0x108] sm:$0xf]  ;;  %v1724_v60 = vshrl.u32 %v1386_v10, 16  ;;  %v1727_v34 = vshll.u32 %v1386_v10, 16 }
 0x18b   : > { %v3472_v33 = vsel %vm3454_vm13, %v3432_v45, %v10333_v24  ;;  %v1733_v52 = vshrl.u32 %v1387_v49, 16  ;;  %v1736_v1 = vshll.u32 %v1387_v49, 16  ;;  %v10575_v50 = vcombine.low %v1386_v10, %v1387_v49  ;;  %v10582_v24 = vld [vmem:[#allocation2 + $0x104] sm:$0xf]  ;;  %v10584_v43 = vld [vmem:[#allocation2 + $0x108] sm:$0xf] }
 0x18c   : > { %3129 = vrot.lane.b32.xlu0 %v7913_v25, %s8619_s17  ;;  %v1755_v51 = vld [vmem:[#allocation2 + $0x10c] sm:$0x1]  ;;  %v3435_v36 = vsel %vm3405_vm12, %v7828_v62, %v10375_v48  ;;  %v1726_v12 = vrot.slane %v1724_v60, 7  ;;  %v1966_v2 = vrot.slane %v1724_v60, 4  ;;  %v1967_v40 = vrot.slane %v1727_v34, 5  ;;  %v10588_v60 = vpop.permute.xlu0 %2849 }
 0x18d   : > { %14198 = vst [vmem:[#allocation15_spill] sm:$0xff] %v10575_v50  ;;  %v1976_v63 = vshll.u32 %v1755_v51, 16  ;;  %v1735_v45 = vrot.slane %v1733_v52, 7  ;;  %v1970_v57 = vrot.slane %v1736_v1, 5  ;;  %v1972_v37 = vrot.slane %v1733_v52, 4 }
 0x18e   : > { %v7817_v32 = vrot.slane %v2338_v59, 11  ;;  %v1729_v6 = vor.u32 %v1727_v34, %v1726_v12  ;;  %v1731_v54 = vrot.slane %v1726_v12, 4  ;;  %v1968_v29 = vor.u32 %v1967_v40, %v1966_v2  ;;  %v10597_v40 = vpop.permute.xlu1 %2769 }
 0x18f   : > { %v1978_v10 = vrot.slane %v1976_v63, 5  ;;  %v1738_v25 = vor.u32 %v1736_v1, %v1735_v45  ;;  %v1973_v48 = vor.u32 %v1972_v37, %v1970_v57  ;;  %v2343_v62 = vshrl.u32 %v10582_v24, 16 }
 0x190   : > { %v2346_v49 = vshll.u32 %v10582_v24, 16  ;;  %v1730_v51 = vsel %vm8952_vm11, %v7802_v28, %v1729_v6  ;;  %v1969_v3 = vrot.slane %v1968_v29, 4  ;;  %v2352_v52 = vshrl.u32 %v10584_v43, 16 }
 0x191   : > { %v2355_v59 = vshll.u32 %v10584_v43, 16  ;;  %v1739_v34 = vsel %vm8952_vm11, %v1731_v54, %v1738_v25  ;;  %v1974_v12 = vrot.slane %v1973_v48, 4  ;;  %v2345_v1 = vrot.slane %v2343_v62, 7 }
 0x192   : > { %v2368_v2 = vshll.u32 %v10534_v16, 16  ;;  %v7882_v63 = vcombine.low %v1730_v51, %v1739_v34  ;;  %v1971_v45 = vsel %vm8752_vm9, %v1969_v3, %v1970_v57  ;;  %v2354_v37 = vrot.slane %v2352_v52, 7  ;;  %v2395_v34 = vld [vmem:[#allocation2 + $0x10c] sm:$0x1] }
 0x193   : > { %v2372_v28 = vrot.slane %v10567_v5, 4  ;;  %v1979_v6 = vsel %vm8752_vm9, %v1974_v12, %v1978_v10  ;;  %v2348_v29 = vor.u32 %v2346_v49, %v2345_v1  ;;  %v2350_v7 = vrot.slane %v2345_v1, 4  ;;  %v10617_v12 = vpop.permute.xlu0 %2929 }
 0x194   : > { %v2370_v54 = vor.u32 %v2368_v2, %v10567_v5  ;;  %2939 = vrot.lane.b32.xlu1 %v7882_v63, %s8617_s15  ;;  %v7914_v25 = vcombine.low %v1971_v45, %v1979_v6  ;;  %v2357_v48 = vor.u32 %v2355_v59, %v2354_v37  ;;  %v2374_v23 = vshrl.u32 %v10563_v31, 16  ;;  %s8622_s15 = smov 48  }
 0x195   : > { %v2377_v51 = vshll.u32 %v10563_v31, 16  ;;  %v2349_v3 = vsel %vm8952_vm11, %v7817_v32, %v2348_v29  ;;  %v3474_v10 = vsel %vm3454_vm13, %v3435_v36, %v10432_v61  ;;  %v7945_v5 = vcombine.low %v10582_v24, %v10584_v43  ;;  %v2396_v36 = vld [vmem:[#allocation2 + $0x11c] sm:$0x1]  ;;  %v10625_v29 = vpop.permute.xlu1 %2771 }
 0x196   : > { %v2371_v57 = vsel %vm8952_vm11, %v10554_v14, %v2370_v54  ;;  %v2358_v1 = vsel %vm8952_vm11, %v2350_v7, %v2357_v48  ;;  %v2376_v63 = vrot.slane %v2374_v23, 7  ;;  %v3505_v32 = vsel %vm3487_vm14, %v3472_v33, %v10370_v18 }
 0x197   : > { %v3507_v45 = vsel %vm3487_vm14, %v3474_v10, %v10452_v35  ;;  %v7929_v14 = vcombine.low %v2349_v3, %v2358_v1  ;;  %v2593_v37 = vrot.slane %v2343_v62, 4  ;;  %v2594_v6 = vrot.slane %v2346_v49, 5  ;;  %v10634_v55 = vpop.permute.xlu0 %3041 }
 0x198   : > { %v2597_v61 = vrot.slane %v2355_v59, 5  ;;  %3051 = vrot.lane.b32.xlu1 %v10575_v50, %s8615_s13  ;;  %v2379_v24 = vor.u32 %v2377_v51, %v2376_v63  ;;  %v2599_v43 = vrot.slane %v2352_v52, 4  ;;  %v2603_v7 = vshll.u32 %v2395_v34, 16  ;;  %v725_v34 = vld [vmem:[#allocation2 + $0xa0] sm:$0x8] }
 0x199   : > { %v14199_v54 = vshrl.u32 %v10534_v16, 16  ;;  %3209 = vrot.lane.b32.xlu0 %v7929_v14, %s8618_s16  ;;  %v2595_v18 = vor.u32 %v2594_v6, %v2593_v37  ;;  %v2608_v35 = vrot.slane %v2368_v2, 5  ;;  %v2611_v33 = vrot.slane %v2377_v51, 5 }
 0x19a   : > { %v2613_v62 = vrot.slane %v2374_v23, 4  ;;  %v2380_v49 = vsel %vm8952_vm11, %v2372_v28, %v2379_v24  ;;  %v2600_v59 = vor.u32 %v2599_v43, %v2597_v61  ;;  %v2605_v3 = vrot.slane %v2603_v7, 5  ;;  %v731_v24 = vld [vmem:[#allocation2 + $0xc0] sm:$0x8] }
 0x19b   : > { %v2607_v48 = vrot.slane %v14199_v54, 4  ;;  %v2617_v10 = vshll.u32 %v2396_v36, 16  ;;  %v7930_v1 = vcombine.low %v2371_v57, %v2380_v49  ;;  %v2596_v50 = vrot.slane %v2595_v18, 4  ;;  %v10646_v36 = vpop.permute.xlu1 %2851  ;;  %v734_v54 = vld [vmem:[#allocation2 + $0xd0] sm:$0x8] }
 0x19c   : > { %v2614_v52 = vor.u32 %v2613_v62, %v2611_v33  ;;  %3131 = vrot.lane.b32.xlu1 %v7914_v25, %s8619_s17  ;;  %v2601_v14 = vrot.slane %v2600_v59, 4  ;;  %v3538_v23 = vsel %vm3520_vm15, %v3505_v32, %v10409_v46  ;;  %v3540_v2 = vsel %vm3520_vm15, %v3507_v45, %v10478_v56  ;;  %v728_v32 = vld [vmem:[#allocation2 + $0xb0] sm:$0x8]  ;;  %v737_v59 = vld [vmem:[#allocation2 + $0xe0] sm:$0x8]  ;;  %s8623_s17 = smov 64  }
 0x19d   : > { %v2609_v63 = vor.u32 %v2608_v35, %v2607_v48  ;;  %v2619_v37 = vrot.slane %v2617_v10, 5  ;;  %3321 = vrot.lane.b32.xlu0 %v7945_v5, %s8616_s14  ;;  %v2598_v28 = vsel %vm8752_vm9, %v2596_v50, %v2597_v61  ;;  %v3571_v6 = vsel %vm3553_vm1, %v3538_v23, %v10441_v21 }
 0x19e   : > { %v2615_v57 = vrot.slane %v2614_v52, 4  ;;  %v2606_v25 = vsel %vm8752_vm9, %v2601_v14, %v2605_v3  ;;  %v3573_v46 = vsel %vm3553_vm1, %v3540_v2, %v10512_v17  ;;  %v3604_v56 = vsel %vm3586_vm5, %v3571_v6, %v10475_v27  ;;  %v14202_v52 = vld [vmem:[#allocation26_spill] sm:$0xff] }
 0x19f   : > { %v2610_v51 = vrot.slane %v2609_v63, 4  ;;  %v966_v5 = vshrl.u32 %v725_v34, 16  ;;  %v7961_v45 = vcombine.low %v2598_v28, %v2606_v25  ;;  %v3606_v61 = vsel %vm3586_vm5, %v3573_v46, %v10543_v8  ;;  %v740_v25 = vld [vmem:[#allocation2 + $0xf0] sm:$0x8] }
 0x1a0   : > { %v2620_v21 = vsel %vm8752_vm9, %v2615_v57, %v2619_v37  ;;  %3211 = vrot.lane.b32.xlu1 %v7930_v1, %s8618_s16  ;;  %v3637_v17 = vsel %vm3619_vm7, %v3604_v56, %v10493_v30  ;;  %v3639_v27 = vsel %vm3619_vm7, %v3606_v61, %v10580_v44  ;;  %v978_v18 = vrot.slane %v9843_v39, 4 }
 0x1a1   : > { %v2612_v50 = vsel %vm8752_vm9, %v2610_v51, %v2611_v33  ;;  %v7781_v7 = vrot.slane %v966_v5, 11  ;;  %3401 = vrot.lane.b32.xlu0 %v7961_v45, %s8620_s18  ;;  %v3670_v48 = vsel %vm3652_vm10, %v3637_v17, %v10536_v58  ;;  %v3672_v8 = vsel %vm3652_vm10, %v3639_v27, %v10569_v22  ;;  %v3122_v33 = vpop.permute.xlu0 %3121 }
 0x1a2   : > { %v7962_v43 = vcombine.low %v2612_v50, %v2620_v21  ;;  %v988_v35 = vshrl.u32 %v728_v32, 16  ;;  %8391 = vmatprep.mubr.msk.bf16.mxu0 %vm3712_vm6, %v3670_v48  ;;  %v1000_v44 = vrot.slane %v9905_v41, 4  ;;  %v1010_v62 = vshrl.u32 %v731_v24, 16  ;;  %v3974_v48 = vld [vmem:[#allocation3 + $0x20] sm:$0x8] }
 0x1a3   : > { %v977_v30 = vsel %vm8952_vm11, %v7781_v7, %v9853_v26  ;;  %v1022_v49 = vrot.slane %v10121_v42, 4  ;;  %v986_v39 = vsel %vm8952_vm11, %v978_v18, %v9861_v4  ;;  %8392 = vmatmul.mubr.msk.bf16.gmra.mxu0 %vm3712_vm6, %v3672_v8  ;;  %v10681_v22 = vpop.permute.xlu1 %2931  ;;  %v1032_v3 = vshrl.u32 %v734_v54, 16  ;;  %v14201_v4 = vld [vmem:[#allocation28_spill] sm:$0xff]  ;;  %v3971_v18 = vld [vmem:[#allocation3 + $0x10] sm:$0x8] }
 0x1a4   : > { %v7782_v58 = vrot.slane %v988_v35, 11  ;;  %v1044_v26 = vrot.slane %v10175_v11, 4  ;;  %v14200_v41 = vcombine.low %v10534_v16, %v10563_v31  ;;  %v7829_v10 = vcombine.low %v977_v30, %v986_v39 }
 0x1a5   : > { %v1008_v42 = vsel %vm8952_vm11, %v1000_v44, %v9919_v9  ;;  %v7783_v1 = vrot.slane %v1010_v62, 11  ;;  %v1030_v63 = vsel %vm8952_vm11, %v1022_v49, %v14201_v4  ;;  %v7784_v11 = vrot.slane %v1032_v3, 11  ;;  %v14203_v9 = vld [vmem:[#allocation4_spill] sm:$0xff]  ;;  %v3977_v62 = vld [vmem:[#allocation3 + $0x30] sm:$0x8] }
 0x1a6   : > { %3323 = vrot.lane.b32.xlu1 %v14200_v41, %s8616_s14  ;;  %v999_v34 = vsel %vm8952_vm11, %v7782_v58, %v14202_v52  ;;  %v1052_v16 = vsel %vm8952_vm11, %v1044_v26, %v10192_v0  ;;  %v1054_v31 = vshrl.u32 %v737_v59, 16  ;;  %v3438_v14 = vsel %vm3405_vm12, %v7829_v10, %v10597_v40  ;;  %v3980_v44 = vld [vmem:[#allocation3 + $0x40] sm:$0x8]  ;;  %v4024_v58 = vld [vmem:[#allocation3 + $0x2c] sm:$0x1]  ;;  %s8621_s14 = smov 56  }
 0x1a7   : > { %v10702_v37 = vcombine.low %v999_v34, %v1008_v42  ;;  %v1021_v23 = vsel %vm8952_vm11, %v7783_v1, %v14203_v9  ;;  %v14204_v2 = vshrl.u32 %v10358_v15, 16  ;;  %v3476_v51 = vsel %vm3454_vm13, %v3438_v14, %v10588_v60  ;;  %v3202_v57 = vpop.permute.xlu0 %3201  ;;  %v10725_v45 = vpop.permute.xlu1 %3043  ;;  %v4021_v42 = vld [vmem:[#allocation3 + $0x1c] sm:$0x1]  ;;  %v4030_v1 = vld [vmem:[#allocation3 + $0x4c] sm:$0x1] }
 0x1a8   : > { %v10711_v6 = vcombine.low %v1021_v23, %v1030_v63  ;;  %v1043_v0 = vsel %vm8952_vm11, %v7784_v11, %v10185_v47  ;;  %v7785_v40 = vrot.slane %v1054_v31, 11  ;;  %vm3969_vm0 = vcmask 60419  }
 0x1a9   : > { %v1061_v28 = vrot.slane %v14204_v2, 7  ;;  %v3509_v46 = vsel %vm3487_vm14, %v3476_v51, %v10617_v12  ;;  %v10719_v56 = vcombine.low %v1043_v0, %v1052_v16  ;;  %v14205_v5 = vshll.u32 %v10358_v15, 16  ;;  %vm10731_vm3 = vmand %vm3969_vm0, %vm450_vm2  ;;  %v4027_v16 = vld [vmem:[#allocation3 + $0x3c] sm:$0x1] }
 0x1aa   : > { %3403 = vrot.lane.b32.xlu1 %v7962_v43, %s8620_s18  ;;  %v3542_v32 = vsel %vm3520_vm15, %v3509_v46, %v10634_v55  ;;  %v14206_v47 = vshrl.u32 %v10360_v13, 16  ;;  %v1076_v24 = vshrl.u32 %v740_v25, 16  ;;  %v14207_v12 = vmov 0 }
 0x1ab   : > { %v1064_v60 = vor.u32 %v14205_v5, %v1061_v28  ;;  %v1066_v50 = vrot.slane %v1061_v28, 4  ;;  %v3575_v61 = vsel %vm3553_vm1, %v3542_v32, %v3122_v33  ;;  %v14208_v12 = vsel %vm10731_vm3, 4294967295, %v14207_v12  ;;  %v3314_v43 = vpop.permute.xlu0 %3313  ;;  %v3124_v4 = vpop.permute.xlu1 %3123 }
 0x1ac   : > { %v1070_v21 = vrot.slane %v14206_v47, 7  ;;  %14209 = vst [vmem:[#allocation9_spill] sm:$0xff] %v14208_v12  ;;  %v3608_v15 = vsel %vm3586_vm5, %v3575_v61, %v3202_v57  ;;  %v14210_v17 = vshll.u32 %v10360_v13, 16  ;;  %v14211_v7 = vshrl.u32 %v10419_v20, 16 }
 0x1ad   : > { %v1065_v55 = vsel %vm8952_vm11, %v7785_v40, %v1064_v60  ;;  %v3641_v8 = vsel %vm3619_vm7, %v3608_v15, %v3314_v43  ;;  %v7786_v35 = vrot.slane %v1076_v24, 11  ;;  %v14212_v33 = vshrl.u32 %v10430_v38, 16 }
 0x1ae   : > { %v1073_v27 = vor.u32 %v14210_v17, %v1070_v21  ;;  %v1083_v54 = vrot.slane %v14211_v7, 7  ;;  %v14213_v59 = vshll.u32 %v10419_v20, 16  ;;  %vm3958_vm2 = vcmask 60416  }
 0x1af   : > { %v1092_v30 = vrot.slane %v14212_v33, 7  ;;  %v14214_v26 = vshll.u32 %v10430_v38, 16  ;;  %v14215_v10 = vmov 0   ;;  %v3975_v20 = vsel %vm10731_vm3, 0, %v3974_v48  ;;  %v3394_v63 = vpop.permute.xlu0 %3393  ;;  %v10834_v33 = vld [vmem:[%s13901_s4] ss:$0 sm:$0xff] }
 0x1b0   : > { %v1074_v49 = vsel %vm8952_vm11, %v1066_v50, %v1073_v27  ;;  %v1086_v13 = vor.u32 %v14213_v59, %v1083_v54  ;;  %v1088_v39 = vrot.slane %v1083_v54, 4  ;;  %3959 = vst.msk [vmem:[#allocation3] sm:$0xf] %vm3958_vm2, %v14215_v10  ;;  %3960 = vst.msk [vmem:[#allocation3 + $0x4] sm:$0xf] %vm3958_vm2, %v14215_v10  ;;  %v3972_v38 = vsel %vm10731_vm3, 0, %v3971_v18 }
 0x1b1   : > { %v10749_v3 = vcombine.low %v1065_v55, %v1074_v49  ;;  %v1095_v41 = vor.u32 %v14214_v26, %v1092_v30  ;;  %3961 = vst.msk [vmem:[#allocation3 + $0x8] sm:$0xf] %vm3958_vm2, %v14215_v10  ;;  %3962 = vst.msk [vmem:[#allocation3 + $0xc] sm:$0xf] %vm3958_vm2, %v14215_v10  ;;  %vm4019_vm8 = vcmask 57344   ;;  %v3981_v34 = vsel %vm10731_vm3, 0, %v3980_v44 }
 0x1b2   : > { %3964 = vst.msk [vmem:[#allocation3 + $0x110] sm:$0xf] %vm3958_vm2, %v14215_v10  ;;  %3965 = vst.msk [vmem:[#allocation3 + $0x114] sm:$0xf] %vm3958_vm2, %v14215_v10  ;;  %v1087_v52 = vsel %vm8952_vm11, %v7786_v35, %v1086_v13  ;;  %v3978_v11 = vsel %vm10731_vm3, 0, %v3977_v62  ;;  %v3674_v31 = vsel %vm3652_vm10, %v3641_v8, %v3394_v63  ;;  %v14216_v9 = vmov 0 }
 0x1b3   : > { %3966 = vst.msk [vmem:[#allocation3 + $0x118] sm:$0xf] %vm3958_vm2, %v14215_v10  ;;  %3967 = vst.msk [vmem:[#allocation3 + $0x11c] sm:$0xf] %vm3958_vm2, %v14215_v10  ;;  %v1096_v14 = vsel %vm8952_vm11, %v1088_v39, %v1095_v41  ;;  %8395 = vmatprep.mubr.msk.bf16.mxu0 %vm3712_vm6, %v3674_v31  ;;  %v3441_v0 = vsel %vm3405_vm12, %v10702_v37, %v10625_v29 }
 0x1b4   : > { %3976 = vst [vmem:[#allocation3 + $0x20] sm:$0x8] %v3975_v20  ;;  %3973 = vst [vmem:[#allocation3 + $0x10] sm:$0x8] %v3972_v38  ;;  %v10788_v23 = vcombine.low %v1087_v52, %v1096_v14  ;;  %v3478_v60 = vsel %vm3454_vm13, %v3441_v0, %v10646_v36 }
 0x1b5   : > { %vm10783_vm0 = vmand %vm4019_vm8, %vm501_vm4  ;;  %3982 = vst [vmem:[#allocation3 + $0x40] sm:$0x8] %v3981_v34  ;;  %v3204_v40 = vpop.permute.xlu1 %3203  ;;  %v3511_v21 = vsel %vm3487_vm14, %v3478_v60, %v10681_v22  ;;  %vm14246_vm4 = vcmask 1041408  }
 0x1b6   : > { %v14217_v9 = vsel %vm10783_vm0, 4294967295, %v14216_v9  ;;  %3979 = vst [vmem:[#allocation3 + $0x30] sm:$0x8] %v3978_v11  ;;  %v4025_v2 = vsel %vm10783_vm0, 0, %v4024_v58  ;;  %v4022_v28 = vsel %vm10783_vm0, 0, %v4021_v42  ;;  %v4031_v51 = vsel %vm10783_vm0, 0, %v4030_v1  ;;  %vm14247_vm8 = vmmov %vm14246_vm4 }
 0x1b7   : > { %14218 = vst [vmem:[#allocation24_spill] sm:$0xff] %v14217_v9  ;;  %4026 = vst [vmem:[#allocation3 + $0x2c] sm:$0x1] %v4025_v2  ;;  %v4028_v57 = vsel %vm10783_vm0, 0, %v4027_v16  ;;  %v10801_v25 = vld [vmem:[#allocation3 + $0x4] sm:$0xf]  ;;  %v3544_v24 = vsel %vm3520_vm15, %v3511_v21, %v10725_v45 }
 0x1b8   : > { %4023 = vst [vmem:[#allocation3 + $0x1c] sm:$0x1] %v4022_v28  ;;  %4032 = vst [vmem:[#allocation3 + $0x4c] sm:$0x1] %v4031_v51  ;;  %v10803_v46 = vld [vmem:[#allocation3 + $0x8] sm:$0xf]  ;;  %v3577_v22 = vsel %vm3553_vm1, %v3544_v24, %v3124_v4 }
 0x1b9   : > { %4029 = vst [vmem:[#allocation3 + $0x3c] sm:$0x1] %v4028_v57  ;;  %14219 = vst [vmem:[#allocation8_spill] sm:$0xff] %v10801_v25  ;;  %v4613_v5 = vld [vmem:[#allocation3 + $0xc] sm:$0x1]  ;;  %v13953_v32 = vshrl.u32 %v10801_v25, 16  ;;  %v8079_v37 = vcombine.low %v10801_v25, %v10803_v46  ;;  %v3316_v55 = vpop.permute.xlu1 %3315  ;;  %v3610_v27 = vsel %vm3586_vm5, %v3577_v22, %v3204_v40 }
 0x1ba   : > { %14220 = vst [vmem:[#allocation19_spill] sm:$0xff] %v10803_v46  ;;  %v13951_v50 = vshll.u32 %v10801_v25, 16  ;;  %v13952_v47 = vshrl.u32 %v10803_v46, 16  ;;  %v13950_v29 = vshll.u32 %v10803_v46, 16  ;;  %v4639_v61 = vshll.u32 %v4613_v5, 16  ;;  %v3396_v54 = vpop.permute.xlu0 %3395 }
 0x1bb   : > { %v4629_v36 = vrot.slane %v13953_v32, 4  ;;  %6262 = vrot.lane.b32.xlu0 %v8079_v37, %s8614_s12  ;;  %v3643_v7 = vsel %vm3619_vm7, %v3610_v27, %v3316_v55  ;;  %v5494_v10 = vld [vmem:[#allocation3 + $0x20] sm:$0x8]  ;;  %v4853_v42 = vld [vmem:[#allocation3 + $0x10] sm:$0x8] }
 0x1bc   : > { %v4630_v15 = vrot.slane %v13951_v50, 5  ;;  %v4635_v43 = vrot.slane %v13952_v47, 4  ;;  %v4633_v17 = vrot.slane %v13950_v29, 5  ;;  %v4641_v18 = vrot.slane %v4639_v61, 5  ;;  %v4856_v20 = vld [vmem:[#allocation3 + $0x20] sm:$0x8] }
 0x1bd   : > { %v3676_v8 = vsel %vm3652_vm10, %v3643_v7, %v3396_v54  ;;  %v10845_v1 = vpop.permute.xlu1 %2773  ;;  %v5543_v11 = vshrl.u32 %v5494_v10, 16  ;;  %v4924_v16 = vshrl.u32 %v4856_v20, 16  ;;  %v4902_v57 = vshrl.u32 %v4853_v42, 16  ;;  %v5500_v60 = vld [vmem:[#allocation3 + $0x40] sm:$0x8] }
 0x1be   : > { %v4631_v45 = vor.u32 %v4630_v15, %v4629_v36  ;;  %v4636_v48 = vor.u32 %v4635_v43, %v4633_v17  ;;  %8396 = vmatmul.mubr.msk.bf16.gmra.mxu0 %vm3712_vm6, %v3676_v8  ;;  %v8377_v62 = vpop.f32.mrf.mxu0  ;;  %v10841_v58 = vpop.permute.xlu0 %2853  ;;  %v5894_v31 = vld [vmem:[#allocation3 + $0x2c] sm:$0x1]  ;;  %v3986_v21 = vld [vmem:[#allocation3 + $0x60] sm:$0x8]  ;;  %v4859_v15 = vld [vmem:[#allocation3 + $0x30] sm:$0x8] }
 0x1bf   : > { %v3792_v59 = vadd.f32 %v8377_v62, %v10834_v33  ;;  %v5254_v14 = vld [vmem:[#allocation3 + $0x2c] sm:$0x1]  ;;  %v5253_v40 = vld [vmem:[#allocation3 + $0x1c] sm:$0x1]  ;;  %v4862_v36 = vld [vmem:[#allocation3 + $0x40] sm:$0x8] }
 0x1c0   : > { %v4632_v35 = vrot.slane %v4631_v45, 4  ;;  %v4637_v30 = vrot.slane %v4636_v48, 4  ;;  %v3783_v39 = vpop.f32.mrf.mxu0  ;;  %v4615_v0 = vld [vmem:[#allocation3 + $0x2c] sm:$0x1]  ;;  %v4614_v5 = vld [vmem:[#allocation3 + $0x1c] sm:$0x1] }
 0x1c1   : > { %v3912_v26 = vmax.f32 %v3792_v59, 0.0  ;;  %v3784_v41 = vadd.f32 %v10834_v33, %v3783_v39  ;;  %v3987_v43 = vsel %vm10731_vm3, 0, %v3986_v21  ;;  %v5920_v22 = vshll.u32 %v5894_v31, 16  ;;  %v3983_v27 = vld [vmem:[#allocation3 + $0x50] sm:$0x8]  ;;  %v2776_v45 = vpop.permute.xlu1 %2775 }
 0x1c2   : > { %v4634_v44 = vsel %vm8752_vm9, %v4632_v35, %v4633_v17  ;;  %v4642_v49 = vsel %vm8752_vm9, %v4637_v30, %v4641_v18  ;;  %v8378_v38 = vpop.f32.mrf.mxu0  ;;  %v5293_v55 = vshll.u32 %v5254_v14, 16  ;;  %v4667_v17 = vshll.u32 %v4615_v0, 16  ;;  %3988 = vst [vmem:[#allocation3 + $0x60] sm:$0x8] %v3987_v43  ;;  %v4617_v10 = vld [vmem:[#allocation3 + $0x4c] sm:$0x1] }
 0x1c3   : > { %v8095_v13 = vcombine.low %v4634_v44, %v4642_v49  ;;  %v8282_v4 = vpack.c.bf16 %v3912_v26, %v3912_v26  ;;  %v3910_v63 = vmax.f32 %v3784_v41, 0.0  ;;  %v3795_v52 = vadd.f32 %v8378_v38, %v10834_v33  ;;  %v5896_v44 = vld [vmem:[#allocation3 + $0x4c] sm:$0x1] }
 0x1c4   : > { %v3786_v34 = vpop.f32.mrf.mxu0  ;;  %v10850_v37 = vpop.permute.xlu0 %2933  ;;  %v5279_v54 = vshll.u32 %v5253_v40, 16  ;;  %v4653_v48 = vshll.u32 %v4614_v5, 16  ;;  %v3984_v18 = vsel %vm10731_vm3, 0, %v3983_v27  ;;  %v5587_v8 = vshrl.u32 %v5500_v60, 16  ;;  %v5256_v31 = vld [vmem:[#allocation3 + $0x4c] sm:$0x1] }
 0x1c5   : > { %6342 = vrot.lane.b32.xlu0 %v8095_v13, %s8615_s13  ;;  %4183 = vst.msk [vmem:[#allocation3 + $0x24] sm:$0xf] %vm3958_vm2, %v8282_v4  ;;  %v8280_v2 = vpack.c.bf16 %v3910_v63, %v3910_v63  ;;  %v3913_v28 = vmax.f32 %v3795_v52, 0.0  ;;  %v3787_v51 = vadd.f32 %v10834_v33, %v3786_v34  ;;  %v4968_v35 = vshrl.u32 %v4862_v36, 16  ;;  %3985 = vst [vmem:[#allocation3 + $0x50] sm:$0x8] %v3984_v18  ;;  %v2856_v14 = vpop.permute.xlu1 %2855 }
 0x1c6   : > { %v4946_v30 = vshrl.u32 %v4859_v15, 16  ;;  %v10859_v62 = vrot.slane %v5543_v11, 11  ;;  %v10861_v49 = vrot.slane %v4924_v16, 11  ;;  %v10863_v59 = vrot.slane %v4902_v57, 11  ;;  %v5497_v13 = vld [vmem:[#allocation3 + $0x30] sm:$0x8] }
 0x1c7   : > { %4181 = vst.msk [vmem:[#allocation3 + $0x14] sm:$0xf] %vm3958_vm2, %v8280_v2  ;;  %v8283_v61 = vpack.c.bf16 %v3913_v28, %v3913_v28  ;;  %v3911_v24 = vmax.f32 %v3787_v51, 0.0  ;;  %v10867_v26 = vrot.slane %v5920_v22, 5  ;;  %v10869_v41 = vrot.slane %v5293_v55, 5 }
 0x1c8   : > { %v10871_v20 = vpop.permute.xlu0 %3045  ;;  %v10873_v38 = vrot.slane %v4667_v17, 5  ;;  %v10875_v42 = vrot.slane %v5279_v54, 5  ;;  %v10877_v4 = vrot.slane %v4653_v48, 5  ;;  %v5948_v63 = vshll.u32 %v5896_v44, 16  ;;  %v5895_v51 = vld [vmem:[#allocation3 + $0x3c] sm:$0x1] }
 0x1c9   : > { %4184 = vst.msk [vmem:[#allocation3 + $0x28] sm:$0xf] %vm3958_vm2, %v8283_v61  ;;  %v8281_v7 = vpack.c.bf16 %v3911_v24, %v3911_v24  ;;  %v10879_v52 = vrot.slane %v5587_v8, 11  ;;  %v10881_v34 = vrot.slane %v4968_v35, 11  ;;  %v10883_v11 = vrot.slane %v4946_v30, 11 }
 0x1ca   : > { %v5565_v16 = vshrl.u32 %v5497_v13, 16  ;;  %v4695_v28 = vshll.u32 %v4617_v10, 16  ;;  %v5255_v57 = vld [vmem:[#allocation3 + $0x3c] sm:$0x1]  ;;  %v10897_v24 = vrot.slane %v5948_v63, 5  ;;  %v3444_v36 = vsel %vm3405_vm12, %v10711_v6, %v10845_v1 }
 0x1cb   : > { %4182 = vst.msk [vmem:[#allocation3 + $0x18] sm:$0xf] %vm3958_vm2, %v8281_v7  ;;  %v5321_v22 = vshll.u32 %v5256_v31, 16  ;;  %v5934_v55 = vshll.u32 %v5895_v51, 16  ;;  %v5307_v6 = vshll.u32 %v5255_v57, 16  ;;  %v3447_v48 = vsel %vm3405_vm12, %v10719_v56, %v2776_v45 }
 0x1cc   : > { %v10865_v39 = vld [vmem:[#allocation3 + $0x24] sm:$0xf]  ;;  %v3126_v17 = vpop.permute.xlu0 %3125  ;;  %v10911_v54 = vrot.slane %v5565_v16, 11  ;;  %v4616_v1 = vld [vmem:[#allocation3 + $0x3c] sm:$0x1]  ;;  %v3480_v18 = vsel %vm3454_vm13, %v3444_v36, %v10841_v58  ;;  %v10931_v58 = vrot.slane %v4695_v28, 5  ;;  %v3482_v36 = vsel %vm3454_vm13, %v3447_v48, %v2856_v14 }
 0x1cd   : > { %v13957_v2 = vshrl.u32 %v10865_v39, 16  ;;  %v10888_v40 = vld [vmem:[#allocation3 + $0x24] sm:$0xf]  ;;  %v5551_v10 = vshll.u32 %v10865_v39, 16  ;;  %v10933_v45 = vld [vmem:[#allocation3 + $0x20] sm:$0x8]  ;;  %v3513_v31 = vsel %vm3487_vm14, %v3480_v18, %v10850_v37 }
 0x1ce   : > { %v4929_v7 = vshrl.u32 %v10888_v40, 16  ;;  %v10920_v30 = vld [vmem:[#allocation3 + $0x24] sm:$0xf]  ;;  %v10922_v44 = vld [vmem:[#allocation3 + $0x14] sm:$0xf]  ;;  %v10949_v50 = vrot.slane %v5307_v6, 5 }
 0x1cf   : > { %v5550_v27 = vrot.slane %v13957_v2, 7  ;;  %14222 = vst [vmem:[#allocation20_spill] sm:$0xff] %v10920_v30  ;;  %v10935_v16 = vld [vmem:[#allocation3 + $0x10] sm:$0x8]  ;;  %v10955_v47 = vld [vmem:[#allocation3 + $0x14] sm:$0xf] }
 0x1d0   : > { %v10886_v0 = vld [vmem:[#allocation3 + $0x28] sm:$0xf]  ;;  %v4931_v29 = vrot.slane %v4929_v7, 7  ;;  %14225 = vst [vmem:[#allocation28_spill] sm:$0xff] %v10949_v50  ;;  %14226 = vst [vmem:[#allocation26_spill] sm:$0xff] %v10955_v47  ;;  %v4932_v14 = vshll.u32 %v10888_v40, 16 }
 0x1d1   : > { %v10890_v5 = vld [vmem:[#allocation3 + $0x28] sm:$0xf]  ;;  %v8175_v60 = vcombine.low %v10865_v39, %v10886_v0  ;;  %v13956_v21 = vshrl.u32 %v10886_v0, 16  ;;  %v13955_v51 = vshll.u32 %v10886_v0, 16  ;;  %v5553_v28 = vor.u32 %v5551_v10, %v5550_v27 }
 0x1d2   : > { %v8128_v61 = vcombine.low %v10888_v40, %v10890_v5  ;;  %v10902_v15 = vld [vmem:[#allocation3 + $0x28] sm:$0xf]  ;;  %v10904_v43 = vld [vmem:[#allocation3 + $0x18] sm:$0xf]  ;;  %v13954_v35 = vshrl.u32 %v10890_v5, 16  ;;  %v5555_v18 = vrot.slane %v5550_v27, 4  ;;  %v4934_v6 = vor.u32 %v4932_v14, %v4931_v29 }
 0x1d3   : > { %14221 = vst [vmem:[#allocation21_spill] sm:$0xff] %v10902_v15  ;;  %6806 = vrot.lane.b32.xlu0 %v8175_v60, %s8621_s14  ;;  %v5559_v8 = vrot.slane %v13956_v21, 7  ;;  %v8081_v63 = vcombine.low %v10920_v30, %v10902_v15  ;;  %v8127_v56 = vcombine.low %v10922_v44, %v10904_v43  ;;  %v10940_v57 = vld [vmem:[#allocation3 + $0x18] sm:$0xf]  ;;  %v10942_v60 = vrot.slane %v5321_v22, 5 }
 0x1d4   : > { %6536 = vrot.lane.b32.xlu1 %v8128_v61, %s8620_s18  ;;  %14223 = vst [vmem:[#allocation17_spill] sm:$0xff] %v10940_v57  ;;  %v10944_v61 = vrot.slane %v5934_v55, 5  ;;  %v4940_v37 = vrot.slane %v13954_v35, 7  ;;  %v4681_v55 = vshll.u32 %v4616_v1, 16  ;;  %v8080_v48 = vcombine.low %v10955_v47, %v10940_v57 }
 0x1d5   : > { %v5562_v22 = vor.u32 %v13955_v51, %v5559_v8  ;;  %v4941_v27 = vshll.u32 %v10890_v5, 16  ;;  %v5554_v1 = vsel %vm8952_vm11, %v10859_v62, %v5553_v28  ;;  %v3546_v8 = vsel %vm3520_vm15, %v3513_v31, %v10871_v20 }
 0x1d6   : > { %v10924_v13 = vpop.permute.xlu1 %2935  ;;  %14224 = vst [vmem:[#allocation22_spill] sm:$0xff] %v10944_v61  ;;  %v3579_v21 = vsel %vm3553_vm1, %v3546_v8, %v3126_v17  ;;  %v4936_v2 = vrot.slane %v4931_v29, 4  ;;  %v10976_v50 = vrot.slane %v4681_v55, 5  ;;  %v14228_v62 = vshrl.u32 %v10865_v39, 16 }
 0x1d7   : > { %6534 = vrot.lane.b32.xlu0 %v8127_v56, %s8620_s18  ;;  %v5563_v40 = vsel %vm8952_vm11, %v5555_v18, %v5562_v22  ;;  %v4943_v35 = vor.u32 %v4941_v27, %v4940_v37  ;;  %v10982_v18 = vrot.slane %v5551_v10, 5  ;;  %v10984_v20 = vrot.slane %v4929_v7, 4 }
 0x1d8   : > { %6266 = vrot.lane.b32.xlu1 %v8081_v63, %s8614_s12  ;;  %v13960_v63 = vshll.u32 %v10920_v30, 16  ;;  %v8159_v51 = vcombine.low %v5554_v1, %v5563_v40  ;;  %14227 = vst [vmem:[#allocation4_spill] sm:$0xff] %v10976_v50  ;;  %v10980_v28 = vrot.slane %v14228_v62, 4  ;;  %v13961_v31 = vshrl.u32 %v10902_v15, 16 }
 0x1d9   : > { %v10988_v22 = vrot.slane %v4932_v14, 5  ;;  %v14229_v29 = vshrl.u32 %v10920_v30, 16  ;;  %v4935_v39 = vsel %vm8952_vm11, %v10861_v49, %v4934_v6  ;;  %v4944_v10 = vsel %vm8952_vm11, %v4936_v2, %v4943_v35 }
 0x1da   : > { %v3206_v32 = vpop.permute.xlu0 %3205  ;;  %v10962_v56 = vpop.permute.xlu1 %3047  ;;  %v14230_v7 = vshrl.u32 %v10886_v0, 16  ;;  %v4916_v55 = vshrl.u32 %v10904_v43, 16  ;;  %v14231_v49 = vshrl.u32 %v10890_v5, 16  ;;  %v3515_v5 = vsel %vm3487_vm14, %v3482_v36, %v10924_v13 }
 0x1db   : > { %6694 = vrot.lane.b32.xlu0 %v8159_v51, %s8622_s15  ;;  %v10992_v17 = vrot.slane %v14229_v29, 4  ;;  %v11005_v51 = vrot.slane %v13960_v63, 5  ;;  %v3612_v40 = vsel %vm3586_vm5, %v3579_v21, %v3206_v32  ;;  %v11018_v29 = vrot.slane %v13961_v31, 4 }
 0x1dc   : > { %6264 = vrot.lane.b32.xlu1 %v8080_v48, %s8614_s12  ;;  %v11001_v37 = vrot.slane %v14230_v7, 4  ;;  %v8112_v48 = vcombine.low %v4935_v39, %v4944_v10  ;;  %v11011_v6 = vrot.slane %v14231_v49, 4  ;;  %v4919_v39 = vshll.u32 %v10904_v43, 16 }
 0x1dd   : > { %v4907_v10 = vshrl.u32 %v10922_v44, 16  ;;  %v4910_v43 = vshll.u32 %v10922_v44, 16 }
 0x1de   : > { %v3318_v12 = vpop.permute.xlu0 %3317  ;;  %v3128_v1 = vpop.permute.xlu1 %3127 }
 0x1df   : > { %v3645_v8 = vsel %vm3619_vm7, %v3612_v40, %v3318_v12  ;;  %v11028_v40 = vrot.slane %v4916_v55, 4  ;;  %v4909_v36 = vrot.slane %v4907_v10, 7 }
 0x1e0   : > { %v8381_v14 = vpop.f32.mrf.mxu0  ;;  %6424 = vrot.lane.b32.xlu1 %v8112_v48, %s8618_s16 }
 0x1e1   : > { %v3808_v35 = vadd.f32 %v8381_v14, %v10834_v33  ;;  %v4918_v14 = vrot.slane %v4916_v55, 7  ;;  %v14233_v55 = vshll.u32 %v10902_v15, 16 }
 0x1e2   : > { %v3398_v62 = vpop.permute.xlu0 %3397  ;;  %v3799_v32 = vpop.f32.mrf.mxu0 }
 0x1e3   : > { %v3678_v21 = vsel %vm3652_vm10, %v3645_v8, %v3398_v62  ;;  %v3916_v7 = vmax.f32 %v3808_v35, 0.0  ;;  %v3800_v12 = vadd.f32 %v10834_v33, %v3799_v32  ;;  %v14232_v8 = vshll.u32 %v10886_v0, 16 }
 0x1e4   : > { %8399 = vmatprep.mubr.msk.bf16.mxu0 %vm3712_vm6, %v3678_v21  ;;  %v8382_v63 = vpop.f32.mrf.mxu0  ;;  %v11038_v32 = vrot.slane %v4941_v27, 5  ;;  %v11042_v44 = vrot.slane %v14233_v55, 5  ;;  %v5269_v21 = vrot.slane %v4907_v10, 4  ;;  %v5270_v0 = vrot.slane %v4910_v43, 5 }
 0x1e5   : > { %v8286_v31 = vpack.c.bf16 %v3916_v7, %v3916_v7  ;;  %v3914_v2 = vmax.f32 %v3800_v12, 0.0  ;;  %v3811_v13 = vadd.f32 %v8382_v63, %v10834_v33  ;;  %v11036_v62 = vrot.slane %v14232_v8, 5 }
 0x1e6   : > { %v3802_v35 = vpop.f32.mrf.mxu0  ;;  %v3548_v63 = vsel %vm3520_vm15, %v3515_v5, %v10962_v56  ;;  %v14234_v27 = vshrl.u32 %v10955_v47, 16  ;;  %v14235_v55 = vshll.u32 %v10955_v47, 16  ;;  %v11054_v10 = vrot.slane %v4919_v39, 5 }
 0x1e7   : > { %4187 = vst.msk [vmem:[#allocation3 + $0x44] sm:$0xf] %vm3958_vm2, %v8286_v31  ;;  %v8284_v7 = vpack.c.bf16 %v3914_v2, %v3914_v2  ;;  %v3917_v48 = vmax.f32 %v3811_v13, 0.0  ;;  %v3803_v12 = vadd.f32 %v10834_v33, %v3802_v35  ;;  %v4036_v13 = vld [vmem:[#allocation3 + $0x6c] sm:$0x1]  ;;  %v4912_v35 = vor.u32 %v4910_v43, %v4909_v36 }
 0x1e8   : > { %v4643_v50 = vrot.slane %v14234_v27, 4  ;;  %v4644_v30 = vrot.slane %v14235_v55, 5  ;;  %v5917_v56 = vor.u32 %v11001_v37, %v11036_v62  ;;  %v5290_v5 = vor.u32 %v11011_v6, %v11038_v32 }
 0x1e9   : > { %v3208_v49 = vpop.permute.xlu1 %3207  ;;  %4185 = vst.msk [vmem:[#allocation3 + $0x34] sm:$0xf] %vm3958_vm2, %v8284_v7  ;;  %v8287_v31 = vpack.c.bf16 %v3917_v48, %v3917_v48  ;;  %v3915_v2 = vmax.f32 %v3803_v12, 0.0  ;;  %v4664_v27 = vor.u32 %v11018_v29, %v11042_v44  ;;  %v3581_v8 = vsel %vm3553_vm1, %v3548_v63, %v3128_v1 }
 0x1ea   : > { %v4921_v48 = vor.u32 %v4919_v39, %v4918_v14  ;;  %v5912_v12 = vor.u32 %v10982_v18, %v10980_v28  ;;  %v3614_v43 = vsel %vm3586_vm5, %v3581_v8, %v3208_v49  ;;  %v5285_v37 = vor.u32 %v10988_v22, %v10984_v20 }
 0x1eb   : > { %4188 = vst.msk [vmem:[#allocation3 + $0x48] sm:$0xf] %vm3958_vm2, %v8287_v31  ;;  %v8285_v7 = vpack.c.bf16 %v3915_v2, %v3915_v2  ;;  %v4659_v6 = vor.u32 %v11005_v51, %v10992_v17  ;;  %v4037_v1 = vsel %vm10783_vm0, 0, %v4036_v13  ;;  %v4914_v39 = vrot.slane %v4909_v36, 4 }
 0x1ec   : > { %v3400_v47 = vpop.permute.xlu0 %3399  ;;  %v5271_v14 = vor.u32 %v5270_v0, %v5269_v21  ;;  %v5276_v28 = vor.u32 %v11028_v40, %v11054_v10  ;;  %4038 = vst [vmem:[#allocation3 + $0x6c] sm:$0x1] %v4037_v1  ;;  %v5918_v49 = vrot.slane %v5917_v56, 4  ;;  %v5291_v20 = vrot.slane %v5290_v5, 4  ;;  %v5506_v0 = vld [vmem:[#allocation3 + $0x60] sm:$0x8] }
 0x1ed   : > { %v3320_v55 = vpop.permute.xlu1 %3319  ;;  %4186 = vst.msk [vmem:[#allocation3 + $0x38] sm:$0xf] %vm3958_vm2, %v8285_v7  ;;  %v4665_v22 = vrot.slane %v4664_v27, 4  ;;  %v13966_v17 = vshll.u32 %v10940_v57, 16  ;;  %v4922_v51 = vsel %vm8952_vm11, %v4914_v39, %v4921_v48  ;;  %v5913_v63 = vrot.slane %v5912_v12, 4 }
 0x1ee   : > { %v3647_v29 = vsel %vm3619_vm7, %v3614_v43, %v3320_v55  ;;  %v4645_v8 = vor.u32 %v4644_v30, %v4643_v50  ;;  %v5286_v36 = vrot.slane %v5285_v37, 4  ;;  %v4660_v21 = vrot.slane %v4659_v6, 4  ;;  %v11097_v7 = vld [vmem:[#allocation3 + $0x60] sm:$0x8]  ;;  %v11116_v6 = vld [vmem:[#allocation3 + $0x44] sm:$0xf] }
 0x1ef   : > { %v3680_v18 = vsel %vm3652_vm10, %v3647_v29, %v3400_v47  ;;  %v14236_v40 = vshrl.u32 %v10933_v45, 16  ;;  %v14238_v47 = vshrl.u32 %v10935_v16, 16  ;;  %v14240_v56 = vshrl.u32 %v10940_v57, 16  ;;  %14241 = vst [vmem:[#allocation32_spill] sm:$0xff] %v11097_v7  ;;  %v11099_v45 = vld [vmem:[#allocation3 + $0x44] sm:$0xf] }
 0x1f0   : > { %8400 = vmatmul.mubr.msk.bf16.gmra.mxu0 %vm3712_vm6, %v3680_v18  ;;  %v4913_v50 = vsel %vm8952_vm11, %v10863_v59, %v4912_v35  ;;  %v5272_v30 = vrot.slane %v5271_v14, 4  ;;  %v5277_v27 = vrot.slane %v5276_v28, 4  ;;  %v5923_v43 = vsel %vm8752_vm9, %v5918_v49, %v10867_v26  ;;  %v2858_v35 = vpop.permute.xlu0 %2857  ;;  %v11135_v28 = vld [vmem:[#allocation3 + $0x50] sm:$0x8] }
 0x1f1   : > { %v11084_v31 = vrot.slane %v14236_v40, 11  ;;  %v11088_v2 = vrot.slane %v14238_v47, 11  ;;  %v2778_v13 = vpop.permute.xlu1 %2777  ;;  %v11092_v5 = vrot.slane %v14240_v56, 4  ;;  %v8111_v12 = vcombine.low %v4913_v50, %v4922_v51  ;;  %14242 = vst [vmem:[#allocation33_spill] sm:$0xff] %v11135_v28 }
 0x1f2   : > { %v11101_v48 = vld [vmem:[#allocation3 + $0x48] sm:$0xf]  ;;  %v5296_v55 = vsel %vm8752_vm9, %v5291_v20, %v10869_v41  ;;  %v4670_v59 = vsel %vm8752_vm9, %v4665_v22, %v10873_v38  ;;  %v5915_v1 = vsel %vm8752_vm9, %v5913_v63, %v11036_v62  ;;  %v11121_v29 = vrot.slane %v4645_v8, 4  ;;  %v11138_v62 = vld [vmem:[#allocation3 + $0x44] sm:$0xf] }
 0x1f3   : > { %14237 = vst [vmem:[#allocation30_spill] sm:$0xff] %v11084_v31  ;;  %14239 = vst [vmem:[#allocation31_spill] sm:$0xff] %v11088_v2  ;;  %v11103_v16 = vld [vmem:[#allocation3 + $0x48] sm:$0xf]  ;;  %v8177_v37 = vcombine.low %v11099_v45, %v11101_v48  ;;  %v11125_v26 = vrot.slane %v13966_v17, 5  ;;  %v5288_v38 = vsel %vm8752_vm9, %v5286_v36, %v11038_v32  ;;  %v4662_v39 = vsel %vm8752_vm9, %v4660_v21, %v11042_v44 }
 0x1f4   : > { %v8130_v41 = vcombine.low %v11116_v6, %v11103_v16  ;;  %v5631_v14 = vshrl.u32 %v5506_v0, 16  ;;  %14243 = vst [vmem:[#allocation34_spill] sm:$0xff] %v11138_v62  ;;  %v11140_v18 = vld [vmem:[#allocation3 + $0x48] sm:$0xf]  ;;  %v8191_v49 = vcombine.low %v5915_v1, %v5923_v43  ;;  %v8144_v20 = vcombine.low %v5288_v38, %v5296_v55  ;;  %v11185_v38 = vld [vmem:[#allocation3 + $0x34] sm:$0xf] }
 0x1f5   : > { %6810 = vrot.lane.b32.xlu0 %v8177_v37, %s8621_s14  ;;  %v11142_v22 = vcombine.low %v4662_v39, %v4670_v59  ;;  %v5592_v32 = vshrl.u32 %v11099_v45, 16  ;;  %v13968_v63 = vshll.u32 %v11099_v45, 16  ;;  %v5274_v44 = vsel %vm8752_vm9, %v5272_v30, %v11054_v10  ;;  %v2938_v30 = vpop.permute.xlu0 %2937  ;;  %v11246_v39 = vld [vmem:[#allocation3 + $0x34] sm:$0xf] }
 0x1f6   : > { %6540 = vrot.lane.b32.xlu1 %v8130_v41, %s8620_s18  ;;  %v5282_v8 = vsel %vm8752_vm9, %v5277_v27, %v10875_v42  ;;  %v2780_v36 = vpop.permute.xlu1 %2779  ;;  %v4973_v21 = vshrl.u32 %v11116_v6, 16  ;;  %v4650_v40 = vor.u32 %v11092_v5, %v11125_v26  ;;  %v13967_v56 = vshll.u32 %v11116_v6, 16  ;;  %14248 = vst [vmem:[#allocation37_spill] sm:$0xff] %v11246_v39 }
 0x1f7   : > { %v13969_v10 = vshrl.u32 %v11138_v62, 16  ;;  %v8083_v42 = vcombine.low %v11138_v62, %v11140_v18  ;;  %v11166_v50 = vrot.slane %v5631_v14, 11  ;;  %v5601_v27 = vshrl.u32 %v11101_v48, 16 }
 0x1f8   : > { %v4982_v43 = vshrl.u32 %v11103_v16, 16  ;;  %v13970_v5 = vshll.u32 %v11138_v62, 16  ;;  %v11172_v55 = vcombine.low %v5274_v44, %v5282_v8  ;;  %v3450_v59 = vsel %vm3405_vm12, %v10749_v3, %v2778_v13  ;;  %v11193_v3 = vld [vmem:[#allocation3 + $0x38] sm:$0xf] }
 0x1f9   : > { %14244 = vst [vmem:[#allocation35_spill] sm:$0xff] %v11166_v50  ;;  %6422 = vrot.lane.b32.xlu0 %v8111_v12, %s8618_s16  ;;  %v11176_v37 = vrot.slane %v5592_v32, 7  ;;  %v11178_v1 = vrot.slane %v5592_v32, 4  ;;  %v11182_v41 = vrot.slane %v13968_v63, 5  ;;  %v3484_v12 = vsel %vm3454_vm13, %v3450_v59, %v2858_v35  ;;  %v11203_v35 = vld [vmem:[#allocation3 + $0x34] sm:$0xf] }
 0x1fa   : > { %6270 = vrot.lane.b32.xlu1 %v8083_v42, %s8614_s12  ;;  %v11189_v14 = vrot.slane %v4973_v21, 7  ;;  %v11191_v44 = vrot.slane %v4973_v21, 4  ;;  %v3453_v13 = vsel %vm3405_vm12, %v10788_v23, %v2780_v36  ;;  %v11200_v8 = vrot.slane %v13967_v56, 5  ;;  %v2860_v59 = vpop.permute.xlu1 %2859  ;;  %v11209_v36 = vld [vmem:[#allocation3 + $0x38] sm:$0xf] }
 0x1fb   : > { %v13973_v42 = vshrl.u32 %v11140_v18, 16  ;;  %v5603_v17 = vrot.slane %v5601_v27, 7  ;;  %v11205_v47 = vrot.slane %v5601_v27, 4  ;;  %v4984_v21 = vrot.slane %v4982_v43, 7  ;;  %v11220_v63 = vld [vmem:[%s13903_s6] sm:$0x3] }
 0x1fc   : > { %v5570_v23 = vshrl.u32 %v11185_v38, 16  ;;  %v3517_v51 = vsel %vm3487_vm14, %v3484_v12, %v2938_v30  ;;  %v11212_v0 = vrot.slane %v4982_v43, 4  ;;  %v5579_v27 = vshrl.u32 %v11193_v3, 16  ;;  %14245 = vst [vmem:[#allocation36_spill] sm:$0xff] %v11220_v63  ;;  %8487 = vmatprep.subr.msk.bf16.mxu1 %vm14246_vm4, %v11220_v63  ;;  %8486 = vmatprep.subr.msk.bf16.mxu0 %vm14247_vm8, %v11220_v63 }
 0x1fd   : > { %6886 = vrot.lane.b32.xlu0 %v8191_v49, %s8623_s17  ;;  %v3050_v49 = vpop.permute.xlu0 %3049  ;;  %v11225_v30 = vrot.slane %v13969_v10, 4  ;;  %v11229_v43 = vrot.slane %v13970_v5, 5  ;;  %v11237_v12 = vsel %vm3454_vm13, %v3453_v13, %v2860_v59  ;;  %v11241_v32 = vrot.slane %v13973_v42, 4  ;;  %v11255_v59 = vld [vmem:[#allocation3 + $0x38] sm:$0xf] }
 0x1fe   : > { %6616 = vrot.lane.b32.xlu1 %v8144_v20, %s8624_s26  ;;  %v4951_v20 = vshrl.u32 %v11203_v35, 16  ;;  %v8176_v5 = vcombine.low %v11185_v38, %v11193_v3  ;;  %v11250_v56 = vrot.slane %v5570_v23, 7  ;;  %v11252_v62 = vrot.slane %v5570_v23, 4  ;;  %14249 = vst [vmem:[#allocation38_spill] sm:$0xff] %v11255_v59 }
 0x1ff   : > { %v4960_v13 = vshrl.u32 %v11209_v36, 16  ;;  %v4651_v42 = vrot.slane %v4650_v40, 4  ;;  %v3550_v50 = vsel %vm3520_vm15, %v3517_v51, %v3050_v49  ;;  %v5581_v10 = vrot.slane %v5579_v27, 7 }
 0x200   : > { %v14250_v2 = vshll.u32 %v11185_v38, 16  ;;  %v11264_v57 = vrot.slane %v5579_v27, 4  ;;  %v4953_v23 = vrot.slane %v4951_v20, 7  ;;  %v8129_v63 = vcombine.low %v11203_v35, %v11209_v36 }
 0x201   : > { %6346 = vrot.lane.b32.xlu0 %v11142_v22, %s8615_s13  ;;  %v4954_v22 = vshll.u32 %v11203_v35, 16  ;;  %v11269_v40 = vrot.slane %v4951_v20, 4  ;;  %v14251_v49 = vshll.u32 %v11101_v48, 16  ;;  %v3130_v15 = vpop.permute.xlu0 %3129  ;;  %v4962_v7 = vrot.slane %v4960_v13, 7 }
 0x202   : > { %v11260_v31 = vrot.slane %v14250_v2, 5  ;;  %6808 = vrot.lane.b32.xlu1 %v8176_v5, %s8621_s14  ;;  %v8082_v2 = vcombine.low %v11246_v39, %v11255_v59  ;;  %v4656_v35 = vsel %vm8752_vm9, %v4651_v42, %v10877_v4  ;;  %v14252_v20 = vshll.u32 %v11103_v16, 16 }
 0x203   : > { %v5606_v5 = vor.u32 %v14251_v49, %v5603_v17  ;;  %v11283_v46 = vrot.slane %v4954_v22, 5  ;;  %v14253_v17 = vshll.u32 %v11099_v45, 16  ;;  %v14254_v27 = vshll.u32 %v11101_v48, 16 }
 0x204   : > { %v4987_v28 = vor.u32 %v14252_v20, %v4984_v21  ;;  %v11294_v61 = vrot.slane %v4960_v13, 4  ;;  %v14255_v4 = vshll.u32 %v11116_v6, 16  ;;  %v4980_v21 = vrot.slane %v11189_v14, 4 }
 0x205   : > { %6538 = vrot.lane.b32.xlu0 %v8129_v63, %s8620_s18  ;;  %v5597_v49 = vor.u32 %v14253_v17, %v11176_v37  ;;  %v5599_v63 = vrot.slane %v11176_v37, 4  ;;  %v11292_v25 = vrot.slane %v14254_v27, 5  ;;  %v3583_v45 = vsel %vm3553_vm1, %v3550_v50, %v3130_v15 }
 0x206   : > { %v2940_v51 = vpop.permute.xlu1 %2939  ;;  %6268 = vrot.lane.b32.xlu1 %v8082_v2, %s8614_s12  ;;  %v4978_v42 = vor.u32 %v14255_v4, %v11189_v14  ;;  %v14256_v2 = vshll.u32 %v11140_v18, 16  ;;  %v13987_v37 = vshrl.u32 %v11255_v59, 16  ;;  %v14257_v48 = vsel %vm8752_vm9, %v11121_v29, %v11125_v26 }
 0x207   : > { %v8096_v13 = vcombine.low %v14257_v48, %v4656_v35  ;;  %v5607_v6 = vsel %vm8952_vm11, %v5599_v63, %v5606_v5  ;;  %v13986_v27 = vshll.u32 %v11255_v59, 16  ;;  %v4988_v14 = vsel %vm8952_vm11, %v4980_v21, %v4987_v28 }
 0x208   : > { %v11302_v20 = vrot.slane %v14256_v2, 5  ;;  %v14258_v15 = vshll.u32 %v11209_v36, 16  ;;  %v5940_v17 = vor.u32 %v11182_v41, %v11178_v1  ;;  %v14259_v29 = vshrl.u32 %v11246_v39, 16 }
 0x209   : > { %6614 = vrot.lane.b32.xlu0 %v11172_v55, %s8624_s26  ;;  %v5598_v55 = vsel %vm8952_vm11, %v10879_v52, %v5597_v49  ;;  %v4956_v5 = vor.u32 %v4954_v22, %v4953_v23  ;;  %v5945_v28 = vor.u32 %v11205_v47, %v11292_v25  ;;  %v4979_v1 = vsel %vm8952_vm11, %v10881_v34, %v4978_v42 }
 0x20a   : > { %v4965_v50 = vor.u32 %v14258_v15, %v4962_v7  ;;  %v3052_v4 = vpop.permute.xlu1 %3051  ;;  %v11324_v26 = vrot.slane %v14259_v29, 4  ;;  %6344 = vrot.lane.b32.xlu1 %v8096_v13, %s8615_s13  ;;  %v8161_v7 = vcombine.low %v5598_v55, %v5607_v6  ;;  %v4958_v41 = vrot.slane %v4953_v23, 4 }
 0x20b   : > { %v3210_v35 = vpop.permute.xlu0 %3209  ;;  %v4692_v63 = vor.u32 %v11241_v32, %v11302_v20  ;;  %v14260_v21 = vshll.u32 %v11246_v39, 16  ;;  %v8114_v48 = vcombine.low %v4979_v1, %v4988_v14  ;;  %v14261_v52 = vshll.u32 %v11193_v3, 16 }
 0x20c   : > { %v14262_v47 = vshll.u32 %v11103_v16, 16  ;;  %v4966_v34 = vsel %vm8952_vm11, %v4958_v41, %v4965_v50  ;;  %v5941_v23 = vrot.slane %v5940_v17, 4  ;;  %v14263_v32 = vshll.u32 %v11185_v38, 16 }
 0x20d   : > { %v11339_v2 = vrot.slane %v14260_v21, 5  ;;  %v5584_v22 = vor.u32 %v14261_v52, %v5581_v10  ;;  %6698 = vrot.lane.b32.xlu0 %v8161_v7, %s8622_s15  ;;  %v4687_v13 = vor.u32 %v11229_v43, %v11225_v30  ;;  %v5946_v10 = vrot.slane %v5945_v28, 4 }
 0x20e   : > { %v11345_v49 = vrot.slane %v14262_v47, 5  ;;  %v5575_v42 = vor.u32 %v14263_v32, %v11250_v56  ;;  %v3132_v6 = vpop.permute.xlu1 %3131  ;;  %6428 = vrot.lane.b32.xlu1 %v8114_v48, %s8618_s16  ;;  %v5577_v16 = vrot.slane %v11250_v56, 4  ;;  %v5313_v14 = vor.u32 %v11200_v8, %v11191_v44 }
 0x20f   : > { %v14264_v15 = vmov %v14261_v52  ;;  %v3322_v17 = vpop.permute.xlu0 %3321  ;;  %v11365_v38 = vrot.slane %v13987_v37, 4  ;;  %v4957_v30 = vsel %vm8952_vm11, %v10883_v11, %v4956_v5  ;;  %v4693_v43 = vrot.slane %v4692_v63, 4 }
 0x210   : > { %v11361_v50 = vrot.slane %v14264_v15, 5  ;;  %v5926_v56 = vor.u32 %v11260_v31, %v11252_v62  ;;  %v11372_v29 = vcombine.low %v4957_v30, %v4966_v34  ;;  %v5585_v44 = vsel %vm8952_vm11, %v5577_v16, %v5584_v22 }
 0x211   : > { %v5318_v3 = vor.u32 %v11212_v0, %v11345_v49  ;;  %v5299_v8 = vor.u32 %v11283_v46, %v11269_v40  ;;  %v3519_v55 = vsel %vm3487_vm14, %v11237_v12, %v2940_v51  ;;  %v5943_v11 = vsel %vm8752_vm9, %v5941_v23, %v11292_v25  ;;  %vm14282_vm14 = vmmov %vm14246_vm4 }
 0x212   : > { %v5576_v31 = vsel %vm8952_vm11, %v10911_v54, %v5575_v42  ;;  %v4688_v62 = vrot.slane %v4687_v13, 4  ;;  %v3616_v5 = vsel %vm3586_vm5, %v3583_v45, %v3210_v35  ;;  %v3212_v28 = vpop.permute.xlu1 %3211  ;;  %v5951_v0 = vsel %vm8752_vm9, %v5946_v10, %v10897_v24  ;;  %v4033_v45 = vld [vmem:[#allocation3 + $0x5c] sm:$0x1] }
 0x213   : > { %v5314_v46 = vrot.slane %v5313_v14, 4  ;;  %v5931_v12 = vor.u32 %v11264_v57, %v11361_v50  ;;  %v3649_v40 = vsel %vm3619_vm7, %v3616_v5, %v3322_v17  ;;  %v3402_v51 = vpop.permute.xlu0 %3401  ;;  %v11395_v25 = vcombine.low %v5576_v31, %v5585_v44 }
 0x214   : > { %v4698_v54 = vsel %vm8752_vm9, %v4693_v43, %v10931_v58  ;;  %v5927_v7 = vrot.slane %v5926_v56, 4  ;;  %v3682_v35 = vsel %vm3652_vm10, %v3649_v40, %v3402_v51  ;;  %v8385_v1 = vpop.f32.mrf.mxu0  ;;  %v5319_v41 = vrot.slane %v5318_v3, 4  ;;  %v14267_v51 = vld [vmem:[#allocation8_spill] sm:$0xff] }
 0x215   : > { %v11401_v24 = vrot.slane %v5299_v8, 4  ;;  %v14265_v63 = vshll.u32 %v11209_v36, 16  ;;  %v3552_v21 = vsel %vm3520_vm15, %v3519_v55, %v3052_v4  ;;  %8403 = vmatprep.mubr.msk.bf16.mxu0 %vm3712_vm6, %v3682_v35  ;;  %v3824_v48 = vadd.f32 %v8385_v1, %v10834_v33  ;;  %v14269_v35 = vld [vmem:[#allocation19_spill] sm:$0xff] }
 0x216   : > { %v11410_v52 = vcombine.low %v5943_v11, %v5951_v0  ;;  %v4690_v58 = vsel %vm8752_vm9, %v4688_v62, %v11302_v20  ;;  %v3815_v47 = vpop.f32.mrf.mxu0  ;;  %v5316_v36 = vsel %vm8752_vm9, %v5314_v46, %v11345_v49  ;;  %v5932_v34 = vrot.slane %v5931_v12, 4  ;;  %v5503_v0 = vld [vmem:[#allocation3 + $0x50] sm:$0x8] }
 0x217   : > { %v11405_v57 = vrot.slane %v14265_v63, 5  ;;  %v11420_v4 = vrot.slane %v13986_v27, 5  ;;  %v4034_v23 = vsel %vm10783_vm0, 0, %v4033_v45  ;;  %v3920_v32 = vmax.f32 %v3824_v48, 0.0  ;;  %v14272_v48 = vld [vmem:[#allocation18_spill] sm:$0xff]  ;;  %v14311_v27 = vld [vmem:[#allocation11_spill] sm:$0xff] }
 0x218   : > { %v3324_v22 = vpop.permute.xlu1 %3323  ;;  %v3816_v42 = vadd.f32 %v10834_v33, %v3815_v47  ;;  %v11425_v13 = vcombine.low %v4690_v58, %v4698_v54  ;;  %v5929_v20 = vsel %vm8752_vm9, %v5927_v7, %v11361_v50  ;;  %4035 = vst [vmem:[#allocation3 + $0x5c] sm:$0x1] %v4034_v23  ;;  %v3585_v49 = vsel %vm3553_vm1, %v3552_v21, %v3132_v6  ;;  %v8386_v10 = vpop.f32.mrf.mxu0  ;;  %v4213_v6 = vld [vmem:[#allocation3] sm:$0x8]  ;;  %v3989_v21 = vld [vmem:[#allocation3 + $0x70] sm:$0x8] }
 0x219   : > { %v5324_v16 = vsel %vm8752_vm9, %v5319_v41, %v10942_v60  ;;  %v5302_v14 = vsel %vm8752_vm9, %v11401_v24, %v11405_v57  ;;  %v4673_v15 = vor.u32 %v11339_v2, %v11324_v26  ;;  %v3618_v17 = vsel %vm3586_vm5, %v3585_v49, %v3212_v28  ;;  %v14266_v60 = vld [vmem:[#allocation22_spill] sm:$0xff]  ;;  %v3992_v2 = vld [vmem:[#allocation3 + $0x80] sm:$0x8]  ;;  %v5898_v28 = vld [vmem:[#allocation3 + $0x6c] sm:$0x1] }
 0x21a   : > { %v8290_v30 = vpack.c.bf16 %v3920_v32, %v3920_v32  ;;  %v3918_v50 = vmax.f32 %v3816_v42, 0.0  ;;  %v3827_v43 = vadd.f32 %v8386_v10, %v10834_v33  ;;  %v3651_v56 = vsel %vm3619_vm7, %v3618_v17, %v3324_v22  ;;  %v3818_v3 = vpop.f32.mrf.mxu0  ;;  %v14273_v47 = vld [vmem:[#allocation32_spill] sm:$0xff]  ;;  %v14275_v23 = vld [vmem:[#allocation21_spill] sm:$0xff] }
 0x21b   : > { %v5937_v8 = vsel %vm8752_vm9, %v5932_v34, %v14266_v60  ;;  %v5304_v55 = vor.u32 %v11294_v61, %v11405_v57  ;;  %v4678_v26 = vor.u32 %v11365_v38, %v11420_v4  ;;  %v3819_v5 = vadd.f32 %v10834_v33, %v3818_v3  ;;  %v4619_v61 = vld [vmem:[#allocation3 + $0x6c] sm:$0x1] }
 0x21c   : > { %v3404_v44 = vpop.permute.xlu1 %3403  ;;  %4191 = vst.msk [vmem:[#allocation3 + $0x64] sm:$0xf] %vm3958_vm2, %v8290_v30  ;;  %v8288_v31 = vpack.c.bf16 %v3918_v50, %v3918_v50  ;;  %v3921_v62 = vmax.f32 %v3827_v43, 0.0  ;;  %v11454_v46 = vcombine.low %v5316_v36, %v5324_v16  ;;  %v4674_v12 = vrot.slane %v4673_v15, 4  ;;  %v5258_v30 = vld [vmem:[#allocation3 + $0x6c] sm:$0x1] }
 0x21d   : > { %v3684_v11 = vsel %vm3652_vm10, %v3651_v56, %v3404_v44  ;;  %v4262_v40 = vshrl.u32 %v4213_v6, 16  ;;  %v14268_v38 = vshrl.u32 %v14267_v51, 16  ;;  %v3919_v45 = vmax.f32 %v3819_v5, 0.0  ;;  %v14284_v5 = vld [vmem:[#allocation33_spill] sm:$0xff] }
 0x21e   : > { %8404 = vmatmul.mubr.msk.bf16.gmra.mxu0 %vm3712_vm6, %v3684_v11  ;;  %4189 = vst.msk [vmem:[#allocation3 + $0x54] sm:$0xf] %vm3958_vm2, %v8288_v31  ;;  %v8291_v7 = vpack.c.bf16 %v3921_v62, %v3921_v62  ;;  %v14270_v1 = vshrl.u32 %v14269_v35, 16  ;;  %v3993_v63 = vsel %vm10731_vm3, 0, %v3992_v2  ;;  %v11465_v58 = vcombine.low %v5929_v20, %v5937_v8  ;;  %v14277_v20 = vld [vmem:[#allocation20_spill] sm:$0xff]  ;;  %v14297_v24 = vld [vmem:[#allocation17_spill] sm:$0xff] }
 0x21f   : > { %v4269_v54 = vrot.slane %v14268_v38, 7  ;;  %8409 = vmatprep.mubr.msk.bf16.mxu0 %vm3405_vm12, %v14272_v48  ;;  %v5305_v22 = vrot.slane %v5304_v55, 4  ;;  %v14274_v36 = vshrl.u32 %v14273_v47, 16  ;;  %v14276_v32 = vshrl.u32 %v14275_v23, 16  ;;  %3994 = vst [vmem:[#allocation3 + $0x80] sm:$0x8] %v3993_v63 }
 0x220   : > { %v4278_v41 = vrot.slane %v14270_v1, 7  ;;  %4192 = vst.msk [vmem:[#allocation3 + $0x68] sm:$0xf] %vm3958_vm2, %v8291_v7  ;;  %v8289_v49 = vpack.c.bf16 %v3919_v45, %v3919_v45  ;;  %v4679_v10 = vrot.slane %v4678_v26, 4  ;;  %v5976_v16 = vshll.u32 %v5898_v28, 16  ;;  %v14281_v26 = vld [vmem:[#allocation36_spill] sm:$0xff] }
 0x221   : > { %v11469_v34 = vrot.slane %v14274_v36, 11  ;;  %v4322_v42 = vrot.slane %v14276_v32, 7  ;;  %v5609_v15 = vshrl.u32 %v5503_v0, 16  ;;  %v4723_v17 = vshll.u32 %v4619_v61, 16  ;;  %v14283_v11 = vld [vmem:[#allocation28_spill] sm:$0xff]  ;;  %v14288_v1 = vld [vmem:[#allocation26_spill] sm:$0xff] }
 0x222   : > { %v8015_v50 = vrot.slane %v4262_v40, 11  ;;  %v14278_v43 = vshrl.u32 %v14277_v20, 16  ;;  %v3990_v56 = vsel %vm10731_vm3, 0, %v3989_v21  ;;  %4190 = vst.msk [vmem:[#allocation3 + $0x58] sm:$0xf] %vm3958_vm2, %v8289_v49  ;;  %v14279_v44 = vshll.u32 %v14267_v51, 16 }
 0x223   : > { %v4274_v60 = vrot.slane %v4269_v54, 4  ;;  %v14280_v8 = vshll.u32 %v14269_v35, 16  ;;  %3991 = vst [vmem:[#allocation3 + $0x70] sm:$0x8] %v3990_v56  ;;  %v7253_v2 = vsel %vm14282_vm14, %v14281_v26, 0  ;;  %v5310_v31 = vsel %vm8752_vm9, %v5305_v22, %v14283_v11  ;;  %v14295_v56 = vld [vmem:[#allocation6_spill] sm:$0xff] }
 0x224   : > { %v4313_v6 = vrot.slane %v14278_v43, 7  ;;  %v4272_v3 = vor.u32 %v14279_v44, %v4269_v54  ;;  %v4676_v62 = vsel %vm8752_vm9, %v4674_v12, %v11420_v4  ;;  %v14285_v28 = vshrl.u32 %v14284_v5, 16  ;;  %v5897_v61 = vld [vmem:[#allocation3 + $0x5c] sm:$0x1]  ;;  %8484 = vmatpush3.bf16.msra.mxu1 %v7253_v2  ;;  %8408 = vmatpush3.bf16.msra.mxu0 %v7253_v2  ;;  %v14287_v54 = vld [vmem:[#allocation4_spill] sm:$0xff] }
 0x225   : > { %v4281_v55 = vor.u32 %v14280_v8, %v4278_v41  ;;  %v5257_v40 = vld [vmem:[#allocation3 + $0x5c] sm:$0x1]  ;;  %v14286_v51 = vshll.u32 %v14275_v23, 16  ;;  %v4684_v7 = vsel %vm8752_vm9, %v4679_v10, %v14287_v54  ;;  %v11500_v45 = vrot.slane %v5976_v16, 5  ;;  %v11512_v47 = vld [vmem:[#allocation3 + $0x64] sm:$0xf] }
 0x226   : > { %v11493_v0 = vrot.slane %v14285_v28, 11  ;;  %v5349_v35 = vshll.u32 %v5258_v30, 16  ;;  %v14289_v4 = vshrl.u32 %v14288_v1, 16  ;;  %v11506_v41 = vrot.slane %v5609_v15, 11  ;;  %v11518_v49 = vld [vmem:[#allocation3 + $0x5c] sm:$0x1] }
 0x227   : > { %v4325_v38 = vor.u32 %v14286_v51, %v4322_v42  ;;  %v11508_v63 = vrot.slane %v4723_v17, 5  ;;  %v14291_v21 = vshll.u32 %v14277_v20, 16  ;;  %v4318_v22 = vrot.slane %v4313_v6, 4  ;;  %v14292_v10 = vld [vmem:[#allocation10_spill] sm:$0xff]  ;;  %v14293_v16 = vld [vmem:[#allocation16_spill] sm:$0xff] }
 0x228   : > { %v11504_v12 = vrot.slane %v14289_v4, 7  ;;  %v4273_v36 = vsel %vm8952_vm11, %v8015_v50, %v4272_v3  ;;  %v4282_v23 = vsel %vm8952_vm11, %v4274_v60, %v4281_v55  ;;  %v5962_v32 = vshll.u32 %v5897_v61, 16  ;;  %8422 = vmatmul.mubr.msk.bf16.vlgmr.msra.gmra.mxu1 %vm3405_vm12, %v14292_v10  ;;  %8410 = vmatmul.mubr.msk.bf16.vlgmr.msra.gmra.mxu0 %vm3405_vm12, %v14293_v16  ;;  %v11524_v15 = vld [vmem:[#allocation3 + $0x68] sm:$0xf]  ;;  %v11526_v17 = vld [vmem:[#allocation3 + $0x64] sm:$0xf] }
 0x229   : > { %v4316_v48 = vor.u32 %v14291_v21, %v4313_v6  ;;  %v5335_v42 = vshll.u32 %v5257_v40, 16  ;;  %v11528_v30 = vld [vmem:[#allocation3 + $0x68] sm:$0xf]  ;;  %v11535_v50 = vcombine.low %v5302_v14, %v5310_v31  ;;  %v11537_v20 = vcombine.low %v4676_v62, %v4684_v7  ;;  %v14294_v6 = vld [vmem:[#allocation23_spill] sm:$0xff]  ;;  %8413 = vmatprep.mubr.msk.bf16.mxu0 %vm3405_vm12, %v14295_v56  ;;  %v11547_v3 = vld [vmem:[#allocation3 + $0x64] sm:$0xf] }
 0x22a   : > { %14290 = vst [vmem:[#allocation22_spill] sm:$0xff] %v11504_v12  ;;  %v4326_v43 = vsel %vm8952_vm11, %v4318_v22, %v4325_v38  ;;  %8425 = vmatprep.mubr.msk.bf16.mxu1 %vm3405_vm12, %v14294_v6  ;;  %v8179_v44 = vcombine.low %v11512_v47, %v11524_v15  ;;  %14296 = vst [vmem:[#allocation8_spill] sm:$0xff] %v11547_v3  ;;  %v11549_v60 = vrot.slane %v5349_v35, 5  ;;  %v14298_v57 = vshrl.u32 %v14297_v24, 16  ;;  %v14301_v31 = vld [vmem:[#allocation30_spill] sm:$0xff] }
 0x22b   : > { %v14299_v8 = vshll.u32 %v14288_v1, 16  ;;  %v5636_v26 = vshrl.u32 %v11512_v47, 16  ;;  %v8132_v2 = vcombine.low %v11526_v17, %v11528_v30  ;;  %v11561_v11 = vcombine.low %v4273_v36, %v4282_v23  ;;  %v11569_v61 = vld [vmem:[#allocation3 + $0x68] sm:$0xf]  ;;  %v11583_v21 = vld [vmem:[#allocation3 + $0x54] sm:$0xf] }
 0x22c   : > { %v4300_v14 = vrot.slane %v14298_v57, 7  ;;  %v4317_v62 = vsel %vm8952_vm11, %v14301_v31, %v4316_v48  ;;  %v13991_v5 = vshll.u32 %v11512_v47, 16  ;;  %6814 = vrot.lane.b32.xlu0 %v8179_v44, %s8621_s14  ;;  %v5017_v28 = vshrl.u32 %v11526_v17, 16  ;;  %14302 = vst [vmem:[#allocation18_spill] sm:$0xff] %v11569_v61  ;;  %v11585_v48 = vld [vmem:[#allocation3 + $0x54] sm:$0xf] }
 0x22d   : > { %v11556_v55 = vor.u32 %v14299_v8, %v11504_v12  ;;  %v11572_v51 = vcombine.low %v4317_v62, %v4326_v43  ;;  %v13988_v38 = vshll.u32 %v11526_v17, 16  ;;  %6544 = vrot.lane.b32.xlu1 %v8132_v2, %s8620_s18  ;;  %v13990_v54 = vshrl.u32 %v11547_v3, 16  ;;  %v11602_v6 = vld [vmem:[#allocation3 + $0x58] sm:$0xf]  ;;  %v14309_v8 = vld [vmem:[#allocation25_spill] sm:$0xff]  ;;  %v14312_v2 = vld [vmem:[#allocation12_spill] sm:$0xff] }
 0x22e   : > { %v11577_v7 = vrot.slane %v5962_v32, 5  ;;  %v11579_v35 = vrot.slane %v5335_v42, 5  ;;  %v5645_v1 = vshrl.u32 %v11524_v15, 16  ;;  %v13989_v4 = vshll.u32 %v11547_v3, 16 }
 0x22f   : > { %14300 = vst [vmem:[#allocation19_spill] sm:$0xff] %v11556_v55  ;;  %14303 = vst [vmem:[#allocation32_spill] sm:$0xff] %v11572_v51  ;;  %v14306_v22 = vshll.u32 %v14297_v24, 16  ;;  %v11595_v10 = vrot.slane %v5636_v26, 7  ;;  %v11597_v42 = vrot.slane %v5636_v26, 4  ;;  %v5026_v16 = vshrl.u32 %v11528_v30, 16 }
 0x230   : > { %14304 = vst [vmem:[#allocation21_spill] sm:$0xff] %v11577_v7  ;;  %14305 = vst [vmem:[#allocation20_spill] sm:$0xff] %v11579_v35  ;;  %v8085_v43 = vcombine.low %v11547_v3, %v11569_v61  ;;  %v11606_v56 = vrot.slane %v13991_v5, 5  ;;  %v11608_v44 = vrot.slane %v5017_v28, 7  ;;  %v11610_v24 = vrot.slane %v5017_v28, 4  ;;  %6426 = vrot.lane.b32.xlu0 %v11372_v29, %s8618_s16  ;;  %8426 = vmatmul.mubr.msk.bf16.gmra.mxu1 %vm3405_vm12, %v14309_v8  ;;  %v14310_v29 = vld [vmem:[#allocation27_spill] sm:$0xff] }
 0x231   : > { %v11589_v36 = vor.u32 %v14306_v22, %v4300_v14  ;;  %v13992_v57 = vshrl.u32 %v11569_v61, 16  ;;  %v11615_v14 = vld [vmem:[#allocation3 + $0x58] sm:$0xf]  ;;  %v5648_v26 = vshll.u32 %v11524_v15, 16  ;;  %v11623_v31 = vrot.slane %v13988_v38, 5  ;;  %8429 = vmatprep.mubr.msk.bf16.mxu1 %vm3405_vm12, %v14310_v29  ;;  %8414 = vmatmul.mubr.msk.bf16.gmra.mxu0 %vm3405_vm12, %v14311_v27  ;;  %v14317_v35 = vld [vmem:[#allocation29_spill] sm:$0xff] }
 0x232   : > { %6274 = vrot.lane.b32.xlu1 %v8085_v43, %s8614_s12  ;;  %v4995_v62 = vshrl.u32 %v11583_v21, 16  ;;  %v5647_v28 = vrot.slane %v5645_v1, 7  ;;  %v4998_v8 = vshll.u32 %v11583_v21, 16  ;;  %v5004_v15 = vshrl.u32 %v11602_v6, 16  ;;  %8417 = vmatprep.mubr.msk.bf16.mxu0 %vm3405_vm12, %v14312_v2  ;;  %v11664_v5 = vld [vmem:[#allocation3 + $0x58] sm:$0xf] }
 0x233   : > { %14307 = vst [vmem:[#allocation36_spill] sm:$0xff] %v11589_v36  ;;  %v5972_v37 = vrot.slane %v5645_v1, 4  ;;  %v5028_v32 = vrot.slane %v5026_v16, 7  ;;  %v5614_v40 = vshrl.u32 %v11585_v48, 16  ;;  %v5623_v43 = vshrl.u32 %v11615_v14, 16  ;;  %14314 = vst [vmem:[#allocation33_spill] sm:$0xff] %v11664_v5 }
 0x234   : > { %v11638_v29 = vrot.slane %v5026_v16, 4  ;;  %v11642_v38 = vrot.slane %v13990_v54, 4  ;;  %v11646_v22 = vrot.slane %v13989_v4, 5  ;;  %v11650_v27 = vrot.slane %v13992_v57, 4  ;;  %6890 = vrot.lane.b32.xlu0 %v11410_v52, %s8623_s17  ;;  %v11654_v1 = vld [vmem:[#allocation3 + $0x54] sm:$0xf] }
 0x235   : > { %14313 = vst [vmem:[#allocation28_spill] sm:$0xff] %v11654_v1  ;;  %v11658_v16 = vrot.slane %v4995_v62, 7  ;;  %v8131_v4 = vcombine.low %v11583_v21, %v11602_v6  ;;  %v5617_v54 = vshll.u32 %v11585_v48, 16  ;;  %v5006_v57 = vrot.slane %v5004_v15, 7 }
 0x236   : > { %6696 = vrot.lane.b32.xlu1 %v11395_v25, %s8622_s15  ;;  %v11666_v3 = vrot.slane %v4995_v62, 4  ;;  %v11668_v52 = vrot.slane %v4998_v8, 5  ;;  %v11670_v59 = vrot.slane %v5004_v15, 4  ;;  %v5616_v51 = vrot.slane %v5614_v40, 7  ;;  %v14316_v15 = vld [vmem:[#allocation7_spill] sm:$0xff] }
 0x237   : > { %v5625_v25 = vrot.slane %v5623_v43, 7  ;;  %v14315_v55 = vshll.u32 %v11512_v47, 16  ;;  %v5650_v23 = vor.u32 %v5648_v26, %v5647_v28  ;;  %v11680_v36 = vrot.slane %v5648_v26, 5  ;;  %v14318_v28 = vld [vmem:[#allocation13_spill] sm:$0xff] }
 0x238   : > { %6350 = vrot.lane.b32.xlu0 %v11425_v13, %s8615_s13  ;;  %8430 = vmatmul.mubr.msk.bf16.gmra.mxu1 %vm3405_vm12, %v14316_v15  ;;  %v5626_v2 = vshll.u32 %v11615_v14, 16  ;;  %v11687_v39 = vrot.slane %v5614_v40, 4  ;;  %v11689_v13 = vrot.slane %v5617_v54, 5  ;;  %v11691_v21 = vrot.slane %v5623_v43, 4 }
 0x239   : > { %v5641_v62 = vor.u32 %v14315_v55, %v11595_v10  ;;  %8433 = vmatprep.mubr.msk.bf16.mxu1 %vm3405_vm12, %v14317_v35  ;;  %v8178_v47 = vcombine.low %v11585_v48, %v11615_v14  ;;  %v8084_v26 = vcombine.low %v11654_v1, %v11664_v5  ;;  %8418 = vmatmul.mubr.msk.bf16.gmra.mxu0 %vm3405_vm12, %v14318_v28  ;;  %v14319_v40 = vshrl.u32 %v11654_v1, 16  ;;  %v14323_v28 = vld [vmem:[#allocation35_spill] sm:$0xff] }
 0x23a   : > { %6620 = vrot.lane.b32.xlu1 %v11454_v46, %s8624_s26  ;;  %v5643_v46 = vrot.slane %v11595_v10, 4  ;;  %v14320_v15 = vshll.u32 %v11654_v1, 16  ;;  %v5973_v48 = vor.u32 %v5972_v37, %v11680_v36  ;;  %v14321_v14 = vshll.u32 %v11569_v61, 16 }
 0x23b   : > { %v11705_v43 = vrot.slane %v14319_v40, 4  ;;  %v14322_v10 = vshrl.u32 %v11664_v5, 16  ;;  %v5642_v40 = vsel %vm8952_vm11, %v14323_v28, %v5641_v62  ;;  %v14324_v37 = vshll.u32 %v11526_v17, 16 }
 0x23c   : > { %v11709_v35 = vrot.slane %v14320_v15, 5  ;;  %v11714_v55 = vrot.slane %v14321_v14, 5  ;;  %6542 = vrot.lane.b32.xlu0 %v8131_v4, %s8620_s18  ;;  %v5651_v15 = vsel %vm8952_vm11, %v5643_v46, %v5650_v23  ;;  %v14325_v14 = vshll.u32 %v11528_v30, 16 }
 0x23d   : > { %v11719_v7 = vrot.slane %v14322_v10, 4  ;;  %v5022_v1 = vor.u32 %v14324_v37, %v11608_v44  ;;  %v14326_v61 = vshll.u32 %v11602_v6, 16  ;;  %v5968_v12 = vor.u32 %v11606_v56, %v11597_v42 }
 0x23e   : > { %6812 = vrot.lane.b32.xlu1 %v8178_v47, %s8621_s14  ;;  %v5031_v4 = vor.u32 %v14325_v14, %v5028_v32  ;;  %v14327_v62 = vmov %v14325_v14  ;;  %v5024_v23 = vrot.slane %v11608_v44, 4  ;;  %v5000_v17 = vor.u32 %v4998_v8, %v11658_v16  ;;  %v14328_v8 = vld [vmem:[#allocation14_spill] sm:$0xff]  ;;  %v4042_v14 = vld [vmem:[#allocation3 + $0x8c] sm:$0x1] }
 0x23f   : > { %v5009_v10 = vor.u32 %v14326_v61, %v5006_v57  ;;  %v11738_v28 = vrot.slane %v14327_v62, 5  ;;  %v5628_v46 = vor.u32 %v5626_v2, %v5625_v25  ;;  %v4720_v47 = vor.u32 %v11650_v27, %v11714_v55  ;;  %v6263_v27 = vpop.permute.xlu0 %6262 }
 0x240   : > { %v5002_v32 = vrot.slane %v11658_v16, 4  ;;  %v5974_v37 = vrot.slane %v5973_v48, 4  ;;  %v4715_v61 = vor.u32 %v11646_v22, %v11642_v38  ;;  %v5341_v42 = vor.u32 %v11623_v31, %v11610_v24  ;;  %6888 = vrot.lane.b32.xlu0 %v11465_v58, %s8623_s17  ;;  %8434 = vmatmul.mubr.msk.bf16.gmra.mxu1 %vm3405_vm12, %v14328_v8 }
 0x241   : > { %v8163_v30 = vcombine.low %v5642_v40, %v5651_v15  ;;  %v5619_v56 = vor.u32 %v5617_v54, %v5616_v51  ;;  %v5621_v44 = vrot.slane %v5616_v51, 4  ;;  %v5346_v57 = vor.u32 %v11638_v29, %v11738_v28  ;;  %v14329_v51 = vld [vmem:[#allocation5_spill] sm:$0xff] }
 0x242   : > { %6272 = vrot.lane.b32.xlu1 %v8084_v26, %s8614_s12  ;;  %v5023_v38 = vsel %vm8952_vm11, %v11469_v34, %v5022_v1  ;;  %v5032_v24 = vsel %vm8952_vm11, %v5024_v23, %v5031_v4  ;;  %v5010_v58 = vsel %vm8952_vm11, %v5002_v32, %v5009_v10  ;;  %v5969_v54 = vrot.slane %v5968_v12, 4  ;;  %8437 = vmatprep.mubr.msk.bf16.mxu1 %vm3405_vm12, %v14329_v51 }
 0x243   : > { %v5001_v31 = vsel %vm8952_vm11, %v11493_v0, %v5000_v17  ;;  %v5629_v22 = vsel %vm8952_vm11, %v5621_v44, %v5628_v46  ;;  %v4721_v29 = vrot.slane %v4720_v47, 4  ;;  %v5954_v34 = vor.u32 %v11689_v13, %v11687_v39  ;;  %v4039_v46 = vld [vmem:[#allocation3 + $0x7c] sm:$0x1]  ;;  %v5512_v44 = vld [vmem:[#allocation3 + $0x80] sm:$0x8] }
 0x244   : > { %v5979_v1 = vsel %vm8752_vm9, %v5974_v37, %v11500_v45  ;;  %v4716_v12 = vrot.slane %v4715_v61, 4  ;;  %v5342_v16 = vrot.slane %v5341_v42, 4  ;;  %v11775_v25 = vrot.slane %v5626_v2, 5  ;;  %6618 = vrot.lane.b32.xlu0 %v11535_v50, %s8624_s26  ;;  %v8389_v4 = vpop.f32.mrf.mxu0  ;;  %v14333_v47 = vld [vmem:[#allocation15_spill] sm:$0xff] }
 0x245   : > { %v8116_v0 = vcombine.low %v5023_v38, %v5032_v24  ;;  %v11779_v26 = vcombine.low %v5001_v31, %v5010_v58  ;;  %v5620_v48 = vsel %vm8952_vm11, %v11506_v41, %v5619_v56  ;;  %v5347_v40 = vrot.slane %v5346_v57, 4  ;;  %v3998_v57 = vld [vmem:[#allocation3 + $0xa0] sm:$0x8] }
 0x246   : > { %6348 = vrot.lane.b32.xlu1 %v11537_v20, %s8615_s13  ;;  %v5971_v39 = vsel %vm8752_vm9, %v5969_v54, %v11680_v36  ;;  %v11789_v45 = vcombine.low %v5620_v48, %v5629_v22  ;;  %v6920_v50 = vsel %vm3454_vm13, %v11561_v11, %v6263_v27  ;;  %v14330_v2 = vshll.u32 %v11602_v6, 16  ;;  %v3831_v32 = vpop.f32.mrf.mxu0  ;;  %v3995_v27 = vld [vmem:[#allocation3 + $0x90] sm:$0x8] }
 0x247   : > { %v11797_v15 = vcombine.low %v5971_v39, %v5979_v1  ;;  %v4726_v41 = vsel %vm8752_vm9, %v4721_v29, %v11508_v63  ;;  %v11802_v20 = vrot.slane %v5954_v34, 4  ;;  %v5327_v36 = vor.u32 %v11668_v52, %v11666_v3  ;;  %v11821_v3 = vld [vmem:[%s13901_s4] ss:$0 sm:$0xff]  ;;  %v4225_v29 = vld [vmem:[#allocation3 + $0x40] sm:$0x8] }
 0x248   : > { %v11795_v13 = vrot.slane %v14330_v2, 5  ;;  %v4718_v11 = vsel %vm8752_vm9, %v4716_v12, %v11714_v55  ;;  %v5344_v6 = vsel %vm8752_vm9, %v5342_v16, %v11738_v28  ;;  %v5959_v10 = vor.u32 %v11691_v21, %v11775_v25  ;;  %6702 = vrot.lane.b32.xlu0 %v8163_v30, %s8622_s15  ;;  %v6343_v28 = vpop.permute.xlu0 %6342  ;;  %8438 = vmatmul.mubr.msk.bf16.gmra.mxu1 %vm3405_vm12, %v14333_v47  ;;  %v11851_v30 = vpop.permute.xlu1 %6536  ;;  %v4874_v16 = vld [vmem:[#allocation3 + $0x80] sm:$0x8]  ;;  %v4871_v2 = vld [vmem:[#allocation3 + $0x70] sm:$0x8] }
 0x249   : > { %v14331_v63 = vshll.u32 %v11664_v5, 16  ;;  %v3840_v52 = vadd.f32 %v11821_v3, %v8389_v4  ;;  %v5352_v55 = vsel %vm8752_vm9, %v5347_v40, %v11549_v60  ;;  %v4701_v21 = vor.u32 %v11709_v35, %v11705_v43  ;;  %14334 = vst [vmem:[#allocation4_spill] sm:$0xff] %v11851_v30  ;;  %v8390_v8 = vpop.f32.mrf.mxu0 }
 0x24a   : > { %v14332_v23 = vshll.u32 %v11518_v49, 16  ;;  %6432 = vrot.lane.b32.xlu1 %v8116_v0, %s8618_s16  ;;  %v11837_v37 = vcombine.low %v4718_v11, %v4726_v41  ;;  %v11840_v61 = vsel %vm3520_vm15, %v6920_v50, %v6343_v28  ;;  %v5332_v60 = vor.u32 %v11670_v59, %v11795_v13  ;;  %v14338_v28 = vld [vmem:[#allocation22_spill] sm:$0xff] }
 0x24b   : > { %v11816_v62 = vrot.slane %v14331_v63, 5  ;;  %v4043_v49 = vsel %vm10783_vm0, 0, %v4042_v14  ;;  %v3924_v43 = vmax.f32 %v3840_v52, 0.0  ;;  %v3832_v35 = vadd.f32 %v11821_v3, %v3831_v32  ;;  %v3834_v34 = vpop.f32.mrf.mxu0  ;;  %v14336_v14 = vld [vmem:[#allocation34_spill] sm:$0xff] }
 0x24c   : > { %v11832_v17 = vrot.slane %v14332_v23, 5  ;;  %v5957_v42 = vsel %vm8752_vm9, %v11802_v20, %v11775_v25  ;;  %v11853_v56 = vrot.slane %v5327_v36, 4  ;;  %4044 = vst [vmem:[#allocation3 + $0x8c] sm:$0x1] %v4043_v49  ;;  %v11855_v59 = vcombine.low %v5344_v6, %v5352_v55  ;;  %v5509_v20 = vld [vmem:[#allocation3 + $0x70] sm:$0x8]  ;;  %v6267_v52 = vpop.permute.xlu1 %6266 }
 0x24d   : > { %v5960_v38 = vrot.slane %v5959_v10, 4  ;;  %v4706_v24 = vor.u32 %v11719_v7, %v11816_v62  ;;  %v4040_v58 = vsel %vm10783_vm0, 0, %v4039_v46  ;;  %v8294_v54 = vpack.c.bf16 %v3924_v43, %v3924_v43  ;;  %v14340_v46 = vld [vmem:[#allocation20_spill] sm:$0xff] }
 0x24e   : > { %v3922_v51 = vmax.f32 %v3832_v35, 0.0  ;;  %v3843_v31 = vadd.f32 %v11821_v3, %v8390_v8  ;;  %v4702_v22 = vrot.slane %v4701_v21, 4  ;;  %4041 = vst [vmem:[#allocation3 + $0x7c] sm:$0x1] %v4040_v58  ;;  %v5333_v1 = vrot.slane %v5332_v60, 4 }
 0x24f   : > { %v5675_v12 = vshrl.u32 %v5512_v44, 16  ;;  %v14335_v25 = vshrl.u32 %v11140_v18, 16  ;;  %v3999_v7 = vsel %vm10731_vm3, 0, %v3998_v57  ;;  %4195 = vst.msk [vmem:[#allocation3 + $0x84] sm:$0xf] %vm3958_vm2, %v8294_v54  ;;  %v3835_v39 = vadd.f32 %v11821_v3, %v3834_v34 }
 0x250   : > { %v8292_v48 = vpack.c.bf16 %v3922_v51, %v3922_v51  ;;  %v3925_v40 = vmax.f32 %v3843_v31, 0.0  ;;  %v5330_v50 = vsel %vm8752_vm9, %v11853_v56, %v11795_v13  ;;  %4000 = vst [vmem:[#allocation3 + $0xa0] sm:$0x8] %v3999_v7  ;;  %v4707_v41 = vrot.slane %v4706_v24, 4  ;;  %v14339_v13 = vld [vmem:[#allocation21_spill] sm:$0xff]  ;;  %v14342_v56 = vld [vmem:[#allocation36_spill] sm:$0xff] }
 0x251   : > { %v4366_v0 = vrot.slane %v14335_v25, 7  ;;  %v4350_v36 = vshrl.u32 %v4225_v29, 16  ;;  %v14337_v4 = vshrl.u32 %v14336_v14, 16  ;;  %v3996_v6 = vsel %vm10731_vm3, 0, %v3995_v27  ;;  %v11905_v34 = vld [vmem:[#allocation3 + $0x30] sm:$0x8] }
 0x252   : > { %4193 = vst.msk [vmem:[#allocation3 + $0x74] sm:$0xf] %vm3958_vm2, %v8292_v48  ;;  %v8295_v10 = vpack.c.bf16 %v3925_v40, %v3925_v40  ;;  %v3923_v63 = vmax.f32 %v3835_v39, 0.0  ;;  %v5056_v55 = vshrl.u32 %v4874_v16, 16  ;;  %v4296_v21 = vrot.slane %v14338_v28, 4  ;;  %14344 = vst [vmem:[#allocation26_spill] sm:$0xff] %v11905_v34 }
 0x253   : > { %v4357_v11 = vrot.slane %v14337_v4, 7  ;;  %3997 = vst [vmem:[#allocation3 + $0x90] sm:$0x8] %v3996_v6  ;;  %v5965_v23 = vsel %vm8752_vm9, %v5960_v38, %v14339_v13  ;;  %v5338_v47 = vsel %vm8752_vm9, %v5333_v1, %v14340_v46  ;;  %v4704_v32 = vsel %vm8752_vm9, %v4702_v22, %v11816_v62  ;;  %v5900_v60 = vld [vmem:[#allocation3 + $0x8c] sm:$0x1]  ;;  %v14345_v16 = vld [vmem:[#allocation31_spill] sm:$0xff] }
 0x254   : > { %v14341_v49 = vshll.u32 %v11140_v18, 16  ;;  %4196 = vst.msk [vmem:[#allocation3 + $0x88] sm:$0xf] %vm3958_vm2, %v8295_v10  ;;  %v8293_v35 = vpack.c.bf16 %v3923_v63, %v3923_v63  ;;  %v4304_v44 = vsel %vm8952_vm11, %v4296_v21, %v14342_v56  ;;  %v5034_v57 = vshrl.u32 %v4871_v2, 16  ;;  %v4621_v24 = vld [vmem:[#allocation3 + $0x8c] sm:$0x1] }
 0x255   : > { %v5653_v8 = vshrl.u32 %v5509_v20, 16  ;;  %v4712_v38 = vsel %vm8752_vm9, %v4707_v41, %v11832_v17  ;;  %v5260_v58 = vld [vmem:[#allocation3 + $0x8c] sm:$0x1]  ;;  %v8019_v62 = vrot.slane %v4350_v36, 11  ;;  %v14343_v54 = vshll.u32 %v14336_v14, 16  ;;  %v14346_v25 = vld [vmem:[#allocation19_spill] sm:$0xff]  ;;  %v6265_v41 = vpop.permute.xlu1 %6264 }
 0x256   : > { %v4369_v43 = vor.u32 %v14341_v49, %v4366_v0  ;;  %v4362_v51 = vrot.slane %v4357_v11, 4  ;;  %4194 = vst.msk [vmem:[#allocation3 + $0x78] sm:$0xf] %vm3958_vm2, %v8293_v35  ;;  %v11899_v31 = vcombine.low %v5957_v42, %v5965_v23  ;;  %v11901_v22 = vrot.slane %v5675_v12, 11  ;;  %v11907_v1 = vld [vmem:[#allocation3 + $0x84] sm:$0xf] }
 0x257   : > { %v4360_v18 = vor.u32 %v14343_v54, %v4357_v11  ;;  %v11903_v29 = vrot.slane %v5056_v55, 11  ;;  %v6004_v27 = vshll.u32 %v5900_v60, 16  ;;  %v11909_v17 = vcombine.low %v5330_v50, %v5338_v47  ;;  %v14348_v12 = vld [vmem:[#allocation37_spill] sm:$0xff]  ;;  %v11922_v39 = vld [vmem:[#allocation3 + $0x84] sm:$0xf] }
 0x258   : > { %v14347_v0 = vsel %vm8952_vm11, %v14345_v16, %v14346_v25  ;;  %v4370_v42 = vsel %vm8952_vm11, %v4362_v51, %v4369_v43  ;;  %v14349_v48 = vshrl.u32 %v14348_v12, 16  ;;  %v11924_v2 = vcombine.low %v4704_v32, %v4712_v38  ;;  %v14351_v14 = vld [vmem:[#allocation32_spill] sm:$0xff]  ;;  %v11934_v6 = vld [vmem:[#allocation3 + $0x7c] sm:$0x1] }
 0x259   : > { %v8064_v7 = vcombine.low %v14347_v0, %v4304_v44  ;;  %v11926_v50 = vrot.slane %v5034_v57, 11  ;;  %v4751_v20 = vshll.u32 %v4621_v24, 16  ;;  %v5377_v36 = vshll.u32 %v5260_v58, 16  ;;  %v11941_v21 = vld [vmem:[#allocation3 + $0x84] sm:$0xf] }
 0x25a   : > { %v11920_v40 = vrot.slane %v14349_v48, 7  ;;  %v11930_v4 = vsel %vm3454_vm13, %v14351_v14, %v6267_v52  ;;  %v11932_v11 = vrot.slane %v5653_v8, 11  ;;  %v4361_v10 = vsel %vm8952_vm11, %v8019_v62, %v4360_v18  ;;  %14353 = vst [vmem:[#allocation23_spill] sm:$0xff] %v11941_v21  ;;  %v11975_v54 = vld [vmem:[#allocation3 + $0x74] sm:$0xf] }
 0x25b   : > { %14352 = vst [vmem:[#allocation16_spill] sm:$0xff] %v11930_v4  ;;  %v5680_v55 = vshrl.u32 %v11907_v1, 16  ;;  %v14006_v28 = vshll.u32 %v11907_v1, 16  ;;  %v11943_v13 = vrot.slane %v6004_v27, 5  ;;  %v11945_v23 = vcombine.low %v4361_v10, %v4370_v42  ;;  %v11947_v52 = vld [vmem:[#allocation3 + $0x88] sm:$0xf] }
 0x25c   : > { %14350 = vst [vmem:[#allocation10_spill] sm:$0xff] %v11920_v40  ;;  %v11949_v46 = vld [vmem:[#allocation3 + $0x88] sm:$0xf]  ;;  %v5061_v47 = vshrl.u32 %v11922_v39, 16  ;;  %v14005_v32 = vshll.u32 %v11922_v39, 16  ;;  %v11954_v60 = vsel %vm3454_vm13, %v8064_v7, %v6265_v41  ;;  %v14356_v49 = vshll.u32 %v14348_v12, 16 }
 0x25d   : > { %14354 = vst [vmem:[#allocation6_spill] sm:$0xff] %v11945_v23  ;;  %14355 = vst [vmem:[#allocation17_spill] sm:$0xff] %v11954_v60  ;;  %v8181_v35 = vcombine.low %v11907_v1, %v11947_v52  ;;  %v11963_v56 = vld [vmem:[#allocation3 + $0x88] sm:$0xf]  ;;  %v11965_v44 = vrot.slane %v4751_v20, 5  ;;  %v11967_v57 = vrot.slane %v5377_v36, 5  ;;  %v8134_v24 = vcombine.low %v11922_v39, %v11949_v46 }
 0x25e   : > { %v11959_v43 = vor.u32 %v14356_v49, %v11920_v40  ;;  %14358 = vst [vmem:[#allocation25_spill] sm:$0xff] %v11963_v56  ;;  %v5689_v38 = vshrl.u32 %v11947_v52, 16  ;;  %v14009_v58 = vshrl.u32 %v11941_v21, 16  ;;  %v14010_v62 = vshll.u32 %v11941_v21, 16  ;;  %v11987_v25 = vld [vmem:[#allocation3 + $0x78] sm:$0xf] }
 0x25f   : > { %v11977_v18 = vrot.slane %v5680_v55, 7  ;;  %v11979_v51 = vrot.slane %v5680_v55, 4  ;;  %v11983_v27 = vrot.slane %v14006_v28, 5  ;;  %6818 = vrot.lane.b32.xlu0 %v8181_v35, %s8621_s14  ;;  %v5070_v16 = vshrl.u32 %v11949_v46, 16  ;;  %6548 = vrot.lane.b32.xlu1 %v8134_v24, %s8620_s18  ;;  %v11999_v48 = vld [vmem:[#allocation3 + $0x74] sm:$0xf]  ;;  %v12007_v55 = vpop.permute.xlu0 %6806 }
 0x260   : > { %14357 = vst [vmem:[#allocation30_spill] sm:$0xff] %v11959_v43  ;;  %v11989_v0 = vrot.slane %v5061_v47, 7  ;;  %v11991_v7 = vrot.slane %v5061_v47, 4  ;;  %v11995_v42 = vrot.slane %v14005_v32, 5  ;;  %v14013_v12 = vshrl.u32 %v11963_v56, 16  ;;  %14359 = vst [vmem:[#allocation27_spill] sm:$0xff] %v12007_v55 }
 0x261   : > { %v5039_v14 = vshrl.u32 %v11975_v54, 16  ;;  %v12005_v10 = vld [vmem:[#allocation3 + $0x78] sm:$0xf]  ;;  %v5691_v47 = vrot.slane %v5689_v38, 7  ;;  %v8087_v49 = vcombine.low %v11941_v21, %v11963_v56  ;;  %v5042_v35 = vshll.u32 %v11975_v54, 16 }
 0x262   : > { %v5048_v24 = vshrl.u32 %v11987_v25, 16  ;;  %v12013_v63 = vrot.slane %v5689_v38, 4  ;;  %v5072_v8 = vrot.slane %v5070_v16, 7  ;;  %v12015_v20 = vrot.slane %v5070_v16, 4  ;;  %v12020_v32 = vld [vmem:[#allocation3 + $0x74] sm:$0xf] }
 0x263   : > { %6430 = vrot.lane.b32.xlu0 %v11779_v26, %s8618_s16  ;;  %v5658_v36 = vshrl.u32 %v11999_v48, 16  ;;  %14360 = vst [vmem:[#allocation11_spill] sm:$0xff] %v12020_v32  ;;  %v12024_v41 = vrot.slane %v14009_v58, 4  ;;  %v12028_v28 = vrot.slane %v14010_v62, 5  ;;  %v12032_v38 = vrot.slane %v14013_v12, 4  ;;  %6278 = vrot.lane.b32.xlu1 %v8087_v49, %s8614_s12  ;;  %v12057_v55 = vpop.permute.xlu0 %6534  ;;  %v8393_v40 = vpop.f32.mrf.mxu0 }
 0x264   : > { %v5667_v26 = vshrl.u32 %v12005_v10, 16  ;;  %v12036_v16 = vld [vmem:[#allocation3 + $0x78] sm:$0xf]  ;;  %v12038_v5 = vrot.slane %v5039_v14, 7  ;;  %v8133_v58 = vcombine.low %v11975_v54, %v11987_v25  ;;  %v5661_v62 = vshll.u32 %v11999_v48, 16  ;;  %14363 = vst [vmem:[#allocation29_spill] sm:$0xff] %v12057_v55 }
 0x265   : > { %14361 = vst [vmem:[#allocation12_spill] sm:$0xff] %v12036_v16  ;;  %v5050_v21 = vrot.slane %v5048_v24, 7  ;;  %v12044_v23 = vrot.slane %v5039_v14, 4  ;;  %v12046_v12 = vrot.slane %v5042_v35, 5  ;;  %v12048_v30 = vrot.slane %v5048_v24, 4 }
 0x266   : > { %v12052_v49 = vrot.slane %v5658_v36, 7  ;;  %v5669_v14 = vrot.slane %v5667_v26, 7  ;;  %v14364_v60 = vshll.u32 %v11907_v1, 16  ;;  %v14365_v43 = vshll.u32 %v11947_v52, 16 }
 0x267   : > { %14362 = vst [vmem:[#allocation7_spill] sm:$0xff] %v12048_v30  ;;  %6894 = vrot.lane.b32.xlu0 %v11797_v15, %s8623_s17  ;;  %6700 = vrot.lane.b32.xlu1 %v11789_v45, %s8622_s15  ;;  %v12069_v4 = vrot.slane %v5658_v36, 4  ;;  %v12071_v54 = vrot.slane %v5661_v62, 5  ;;  %v12073_v55 = vrot.slane %v5667_v26, 4  ;;  %v8180_v45 = vcombine.low %v11999_v48, %v12005_v10 }
 0x268   : > { %v12065_v15 = vor.u32 %v14364_v60, %v11977_v18  ;;  %v5694_v33 = vor.u32 %v14365_v43, %v5691_v47  ;;  %v3856_v24 = vadd.f32 %v11821_v3, %v8393_v40  ;;  %v8086_v1 = vcombine.low %v12020_v32, %v12036_v16  ;;  %v3847_v43 = vpop.f32.mrf.mxu0 }
 0x269   : > { %v5687_v60 = vrot.slane %v11977_v18, 4  ;;  %v14366_v36 = vshrl.u32 %v12020_v32, 16  ;;  %v14367_v26 = vshll.u32 %v12020_v32, 16  ;;  %v14369_v40 = vshrl.u32 %v12036_v16, 16 }
 0x26a   : > { %v14371_v9 = vshll.u32 %v11922_v39, 16  ;;  %v3928_v30 = vmax.f32 %v3856_v24, 0.0  ;;  %v5068_v32 = vrot.slane %v11989_v0, 4  ;;  %v14372_v39 = vshll.u32 %v11949_v46, 16  ;;  %v12111_v24 = vpop.permute.xlu0 %6694 }
 0x26b   : > { %6354 = vrot.lane.b32.xlu0 %v11837_v37, %s8615_s13  ;;  %v12086_v47 = vrot.slane %v14366_v36, 4  ;;  %v12090_v48 = vrot.slane %v14367_v26, 5  ;;  %v12094_v34 = vrot.slane %v14369_v40, 4  ;;  %6624 = vrot.lane.b32.xlu1 %v11855_v59, %s8624_s26  ;;  %v3848_v37 = vadd.f32 %v11821_v3, %v3847_v43  ;;  %v8394_v40 = vpop.f32.mrf.mxu0 }
 0x26c   : > { %v5066_v18 = vor.u32 %v14371_v9, %v11989_v0  ;;  %v5686_v36 = vsel %vm8952_vm11, %v11901_v22, %v12065_v15  ;;  %v5695_v26 = vsel %vm8952_vm11, %v5687_v60, %v5694_v33  ;;  %v5075_v9 = vor.u32 %v14372_v39, %v5072_v8 }
 0x26d   : > { %14368 = vst [vmem:[#allocation13_spill] sm:$0xff] %v12090_v48  ;;  %14370 = vst [vmem:[#allocation35_spill] sm:$0xff] %v12094_v34  ;;  %v5044_v59 = vor.u32 %v5042_v35, %v12038_v5  ;;  %v14373_v43 = vshll.u32 %v11947_v52, 16  ;;  %v8298_v16 = vpack.c.bf16 %v3928_v30, %v3928_v30  ;;  %v3926_v48 = vmax.f32 %v3848_v37, 0.0  ;;  %v3850_v33 = vpop.f32.mrf.mxu0 }
 0x26e   : > { %v3859_v22 = vadd.f32 %v11821_v3, %v8394_v40  ;;  %v5046_v15 = vrot.slane %v12038_v5, 4  ;;  %v14374_v0 = vshll.u32 %v11987_v25, 16  ;;  %v5996_v8 = vor.u32 %v11983_v27, %v11979_v51  ;;  %v12138_v27 = vpop.permute.xlu0 %6810 }
 0x26f   : > { %v5998_v34 = vrot.slane %v14373_v43, 5  ;;  %6546 = vrot.lane.b32.xlu0 %v8133_v58, %s8620_s18  ;;  %v5663_v52 = vor.u32 %v5661_v62, %v12052_v49  ;;  %4199 = vst.msk [vmem:[#allocation3 + $0xa4] sm:$0xf] %vm3958_vm2, %v8298_v16  ;;  %v8296_v30 = vpack.c.bf16 %v3926_v48, %v3926_v48  ;;  %6816 = vrot.lane.b32.xlu1 %v8180_v45, %s8621_s14  ;;  %v14375_v58 = vshll.u32 %v12005_v10, 16 }
 0x270   : > { %v5053_v60 = vor.u32 %v14374_v0, %v5050_v21  ;;  %v3929_v37 = vmax.f32 %v3859_v22, 0.0  ;;  %v3851_v5 = vadd.f32 %v11821_v3, %v3850_v33  ;;  %v4743_v21 = vor.u32 %v12028_v28, %v12024_v41  ;;  %14377 = vst [vmem:[#allocation14_spill] sm:$0xff] %v12138_v27  ;;  %v12167_v0 = vpop.permute.xlu1 %6424 }
 0x271   : > { %v6001_v35 = vor.u32 %v12013_v63, %v5998_v34  ;;  %v5672_v40 = vor.u32 %v14375_v58, %v5669_v14  ;;  %v14376_v51 = vshll.u32 %v11963_v56, 16  ;;  %v5369_v62 = vor.u32 %v11995_v42, %v11991_v7  ;;  %4197 = vst.msk [vmem:[#allocation3 + $0x94] sm:$0xf] %vm3958_vm2, %v8296_v30 }
 0x272   : > { %v8299_v16 = vpack.c.bf16 %v3929_v37, %v3929_v37  ;;  %v3927_v45 = vmax.f32 %v3851_v5, 0.0  ;;  %v5665_v48 = vrot.slane %v12052_v49, 4  ;;  %v14378_v14 = vshll.u32 %v11949_v46, 16 }
 0x273   : > { %v6002_v39 = vrot.slane %v6001_v35, 4  ;;  %v12134_v63 = vrot.slane %v14376_v51, 5  ;;  %6892 = vrot.lane.b32.xlu0 %v11899_v31, %s8623_s17  ;;  %v5076_v28 = vsel %vm8952_vm11, %v5068_v32, %v5075_v9  ;;  %v5054_v7 = vsel %vm8952_vm11, %v5046_v15, %v5053_v60  ;;  %6276 = vrot.lane.b32.xlu1 %v8086_v1, %s8614_s12 }
 0x274   : > { %v12144_v43 = vrot.slane %v14378_v14, 5  ;;  %v5997_v42 = vrot.slane %v5996_v8, 4  ;;  %4200 = vst.msk [vmem:[#allocation3 + $0xa8] sm:$0xf] %vm3958_vm2, %v8299_v16  ;;  %v8297_v49 = vpack.c.bf16 %v3927_v45, %v3927_v45  ;;  %v5673_v46 = vsel %vm8952_vm11, %v5665_v48, %v5672_v40  ;;  %v6423_v8 = vpop.permute.xlu0 %6422 }
 0x275   : > { %v4748_v41 = vor.u32 %v12032_v38, %v12134_v63  ;;  %v4744_v22 = vrot.slane %v4743_v21, 4  ;;  %v5067_v32 = vsel %vm8952_vm11, %v11903_v29, %v5066_v18  ;;  %v6007_v38 = vsel %vm8752_vm9, %v6002_v39, %v11943_v13  ;;  %v12216_v21 = vpop.permute.xlu1 %6540 }
 0x276   : > { %v5374_v31 = vor.u32 %v12015_v20, %v12144_v43  ;;  %v5370_v15 = vrot.slane %v5369_v62, 4  ;;  %4198 = vst.msk [vmem:[#allocation3 + $0x98] sm:$0xf] %vm3958_vm2, %v8297_v49  ;;  %v8165_v1 = vcombine.low %v5686_v36, %v5695_v26  ;;  %v8118_v33 = vcombine.low %v5067_v32, %v5076_v28  ;;  %v12177_v13 = vld [vmem:[#allocation3 + $0xa4] sm:$0xf]  ;;  %14382 = vst [vmem:[#allocation15_spill] sm:$0xff] %v12216_v21 }
 0x277   : > { %v4749_v9 = vrot.slane %v4748_v41, 4  ;;  %v5045_v20 = vsel %vm8952_vm11, %v11926_v50, %v5044_v59  ;;  %v5664_v29 = vsel %vm8952_vm11, %v11932_v11, %v5663_v52  ;;  %6622 = vrot.lane.b32.xlu0 %v11909_v17, %s8624_s26  ;;  %v12179_v18 = vld [vmem:[#allocation3 + $0xa4] sm:$0xf]  ;;  %v5999_v36 = vsel %vm8752_vm9, %v5997_v42, %v5998_v34  ;;  %6352 = vrot.lane.b32.xlu1 %v11924_v2, %s8615_s13 }
 0x278   : > { %v12181_v60 = vcombine.low %v5045_v20, %v5054_v7  ;;  %v12185_v26 = vcombine.low %v5664_v29, %v5673_v46  ;;  %v14379_v50 = vmov %v14375_v58  ;;  %v12193_v17 = vld [vmem:[#allocation3 + $0xa4] sm:$0xf]  ;;  %v12195_v11 = vcombine.low %v5999_v36, %v6007_v38  ;;  %v12251_v46 = vld [vmem:[#allocation3 + $0x94] sm:$0xf]  ;;  %v14384_v29 = vld [vmem:[#allocation13_spill] sm:$0xff] }
 0x279   : > { %v12189_v59 = vrot.slane %v14379_v50, 5  ;;  %14380 = vst [vmem:[#allocation5_spill] sm:$0xff] %v12193_v17  ;;  %v4746_v35 = vsel %vm8752_vm9, %v4744_v22, %v12134_v63  ;;  %v5375_v52 = vrot.slane %v5374_v31, 4  ;;  %v5724_v10 = vshrl.u32 %v12177_v13, 16  ;;  %v12337_v21 = vld [vmem:[#allocation3 + $0x94] sm:$0xf] }
 0x27a   : > { %v4754_v30 = vsel %vm8752_vm9, %v4749_v9, %v11965_v44  ;;  %v5372_v2 = vsel %vm8752_vm9, %v5370_v15, %v12144_v43  ;;  %v14381_v37 = vshll.u32 %v11934_v6, 16  ;;  %v14026_v58 = vshll.u32 %v12177_v13, 16  ;;  %14393 = vst [vmem:[#allocation13_spill] sm:$0xff] %v12337_v21 }
 0x27b   : > { %v5105_v40 = vshrl.u32 %v12179_v18, 16  ;;  %v14025_v39 = vshll.u32 %v12179_v18, 16  ;;  %v12220_v51 = vsel %vm3586_vm5, %v11840_v61, %v6423_v8  ;;  %6706 = vrot.lane.b32.xlu0 %v8165_v1, %s8622_s15  ;;  %v12223_v44 = vld [vmem:[#allocation3 + $0xa8] sm:$0xf]  ;;  %v14027_v6 = vshrl.u32 %v12193_v17, 16  ;;  %6436 = vrot.lane.b32.xlu1 %v8118_v33, %s8618_s16 }
 0x27c   : > { %v12211_v5 = vrot.slane %v14381_v37, 5  ;;  %v12225_v63 = vld [vmem:[#allocation3 + $0xa8] sm:$0xf]  ;;  %v14028_v62 = vshll.u32 %v12193_v17, 16  ;;  %v5733_v61 = vshrl.u32 %v12223_v44, 16  ;;  %v8183_v48 = vcombine.low %v12177_v13, %v12223_v44 }
 0x27d   : > { %v12237_v14 = vld [vmem:[#allocation3 + $0xa8] sm:$0xf]  ;;  %v12239_v43 = vcombine.low %v4746_v35, %v4754_v30  ;;  %v5380_v28 = vsel %vm8752_vm9, %v5375_v52, %v11967_v57  ;;  %v12244_v7 = vrot.slane %v5724_v10, 7  ;;  %v12246_v42 = vrot.slane %v5724_v10, 4  ;;  %v12265_v38 = vld [vmem:[#allocation3 + $0x98] sm:$0xf]  ;;  %v12284_v10 = vpop.permute.xlu1 %6270 }
 0x27e   : > { %14383 = vst [vmem:[#allocation34_spill] sm:$0xff] %v12237_v14  ;;  %v5114_v41 = vshrl.u32 %v12225_v63, 16  ;;  %v8136_v49 = vcombine.low %v12179_v18, %v12225_v63  ;;  %v12255_v22 = vrot.slane %v14026_v58, 5  ;;  %v12257_v31 = vrot.slane %v5105_v40, 7  ;;  %v12272_v33 = vld [vmem:[#allocation3 + $0x94] sm:$0xf] }
 0x27f   : > { %v12259_v32 = vrot.slane %v5105_v40, 4  ;;  %v12263_v57 = vrot.slane %v14025_v39, 5  ;;  %6822 = vrot.lane.b32.xlu0 %v8183_v48, %s8621_s14  ;;  %v14029_v15 = vshrl.u32 %v12237_v14, 16  ;;  %v12270_v1 = vcombine.low %v5372_v2, %v5380_v28  ;;  %v12274_v20 = vld [vmem:[#allocation3 + $0x98] sm:$0xf]  ;;  %14385 = vst [vmem:[#allocation22_spill] sm:$0xff] %v12284_v10  ;;  %v8397_v39 = vpop.f32.mrf.mxu0 }
 0x280   : > { %v12278_v50 = vrot.slane %v5733_v61, 7  ;;  %6552 = vrot.lane.b32.xlu1 %v8136_v49, %s8620_s18  ;;  %v5083_v52 = vshrl.u32 %v12251_v46, 16  ;;  %v12286_v30 = vrot.slane %v5733_v61, 4  ;;  %v12288_v2 = vrot.slane %v5114_v41, 7  ;;  %v5259_v10 = vld [vmem:[#allocation3 + $0x7c] sm:$0x1] }
 0x281   : > { %v14034_v37 = vshll.u32 %v12251_v46, 16  ;;  %v5092_v40 = vshrl.u32 %v12265_v38, 16  ;;  %v12292_v48 = vrot.slane %v5114_v41, 4  ;;  %v8089_v28 = vcombine.low %v12193_v17, %v12237_v14  ;;  %v12339_v56 = vpop.permute.xlu1 %6616 }
 0x282   : > { %v5702_v49 = vshrl.u32 %v12272_v33, 16  ;;  %v5711_v35 = vshrl.u32 %v12274_v20, 16  ;;  %v12302_v61 = vrot.slane %v14027_v6, 4  ;;  %v12306_v8 = vrot.slane %v14028_v62, 5  ;;  %v3863_v62 = vpop.f32.mrf.mxu0  ;;  %14394 = vst [vmem:[#allocation39_spill] sm:$0xff] %v12339_v56 }
 0x283   : > { %6434 = vrot.lane.b32.xlu0 %v12181_v60, %s8618_s16  ;;  %v12310_v41 = vrot.slane %v14029_v15, 4  ;;  %v3872_v36 = vadd.f32 %v11821_v3, %v8397_v39  ;;  %v12315_v60 = vrot.slane %v5083_v52, 7  ;;  %v8135_v45 = vcombine.low %v12251_v46, %v12265_v38 }
 0x284   : > { %14386 = vst [vmem:[#allocation21_spill] sm:$0xff] %v12302_v61  ;;  %14387 = vst [vmem:[#allocation20_spill] sm:$0xff] %v12306_v8  ;;  %6282 = vrot.lane.b32.xlu1 %v8089_v28, %s8614_s12  ;;  %v12320_v9 = vrot.slane %v5092_v40, 7  ;;  %v12322_v16 = vrot.slane %v5083_v52, 4  ;;  %v12326_v15 = vrot.slane %v14034_v37, 5  ;;  %v12328_v34 = vrot.slane %v5092_v40, 4  ;;  %v12330_v28 = vpop.permute.xlu0 %6886  ;;  %v8398_v52 = vpop.f32.mrf.mxu0 }
 0x285   : > { %14388 = vst [vmem:[#allocation36_spill] sm:$0xff] %v12310_v41  ;;  %14392 = vst [vmem:[#allocation32_spill] sm:$0xff] %v12330_v28  ;;  %v3932_v39 = vmax.f32 %v3872_v36, 0.0  ;;  %v3864_v58 = vadd.f32 %v11821_v3, %v3863_v62  ;;  %v12333_v6 = vrot.slane %v5702_v49, 7  ;;  %v12335_v17 = vrot.slane %v5711_v35, 7 }
 0x286   : > { %14389 = vst [vmem:[#allocation31_spill] sm:$0xff] %v12322_v16  ;;  %14390 = vst [vmem:[#allocation19_spill] sm:$0xff] %v12326_v15  ;;  %v12344_v37 = vrot.slane %v5702_v49, 4  ;;  %v14395_v36 = vshll.u32 %v12272_v33, 16  ;;  %v12350_v62 = vrot.slane %v5711_v35, 4  ;;  %v3875_v14 = vadd.f32 %v11821_v3, %v8398_v52  ;;  %v3866_v35 = vpop.f32.mrf.mxu0 }
 0x287   : > { %14391 = vst [vmem:[#allocation37_spill] sm:$0xff] %v12328_v34  ;;  %6898 = vrot.lane.b32.xlu0 %v12195_v11, %s8623_s17  ;;  %v8302_v41 = vpack.c.bf16 %v3932_v39, %v3932_v39  ;;  %v3930_v56 = vmax.f32 %v3864_v58, 0.0  ;;  %v14397_v11 = vor.u32 %v12071_v54, %v12069_v4  ;;  %v12358_v49 = vld [vmem:[#allocation3 + $0x98] sm:$0xf]  ;;  %v4620_v8 = vld [vmem:[#allocation3 + $0x7c] sm:$0x1]  ;;  %v14399_v61 = vor.u32 %v12073_v55, %v12189_v59 }
 0x288   : > { %v12348_v27 = vrot.slane %v14395_v36, 5  ;;  %14396 = vst [vmem:[#allocation40_spill] sm:$0xff] %v12350_v62  ;;  %6704 = vrot.lane.b32.xlu1 %v12185_v26, %s8622_s15  ;;  %14398 = vst [vmem:[#allocation41_spill] sm:$0xff] %v12358_v49  ;;  %v8182_v36 = vcombine.low %v12272_v33, %v12274_v20  ;;  %v3933_v4 = vmax.f32 %v3875_v14, 0.0  ;;  %v3867_v54 = vadd.f32 %v11821_v3, %v3866_v35  ;;  %v5518_v58 = vld [vmem:[#allocation3 + $0xa0] sm:$0x8]  ;;  %v12376_v62 = vpop.permute.xlu0 %6346 }
 0x289   : > { %v5983_v40 = vrot.slane %v14397_v11, 4  ;;  %v5988_v34 = vrot.slane %v14399_v61, 4  ;;  %4203 = vst.msk [vmem:[#allocation3 + $0xc4] sm:$0xf] %vm3958_vm2, %v8302_v41  ;;  %v8300_v39 = vpack.c.bf16 %v3930_v56, %v3930_v56  ;;  %v14400_v52 = vshll.u32 %v11987_v25, 16  ;;  %v14401_v61 = vld [vmem:[#allocation12_spill] sm:$0xff]  ;;  %v12385_v41 = vpop.permute.xlu1 %6808 }
 0x28a   : > { %v5363_v55 = vshll.u32 %v5259_v10, 16  ;;  %v14402_v16 = vshll.u32 %v14401_v61, 16  ;;  %v4737_v28 = vshll.u32 %v4620_v8, 16  ;;  %v8303_v3 = vpack.c.bf16 %v3933_v4, %v3933_v4  ;;  %v14403_v14 = vld [vmem:[#allocation7_spill] sm:$0xff]  ;;  %v4880_v10 = vld [vmem:[#allocation3 + $0xa0] sm:$0x8] }
 0x28b   : > { %v5357_v11 = vrot.slane %v14400_v52, 5  ;;  %6358 = vrot.lane.b32.xlu0 %v12239_v43, %s8615_s13  ;;  %4201 = vst.msk [vmem:[#allocation3 + $0xb4] sm:$0xf] %vm3958_vm2, %v8300_v39  ;;  %v3931_v56 = vmax.f32 %v3867_v54, 0.0  ;;  %v5985_v25 = vsel %vm8752_vm9, %v5983_v40, %v12189_v59  ;;  %v14037_v8 = vshll.u32 %v12358_v49, 16  ;;  %v14404_v35 = vld [vmem:[#allocation35_spill] sm:$0xff] }
 0x28c   : > { %v4731_v26 = vrot.slane %v14402_v16, 5  ;;  %6628 = vrot.lane.b32.xlu1 %v12270_v1, %s8624_s26  ;;  %v5993_v16 = vsel %vm8752_vm9, %v5988_v34, %v12211_v5  ;;  %v5365_v1 = vrot.slane %v5363_v55, 5  ;;  %4204 = vst.msk [vmem:[#allocation3 + $0xc8] sm:$0xf] %vm3958_vm2, %v8303_v3  ;;  %v4739_v52 = vrot.slane %v4737_v28, 5 }
 0x28d   : > { %v5360_v43 = vor.u32 %v14403_v14, %v5357_v11  ;;  %v8301_v4 = vpack.c.bf16 %v3931_v56, %v3931_v56  ;;  %v5719_v59 = vshrl.u32 %v5518_v58, 16  ;;  %v14405_v40 = vshrl.u32 %v12337_v21, 16 }
 0x28e   : > { %v4734_v39 = vor.u32 %v14404_v35, %v4731_v26  ;;  %v14406_v34 = vshll.u32 %v12223_v44, 16  ;;  %v5100_v55 = vshrl.u32 %v4880_v10, 16  ;;  %v8196_v3 = vcombine.low %v5985_v25, %v5993_v16 }
 0x28f   : > { %v5361_v54 = vrot.slane %v5360_v43, 4  ;;  %6550 = vrot.lane.b32.xlu0 %v8135_v45, %s8620_s18  ;;  %v12396_v14 = vrot.slane %v14405_v40, 4  ;;  %4202 = vst.msk [vmem:[#allocation3 + $0xb8] sm:$0xf] %vm3958_vm2, %v8301_v4  ;;  %v14407_v28 = vshll.u32 %v12337_v21, 16  ;;  %v14408_v45 = vor.u32 %v12046_v12, %v12044_v23  ;;  %v12419_v40 = vpop.permute.xlu0 %6538 }
 0x290   : > { %v4735_v15 = vrot.slane %v4734_v39, 4  ;;  %v5738_v5 = vor.u32 %v14406_v34, %v12278_v50  ;;  %6820 = vrot.lane.b32.xlu1 %v8182_v36, %s8621_s14  ;;  %v14409_v43 = vor.u32 %v14384_v29, %v12086_v47  ;;  %v4877_v39 = vld [vmem:[#allocation3 + $0x90] sm:$0x8]  ;;  %v8088_v50 = vcombine.low %v12337_v21, %v12358_v49  ;;  %v12428_v34 = vpop.permute.xlu1 %6268 }
 0x291   : > { %v12405_v58 = vrot.slane %v14407_v28, 5  ;;  %v5356_v56 = vrot.slane %v14408_v45, 4  ;;  %v8055_v36 = vrot.slane %v5719_v59, 11  ;;  %v14410_v25 = vshll.u32 %v12177_v13, 16  ;;  %v5515_v4 = vld [vmem:[#allocation3 + $0x90] sm:$0x8] }
 0x292   : > { %v4730_v35 = vrot.slane %v14409_v43, 4  ;;  %v5731_v16 = vrot.slane %v12244_v7, 4  ;;  %v5366_v23 = vsel %vm8752_vm9, %v5361_v54, %v5365_v1  ;;  %v4740_v12 = vsel %vm8752_vm9, %v4735_v15, %v4739_v52  ;;  %v4048_v45 = vld [vmem:[#allocation3 + $0xac] sm:$0x1] }
 0x293   : > { %v5729_v10 = vor.u32 %v14410_v25, %v12244_v7  ;;  %v8040_v47 = vrot.slane %v5100_v55, 11  ;;  %v14411_v29 = vshll.u32 %v12179_v18, 16  ;;  %6896 = vrot.lane.b32.xlu0 %v8196_v3, %s8623_s17  ;;  %v14412_v13 = vshrl.u32 %v12358_v49, 16 }
 0x294   : > { %v5739_v28 = vsel %vm8952_vm11, %v5731_v16, %v5738_v5  ;;  %v14413_v1 = vshll.u32 %v12225_v63, 16  ;;  %v5078_v54 = vshrl.u32 %v4877_v39, 16  ;;  %6280 = vrot.lane.b32.xlu1 %v8088_v50, %s8614_s12  ;;  %v5358_v18 = vsel %vm8752_vm9, %v5356_v56, %v5357_v11 }
 0x295   : > { %v5110_v59 = vor.u32 %v14411_v29, %v12257_v31  ;;  %v12433_v7 = vrot.slane %v14412_v13, 4  ;;  %v4732_v52 = vsel %vm8752_vm9, %v4730_v35, %v4731_v26  ;;  %v5112_v55 = vrot.slane %v12257_v31, 4 }
 0x296   : > { %v5119_v15 = vor.u32 %v14413_v1, %v12288_v2  ;;  %v5697_v3 = vshrl.u32 %v5515_v4, 16  ;;  %v8149_v43 = vcombine.low %v5358_v18, %v5366_v23  ;;  %v8102_v25 = vcombine.low %v4732_v52, %v4740_v12  ;;  %v6615_v23 = vpop.permute.xlu0 %6614  ;;  %v14421_v1 = vld [vmem:[#allocation38_spill] sm:$0xff] }
 0x297   : > { %v5730_v5 = vsel %vm8952_vm11, %v8055_v36, %v5729_v10  ;;  %v14414_v2 = vshll.u32 %v12265_v38, 16  ;;  %v5111_v11 = vsel %vm8952_vm11, %v8040_v47, %v5110_v59  ;;  %v8039_v56 = vrot.slane %v5078_v54, 11  ;;  %v14419_v59 = vld [vmem:[#allocation26_spill] sm:$0xff] }
 0x298   : > { %v8167_v50 = vcombine.low %v5730_v5, %v5739_v28  ;;  %v14415_v26 = vshll.u32 %v12251_v46, 16  ;;  %6626 = vrot.lane.b32.xlu0 %v8149_v43, %s8624_s26  ;;  %v5120_v35 = vsel %vm8952_vm11, %v5112_v55, %v5119_v15  ;;  %v5090_v36 = vrot.slane %v12315_v60, 4  ;;  %6356 = vrot.lane.b32.xlu1 %v8102_v25, %s8615_s13  ;;  %v6345_v28 = vpop.permute.xlu1 %6344  ;;  %v14425_v5 = vld [vmem:[#allocation10_spill] sm:$0xff] }
 0x299   : > { %v5097_v39 = vor.u32 %v14414_v2, %v12320_v9  ;;  %v14416_v10 = vshll.u32 %v12274_v20, 16  ;;  %v4049_v4 = vsel %vm10783_vm0, 0, %v4048_v45  ;;  %v8054_v12 = vrot.slane %v5697_v3, 11 }
 0x29a   : > { %v5088_v31 = vor.u32 %v14415_v26, %v12315_v60  ;;  %v14418_v46 = vshll.u32 %v12272_v33, 16  ;;  %v5709_v29 = vrot.slane %v12333_v6, 4  ;;  %v14420_v13 = vshrl.u32 %v14419_v59, 16  ;;  %4050 = vst [vmem:[#allocation3 + $0xac] sm:$0x1] %v4049_v4  ;;  %v14428_v26 = vld [vmem:[#allocation29_spill] sm:$0xff] }
 0x29b   : > { %v5716_v9 = vor.u32 %v14416_v10, %v12335_v17  ;;  %v5098_v17 = vsel %vm8952_vm11, %v5090_v36, %v5097_v39  ;;  %v14422_v15 = vshrl.u32 %v14421_v1, 16  ;;  %v6024_v18 = vor.u32 %v12255_v22, %v12246_v42  ;;  %v4045_v39 = vld [vmem:[#allocation3 + $0x9c] sm:$0x1]  ;;  %v12508_v36 = vpop.permute.xlu0 %6698 }
 0x29c   : > { %v5707_v47 = vor.u32 %v14418_v46, %v12333_v6  ;;  %v12472_v60 = vrot.slane %v14420_v13, 11  ;;  %v14423_v33 = vshll.u32 %v12223_v44, 16  ;;  %v8120_v55 = vcombine.low %v5111_v11, %v5120_v35  ;;  %6710 = vrot.lane.b32.xlu0 %v8167_v50, %s8622_s15  ;;  %v12506_v35 = vld [vmem:[#allocation3 + $0xb4] sm:$0xf] }
 0x29d   : > { %v4344_v54 = vrot.slane %v14422_v15, 7  ;;  %v5089_v6 = vsel %vm8952_vm11, %v8039_v56, %v5088_v31  ;;  %v5397_v3 = vor.u32 %v12263_v57, %v12259_v32  ;;  %v14424_v45 = vshll.u32 %v12225_v63, 16  ;;  %v14426_v32 = vld [vmem:[#allocation30_spill] sm:$0xff] }
 0x29e   : > { %v6026_v52 = vrot.slane %v14423_v33, 5  ;;  %v5717_v25 = vsel %vm8952_vm11, %v5709_v29, %v5716_v9  ;;  %v4340_v42 = vrot.slane %v14425_v5, 4  ;;  %vm7062_vm12 = vcmask 326656   ;;  %6440 = vrot.lane.b32.xlu1 %v8120_v55, %s8618_s16 }
 0x29f   : > { %v5399_v43 = vrot.slane %v14424_v45, 5  ;;  %v8119_v22 = vcombine.low %v5089_v6, %v5098_v17  ;;  %v5708_v2 = vsel %vm8952_vm11, %v8054_v12, %v5707_v47  ;;  %v14427_v50 = vshll.u32 %v14421_v1, 16  ;;  %v14429_v47 = vld [vmem:[#allocation17_spill] sm:$0xff]  ;;  %v12538_v33 = vpop.permute.xlu0 %6814 }
 0x2a0   : > { %v6029_v44 = vor.u32 %v12286_v30, %v6026_v52  ;;  %v6025_v56 = vrot.slane %v6024_v18, 4  ;;  %v5398_v30 = vrot.slane %v5397_v3, 4  ;;  %v7031_v31 = vsel %vm3652_vm10, %v12220_v51, %v14428_v26  ;;  %v14436_v26 = vld [vmem:[#allocation19_spill] sm:$0xff] }
 0x2a1   : > { %v5402_v57 = vor.u32 %v12292_v48, %v5399_v43  ;;  %v4347_v11 = vor.u32 %v14427_v50, %v4344_v54  ;;  %v8166_v10 = vcombine.low %v5708_v2, %v5717_v25  ;;  %vm7095_vm1 = vcmask 392192   ;;  %v12511_v48 = vpop.permute.xlu1 %6428  ;;  %6438 = vrot.lane.b32.xlu0 %v8119_v22, %s8618_s16  ;;  %v5902_v12 = vld [vmem:[#allocation3 + $0xac] sm:$0x1]  ;;  %v12525_v54 = vld [vmem:[#allocation3 + $0xb8] sm:$0xf] }
 0x2a2   : > { %v6030_v9 = vrot.slane %v6029_v44, 4  ;;  %v7064_v4 = vsel %vm7062_vm12, %v7031_v31, %v6615_v23  ;;  %v5262_v46 = vld [vmem:[#allocation3 + $0xac] sm:$0x1]  ;;  %v6969_v29 = vsel %vm3520_vm15, %v14429_v47, %v6345_v28  ;;  %v4046_v51 = vsel %vm10783_vm0, 0, %v4045_v39  ;;  %v14433_v39 = vld [vmem:[#allocation27_spill] sm:$0xff] }
 0x2a3   : > { %v6010_v59 = vor.u32 %v12348_v27, %v12344_v37  ;;  %v14430_v13 = vshll.u32 %v12274_v20, 16  ;;  %6708 = vrot.lane.b32.xlu1 %v8166_v10, %s8622_s15  ;;  %v6032_v23 = vshll.u32 %v5902_v12, 16  ;;  %v5403_v1 = vrot.slane %v5402_v57, 4  ;;  %4047 = vst [vmem:[#allocation3 + $0x9c] sm:$0x1] %v4046_v51 }
 0x2a4   : > { %v5405_v15 = vshll.u32 %v5262_v46, 16  ;;  %v5746_v28 = vshrl.u32 %v12506_v35, 16  ;;  %v12530_v18 = vsel %vm8952_vm11, %v4340_v42, %v4347_v11  ;;  %v6027_v27 = vsel %vm8752_vm9, %v6025_v56, %v6026_v52  ;;  %v14432_v52 = vld [vmem:[#allocation40_spill] sm:$0xff]  ;;  %v12569_v12 = vld [vmem:[#allocation3 + $0xb8] sm:$0xf] }
 0x2a5   : > { %v12522_v17 = vrot.slane %v14430_v13, 5  ;;  %v5400_v20 = vsel %vm8752_vm9, %v5398_v30, %v5399_v43  ;;  %v7097_v37 = vsel %vm7095_vm1, %v7064_v4, %v12111_v24  ;;  %v6034_v55 = vrot.slane %v6032_v23, 5  ;;  %v12545_v25 = vpop.permute.xlu1 %6544  ;;  %v14434_v11 = vld [vmem:[#allocation32_spill] sm:$0xff]  ;;  %v14435_v30 = vld [vmem:[#allocation31_spill] sm:$0xff]  ;;  %v12567_v4 = vld [vmem:[#allocation3 + $0xb4] sm:$0xf]  ;;  %v12580_v13 = vpop.permute.xlu0 %6426 }
 0x2a6   : > { %v5407_v6 = vrot.slane %v5405_v15, 5  ;;  %v12542_v3 = vsel %vm3586_vm5, %v6969_v29, %v12167_v0  ;;  %v5749_v45 = vshll.u32 %v12506_v35, 16  ;;  %14431 = vst [vmem:[#allocation12_spill] sm:$0xff] %v12545_v25  ;;  %v6011_v5 = vrot.slane %v6010_v59, 4  ;;  %14438 = vst [vmem:[#allocation7_spill] sm:$0xff] %v12567_v4  ;;  %v14440_v15 = vld [vmem:[#allocation37_spill] sm:$0xff] }
 0x2a7   : > { %v6015_v42 = vor.u32 %v14432_v52, %v12522_v17  ;;  %v5755_v43 = vshrl.u32 %v12525_v54, 16  ;;  %v5758_v24 = vshll.u32 %v12525_v54, 16  ;;  %v6035_v44 = vsel %vm8752_vm9, %v6030_v9, %v6034_v55  ;;  %14439 = vst [vmem:[#allocation35_spill] sm:$0xff] %v12569_v12 }
 0x2a8   : > { %v5408_v22 = vsel %vm8752_vm9, %v5403_v1, %v5407_v6  ;;  %v12555_v0 = vrot.slane %v5746_v28, 7  ;;  %vm7128_vm6 = vcmask 457728   ;;  %v8199_v2 = vcombine.low %v6027_v27, %v6035_v44 }
 0x2a9   : > { %v8152_v57 = vcombine.low %v5400_v20, %v5408_v22  ;;  %v7130_v50 = vsel %vm7128_vm6, %v7097_v37, %v14433_v39  ;;  %vm7161_vm7 = vcmask 523264   ;;  %vm7443_vm4 = vcmask 588800   ;;  %v4623_v37 = vld [vmem:[#allocation3 + $0xac] sm:$0x1]  ;;  %v14442_v39 = vld [vmem:[#allocation20_spill] sm:$0xff] }
 0x2aa   : > { %v7163_v56 = vsel %vm7161_vm7, %v7130_v50, %v14434_v11  ;;  %v5383_v31 = vor.u32 %v14436_v26, %v14435_v30  ;;  %v14437_v10 = vshll.u32 %v12265_v38, 16  ;;  %6902 = vrot.lane.b32.xlu0 %v8199_v2, %s8623_s17  ;;  %v5901_v46 = vld [vmem:[#allocation3 + $0x9c] sm:$0x1]  ;;  %v6013_v47 = vsel %vm8752_vm9, %v6011_v5, %v12522_v17  ;;  %v12587_v17 = vpop.permute.xlu1 %6274  ;;  %v14443_v11 = vld [vmem:[#allocation34_spill] sm:$0xff] }
 0x2ab   : > { %6632 = vrot.lane.b32.xlu1 %v8152_v57, %s8624_s26  ;;  %v6016_v29 = vrot.slane %v6015_v42, 4  ;;  %v12576_v51 = vrot.slane %v5746_v28, 4  ;;  %v8184_v38 = vcombine.low %v12506_v35, %v12525_v54  ;;  %v5261_v59 = vld [vmem:[#allocation3 + $0x9c] sm:$0x1]  ;;  %v6018_v23 = vshll.u32 %v5901_v46, 16  ;;  %8451 = vmatprep.mubr.msk.bf16.mxu1 %vm7443_vm4, %v7163_v56  ;;  %v14441_v57 = vld [vmem:[#allocation21_spill] sm:$0xff] }
 0x2ac   : > { %v12565_v9 = vrot.slane %v14437_v10, 5  ;;  %v12582_v1 = vrot.slane %v5755_v43, 7  ;;  %v5391_v20 = vshll.u32 %v5261_v59, 16  ;;  %v6037_v28 = vrot.slane %v5749_v45, 5  ;;  %v4622_v26 = vld [vmem:[#allocation3 + $0x9c] sm:$0x1] }
 0x2ad   : > { %v12591_v55 = vrot.slane %v5755_v43, 4  ;;  %v5384_v6 = vrot.slane %v5383_v31, 4  ;;  %v14040_v5 = vshrl.u32 %v12567_v4, 16  ;;  %v6020_v52 = vrot.slane %v6018_v23, 5  ;;  %v8580_v59 = vld [vmem:[%s13902_s5 + $0x20] ss:$0 sps:$4 sm:$0xff]  }
 0x2ae   : > { %v5388_v27 = vor.u32 %v14440_v15, %v12565_v9  ;;  %v5393_v44 = vrot.slane %v5391_v20, 5  ;;  %v14038_v22 = vshll.u32 %v12567_v4, 16  ;;  %v8090_v2 = vcombine.low %v12567_v4, %v12569_v12  ;;  %v4051_v23 = vld [vmem:[#allocation3 + $0xbc] sm:$0x1]  ;;  %v14445_v20 = vld [vmem:[#allocation36_spill] sm:$0xff] }
 0x2af   : > { %6824 = vrot.lane.b32.xlu1 %v8184_v38, %s8621_s14  ;;  %v4771_v50 = vor.u32 %v14442_v39, %v14441_v57  ;;  %v14444_v56 = vshll.u32 %v14443_v11, 16  ;;  %v4779_v30 = vshll.u32 %v4623_v37, 16  ;;  %v6021_v31 = vsel %vm8752_vm9, %v6016_v29, %v6020_v52  ;;  %v12618_v52 = vpop.permute.xlu0 %6890 }
 0x2b0   : > { %v5389_v42 = vrot.slane %v5388_v27, 4  ;;  %v14039_v10 = vshrl.u32 %v12569_v12, 16  ;;  %v4757_v46 = vor.u32 %v12405_v58, %v12396_v14  ;;  %v4759_v38 = vrot.slane %v14037_v8, 5  ;;  %v12621_v8 = vpop.permute.xlu1 %6696 }
 0x2b1   : > { %v4773_v43 = vrot.slane %v14444_v56, 5  ;;  %v8198_v15 = vcombine.low %v6013_v47, %v6021_v31  ;;  %v5386_v27 = vsel %vm8752_vm9, %v5384_v6, %v12565_v9  ;;  %v4781_v14 = vrot.slane %v4779_v30, 5  ;;  %v4001_v56 = vld [vmem:[#allocation3 + $0xb0] sm:$0x8] }
 0x2b2   : > { %v5394_v29 = vsel %vm8752_vm9, %v5389_v42, %v5393_v44  ;;  %v4758_v58 = vrot.slane %v4757_v46, 4  ;;  %v4762_v57 = vor.u32 %v12433_v7, %v4759_v38  ;;  %v4765_v39 = vshll.u32 %v4622_v26, 16 }
 0x2b3   : > { %v4776_v37 = vor.u32 %v14445_v20, %v4773_v43  ;;  %6900 = vrot.lane.b32.xlu0 %v8198_v15, %s8623_s17  ;;  %6284 = vrot.lane.b32.xlu1 %v8090_v2, %s8614_s12  ;;  %vm7476_vm8 = vcmask 1043456   ;;  %v4052_v47 = vsel %vm10783_vm0, 0, %v4051_v23  ;;  %v6038_v6 = vor.u32 %v6037_v28, %v12576_v51  ;;  %v4231_v51 = vld [vmem:[#allocation3 + $0x60] sm:$0x8]  ;;  %v8581_v28 = vld [vmem:[%s13902_s5 + $0x18] sm:$0xff]  }
 0x2b4   : > { %v4772_v42 = vrot.slane %v4771_v50, 4  ;;  %v4763_v44 = vrot.slane %v4762_v57, 4  ;;  %v4767_v30 = vrot.slane %v4765_v39, 5  ;;  %8488 = vmatprep.subr.msk.bf16.mxu1 %vm7476_vm8, %v8580_v59  ;;  %4053 = vst [vmem:[#allocation3 + $0xbc] sm:$0x1] %v4052_v47  ;;  %v12631_v7 = vrot.slane %v5758_v24, 5  ;;  %v12661_v57 = vpop.permute.xlu0 %6350 }
 0x2b5   : > { %v4777_v9 = vrot.slane %v4776_v37, 4  ;;  %v8151_v26 = vcombine.low %v5386_v27, %v5394_v29  ;;  %v4760_v31 = vsel %vm8752_vm9, %v4758_v58, %v4759_v38  ;;  %v4002_v23 = vsel %vm10731_vm3, 0, %v4001_v56  ;;  %v12649_v38 = vld [vmem:[#allocation3 + $0xb4] sm:$0xf]  ;;  %v12674_v47 = vld [vmem:[#allocation3 + $0xb8] sm:$0xf] }
 0x2b6   : > { %v4768_v15 = vsel %vm8752_vm9, %v4763_v44, %v4767_v30  ;;  %v12645_v27 = vrot.slane %v6038_v6, 4  ;;  %v6043_v29 = vor.u32 %v12591_v55, %v12631_v7  ;;  %4003 = vst [vmem:[#allocation3 + $0xb0] sm:$0x8] %v4002_v23  ;;  %v12654_v20 = vrot.slane %v14040_v5, 4  ;;  %v12676_v6 = vpop.permute.xlu1 %6620 }
 0x2b7   : > { %v4782_v50 = vsel %vm8752_vm9, %v4777_v9, %v4781_v14  ;;  %6630 = vrot.lane.b32.xlu0 %v8151_v26, %s8624_s26  ;;  %v12658_v37 = vrot.slane %v14038_v22, 5  ;;  %v8104_v14 = vcombine.low %v4760_v31, %v4768_v15  ;;  %v7478_v58 = vsel %vm7476_vm8, %v8580_v59, 0  ;;  %v8401_v59 = vpop.f32.mrf.mxu0 }
 0x2b8   : > { %v12665_v55 = vrot.slane %v14039_v10, 4  ;;  %v4774_v39 = vsel %vm8752_vm9, %v4772_v42, %v4773_v43  ;;  %v12672_v56 = vor.u32 %v5749_v45, %v12555_v0  ;;  %8442 = vmatpush3.bf16.msra.mxu1 %v7478_v58  ;;  %v4394_v9 = vshrl.u32 %v4231_v51, 16  ;;  %v8582_v45 = vld [vmem:[%s13902_s5 + $0x10] sm:$0xff]   ;;  %v12690_v42 = vld [vmem:[%s13901_s4] ss:$0 sm:$0xff] }
 0x2b9   : > { %v8105_v44 = vcombine.low %v4774_v39, %v4782_v50  ;;  %6360 = vrot.lane.b32.xlu1 %v8104_v14, %s8615_s13  ;;  %v5753_v30 = vrot.slane %v12555_v0, 4  ;;  %v5760_v43 = vor.u32 %v5758_v24, %v12582_v1  ;;  %8443 = vmatprep.subr.bf16.mxu1 %v8581_v28  ;;  %v14041_v35 = vshrl.u32 %v12649_v38, 16  ;;  %v14447_v0 = vld [vmem:[#allocation8_spill] sm:$0xff]  ;;  %v3879_v23 = vpop.f32.mrf.mxu0  ;;  %v14449_v50 = vld [vmem:[#allocation18_spill] sm:$0xff] }
 0x2ba   : > { %v3888_v26 = vadd.f32 %v12690_v42, %v8401_v59  ;;  %v6041_v54 = vsel %vm8752_vm9, %v12645_v27, %v12631_v7  ;;  %v6044_v24 = vrot.slane %v6043_v29, 4  ;;  %v14448_v1 = vshrl.u32 %v14447_v0, 16  ;;  %v12726_v4 = vpop.permute.xlu1 %6812 }
 0x2bb   : > { %6362 = vrot.lane.b32.xlu0 %v8105_v44, %s8615_s13  ;;  %v5903_v51 = vld [vmem:[#allocation3 + $0xbc] sm:$0x1]  ;;  %v14450_v15 = vshrl.u32 %v14449_v50, 16  ;;  %v5129_v58 = vrot.slane %v14041_v35, 7  ;;  %v14048_v39 = vshll.u32 %v12649_v38, 16  ;;  %v14049_v7 = vshrl.u32 %v12674_v47, 16 }
 0x2bc   : > { %v12699_v31 = vrot.slane %v14448_v1, 7  ;;  %v3936_v27 = vmax.f32 %v3888_v26, 0.0  ;;  %v3880_v29 = vadd.f32 %v12690_v42, %v3879_v23  ;;  %v6046_v59 = vshll.u32 %v5903_v51, 16  ;;  %8444 = vmatpush3.bf16.msra.mxu1 %v8581_v28  ;;  %v8584_v44 = vld [vmem:[%s13902_s5 + $0x8] sm:$0xff]   ;;  %v12723_v28 = vpop.permute.xlu0 %6542 }
 0x2bd   : > { %v12704_v14 = vrot.slane %v14450_v15, 7  ;;  %v12711_v1 = vrot.slane %v4394_v9, 11  ;;  %v8402_v15 = vpop.f32.mrf.mxu0  ;;  %v5521_v22 = vld [vmem:[#allocation3 + $0xb0] sm:$0x8]  ;;  %v5761_v10 = vsel %vm8952_vm11, %v5753_v30, %v5760_v43  ;;  %v5132_v63 = vor.u32 %v14048_v39, %v5129_v58  ;;  %8445 = vmatprep.subr.bf16.mxu1 %v8582_v45 }
 0x2be   : > { %v4883_v5 = vld [vmem:[#allocation3 + $0xb0] sm:$0x8]  ;;  %v5138_v26 = vrot.slane %v14049_v7, 7  ;;  %v5139_v9 = vshll.u32 %v12674_v47, 16  ;;  %v8306_v23 = vpack.c.bf16 %v3936_v27, %v3936_v27  ;;  %v3934_v51 = vmax.f32 %v3880_v29, 0.0 }
 0x2bf   : > { %v3891_v35 = vadd.f32 %v12690_v42, %v8402_v15  ;;  %v6048_v2 = vrot.slane %v6046_v59, 5  ;;  %v3882_v30 = vpop.f32.mrf.mxu0  ;;  %v5741_v43 = vshrl.u32 %v5521_v22, 16  ;;  %v5122_v49 = vshrl.u32 %v4883_v5, 16  ;;  %v4624_v29 = vld [vmem:[#allocation3 + $0xbc] sm:$0x1] }
 0x2c0   : > { %v5134_v21 = vrot.slane %v5129_v58, 4  ;;  %v5141_v39 = vor.u32 %v5139_v9, %v5138_v26  ;;  %4207 = vst.msk [vmem:[#allocation3 + $0xe4] sm:$0xf] %vm3958_vm2, %v8306_v23  ;;  %v8304_v7 = vpack.c.bf16 %v3934_v51, %v3934_v51  ;;  %v3883_v25 = vadd.f32 %v12690_v42, %v3882_v30  ;;  %8446 = vmatpush3.bf16.msra.mxu1 %v8582_v45  ;;  %v12756_v51 = vpop.permute.xlu0 %6888  ;;  %v12761_v30 = vld [vmem:[#allocation3 + $0xc8] sm:$0xf] }
 0x2c1   : > { %v3937_v11 = vmax.f32 %v3891_v35, 0.0  ;;  %v6049_v27 = vsel %vm8752_vm9, %v6044_v24, %v6048_v2  ;;  %v8056_v15 = vrot.slane %v5741_v43, 11  ;;  %v14451_v5 = vshll.u32 %v14447_v0, 16  ;;  %8447 = vmatprep.subr.bf16.mxu1 %v8584_v44  ;;  %v8586_v35 = vld [vmem:[%s13902_s5] sm:$0xff]  }
 0x2c2   : > { %v8200_v59 = vcombine.low %v6041_v54, %v6049_v27  ;;  %v8041_v58 = vrot.slane %v5122_v49, 11  ;;  %4205 = vst.msk [vmem:[#allocation3 + $0xd4] sm:$0xf] %vm3958_vm2, %v8304_v7  ;;  %v3935_v23 = vmax.f32 %v3883_v25, 0.0  ;;  %v5142_v2 = vsel %vm8952_vm11, %v5134_v21, %v5141_v39  ;;  %v4004_v54 = vld [vmem:[#allocation3 + $0xc0] sm:$0x8] }
 0x2c3   : > { %v12737_v22 = vor.u32 %v14451_v5, %v12699_v31  ;;  %v8307_v26 = vpack.c.bf16 %v3937_v11, %v3937_v11  ;;  %v4785_v45 = vor.u32 %v12658_v37, %v12654_v20  ;;  %v5752_v49 = vsel %vm8952_vm11, %v8056_v15, %v12672_v56  ;;  %v12754_v25 = vld [vmem:[#allocation3 + $0xc4] sm:$0xf]  ;;  %v12763_v56 = vpop.permute.xlu1 %6272 }
 0x2c4   : > { %6904 = vrot.lane.b32.xlu0 %v8200_v59, %s8623_s17  ;;  %v4406_v24 = vrot.slane %v12699_v31, 4  ;;  %v14452_v0 = vshll.u32 %v12569_v12, 16  ;;  %v4793_v11 = vshll.u32 %v4624_v29, 16  ;;  %v8305_v21 = vpack.c.bf16 %v3935_v23, %v3935_v23  ;;  %8448 = vmatpush3.bf16.msra.mxu1 %v8584_v44  ;;  %v14453_v29 = vld [vmem:[#allocation4_spill] sm:$0xff] }
 0x2c5   : > { %4208 = vst.msk [vmem:[#allocation3 + $0xe8] sm:$0xf] %vm3958_vm2, %v8307_v26  ;;  %v8168_v20 = vcombine.low %v5752_v49, %v5761_v10  ;;  %v5133_v37 = vsel %vm8952_vm11, %v8041_v58, %v5132_v63  ;;  %v4786_v39 = vrot.slane %v4785_v45, 4  ;;  %v7033_v59 = vsel %vm3652_vm10, %v12542_v3, %v14453_v29  ;;  %8449 = vmatprep.subr.bf16.mxu1 %v8586_v35  ;;  %v14455_v58 = vld [vmem:[#allocation39_spill] sm:$0xff] }
 0x2c6   : > { %v4787_v7 = vrot.slane %v14452_v0, 5  ;;  %v8121_v31 = vcombine.low %v5133_v37, %v5142_v2  ;;  %v4795_v27 = vrot.slane %v4793_v11, 5  ;;  %4206 = vst.msk [vmem:[#allocation3 + $0xd8] sm:$0xf] %vm3958_vm2, %v8305_v21  ;;  %v14454_v63 = vshll.u32 %v14449_v50, 16 }
 0x2c7   : > { %6712 = vrot.lane.b32.xlu1 %v8168_v20, %s8622_s15  ;;  %v8137_v44 = vcombine.low %v12649_v38, %v12674_v47  ;;  %v5149_v15 = vshrl.u32 %v12754_v25, 16  ;;  %v7066_v26 = vsel %vm7062_vm12, %v7033_v59, %v14455_v58  ;;  %v5158_v50 = vshrl.u32 %v12761_v30, 16 }
 0x2c8   : > { %v4790_v43 = vor.u32 %v12665_v55, %v4787_v7  ;;  %v4413_v10 = vor.u32 %v14454_v63, %v12704_v14  ;;  %v4005_v55 = vsel %vm10731_vm3, 0, %v4004_v54  ;;  %6442 = vrot.lane.b32.xlu0 %v8121_v31, %s8618_s16  ;;  %v4788_v3 = vsel %vm8752_vm9, %v4786_v39, %v4787_v7  ;;  %v12785_v14 = vld [vmem:[#allocation3 + $0xc4] sm:$0xf]  ;;  %v5263_v54 = vld [vmem:[#allocation3 + $0xbc] sm:$0x1]  ;;  %8450 = vmatpush3.bf16.msra.mxu1 %v8586_v35  ;;  %v12799_v31 = vpop.permute.xlu0 %6618  ;;  %v12807_v63 = vpop.permute.xlu1 %6348 }
 0x2c9   : > { %4006 = vst [vmem:[#allocation3 + $0xc0] sm:$0x8] %v4005_v55  ;;  %v5151_v23 = vrot.slane %v5149_v15, 7  ;;  %v5152_v2 = vshll.u32 %v12754_v25, 16  ;;  %v5161_v45 = vshll.u32 %v12761_v30, 16  ;;  %v14456_v49 = vshrl.u32 %v12649_v38, 16 }
 0x2ca   : > { %v4791_v5 = vrot.slane %v4790_v43, 4  ;;  %v5160_v11 = vrot.slane %v5158_v50, 7  ;;  %v14457_v21 = vshll.u32 %v12649_v38, 16  ;;  %v5413_v37 = vrot.slane %v5139_v9, 5  ;;  %v12797_v39 = vld [vmem:[#allocation3 + $0xc8] sm:$0xf] }
 0x2cb   : > { %v5409_v0 = vrot.slane %v14456_v49, 4  ;;  %v4414_v43 = vsel %vm8952_vm11, %v4406_v24, %v4413_v10  ;;  %v7099_v35 = vsel %vm7095_vm1, %v7066_v26, %v12621_v8  ;;  %v5154_v38 = vor.u32 %v5152_v2, %v5151_v23 }
 0x2cc   : > { %v4796_v7 = vsel %vm8752_vm9, %v4791_v5, %v4795_v27  ;;  %v5410_v20 = vrot.slane %v14457_v21, 5  ;;  %v14458_v27 = vshrl.u32 %v12674_v47, 16  ;;  %6554 = vrot.lane.b32.xlu0 %v8137_v44, %s8620_s18  ;;  %v5163_v9 = vor.u32 %v5161_v45, %v5160_v11 }
 0x2cd   : > { %v8106_v29 = vcombine.low %v4788_v3, %v4796_v7  ;;  %v5419_v5 = vshll.u32 %v5263_v54, 16  ;;  %v5156_v58 = vrot.slane %v5151_v23, 4  ;;  %v14051_v24 = vshrl.u32 %v12785_v14, 16  ;;  %v4054_v7 = vld [vmem:[#allocation3 + $0xcc] sm:$0x1] }
 0x2ce   : > { %v5415_v59 = vrot.slane %v14458_v27, 4  ;;  %v5411_v55 = vor.u32 %v5410_v20, %v5409_v0  ;;  %v14050_v10 = vshrl.u32 %v12797_v39, 16  ;;  %v5771_v47 = vshll.u32 %v12785_v14, 16 }
 0x2cf   : > { %6364 = vrot.lane.b32.xlu1 %v8106_v29, %s8615_s13  ;;  %v5421_v3 = vrot.slane %v5419_v5, 5  ;;  %v5780_v26 = vshll.u32 %v12797_v39, 16  ;;  %v5164_v0 = vsel %vm8952_vm11, %v5156_v58, %v5163_v9  ;;  %v5770_v23 = vrot.slane %v14051_v24, 7 }
 0x2d0   : > { %v5416_v49 = vor.u32 %v5415_v59, %v5413_v37  ;;  %v5412_v8 = vrot.slane %v5411_v55, 4  ;;  %v4886_v44 = vld [vmem:[#allocation3 + $0xc0] sm:$0x8]  ;;  %v7132_v21 = vsel %vm7128_vm6, %v7099_v35, %v12385_v41  ;;  %v5779_v59 = vrot.slane %v14050_v10, 7  ;;  %v12825_v55 = vpop.permute.xlu0 %6702  ;;  %v12833_v35 = vpop.permute.xlu1 %6432 }
 0x2d1   : > { %v5524_v11 = vld [vmem:[#allocation3 + $0xc0] sm:$0x8]  ;;  %v5144_v20 = vshrl.u32 %v4886_v44, 16  ;;  %v5773_v5 = vor.u32 %v5771_v47, %v5770_v23  ;;  %v5775_v58 = vrot.slane %v5770_v23, 4  ;;  %v4055_v41 = vsel %vm10783_vm0, 0, %v4054_v7 }
 0x2d2   : > { %v5417_v54 = vrot.slane %v5416_v49, 4  ;;  %v5414_v29 = vsel %vm8752_vm9, %v5412_v8, %v5413_v37  ;;  %v5763_v27 = vshrl.u32 %v5524_v11, 16  ;;  %v5782_v44 = vor.u32 %v5780_v26, %v5779_v59  ;;  %4056 = vst [vmem:[#allocation3 + $0xcc] sm:$0x1] %v4055_v41 }
 0x2d3   : > { %v8042_v49 = vrot.slane %v5144_v20, 11  ;;  %v5423_v11 = vrot.slane %v5149_v15, 4  ;;  %v5424_v10 = vrot.slane %v5152_v2, 5  ;;  %v12837_v24 = vrot.slane %v5161_v45, 5 }
 0x2d4   : > { %v5422_v9 = vsel %vm8752_vm9, %v5417_v54, %v5421_v3  ;;  %v8057_v8 = vrot.slane %v5763_v27, 11  ;;  %v5429_v3 = vrot.slane %v5158_v50, 4  ;;  %v4007_v54 = vld [vmem:[#allocation3 + $0xd0] sm:$0x8]  ;;  %v14459_v7 = vsel %vm8952_vm11, %v12472_v60, %v14426_v32  ;;  %v12852_v50 = vld [vmem:[#allocation3 + $0xd4] sm:$0xf]  ;;  %v12866_v59 = vpop.permute.xlu0 %6818  ;;  %v12882_v41 = vpop.permute.xlu1 %6548 }
 0x2d5   : > { %v8153_v37 = vcombine.low %v5414_v29, %v5422_v9  ;;  %v8066_v23 = vcombine.low %v14459_v7, %v12530_v18  ;;  %v5155_v20 = vsel %vm8952_vm11, %v8042_v49, %v5154_v38  ;;  %v5783_v15 = vsel %vm8952_vm11, %v5775_v58, %v5782_v44  ;;  %14460 = vst [vmem:[#allocation24_spill] sm:$0xff] %v12866_v59  ;;  %v14461_v9 = vld [vmem:[#allocation22_spill] sm:$0xff]  ;;  %v14489_v59 = vld [vmem:[#allocation15_spill] sm:$0xff] }
 0x2d6   : > { %v7165_v2 = vsel %vm7161_vm7, %v7132_v21, %v12756_v51  ;;  %v4405_v45 = vsel %vm8952_vm11, %v12711_v1, %v12737_v22  ;;  %v8122_v60 = vcombine.low %v5155_v20, %v5164_v0  ;;  %v5774_v32 = vsel %vm8952_vm11, %v8057_v8, %v5773_v5  ;;  %v12864_v21 = vld [vmem:[#allocation3 + $0xd8] sm:$0xf]  ;;  %v14462_v1 = vld [vmem:[#allocation6_spill] sm:$0xff]  ;;  %v14463_v0 = vld [vmem:[#allocation16_spill] sm:$0xff]  ;;  %14464 = vst [vmem:[#allocation26_spill] sm:$0xff] %v12882_v41 }
 0x2d7   : > { %6634 = vrot.lane.b32.xlu0 %v8153_v37, %s8624_s26  ;;  %v5425_v18 = vor.u32 %v5424_v10, %v5423_v11  ;;  %8452 = vmatmul.mubr.msk.bf16.vlgmr.msra.gmra.mxu1 %vm7443_vm4, %v7165_v2  ;;  %v8069_v38 = vcombine.low %v4405_v45, %v4414_v43  ;;  %v8169_v29 = vcombine.low %v5774_v32, %v5783_v15  ;;  %v4008_v51 = vsel %vm10731_vm3, 0, %v4007_v54  ;;  %v12879_v5 = vld [vmem:[#allocation3 + $0x50] sm:$0x8] }
 0x2d8   : > { %v5430_v27 = vor.u32 %v5429_v3, %v12837_v24  ;;  %v6932_v22 = vsel %vm3454_vm13, %v14462_v1, %v14461_v9  ;;  %v6971_v10 = vsel %vm3520_vm15, %v14463_v0, %v12376_v62  ;;  %v12876_v43 = vsel %vm3454_vm13, %v8066_v23, %v12428_v34  ;;  %6444 = vrot.lane.b32.xlu1 %v8122_v60, %s8618_s16  ;;  %v14465_v23 = vld [vmem:[#allocation28_spill] sm:$0xff]  ;;  %v12905_v15 = vpop.permute.xlu0 %6430 }
 0x2d9   : > { %4009 = vst [vmem:[#allocation3 + $0xd0] sm:$0x8] %v4008_v51  ;;  %v5790_v58 = vshrl.u32 %v12852_v50, 16  ;;  %v7003_v49 = vsel %vm3586_vm5, %v6971_v10, %v12580_v13  ;;  %v12888_v37 = vsel %vm3454_vm13, %v8069_v38, %v12587_v17  ;;  %v12892_v62 = vsel %vm3520_vm15, %v6932_v22, %v12661_v57  ;;  %v5264_v8 = vld [vmem:[#allocation3 + $0xcc] sm:$0x1] }
 0x2da   : > { %v8138_v34 = vcombine.low %v12754_v25, %v12761_v30  ;;  %v5426_v44 = vrot.slane %v5425_v18, 4  ;;  %v8185_v11 = vcombine.low %v12785_v14, %v12797_v39  ;;  %v5799_v13 = vshrl.u32 %v12864_v21, 16  ;;  %v14467_v25 = vld [vmem:[#allocation33_spill] sm:$0xff]  ;;  %v12915_v18 = vpop.permute.xlu1 %6278 }
 0x2db   : > { %6714 = vrot.lane.b32.xlu0 %v8169_v29, %s8622_s15  ;;  %v5792_v3 = vrot.slane %v5790_v58, 7  ;;  %v5431_v54 = vrot.slane %v5430_v27, 4  ;;  %v5433_v17 = vshll.u32 %v5264_v8, 16  ;;  %v4372_v7 = vshrl.u32 %v12879_v5, 16  ;;  %v5904_v51 = vld [vmem:[#allocation3 + $0xcc] sm:$0x1] }
 0x2dc   : > { %v14466_v57 = vshrl.u32 %v14465_v23, 16  ;;  %6556 = vrot.lane.b32.xlu1 %v8138_v34, %s8620_s18  ;;  %v14468_v30 = vshrl.u32 %v14467_v25, 16  ;;  %v5801_v45 = vrot.slane %v5799_v13, 7  ;;  %v5802_v60 = vshll.u32 %v12864_v21, 16  ;;  %v4057_v5 = vld [vmem:[#allocation3 + $0xdc] sm:$0x1] }
 0x2dd   : > { %v7035_v32 = vsel %vm3652_vm10, %v7003_v49, %v12419_v40  ;;  %v5435_v38 = vrot.slane %v5433_v17, 5  ;;  %v5793_v29 = vshll.u32 %v12852_v50, 16  ;;  %v14469_v9 = vshrl.u32 %v12785_v14, 16 }
 0x2de   : > { %v12903_v20 = vrot.slane %v14466_v57, 7  ;;  %v12910_v2 = vrot.slane %v14468_v30, 7  ;;  %v7068_v27 = vsel %vm7062_vm12, %v7035_v32, %v12799_v31  ;;  %v5428_v22 = vsel %vm8752_vm9, %v5426_v44, %v12837_v24  ;;  %v12936_v24 = vpop.permute.xlu0 %6894 }
 0x2df   : > { %6826 = vrot.lane.b32.xlu0 %v8185_v11, %s8621_s14  ;;  %v6050_v1 = vrot.slane %v14469_v9, 4  ;;  %v5797_v0 = vrot.slane %v5792_v3, 4  ;;  %v5804_v40 = vor.u32 %v5802_v60, %v5801_v45  ;;  %v7101_v10 = vsel %vm7095_vm1, %v7068_v27, %v12508_v36  ;;  %v12938_v45 = vpop.permute.xlu1 %6700 }
 0x2e0   : > { %v5436_v49 = vsel %vm8752_vm9, %v5431_v54, %v5435_v38  ;;  %v5527_v34 = vld [vmem:[#allocation3 + $0xd0] sm:$0x8]  ;;  %v6051_v31 = vrot.slane %v5771_v47, 5  ;;  %v6054_v8 = vrot.slane %v5780_v26, 5  ;;  %v14470_v11 = vshrl.u32 %v12797_v39, 16 }
 0x2e1   : > { %v8154_v44 = vcombine.low %v5428_v22, %v5436_v49  ;;  %v5785_v57 = vshrl.u32 %v5527_v34, 16  ;;  %v5795_v30 = vor.u32 %v5793_v29, %v5792_v3  ;;  %v6060_v36 = vshll.u32 %v5904_v51, 16  ;;  %v14471_v47 = vld [vmem:[#allocation14_spill] sm:$0xff]  ;;  %v12944_v26 = vld [vmem:[#allocation3 + $0xc4] sm:$0xf] }
 0x2e2   : > { %v6056_v17 = vrot.slane %v14470_v11, 4  ;;  %v5805_v54 = vsel %vm8952_vm11, %v5797_v0, %v5804_v40  ;;  %v6052_v32 = vor.u32 %v6051_v31, %v6050_v1  ;;  %v7134_v38 = vsel %vm7128_vm6, %v7101_v10, %v14471_v47  ;;  %14472 = vst [vmem:[#allocation38_spill] sm:$0xff] %v12944_v26  ;;  %v12952_v40 = vld [vmem:[#allocation3 + $0xc8] sm:$0xf]  ;;  %v12954_v10 = vpop.permute.xlu0 %6354 }
 0x2e3   : > { %6636 = vrot.lane.b32.xlu1 %v8154_v44, %s8624_s26  ;;  %v8058_v39 = vrot.slane %v5785_v57, 11  ;;  %v6062_v27 = vrot.slane %v6060_v36, 5  ;;  %v7167_v3 = vsel %vm7161_vm7, %v7134_v38, %v12618_v52  ;;  %v4058_v51 = vsel %vm10783_vm0, 0, %v4057_v5  ;;  %14473 = vst [vmem:[#allocation10_spill] sm:$0xff] %v12952_v40  ;;  %v12961_v5 = vpop.permute.xlu1 %6624  ;;  %v4625_v44 = vld [vmem:[#allocation3 + $0xcc] sm:$0x1] }
 0x2e4   : > { %v6057_v14 = vor.u32 %v6056_v17, %v6054_v8  ;;  %v6053_v9 = vrot.slane %v6052_v32, 4  ;;  %8455 = vmatprep.mubr.msk.bf16.mxu1 %vm7443_vm4, %v7167_v3  ;;  %4059 = vst [vmem:[#allocation3 + $0xdc] sm:$0x1] %v4058_v51  ;;  %v6064_v1 = vrot.slane %v5790_v58, 4  ;;  %v6065_v0 = vrot.slane %v5793_v29, 5 }
 0x2e5   : > { %v5796_v49 = vsel %vm8952_vm11, %v8058_v39, %v5795_v30  ;;  %v12958_v34 = vrot.slane %v5802_v60, 5  ;;  %v6070_v52 = vrot.slane %v5799_v13, 4  ;;  %v14054_v31 = vshrl.u32 %v12944_v26, 16  ;;  %v8405_v39 = vpop.f32.mrf.mxu0 }
 0x2e6   : > { %v6058_v22 = vrot.slane %v6057_v14, 4  ;;  %v8170_v11 = vcombine.low %v5796_v49, %v5805_v54  ;;  %v6055_v17 = vsel %vm8752_vm9, %v6053_v9, %v6054_v8  ;;  %v6066_v29 = vor.u32 %v6065_v0, %v6064_v1  ;;  %v12981_v47 = vpop.permute.xlu0 %6546  ;;  %v13003_v49 = vld [vmem:[#allocation3 + $0xd4] sm:$0xf] }
 0x2e7   : > { %v6071_v36 = vor.u32 %v6070_v52, %v12958_v34  ;;  %v14052_v60 = vshll.u32 %v12944_v26, 16  ;;  %v14055_v13 = vshrl.u32 %v12952_v40, 16  ;;  %v12970_v30 = vrot.slane %v4372_v7, 11  ;;  %14475 = vst [vmem:[#allocation30_spill] sm:$0xff] %v12981_v47  ;;  %v12989_v3 = vpop.permute.xlu1 %6816  ;;  %14478 = vst [vmem:[#allocation17_spill] sm:$0xff] %v13003_v49  ;;  %v3895_v52 = vpop.f32.mrf.mxu0 }
 0x2e8   : > { %v6063_v58 = vsel %vm8752_vm9, %v6058_v22, %v6062_v27  ;;  %v14474_v54 = vshll.u32 %v14465_v23, 16  ;;  %6716 = vrot.lane.b32.xlu1 %v8170_v11, %s8622_s15  ;;  %v14053_v8 = vshll.u32 %v12952_v40, 16  ;;  %v4797_v14 = vrot.slane %v14054_v31, 4  ;;  %14476 = vst [vmem:[#allocation29_spill] sm:$0xff] %v12989_v3  ;;  %v4237_v31 = vld [vmem:[#allocation3 + $0x80] sm:$0x8] }
 0x2e9   : > { %v8201_v57 = vcombine.low %v6055_v17, %v6063_v58  ;;  %v4798_v7 = vrot.slane %v14052_v60, 5  ;;  %v4803_v23 = vrot.slane %v14055_v13, 4  ;;  %v4807_v27 = vshll.u32 %v4625_v44, 16  ;;  %v13099_v47 = vld [vmem:[#allocation3 + $0xe8] sm:$0xf] }
 0x2ea   : > { %v12975_v32 = vor.u32 %v14474_v54, %v12903_v20  ;;  %v14477_v51 = vshll.u32 %v14467_v25, 16  ;;  %v3904_v22 = vadd.f32 %v12690_v42, %v8405_v39  ;;  %v8186_v1 = vcombine.low %v12852_v50, %v12864_v21  ;;  %v13011_v54 = vld [vmem:[#allocation3 + $0xd8] sm:$0xf]  ;;  %v13013_v39 = vpop.permute.xlu0 %6892 }
 0x2eb   : > { %6906 = vrot.lane.b32.xlu0 %v8201_v57, %s8623_s17  ;;  %v13001_v0 = vrot.slane %v14053_v8, 5  ;;  %v6973_v11 = vsel %vm3520_vm15, %v12876_v43, %v12807_v63  ;;  %v5905_v17 = vld [vmem:[#allocation3 + $0xdc] sm:$0x1]  ;;  %v6067_v25 = vrot.slane %v6066_v29, 4  ;;  %v4799_v58 = vor.u32 %v4798_v7, %v4797_v14  ;;  %14479 = vst [vmem:[#allocation40_spill] sm:$0xff] %v13011_v54  ;;  %v13019_v14 = vpop.permute.xlu1 %6276 }
 0x2ec   : > { %v12994_v9 = vor.u32 %v14477_v51, %v12910_v2  ;;  %v6072_v2 = vrot.slane %v6071_v36, 4  ;;  %v3940_v44 = vmax.f32 %v3904_v22, 0.0  ;;  %v3896_v57 = vadd.f32 %v12690_v42, %v3895_v52  ;;  %6828 = vrot.lane.b32.xlu1 %v8186_v1, %s8621_s14  ;;  %v8406_v51 = vpop.f32.mrf.mxu0 }
 0x2ed   : > { %v6074_v50 = vshll.u32 %v5905_v17, 16  ;;  %v4804_v21 = vor.u32 %v4803_v23, %v13001_v0  ;;  %v8091_v63 = vcombine.low %v12944_v26, %v12952_v40  ;;  %v4809_v43 = vrot.slane %v4807_v27, 5 }
 0x2ee   : > { %v14057_v29 = vshrl.u32 %v13003_v49, 16  ;;  %v14056_v36 = vshll.u32 %v13003_v49, 16  ;;  %v8310_v7 = vpack.c.bf16 %v3940_v44, %v3940_v44  ;;  %v3938_v22 = vmax.f32 %v3896_v57, 0.0  ;;  %v3898_v52 = vpop.f32.mrf.mxu0 }
 0x2ef   : > { %v3907_v1 = vadd.f32 %v12690_v42, %v8406_v51  ;;  %v6076_v23 = vrot.slane %v6074_v50, 5  ;;  %v6069_v17 = vsel %vm8752_vm9, %v6067_v25, %v12958_v34  ;;  %v4800_v60 = vrot.slane %v4799_v58, 4  ;;  %v4889_v50 = vld [vmem:[#allocation3 + $0xd0] sm:$0x8]  ;;  %v13031_v51 = vld [vmem:[#allocation3 + $0xd4] sm:$0xf]  ;;  %v13033_v34 = vpop.permute.xlu0 %6622 }
 0x2f0   : > { %v4805_v8 = vrot.slane %v4804_v21, 4  ;;  %v14058_v27 = vshrl.u32 %v13011_v54, 16  ;;  %4211 = vst.msk [vmem:[#allocation3 + $0x104] sm:$0xf] %vm3958_vm2, %v8310_v7  ;;  %v8308_v13 = vpack.c.bf16 %v3938_v22, %v3938_v22  ;;  %v3899_v44 = vadd.f32 %v12690_v42, %v3898_v52  ;;  %6286 = vrot.lane.b32.xlu1 %v8091_v63, %s8614_s12  ;;  %v13040_v42 = vpop.permute.xlu1 %6352 }
 0x2f1   : > { %v3941_v38 = vmax.f32 %v3907_v1, 0.0  ;;  %v6077_v57 = vsel %vm8752_vm9, %v6072_v2, %v6076_v23  ;;  %v4811_v21 = vrot.slane %v14057_v29, 4  ;;  %v4812_v7 = vrot.slane %v14056_v36, 5  ;;  %v13047_v23 = vld [vmem:[#allocation3 + $0xd8] sm:$0xf] }
 0x2f2   : > { %v8202_v25 = vcombine.low %v6069_v17, %v6077_v57  ;;  %4209 = vst.msk [vmem:[#allocation3 + $0xf4] sm:$0xf] %vm3958_vm2, %v8308_v13  ;;  %v3939_v63 = vmax.f32 %v3899_v44, 0.0  ;;  %v4810_v22 = vsel %vm8752_vm9, %v4805_v8, %v4809_v43  ;;  %v8092_v1 = vcombine.low %v13003_v49, %v13011_v54  ;;  %v14480_v43 = vld [vmem:[#allocation23_spill] sm:$0xff] }
 0x2f3   : > { %v8311_v2 = vpack.c.bf16 %v3941_v38, %v3941_v38  ;;  %v7005_v52 = vsel %vm3586_vm5, %v6973_v11, %v12511_v48  ;;  %v4438_v17 = vshrl.u32 %v4237_v31, 16  ;;  %v5166_v57 = vshrl.u32 %v4889_v50, 16  ;;  %v13064_v31 = vpop.permute.xlu0 %6706 }
 0x2f4   : > { %6908 = vrot.lane.b32.xlu0 %v8202_v25, %s8623_s17  ;;  %v5171_v36 = vshrl.u32 %v13031_v51, 16  ;;  %v8309_v13 = vpack.c.bf16 %v3939_v63, %v3939_v63  ;;  %v4802_v8 = vsel %vm8752_vm9, %v4800_v60, %v13001_v0  ;;  %v4817_v38 = vrot.slane %v14058_v27, 4  ;;  %6288 = vrot.lane.b32.xlu1 %v8092_v1, %s8614_s12  ;;  %14482 = vst [vmem:[#allocation27_spill] sm:$0xff] %v13064_v31  ;;  %v4626_v63 = vld [vmem:[#allocation3 + $0xdc] sm:$0x1]  ;;  %v13068_v29 = vpop.permute.xlu1 %6436  ;;  %v14484_v60 = vld [vmem:[#allocation25_spill] sm:$0xff] }
 0x2f5   : > { %4212 = vst.msk [vmem:[#allocation3 + $0x108] sm:$0xf] %vm3958_vm2, %v8311_v2  ;;  %v14481_v48 = vshrl.u32 %v14480_v43, 16  ;;  %v8107_v44 = vcombine.low %v4802_v8, %v4810_v22  ;;  %v5174_v25 = vshll.u32 %v13031_v51, 16  ;;  %v5180_v2 = vshrl.u32 %v13047_v23, 16  ;;  %14483 = vst [vmem:[#allocation32_spill] sm:$0xff] %v13068_v29 }
 0x2f6   : > { %v5173_v50 = vrot.slane %v5171_v36, 7  ;;  %4210 = vst.msk [vmem:[#allocation3 + $0xf8] sm:$0xf] %vm3958_vm2, %v8309_v13  ;;  %v14485_v0 = vshrl.u32 %v14484_v60, 16  ;;  %v8043_v27 = vrot.slane %v5166_v57, 11  ;;  %v4813_v58 = vor.u32 %v4812_v7, %v4811_v21 }
 0x2f7   : > { %v13062_v11 = vrot.slane %v14481_v48, 7  ;;  %v14486_v48 = vshll.u32 %v13011_v54, 16  ;;  %v13076_v22 = vrot.slane %v4438_v17, 11  ;;  %v5182_v26 = vrot.slane %v5180_v2, 7  ;;  %v4010_v21 = vld [vmem:[#allocation3 + $0xe0] sm:$0x8] }
 0x2f8   : > { %v4454_v1 = vrot.slane %v14485_v0, 7  ;;  %6366 = vrot.lane.b32.xlu0 %v8107_v44, %s8615_s13  ;;  %v5176_v8 = vor.u32 %v5174_v25, %v5173_v50  ;;  %v5183_v40 = vshll.u32 %v13047_v23, 16  ;;  %v14487_v12 = vshll.u32 %v14480_v43, 16  ;;  %v13084_v7 = vld [vmem:[#allocation3 + $0xe4] sm:$0xf]  ;;  %v13091_v31 = vpop.permute.xlu1 %6552 }
 0x2f9   : > { %v4815_v49 = vrot.slane %v14486_v48, 5  ;;  %v4814_v41 = vrot.slane %v4813_v58, 4  ;;  %v4821_v57 = vshll.u32 %v4626_v63, 16  ;;  %v13086_v48 = vpop.permute.xlu0 %6822  ;;  %v5178_v44 = vrot.slane %v5173_v50, 4  ;;  %14490 = vst [vmem:[#allocation19_spill] sm:$0xff] %v13091_v31 }
 0x2fa   : > { %v13082_v13 = vor.u32 %v14487_v12, %v13062_v11  ;;  %14488 = vst [vmem:[#allocation31_spill] sm:$0xff] %v13086_v48  ;;  %v5185_v54 = vor.u32 %v5183_v40, %v5182_v26  ;;  %v7037_v29 = vsel %vm3652_vm10, %v7005_v52, %v14489_v59  ;;  %v14491_v12 = vshll.u32 %v14484_v60, 16 }
 0x2fb   : > { %v4818_v0 = vor.u32 %v4817_v38, %v4815_v49  ;;  %v5177_v58 = vsel %vm8952_vm11, %v8043_v27, %v5176_v8  ;;  %v4823_v63 = vrot.slane %v4821_v57, 5  ;;  %v8139_v26 = vcombine.low %v13031_v51, %v13047_v23 }
 0x2fc   : > { %v13095_v43 = vor.u32 %v14491_v12, %v4454_v1  ;;  %v5186_v50 = vsel %vm8952_vm11, %v5178_v44, %v5185_v54  ;;  %v4011_v59 = vsel %vm10731_vm3, 0, %v4010_v21  ;;  %v5193_v52 = vshrl.u32 %v13084_v7, 16  ;;  %v13114_v54 = vld [vmem:[#allocation3 + $0xe4] sm:$0xf]  ;;  %v5265_v44 = vld [vmem:[#allocation3 + $0xdc] sm:$0x1]  ;;  %v13120_v12 = vpop.permute.xlu1 %6282 }
 0x2fd   : > { %v4819_v38 = vrot.slane %v4818_v0, 4  ;;  %v8123_v60 = vcombine.low %v5177_v58, %v5186_v50  ;;  %v4816_v1 = vsel %vm8752_vm9, %v4814_v41, %v4815_v49  ;;  %v7070_v8 = vsel %vm7062_vm12, %v7037_v29, %v12676_v6  ;;  %4012 = vst [vmem:[#allocation3 + $0xe0] sm:$0x8] %v4011_v59  ;;  %v13116_v0 = vpop.permute.xlu0 %6434  ;;  %14492 = vst [vmem:[#allocation37_spill] sm:$0xff] %v13120_v12  ;;  %v13125_v58 = vld [vmem:[#allocation3 + $0xe8] sm:$0xf] }
 0x2fe   : > { %v5195_v23 = vrot.slane %v5193_v52, 7  ;;  %v5196_v57 = vshll.u32 %v13084_v7, 16  ;;  %v5202_v21 = vshrl.u32 %v13099_v47, 16  ;;  %v7103_v41 = vsel %vm7095_vm1, %v7070_v8, %v12938_v45 }
 0x2ff   : > { %v4824_v27 = vsel %vm8752_vm9, %v4819_v38, %v4823_v63  ;;  %6446 = vrot.lane.b32.xlu0 %v8123_v60, %s8618_s16  ;;  %v5437_v6 = vrot.slane %v5171_v36, 4  ;;  %v5438_v49 = vrot.slane %v5174_v25, 5  ;;  %v5441_v29 = vrot.slane %v5183_v40, 5 }
 0x300   : > { %v8108_v51 = vcombine.low %v4816_v1, %v4824_v27  ;;  %v5198_v38 = vor.u32 %v5196_v57, %v5195_v23  ;;  %v5204_v63 = vrot.slane %v5202_v21, 7  ;;  %v5205_v50 = vshll.u32 %v13099_v47, 16  ;;  %v13134_v8 = vpop.permute.xlu1 %6704 }
 0x301   : > { %v5443_v59 = vrot.slane %v5180_v2, 4  ;;  %v5200_v1 = vrot.slane %v5195_v23, 4  ;;  %v5439_v27 = vor.u32 %v5438_v49, %v5437_v6  ;;  %v5447_v17 = vshll.u32 %v5265_v44, 16  ;;  %v13130_v12 = vpop.permute.xlu0 %6898  ;;  %v4060_v44 = vld [vmem:[#allocation3 + $0xec] sm:$0x1] }
 0x302   : > { %6368 = vrot.lane.b32.xlu1 %v8108_v51, %s8615_s13  ;;  %v14069_v60 = vshrl.u32 %v13114_v54, 16  ;;  %14493 = vst [vmem:[#allocation21_spill] sm:$0xff] %v13130_v12  ;;  %v5207_v45 = vor.u32 %v5205_v50, %v5204_v63  ;;  %v14070_v25 = vshrl.u32 %v13125_v58, 16  ;;  %v14494_v23 = vshll.u32 %v13114_v54, 16 }
 0x303   : > { %v5444_v36 = vor.u32 %v5443_v59, %v5441_v29  ;;  %6558 = vrot.lane.b32.xlu0 %v8139_v26, %s8620_s18  ;;  %v5440_v51 = vrot.slane %v5439_v27, 4  ;;  %v5449_v31 = vrot.slane %v5447_v17, 5  ;;  %v7136_v26 = vsel %vm7128_vm6, %v7103_v41, %v12726_v4  ;;  %v4234_v41 = vld [vmem:[#allocation3 + $0x70] sm:$0x8] }
 0x304   : > { %v5814_v2 = vrot.slane %v14069_v60, 7  ;;  %v4892_v6 = vld [vmem:[#allocation3 + $0xe0] sm:$0x8]  ;;  %v5208_v49 = vsel %vm8952_vm11, %v5200_v1, %v5207_v45  ;;  %v5823_v40 = vrot.slane %v14070_v25, 7  ;;  %v4061_v4 = vsel %vm10783_vm0, 0, %v4060_v44 }
 0x305   : > { %v5445_v63 = vrot.slane %v5444_v36, 4  ;;  %v5530_v59 = vld [vmem:[#allocation3 + $0xe0] sm:$0x8]  ;;  %v5188_v27 = vshrl.u32 %v4892_v6, 16  ;;  %v5442_v17 = vsel %vm8752_vm9, %v5440_v51, %v5441_v29  ;;  %v13150_v12 = vpop.permute.xlu0 %6358  ;;  %v14496_v36 = vshll.u32 %v13125_v58, 16  ;;  %v13158_v6 = vpop.permute.xlu1 %6628 }
 0x306   : > { %v5807_v60 = vshrl.u32 %v5530_v59, 16  ;;  %v5817_v48 = vor.u32 %v14494_v23, %v5814_v2  ;;  %14495 = vst [vmem:[#allocation20_spill] sm:$0xff] %v13150_v12  ;;  %v5819_v45 = vrot.slane %v5814_v2, 4  ;;  %4062 = vst [vmem:[#allocation3 + $0xec] sm:$0x1] %v4061_v4  ;;  %v5451_v23 = vrot.slane %v5193_v52, 4 }
 0x307   : > { %v5450_v1 = vsel %vm8752_vm9, %v5445_v63, %v5449_v31  ;;  %v5826_v25 = vor.u32 %v14496_v36, %v5823_v40  ;;  %v8044_v29 = vrot.slane %v5188_v27, 11  ;;  %v5452_v3 = vrot.slane %v5196_v57, 5  ;;  %v13174_v57 = vld [vmem:[#allocation3 + $0xf4] sm:$0xf] }
 0x308   : > { %v8155_v51 = vcombine.low %v5442_v17, %v5450_v1  ;;  %v8059_v59 = vrot.slane %v5807_v60, 11  ;;  %v13162_v31 = vrot.slane %v5205_v50, 5  ;;  %v5457_v2 = vrot.slane %v5202_v21, 4  ;;  %v14499_v1 = vld [vmem:[#allocation11_spill] sm:$0xff] }
 0x309   : > { %v5827_v12 = vsel %vm8952_vm11, %v5819_v45, %v5826_v25  ;;  %v14497_v40 = vrot.slane %v12903_v20, 4  ;;  %v5199_v63 = vsel %vm8952_vm11, %v8044_v29, %v5198_v38  ;;  %v7169_v52 = vsel %vm7161_vm7, %v7136_v26, %v13013_v39  ;;  %v4013_v25 = vld [vmem:[#allocation3 + $0xf0] sm:$0x8]  ;;  %v13176_v50 = vpop.permute.xlu0 %6550  ;;  %v13186_v39 = vpop.permute.xlu1 %6820 }
 0x30a   : > { %6638 = vrot.lane.b32.xlu0 %v8155_v51, %s8624_s26  ;;  %v4416_v60 = vshrl.u32 %v4234_v41, 16  ;;  %v14498_v20 = vrot.slane %v13062_v11, 4  ;;  %v8124_v21 = vcombine.low %v5199_v63, %v5208_v49  ;;  %v5818_v38 = vsel %vm8952_vm11, %v8059_v59, %v5817_v48  ;;  %8456 = vmatmul.mubr.msk.bf16.gmra.mxu1 %vm7443_vm4, %v7169_v52  ;;  %v13197_v49 = vld [vmem:[#allocation3 + $0xf8] sm:$0xf] }
 0x30b   : > { %v4392_v44 = vsel %vm8952_vm11, %v14497_v40, %v12994_v9  ;;  %v5453_v27 = vor.u32 %v5452_v3, %v5451_v23  ;;  %v4383_v26 = vsel %vm8952_vm11, %v12970_v30, %v12975_v32  ;;  %v8171_v17 = vcombine.low %v5818_v38, %v5827_v12 }
 0x30c   : > { %v4458_v9 = vsel %vm8952_vm11, %v14498_v20, %v13095_v43  ;;  %v5458_v11 = vor.u32 %v5457_v2, %v13162_v31  ;;  %v14500_v45 = vshrl.u32 %v14499_v1, 16  ;;  %v13199_v48 = vcombine.low %v4383_v26, %v4392_v44  ;;  %6448 = vrot.lane.b32.xlu1 %v8124_v21, %s8618_s16 }
 0x30d   : > { %v4449_v3 = vsel %vm8952_vm11, %v13076_v22, %v13082_v13  ;;  %v4014_v30 = vsel %vm10731_vm3, 0, %v4013_v25  ;;  %v5834_v32 = vshrl.u32 %v13174_v57, 16  ;;  %v7007_v12 = vsel %vm3586_vm5, %v12892_v62, %v12905_v15  ;;  %v13219_v22 = vpop.permute.xlu0 %6896  ;;  %v5266_v13 = vld [vmem:[#allocation3 + $0xec] sm:$0x1]  ;;  %v13236_v25 = vpop.permute.xlu1 %6280 }
 0x30e   : > { %v13195_v43 = vrot.slane %v14500_v45, 7  ;;  %v13212_v36 = vcombine.low %v4449_v3, %v4458_v9  ;;  %v8140_v4 = vcombine.low %v13084_v7, %v13099_v47  ;;  %6718 = vrot.lane.b32.xlu0 %v8171_v17, %s8622_s15  ;;  %v13217_v41 = vrot.slane %v4416_v60, 11  ;;  %4015 = vst [vmem:[#allocation3 + $0xf0] sm:$0x8] %v4014_v30  ;;  %v5906_v38 = vld [vmem:[#allocation3 + $0xec] sm:$0x1] }
 0x30f   : > { %v5454_v29 = vrot.slane %v5453_v27, 4  ;;  %v14501_v51 = vshrl.u32 %v14401_v61, 16  ;;  %v5836_v23 = vrot.slane %v5834_v32, 7  ;;  %v5843_v62 = vshrl.u32 %v13197_v49, 16 }
 0x310   : > { %v5459_v15 = vrot.slane %v5458_v11, 4  ;;  %v5461_v2 = vshll.u32 %v5266_v13, 16  ;;  %v14502_v47 = vshll.u32 %v14499_v1, 16  ;;  %v8187_v40 = vcombine.low %v13114_v54, %v13125_v58  ;;  %6560 = vrot.lane.b32.xlu1 %v8140_v4, %s8620_s18 }
 0x311   : > { %v4432_v59 = vrot.slane %v14501_v51, 7  ;;  %v4428_v44 = vrot.slane %v13195_v43, 4  ;;  %v5845_v63 = vrot.slane %v5843_v62, 7  ;;  %v5846_v52 = vshll.u32 %v13197_v49, 16  ;;  %v13244_v17 = vpop.permute.xlu0 %6626 }
 0x312   : > { %v13227_v7 = vor.u32 %v14502_v47, %v13195_v43  ;;  %v7039_v60 = vsel %vm3652_vm10, %v7007_v12, %v12723_v28  ;;  %v5463_v20 = vrot.slane %v5461_v2, 5  ;;  %6830 = vrot.lane.b32.xlu0 %v8187_v40, %s8621_s14  ;;  %v5837_v9 = vshll.u32 %v13174_v57, 16  ;;  %v4063_v2 = vld [vmem:[#allocation3 + $0xfc] sm:$0x1] }
 0x313   : > { %v7072_v21 = vsel %vm7062_vm12, %v7039_v60, %v13033_v34  ;;  %v14503_v27 = vshrl.u32 %v13114_v54, 16  ;;  %v5456_v28 = vsel %vm8752_vm9, %v5454_v29, %v13162_v31  ;;  %v5841_v11 = vrot.slane %v5836_v23, 4 }
 0x314   : > { %v5848_v1 = vor.u32 %v5846_v52, %v5845_v63  ;;  %v7105_v45 = vsel %vm7095_vm1, %v7072_v21, %v12825_v55  ;;  %v5464_v3 = vsel %vm8752_vm9, %v5459_v15, %v5463_v20  ;;  %v14504_v34 = vshll.u32 %v13114_v54, 16  ;;  %v13263_v20 = vld [vmem:[#allocation3 + $0xe4] sm:$0xf] }
 0x315   : > { %v6078_v26 = vrot.slane %v14503_v27, 4  ;;  %v14505_v12 = vshll.u32 %v13125_v58, 16  ;;  %v14506_v13 = vshrl.u32 %v13125_v58, 16  ;;  %v8156_v47 = vcombine.low %v5456_v28, %v5464_v3  ;;  %v5533_v31 = vld [vmem:[#allocation3 + $0xf0] sm:$0x8]  ;;  %v13270_v28 = vpop.permute.xlu1 %6356 }
 0x316   : > { %v6079_v30 = vrot.slane %v14504_v34, 5  ;;  %v5839_v29 = vor.u32 %v5837_v9, %v5836_v23  ;;  %v5849_v40 = vsel %vm8952_vm11, %v5841_v11, %v5848_v1  ;;  %v6088_v55 = vshll.u32 %v5906_v38, 16  ;;  %v13273_v1 = vld [vmem:[#allocation3 + $0xe8] sm:$0xf] }
 0x317   : > { %v6082_v4 = vrot.slane %v14505_v12, 5  ;;  %v6084_v51 = vrot.slane %v14506_v13, 4  ;;  %v5829_v63 = vshrl.u32 %v5533_v31, 16  ;;  %v7138_v54 = vsel %vm7128_vm6, %v7105_v45, %v12538_v33  ;;  %6640 = vrot.lane.b32.xlu1 %v8156_v47, %s8624_s26  ;;  %v13275_v45 = vpop.permute.xlu0 %6710  ;;  %v4627_v31 = vld [vmem:[#allocation3 + $0xec] sm:$0x1] }
 0x318   : > { %v6080_v60 = vor.u32 %v6079_v30, %v6078_v26  ;;  %v6090_v58 = vrot.slane %v6088_v55, 5  ;;  %v7171_v21 = vsel %vm7161_vm7, %v7138_v54, %v12936_v24  ;;  %v4064_v23 = vsel %vm10783_vm0, 0, %v4063_v2 }
 0x319   : > { %v6085_v15 = vor.u32 %v6084_v51, %v6082_v4  ;;  %v6092_v27 = vrot.slane %v5834_v32, 4  ;;  %v8060_v38 = vrot.slane %v5829_v63, 11  ;;  %8459 = vmatprep.mubr.msk.bf16.mxu1 %vm7443_vm4, %v7171_v21  ;;  %4065 = vst [vmem:[#allocation3 + $0xfc] sm:$0x1] %v4064_v23  ;;  %v6093_v33 = vrot.slane %v5837_v9, 5  ;;  %v13313_v54 = vpop.permute.xlu1 %6440 }
 0x31a   : > { %v6081_v26 = vrot.slane %v6080_v60, 4  ;;  %v13277_v3 = vrot.slane %v5846_v52, 5  ;;  %v6098_v24 = vrot.slane %v5843_v62, 4  ;;  %v14078_v34 = vshrl.u32 %v13263_v20, 16 }
 0x31b   : > { %v6086_v11 = vrot.slane %v6085_v15, 4  ;;  %v14077_v32 = vshll.u32 %v13263_v20, 16  ;;  %v14507_v30 = vshll.u32 %v14401_v61, 16  ;;  %v5840_v13 = vsel %vm8952_vm11, %v8060_v38, %v5839_v29 }
 0x31c   : > { %v6083_v9 = vsel %vm8752_vm9, %v6081_v26, %v6082_v4  ;;  %v8172_v2 = vcombine.low %v5840_v13, %v5849_v40  ;;  %v6094_v47 = vor.u32 %v6093_v33, %v6092_v27  ;;  %v14076_v62 = vshrl.u32 %v13273_v1, 16  ;;  %v13296_v4 = vld [vmem:[#allocation3 + $0xf4] sm:$0xf]  ;;  %v4895_v26 = vld [vmem:[#allocation3 + $0xf0] sm:$0x8] }
 0x31d   : > { %v4435_v12 = vor.u32 %v14507_v30, %v4432_v59  ;;  %v6091_v51 = vsel %vm8752_vm9, %v6086_v11, %v6090_v58  ;;  %v6099_v55 = vor.u32 %v6098_v24, %v13277_v3  ;;  %v14074_v61 = vshll.u32 %v13273_v1, 16  ;;  %v13333_v11 = vld [vmem:[#allocation3 + $0xf4] sm:$0xf] }
 0x31e   : > { %v8203_v52 = vcombine.low %v6083_v9, %v6091_v51  ;;  %v4825_v59 = vrot.slane %v14078_v34, 4  ;;  %v4826_v29 = vrot.slane %v14077_v32, 5  ;;  %v6935_v40 = vsel %vm3454_vm13, %v13199_v48, %v12763_v56  ;;  %6720 = vrot.lane.b32.xlu1 %v8172_v2, %s8622_s15  ;;  %v13325_v48 = vld [vmem:[#allocation3 + $0xf8] sm:$0xf] }
 0x31f   : > { %v13304_v63 = vsel %vm3454_vm13, %v13212_v36, %v12915_v18  ;;  %v6979_v60 = vsel %vm3520_vm15, %v12888_v37, %v12954_v10  ;;  %v4831_v15 = vrot.slane %v14076_v62, 4  ;;  %v4427_v56 = vsel %vm8952_vm11, %v13217_v41, %v13227_v7  ;;  %v13327_v36 = vpop.permute.xlu0 %6438 }
 0x320   : > { %6910 = vrot.lane.b32.xlu0 %v8203_v52, %s8623_s17  ;;  %v4436_v18 = vsel %vm8952_vm11, %v4428_v44, %v4435_v12  ;;  %v4829_v37 = vrot.slane %v14074_v61, 5  ;;  %v4835_v10 = vshll.u32 %v4627_v31, 16  ;;  %v8188_v58 = vcombine.low %v13174_v57, %v13197_v49  ;;  %v5907_v21 = vld [vmem:[#allocation3 + $0xfc] sm:$0x1]  ;;  %v13346_v52 = vld [vmem:[#allocation3 + $0xf8] sm:$0xf]  ;;  %v13349_v31 = vpop.permute.xlu1 %6708 }
 0x321   : > { %v6095_v23 = vrot.slane %v6094_v47, 4  ;;  %v14075_v41 = vshrl.u32 %v13296_v4, 16  ;;  %v14072_v43 = vshll.u32 %v13296_v4, 16  ;;  %v6100_v7 = vrot.slane %v6099_v55, 4 }
 0x322   : > { %v6102_v27 = vshll.u32 %v5907_v21, 16  ;;  %v4827_v44 = vor.u32 %v4826_v29, %v4825_v59  ;;  %v4832_v38 = vor.u32 %v4831_v15, %v4829_v37  ;;  %v8070_v33 = vcombine.low %v4427_v56, %v4436_v18  ;;  %6832 = vrot.lane.b32.xlu1 %v8188_v58, %s8621_s14 }
 0x323   : > { %v6977_v24 = vsel %vm3520_vm15, %v6935_v40, %v13040_v42  ;;  %v8093_v57 = vcombine.low %v13263_v20, %v13273_v1  ;;  %v14073_v49 = vshrl.u32 %v13325_v48, 16  ;;  %v4837_v13 = vrot.slane %v4835_v10, 5  ;;  %v13360_v15 = vpop.permute.xlu0 %6902 }
 0x324   : > { %v6104_v30 = vrot.slane %v6102_v27, 5  ;;  %v4833_v12 = vrot.slane %v4832_v38, 4  ;;  %v14071_v9 = vshll.u32 %v13325_v48, 16  ;;  %v4839_v51 = vrot.slane %v14075_v41, 4  ;;  %v13380_v27 = vld [vmem:[#allocation3 + $0xa0] sm:$0x8] }
 0x325   : > { %v4840_v2 = vrot.slane %v14072_v43, 5  ;;  %v5210_v42 = vshrl.u32 %v4895_v26, 16  ;;  %v5215_v47 = vshrl.u32 %v13333_v11, 16  ;;  %v13353_v55 = vsel %vm3454_vm13, %v8070_v33, %v13019_v14  ;;  %v13404_v43 = vld [vmem:[#allocation3 + $0x108] sm:$0xf] }
 0x326   : > { %v6097_v59 = vsel %vm8752_vm9, %v6095_v23, %v13277_v3  ;;  %v6105_v29 = vsel %vm8752_vm9, %v6100_v7, %v6104_v30  ;;  %v4828_v40 = vrot.slane %v4827_v44, 4  ;;  %v7009_v56 = vsel %vm3586_vm5, %v6977_v24, %v12833_v35  ;;  %6290 = vrot.lane.b32.xlu1 %v8093_v57, %s8614_s12  ;;  %v4628_v35 = vld [vmem:[#allocation3 + $0xfc] sm:$0x1]  ;;  %v14511_v41 = vld [vmem:[#allocation29_spill] sm:$0xff] }
 0x327   : > { %v8204_v18 = vcombine.low %v6097_v59, %v6105_v29  ;;  %v4845_v14 = vrot.slane %v14073_v49, 4  ;;  %v8094_v10 = vcombine.low %v13296_v4, %v13325_v48  ;;  %v4838_v3 = vsel %vm8752_vm9, %v4833_v12, %v4837_v13  ;;  %v4016_v59 = vld [vmem:[#allocation3 + $0x100] sm:$0x8]  ;;  %v13388_v29 = vld [vmem:[#allocation3 + $0x104] sm:$0xf] }
 0x328   : > { %v5217_v58 = vrot.slane %v5215_v47, 7  ;;  %v5218_v21 = vshll.u32 %v13333_v11, 16  ;;  %v5224_v23 = vshrl.u32 %v13346_v52, 16  ;;  %v13378_v7 = vsel %vm3586_vm5, %v6979_v60, %v13116_v0 }
 0x329   : > { %6912 = vrot.lane.b32.xlu0 %v8204_v18, %s8623_s17  ;;  %v8045_v44 = vrot.slane %v5210_v42, 11  ;;  %v4841_v38 = vor.u32 %v4840_v2, %v4839_v51  ;;  %v4843_v26 = vrot.slane %v14071_v9, 5  ;;  %v4830_v33 = vsel %vm8752_vm9, %v4828_v40, %v4829_v37  ;;  %v13390_v51 = vpop.permute.xlu1 %6632  ;;  %v14508_v37 = vld [vmem:[#allocation12_spill] sm:$0xff]  ;;  %v13395_v9 = vpop.permute.xlu0 %6900 }
 0x32a   : > { %v5220_v24 = vor.u32 %v5218_v21, %v5217_v58  ;;  %v5226_v57 = vrot.slane %v5224_v23, 7  ;;  %v5227_v30 = vshll.u32 %v13346_v52, 16  ;;  %v8109_v12 = vcombine.low %v4830_v33, %v4838_v3  ;;  %6292 = vrot.lane.b32.xlu1 %v8094_v10, %s8614_s12  ;;  %v14509_v10 = vld [vmem:[#allocation5_spill] sm:$0xff] }
 0x32b   : > { %v4842_v13 = vrot.slane %v4841_v38, 4  ;;  %v4846_v0 = vor.u32 %v4845_v14, %v4843_v26  ;;  %v4849_v60 = vshll.u32 %v4628_v35, 16  ;;  %v5222_v42 = vrot.slane %v5217_v58, 4 }
 0x32c   : > { %v5229_v18 = vor.u32 %v5227_v30, %v5226_v57  ;;  %v7041_v40 = vsel %vm3652_vm10, %v7009_v56, %v14508_v37  ;;  %v14510_v3 = vshrl.u32 %v14509_v10, 16  ;;  %v5221_v35 = vsel %vm8952_vm11, %v8045_v44, %v5220_v24 }
 0x32d   : > { %6370 = vrot.lane.b32.xlu0 %v8109_v12, %s8615_s13  ;;  %v4847_v38 = vrot.slane %v4846_v0, 4  ;;  %v4851_v33 = vrot.slane %v4849_v60, 5  ;;  %v8141_v56 = vcombine.low %v13333_v11, %v13346_v52  ;;  %v4017_v57 = vsel %vm10731_vm3, 0, %v4016_v59  ;;  %v13419_v0 = vld [vmem:[#allocation3 + $0x104] sm:$0xf] }
 0x32e   : > { %v13400_v14 = vrot.slane %v14510_v3, 7  ;;  %v5230_v58 = vsel %vm8952_vm11, %v5222_v42, %v5229_v18  ;;  %v5237_v12 = vshrl.u32 %v13388_v29, 16  ;;  %v4844_v3 = vsel %vm8752_vm9, %v4842_v13, %v4843_v26  ;;  %4018 = vst [vmem:[#allocation3 + $0x100] sm:$0x8] %v4017_v57  ;;  %v5267_v42 = vld [vmem:[#allocation3 + $0xfc] sm:$0x1]  ;;  %v13423_v18 = vpop.permute.xlu0 %6630 }
 0x32f   : > { %v8125_v37 = vcombine.low %v5221_v35, %v5230_v58  ;;  %v4852_v44 = vsel %vm8752_vm9, %v4847_v38, %v4851_v33  ;;  %v7074_v24 = vsel %vm7062_vm12, %v7041_v40, %v12961_v5  ;;  %v5240_v46 = vshll.u32 %v13388_v29, 16  ;;  %v13430_v35 = vld [vmem:[#allocation3 + $0x108] sm:$0xf]  ;;  %v13432_v38 = vpop.permute.xlu1 %6824 }
 0x330   : > { %v8110_v60 = vcombine.low %v4844_v3, %v4852_v44  ;;  %v5239_v52 = vrot.slane %v5237_v12, 7  ;;  %v5246_v59 = vshrl.u32 %v13404_v43, 16  ;;  %v7107_v26 = vsel %vm7095_vm1, %v7074_v24, %v13134_v8 }
 0x331   : > { %6450 = vrot.lane.b32.xlu0 %v8125_v37, %s8618_s16  ;;  %v5465_v5 = vrot.slane %v5215_v47, 4  ;;  %v5466_v13 = vrot.slane %v5218_v21, 5  ;;  %v5469_v40 = vrot.slane %v5227_v30, 5  ;;  %v5249_v57 = vshll.u32 %v13404_v43, 16 }
 0x332   : > { %6372 = vrot.lane.b32.xlu1 %v8110_v60, %s8615_s13  ;;  %v5242_v33 = vor.u32 %v5240_v46, %v5239_v52  ;;  %v5248_v58 = vrot.slane %v5246_v59, 7  ;;  %v5471_v3 = vrot.slane %v5224_v23, 4  ;;  %v5244_v37 = vrot.slane %v5239_v52, 4  ;;  %v4066_v52 = vld [vmem:[#allocation3 + $0x10c] sm:$0x1] }
 0x333   : > { %v5467_v44 = vor.u32 %v5466_v13, %v5465_v5  ;;  %v5475_v49 = vshll.u32 %v5267_v42, 16  ;;  %v14081_v8 = vshrl.u32 %v13419_v0, 16  ;;  %v14080_v21 = vshll.u32 %v13419_v0, 16  ;;  %v13455_v2 = vpop.permute.xlu1 %6284 }
 0x334   : > { %v5251_v11 = vor.u32 %v5249_v57, %v5248_v58  ;;  %v5472_v47 = vor.u32 %v5471_v3, %v5469_v40  ;;  %v14079_v30 = vshrl.u32 %v13430_v35, 16  ;;  %v5868_v23 = vshll.u32 %v13430_v35, 16  ;;  %14512 = vst [vmem:[#allocation36_spill] sm:$0xff] %v13455_v2 }
 0x335   : > { %6562 = vrot.lane.b32.xlu0 %v8141_v56, %s8620_s18  ;;  %v5468_v24 = vrot.slane %v5467_v44, 4  ;;  %v5477_v60 = vrot.slane %v5475_v49, 5  ;;  %v5858_v61 = vrot.slane %v14081_v8, 7  ;;  %v4898_v5 = vld [vmem:[#allocation3 + $0x100] sm:$0x8]  ;;  %v7140_v56 = vsel %vm7128_vm6, %v7107_v26, %v14511_v41  ;;  %v13449_v44 = vpop.permute.xlu0 %6362 }
 0x336   : > { %v5252_v42 = vsel %vm8952_vm11, %v5244_v37, %v5251_v11  ;;  %v5473_v13 = vrot.slane %v5472_v47, 4  ;;  %v5536_v58 = vld [vmem:[#allocation3 + $0x100] sm:$0x8]  ;;  %v5867_v3 = vrot.slane %v14079_v30, 7  ;;  %v5232_v49 = vshrl.u32 %v4898_v5, 16 }
 0x337   : > { %v5470_v62 = vsel %vm8752_vm9, %v5468_v24, %v5469_v40  ;;  %v5851_v32 = vshrl.u32 %v5536_v58, 16  ;;  %v5861_v34 = vor.u32 %v14080_v21, %v5858_v61  ;;  %v5863_v11 = vrot.slane %v5858_v61, 4  ;;  %v4240_v26 = vld [vmem:[#allocation3 + $0x90] sm:$0x8] }
 0x338   : > { %v5478_v37 = vsel %vm8752_vm9, %v5473_v13, %v5477_v60  ;;  %v5870_v47 = vor.u32 %v5868_v23, %v5867_v3  ;;  %v4067_v41 = vsel %vm10783_vm0, 0, %v4066_v52  ;;  %v8046_v5 = vrot.slane %v5232_v49, 11  ;;  %v14513_v60 = vld [vmem:[#allocation34_spill] sm:$0xff] }
 0x339   : > { %v8157_v30 = vcombine.low %v5470_v62, %v5478_v37  ;;  %v8061_v40 = vrot.slane %v5851_v32, 11  ;;  %4068 = vst [vmem:[#allocation3 + $0x10c] sm:$0x1] %v4067_v41  ;;  %v5479_v24 = vrot.slane %v5237_v12, 4  ;;  %v5480_v21 = vrot.slane %v5240_v46, 5  ;;  %v13479_v49 = vpop.permute.xlu0 %6904 }
 0x33a   : > { %v5871_v58 = vsel %vm8952_vm11, %v5863_v11, %v5870_v47  ;;  %v5483_v8 = vrot.slane %v5249_v57, 5  ;;  %v5485_v2 = vrot.slane %v5246_v59, 4  ;;  %v14514_v61 = vshrl.u32 %v14513_v60, 16  ;;  %v5539_v12 = vld [vmem:[#allocation3 + $0x110] sm:$0x8]  ;;  %v14518_v47 = vld [vmem:[#allocation41_spill] sm:$0xff] }
 0x33b   : > { %v5243_v16 = vsel %vm8952_vm11, %v8046_v5, %v5242_v33  ;;  %6642 = vrot.lane.b32.xlu0 %v8157_v30, %s8624_s26  ;;  %v7173_v32 = vsel %vm7161_vm7, %v7140_v56, %v13219_v22  ;;  %v4460_v62 = vshrl.u32 %v4240_v26, 16  ;;  %v13474_v52 = vld [vmem:[#allocation3 + $0x114] sm:$0xf]  ;;  %v5862_v46 = vsel %vm8952_vm11, %v8061_v40, %v5861_v34  ;;  %v14515_v33 = vld [vmem:[#allocation20_spill] sm:$0xff]  ;;  %v14516_v56 = vld [vmem:[#allocation13_spill] sm:$0xff]  ;;  %v13492_v34 = vpop.permute.xlu1 %6360 }
 0x33c   : > { %v13467_v13 = vrot.slane %v14514_v61, 7  ;;  %v8126_v3 = vcombine.low %v5243_v16, %v5252_v42  ;;  %v5481_v59 = vor.u32 %v5480_v21, %v5479_v24  ;;  %v5486_v57 = vor.u32 %v5485_v2, %v5483_v8  ;;  %8460 = vmatmul.mubr.msk.bf16.gmra.mxu1 %vm7443_vm4, %v7173_v32  ;;  %v13490_v26 = vld [vmem:[#allocation3 + $0x118] sm:$0xf] }
 0x33d   : > { %v13484_v30 = vsel %vm3520_vm15, %v13304_v63, %v14515_v33  ;;  %v8173_v22 = vcombine.low %v5862_v46, %v5871_v58  ;;  %v14517_v37 = vshrl.u32 %v14516_v56, 16  ;;  %v14519_v42 = vshrl.u32 %v14518_v47, 16 }
 0x33e   : > { %6452 = vrot.lane.b32.xlu1 %v8126_v3, %s8618_s16  ;;  %v8142_v2 = vcombine.low %v13388_v29, %v13404_v43  ;;  %v5482_v21 = vrot.slane %v5481_v59, 4  ;;  %v5873_v5 = vshrl.u32 %v5539_v12, 16  ;;  %v5878_v63 = vshrl.u32 %v13474_v52, 16  ;;  %s13786_s16 = scalar_lea.vmem %s13904_s7, %s8246_s28 }
 0x33f   : > { %v4467_v11 = vrot.slane %v14517_v37, 7  ;;  %v4476_v41 = vrot.slane %v14519_v42, 7  ;;  %6722 = vrot.lane.b32.xlu0 %v8173_v22, %s8622_s15  ;;  %v13499_v40 = vrot.slane %v4460_v62, 11  ;;  %v14520_v24 = vshll.u32 %v14516_v56, 16  ;;  %v13512_v56 = vpop.permute.xlu0 %6442 }
 0x340   : > { %v8189_v61 = vcombine.low %v13419_v0, %v13430_v35  ;;  %v5881_v16 = vshll.u32 %v13474_v52, 16  ;;  %v5268_v32 = vld [vmem:[#allocation3 + $0x10c] sm:$0x1]  ;;  %v5487_v3 = vrot.slane %v5486_v57, 4  ;;  %v8062_v43 = vrot.slane %v5873_v5, 11 }
 0x341   : > { %v13503_v58 = vor.u32 %v14520_v24, %v4467_v11  ;;  %v5880_v29 = vrot.slane %v5878_v63, 7  ;;  %v5887_v12 = vshrl.u32 %v13490_v26, 16  ;;  %v5489_v46 = vshll.u32 %v5268_v32, 16 }
 0x342   : > { %v4472_v59 = vrot.slane %v4467_v11, 4  ;;  %v14521_v62 = vshll.u32 %v14518_v47, 16  ;;  %v5890_v22 = vshll.u32 %v13490_v26, 16  ;;  %6564 = vrot.lane.b32.xlu1 %v8142_v2, %s8620_s18  ;;  %v5484_v37 = vsel %vm8752_vm9, %v5482_v21, %v5483_v8  ;;  %v14522_v47 = vld [vmem:[#allocation30_spill] sm:$0xff] }
 0x343   : > { %v5883_v42 = vor.u32 %v5881_v16, %v5880_v29  ;;  %v5885_v57 = vrot.slane %v5880_v29, 4  ;;  %v5889_v5 = vrot.slane %v5887_v12, 7  ;;  %v5491_v24 = vrot.slane %v5489_v46, 5  ;;  %6834 = vrot.lane.b32.xlu0 %v8189_v61, %s8621_s14  ;;  %v14524_v46 = vld [vmem:[#allocation27_spill] sm:$0xff] }
 0x344   : > { %v4479_v33 = vor.u32 %v14521_v62, %v4476_v41  ;;  %v4471_v11 = vsel %vm8952_vm11, %v13499_v40, %v13503_v58  ;;  %v7043_v41 = vsel %vm3652_vm10, %v13378_v7, %v14522_v47  ;;  %v14523_v2 = vshrl.u32 %v13419_v0, 16  ;;  %v13527_v62 = vpop.permute.xlu1 %6712  ;;  %v5908_v58 = vld [vmem:[#allocation3 + $0x10c] sm:$0x1] }
 0x345   : > { %v5884_v8 = vsel %vm8952_vm11, %v8062_v43, %v5883_v42  ;;  %v5892_v21 = vor.u32 %v5890_v22, %v5889_v5  ;;  %v7076_v29 = vsel %vm7062_vm12, %v7043_v41, %v13244_v17  ;;  %v6981_v40 = vsel %vm3520_vm15, %v13353_v55, %v13270_v28 }
 0x346   : > { %v6106_v32 = vrot.slane %v14523_v2, 4  ;;  %v5492_v7 = vsel %vm8752_vm9, %v5487_v3, %v5491_v24  ;;  %v4480_v61 = vsel %vm8952_vm11, %v4472_v59, %v4479_v33  ;;  %v7109_v47 = vsel %vm7095_vm1, %v7076_v29, %v14524_v46  ;;  %v14527_v24 = vld [vmem:[#allocation32_spill] sm:$0xff]  ;;  %v5909_v29 = vld [vmem:[#allocation3 + $0x11c] sm:$0x1]  ;;  %v13552_v46 = vpop.permute.xlu0 %6554 }
 0x347   : > { %v14525_v43 = vshll.u32 %v13419_v0, 16  ;;  %v8158_v5 = vcombine.low %v5484_v37, %v5492_v7  ;;  %v5893_v17 = vsel %vm8952_vm11, %v5885_v57, %v5892_v21  ;;  %v6110_v28 = vrot.slane %v5868_v23, 5  ;;  %v14528_v37 = vld [vmem:[#allocation24_spill] sm:$0xff] }
 0x348   : > { %v14526_v55 = vshrl.u32 %v13430_v35, 16  ;;  %v8174_v3 = vcombine.low %v5884_v8, %v5893_v17  ;;  %v7013_v59 = vsel %vm3586_vm5, %v6981_v40, %v14527_v24  ;;  %v6116_v2 = vshll.u32 %v5908_v58, 16  ;;  %v13559_v40 = vpop.permute.xlu1 %6364 }
 0x349   : > { %v6107_v42 = vrot.slane %v14525_v43, 5  ;;  %6644 = vrot.lane.b32.xlu1 %v8158_v5, %s8624_s26  ;;  %v7142_v57 = vsel %vm7128_vm6, %v7109_v47, %v14528_v37  ;;  %v6120_v21 = vrot.slane %v5878_v63, 4  ;;  %v6121_v23 = vrot.slane %v5881_v16, 5  ;;  %v14529_v43 = vld [vmem:[#allocation21_spill] sm:$0xff]  ;;  %v14530_v47 = vld [vmem:[#allocation26_spill] sm:$0xff] }
 0x34a   : > { %v6112_v41 = vrot.slane %v14526_v55, 4  ;;  %v6118_v35 = vrot.slane %v6116_v2, 5  ;;  %v7175_v8 = vsel %vm7161_vm7, %v7142_v57, %v14529_v43  ;;  %v6124_v17 = vrot.slane %v5890_v22, 5 }
 0x34b   : > { %v6108_v33 = vor.u32 %v6107_v42, %v6106_v32  ;;  %8463 = vmatprep.mubr.msk.bf16.mxu1 %vm7443_vm4, %v7175_v8  ;;  %v6122_v58 = vor.u32 %v6121_v23, %v6120_v21  ;;  %v6126_v42 = vrot.slane %v5887_v12, 4  ;;  %v6130_v5 = vshll.u32 %v5909_v29, 16 }
 0x34c   : > { %v6113_v0 = vor.u32 %v6112_v41, %v6110_v28  ;;  %v8190_v63 = vcombine.low %v13474_v52, %v13490_v26  ;;  %v7015_v16 = vsel %vm3586_vm5, %v13484_v30, %v13327_v36  ;;  %v7045_v22 = vsel %vm3652_vm10, %v7013_v59, %v14530_v47  ;;  %v13571_v41 = vpop.f32.mrf.mxu1  ;;  %v13580_v30 = vpop.permute.xlu0 %6634 }
 0x34d   : > { %v6109_v7 = vrot.slane %v6108_v33, 4  ;;  %6724 = vrot.lane.b32.xlu1 %v8174_v3, %s8622_s15  ;;  %v6123_v24 = vrot.slane %v6122_v58, 4  ;;  %v6127_v33 = vor.u32 %v6126_v42, %v6124_v17  ;;  %v8072_v2 = vcombine.low %v4471_v11, %v4480_v61  ;;  %v13595_v61 = vpop.permute.xlu1 %6444  ;;  %v14537_v58 = vld [vmem:[#allocation19_spill] sm:$0xff] }
 0x34e   : > { %v6114_v32 = vrot.slane %v6113_v0, 4  ;;  %v7078_v52 = vsel %vm7062_vm12, %v7045_v22, %v13158_v6  ;;  %v7047_v36 = vsel %vm3652_vm10, %v7015_v16, %v13176_v50  ;;  %v13597_v37 = vpop.f32.mrf.mxu1  ;;  %v14532_v21 = vshrl.u32 %v13380_v27, 16 }
 0x34f   : > { %v6111_v55 = vsel %vm8752_vm9, %v6109_v7, %v6110_v28  ;;  %v6132_v28 = vrot.slane %v6130_v5, 5  ;;  %v6125_v26 = vsel %vm8752_vm9, %v6123_v24, %v6124_v17  ;;  %v6128_v3 = vrot.slane %v6127_v33, 4 }
 0x350   : > { %v6119_v12 = vsel %vm8752_vm9, %v6114_v32, %v6118_v35  ;;  %v7111_v59 = vsel %vm7095_vm1, %v7078_v52, %v13349_v31  ;;  %v7080_v0 = vsel %vm7062_vm12, %v7047_v36, %v13423_v18  ;;  %v6947_v11 = vsel %vm3454_vm13, %v8072_v2, %v13236_v25  ;;  %v13626_v5 = vpop.f32.mrf.mxu1  ;;  %v14541_v36 = vld [vmem:[#allocation37_spill] sm:$0xff] }
 0x351   : > { %v8205_v29 = vcombine.low %v6111_v55, %v6119_v12  ;;  %v7144_v6 = vsel %vm7128_vm6, %v7111_v59, %v13186_v39  ;;  %v7113_v50 = vsel %vm7095_vm1, %v7080_v0, %v13275_v45  ;;  %v14531_v31 = vshll.u32 %v14513_v60, 16  ;;  %6836 = vrot.lane.b32.xlu1 %v8190_v63, %s8621_s14  ;;  %v4246_v39 = vld [vmem:[#allocation3 + $0xb0] sm:$0x8]  ;;  %v6557_v55 = vpop.permute.xlu1 %6556  ;;  %v14538_v63 = vld [vmem:[#allocation35_spill] sm:$0xff] }
 0x352   : > { %v6133_v25 = vsel %vm8752_vm9, %v6128_v3, %v6132_v28  ;;  %v7177_v18 = vsel %vm7161_vm7, %v7144_v6, %v13395_v9  ;;  %v6985_v45 = vsel %vm3520_vm15, %v6947_v11, %v13492_v34  ;;  %v8025_v23 = vrot.slane %v14532_v21, 11  ;;  %v14534_v9 = vld [vmem:[#allocation31_spill] sm:$0xff]  ;;  %v13646_v52 = vpop.f32.mrf.mxu1 }
 0x353   : > { %6914 = vrot.lane.b32.xlu0 %v8205_v29, %s8623_s17  ;;  %v4501_v57 = vor.u32 %v14531_v31, %v13467_v13  ;;  %v8206_v7 = vcombine.low %v6125_v26, %v6133_v25  ;;  %8464 = vmatmul.mubr.msk.bf16.gmra.mxu1 %vm7443_vm4, %v7177_v18  ;;  %v14533_v60 = vshll.u32 %v14509_v10, 16  ;;  %v4494_v53 = vrot.slane %v13400_v14, 4  ;;  %v14535_v34 = vld [vmem:[#allocation7_spill] sm:$0xff]  ;;  %v6715_v10 = vpop.permute.xlu0 %6714  ;;  %v4255_v29 = vld [vmem:[#allocation3 + $0xe0] sm:$0x8] }
 0x354   : > { %v7017_v35 = vsel %vm3586_vm5, %v6985_v45, %v13313_v54  ;;  %v7146_v43 = vsel %vm7128_vm6, %v7113_v50, %v14534_v9  ;;  %v4504_v8 = vshrl.u32 %v4246_v39, 16  ;;  %v14536_v17 = vshrl.u32 %v14535_v34, 16  ;;  %v4258_v50 = vld [vmem:[#allocation3 + $0xf0] sm:$0x8]  ;;  %v13661_v18 = vpop.f32.mrf.mxu1 }
 0x355   : > { %v4492_v13 = vor.u32 %v14533_v60, %v13400_v14  ;;  %v7179_v32 = vsel %vm7161_vm7, %v7146_v43, %v13360_v15  ;;  %v7049_v42 = vsel %vm3652_vm10, %v7017_v35, %v14537_v58  ;;  %v4502_v14 = vsel %vm8952_vm11, %v4494_v53, %v4501_v57  ;;  %6916 = vrot.lane.b32.xlu1 %v8206_v7, %s8623_s17  ;;  %v6637_v0 = vpop.permute.xlu1 %6636 }
 0x356   : > { %v4511_v27 = vrot.slane %v14536_v17, 7  ;;  %8467 = vmatprep.mubr.msk.bf16.mxu1 %vm7443_vm4, %v7179_v32  ;;  %v7082_v54 = vsel %vm7062_vm12, %v7049_v42, %v13390_v51  ;;  %v14539_v16 = vshrl.u32 %v14538_v63, 16  ;;  %v8026_v33 = vrot.slane %v4504_v8, 11 }
 0x357   : > { %v7115_v47 = vsel %vm7095_vm1, %v7082_v54, %v13527_v62  ;;  %v4493_v22 = vsel %vm8952_vm11, %v8025_v23, %v4492_v13  ;;  %v14540_v28 = vshll.u32 %v14535_v34, 16  ;;  %v14542_v26 = vshll.u32 %v14538_v63, 16 }
 0x358   : > { %v4520_v15 = vrot.slane %v14539_v16, 7  ;;  %v7148_v12 = vsel %vm7128_vm6, %v7115_v47, %v13432_v38  ;;  %v8073_v24 = vcombine.low %v4493_v22, %v4502_v14  ;;  %v6827_v38 = vpop.permute.xlu0 %6826  ;;  %v4570_v11 = vshrl.u32 %v4255_v29, 16  ;;  %v13685_v14 = vpop.f32.mrf.mxu1 }
 0x359   : > { %v4514_v2 = vor.u32 %v14540_v28, %v4511_v27  ;;  %v7181_v51 = vsel %vm7161_vm7, %v7148_v12, %v13479_v49  ;;  %v14543_v6 = vshrl.u32 %v13263_v20, 16  ;;  %v4516_v57 = vrot.slane %v4511_v27, 4 }
 0x35a   : > { %v6950_v62 = vsel %vm3454_vm13, %v8073_v24, %v14541_v36  ;;  %v4523_v3 = vor.u32 %v14542_v26, %v4520_v15  ;;  %v8029_v45 = vrot.slane %v4570_v11, 11  ;;  %v14545_v23 = vshrl.u32 %v13273_v1, 16  ;;  %v14551_v24 = vld [vmem:[#allocation36_spill] sm:$0xff] }
 0x35b   : > { %8468 = vmatmul.mubr.msk.bf16.gmra.mxu1 %vm7443_vm4, %v7181_v51  ;;  %v6987_v59 = vsel %vm3520_vm15, %v6950_v62, %v13449_v44  ;;  %v4577_v49 = vrot.slane %v14543_v6, 7  ;;  %v4515_v31 = vsel %vm8952_vm11, %v8026_v33, %v4514_v2  ;;  %v14544_v44 = vshll.u32 %v13263_v20, 16  ;;  %v13703_v2 = vpop.f32.mrf.mxu1 }
 0x35c   : > { %v7019_v25 = vsel %vm3586_vm5, %v6987_v59, %v13512_v56  ;;  %v4586_v7 = vrot.slane %v14545_v23, 7  ;;  %v4524_v60 = vsel %vm8952_vm11, %v4516_v57, %v4523_v3  ;;  %v4592_v53 = vshrl.u32 %v4258_v50, 16 }
 0x35d   : > { %v7051_v39 = vsel %vm3652_vm10, %v7019_v25, %v13552_v46  ;;  %v4580_v21 = vor.u32 %v14544_v44, %v4577_v49  ;;  %v14546_v56 = vshrl.u32 %v13296_v4, 16  ;;  %v4582_v46 = vrot.slane %v4577_v49, 4  ;;  %v6907_v27 = vpop.permute.xlu0 %6906  ;;  %v13711_v26 = vpop.f32.mrf.mxu1  ;;  %v14552_v44 = vld [vmem:[#allocation10_spill] sm:$0xff] }
 0x35e   : > { %v7084_v13 = vsel %vm7062_vm12, %v7051_v39, %v13580_v30  ;;  %v14547_v43 = vshll.u32 %v13273_v1, 16  ;;  %v14548_v8 = vshrl.u32 %v13325_v48, 16  ;;  %v8030_v30 = vrot.slane %v4592_v53, 11  ;;  %v14554_v53 = vld [vmem:[#allocation38_spill] sm:$0xff] }
 0x35f   : > { %v4599_v35 = vrot.slane %v14546_v56, 7  ;;  %v7117_v9 = vsel %vm7095_vm1, %v7084_v13, %v6715_v10  ;;  %v4581_v32 = vsel %vm8952_vm11, %v8029_v45, %v4580_v21  ;;  %v14549_v58 = vshll.u32 %v13296_v4, 16  ;;  %v6717_v10 = vpop.permute.xlu1 %6716  ;;  %v4249_v45 = vld [vmem:[#allocation3 + $0xc0] sm:$0x8] }
 0x360   : > { %v4589_v20 = vor.u32 %v14547_v43, %v4586_v7  ;;  %v4608_v34 = vrot.slane %v14548_v8, 7  ;;  %v7150_v17 = vsel %vm7128_vm6, %v7117_v9, %v6827_v38  ;;  %v14550_v16 = vshll.u32 %v13325_v48, 16 }
 0x361   : > { %v4602_v42 = vor.u32 %v14549_v58, %v4599_v35  ;;  %v7183_v54 = vsel %vm7161_vm7, %v7150_v17, %v6907_v27  ;;  %v4604_v63 = vrot.slane %v4599_v35, 4  ;;  %v8074_v47 = vcombine.low %v4515_v31, %v4524_v60 }
 0x362   : > { %v4590_v1 = vsel %vm8952_vm11, %v4582_v46, %v4589_v20  ;;  %v4611_v15 = vor.u32 %v14550_v16, %v4608_v34  ;;  %8471 = vmatprep.mubr.msk.bf16.mxu1 %vm7443_vm4, %v7183_v54  ;;  %v14553_v21 = vshrl.u32 %v14552_v44, 16  ;;  %v4526_v13 = vshrl.u32 %v4249_v45, 16 }
 0x363   : > { %v13693_v22 = vcombine.low %v4581_v32, %v4590_v1  ;;  %v4603_v4 = vsel %vm8952_vm11, %v8030_v30, %v4602_v42  ;;  %v6953_v33 = vsel %vm3454_vm13, %v8074_v47, %v14551_v24  ;;  %v6829_v36 = vpop.permute.xlu1 %6828  ;;  %v14555_v56 = vshrl.u32 %v14554_v53, 16  ;;  %v4252_v42 = vld [vmem:[#allocation3 + $0xd0] sm:$0x8]  ;;  %v14558_v1 = vld [vmem:[#allocation40_spill] sm:$0xff] }
 0x364   : > { %v4612_v12 = vsel %vm8952_vm11, %v4604_v63, %v4611_v15  ;;  %v6989_v48 = vsel %vm3520_vm15, %v6953_v33, %v13559_v40  ;;  %v13717_v40 = vpop.f32.mrf.mxu1  ;;  %v4542_v23 = vrot.slane %v14553_v21, 7  ;;  %v14556_v46 = vshll.u32 %v14552_v44, 16 }
 0x365   : > { %v13701_v28 = vcombine.low %v4603_v4, %v4612_v12  ;;  %v7021_v51 = vsel %vm3586_vm5, %v6989_v48, %v13595_v61  ;;  %v4533_v35 = vrot.slane %v14555_v56, 7  ;;  %v8027_v8 = vrot.slane %v4526_v13, 11  ;;  %v14560_v4 = vld [vmem:[#allocation17_spill] sm:$0xff] }
 0x366   : > { %v7053_v29 = vsel %vm3652_vm10, %v7021_v51, %v6557_v55  ;;  %v6909_v59 = vpop.permute.xlu0 %6908  ;;  %v13719_v49 = vpop.f32.mrf.mxu1  ;;  %v4545_v43 = vor.u32 %v14556_v46, %v4542_v23  ;;  %v14557_v34 = vshll.u32 %v14554_v53, 16  ;;  %v14559_v63 = vshrl.u32 %v14558_v1, 16 }
 0x367   : > { %v7086_v62 = vsel %vm7062_vm12, %v7053_v29, %v6637_v0  ;;  %v6287_v61 = vpop.permute.xlu1 %6286  ;;  %v4538_v27 = vrot.slane %v4533_v35, 4  ;;  %v4548_v47 = vshrl.u32 %v4252_v42, 16  ;;  %v14561_v12 = vshrl.u32 %v14560_v4, 16 }
 0x368   : > { %v7119_v3 = vsel %vm7095_vm1, %v7086_v62, %v6717_v10  ;;  %v13721_v55 = vpop.f32.mrf.mxu1  ;;  %v4536_v17 = vor.u32 %v14557_v34, %v4533_v35  ;;  %v4564_v16 = vrot.slane %v14559_v63, 7 }
 0x369   : > { %v7152_v38 = vsel %vm7128_vm6, %v7119_v3, %v6829_v36  ;;  %v4546_v30 = vsel %vm8952_vm11, %v4538_v27, %v4545_v43  ;;  %v4555_v24 = vrot.slane %v14561_v12, 7  ;;  %v14562_v36 = vshll.u32 %v14558_v1, 16  ;;  %v8411_v43 = vpop.f32.mrf.mxu0 }
 0x36a   : > { %v7185_v11 = vsel %vm7161_vm7, %v7152_v38, %v6909_v59  ;;  %v6367_v6 = vpop.permute.xlu0 %6366  ;;  %v13723_v31 = vpop.f32.mrf.mxu1  ;;  %v4537_v54 = vsel %vm8952_vm11, %v8027_v8, %v4536_v17  ;;  %v8028_v59 = vrot.slane %v4548_v47, 11 }
 0x36b   : > { %8472 = vmatmul.mubr.msk.bf16.gmra.mxu1 %vm7443_vm4, %v7185_v11  ;;  %v6289_v50 = vpop.permute.xlu1 %6288  ;;  %v8075_v15 = vcombine.low %v4537_v54, %v4546_v30  ;;  %v4567_v62 = vor.u32 %v14562_v36, %v4564_v16  ;;  %v14563_v11 = vshll.u32 %v14560_v4, 16  ;;  %v4560_v44 = vrot.slane %v4555_v24, 4  ;;  %v7289_v17 = vpop.f32.mrf.mxu0 }
 0x36c   : > { %v13725_v39 = vpop.f32.mrf.mxu1 }
 0x36d   : > { %v6956_v33 = vsel %vm3454_vm13, %v8075_v15, %v6287_v61  ;;  %v4558_v45 = vor.u32 %v14563_v11, %v4555_v24  ;;  %v8412_v1 = vpop.f32.mrf.mxu0 }
 0x36e   : > { %v13729_v60 = vpop.f32.mrf.mxu1  ;;  %v6991_v29 = vsel %vm3520_vm15, %v6956_v33, %v6367_v6  ;;  %v4568_v6 = vsel %vm8952_vm11, %v4560_v44, %v4567_v62 }
 0x36f   : > { %v7292_v4 = vpop.f32.mrf.mxu0 }
 0x370   : > { %v13735_v20 = vpop.f32.mrf.mxu1 }
 0x371   : > { %v6447_v0 = vpop.permute.xlu0 %6446 }
 0x372   : > { %v13741_v10 = vpop.f32.mrf.mxu1  ;;  %v7023_v38 = vsel %vm3586_vm5, %v6991_v29, %v6447_v0  ;;  %v4559_v0 = vsel %vm8952_vm11, %v8028_v59, %v4558_v45 }
 0x374   : > { %v6369_v25 = vpop.permute.xlu1 %6368  ;;  %v13750_v51 = vpop.f32.mrf.mxu1 }
 0x375   : > { %v6559_v57 = vpop.permute.xlu0 %6558 }
 0x376   : > { %v7055_v21 = vsel %vm3652_vm10, %v7023_v38, %v6559_v57  ;;  %v13760_v23 = vpop.f32.mrf.mxu1  ;;  %v8076_v57 = vcombine.low %v4559_v0, %v4568_v6 }
 0x378   : > { %v6959_v8 = vsel %vm3454_vm13, %v8076_v57, %v6289_v50 }
 0x379   : > { %v6993_v34 = vsel %vm3520_vm15, %v6959_v8, %v6369_v25 }
 0x37c   : > { %v6639_v7 = vpop.permute.xlu0 %6638 }
 0x37d   : > { %v7088_v61 = vsel %vm7062_vm12, %v7055_v21, %v6639_v7  ;;  %v13770_v7 = vpop.f32.mrf.mxu1 }
 0x37e   : > { %v6449_v9 = vpop.permute.xlu1 %6448 }
 0x37f   : > { %v7025_v27 = vsel %vm3586_vm5, %v6993_v34, %v6449_v9 }
 0x380   : > { %v6719_v32 = vpop.permute.xlu0 %6718 }
 0x381   : > { %v7121_v13 = vsel %vm7095_vm1, %v7088_v61, %v6719_v32  ;;  %v13775_v32 = vpop.f32.mrf.mxu1 }
 0x382   : > { %v6561_v58 = vpop.permute.xlu1 %6560 }
 0x383   : > { %v7057_v19 = vsel %vm3652_vm10, %v7025_v27, %v6561_v58 }
 0x384   : > { %v6831_v48 = vpop.permute.xlu0 %6830 }
 0x385   : > { %v7154_v53 = vsel %vm7128_vm6, %v7121_v13, %v6831_v48 }
 0x389   : > { %v6641_v3 = vpop.permute.xlu1 %6640 }
 0x38a   : > { %v7090_v42 = vsel %vm7062_vm12, %v7057_v19, %v6641_v3 }
 0x390   : > { %v6721_v35 = vpop.permute.xlu1 %6720 }
 0x391   : > { %v7123_v54 = vsel %vm7095_vm1, %v7090_v42, %v6721_v35  ;;  %v8415_v42 = vpop.f32.mrf.mxu0 }
 0x392   : > { %v6911_v56 = vpop.permute.xlu0 %6910 }
 0x393   : > { %v7187_v46 = vsel %vm7161_vm7, %v7154_v53, %v6911_v56 }
 0x394   : > { %8475 = vmatprep.mubr.msk.bf16.mxu1 %vm7443_vm4, %v7187_v46  ;;  %v6833_v30 = vpop.permute.xlu1 %6832 }
 0x395   : > { %v7156_v63 = vsel %vm7128_vm6, %v7123_v54, %v6833_v30 }
 0x397   : > { %v8453_v50 = vpop.f32.mrf.mxu1 }
 0x398   : > { %v7523_v9 = vadd.f32 %v8453_v50, %v8411_v43  ;;  %v6291_v15 = vpop.permute.xlu1 %6290 }
 0x399   : > { %v7514_v58 = vpop.f32.mrf.mxu1  ;;  %v6962_v61 = vsel %vm3454_vm13, %v13693_v22, %v6291_v15 }
 0x39a   : > { %7643 = vst.msk [vmem:[%s13786_s16 + $0x10] sm:$0xff] %vm3454_vm13, %v7523_v9  ;;  %v7515_v47 = vadd.f32 %v7514_v58, %v7289_v17 }
 0x39b   : > { %v6913_v16 = vpop.permute.xlu0 %6912  ;;  %v8454_v24 = vpop.f32.mrf.mxu1 }
 0x39c   : > { %v7189_v25 = vsel %vm7161_vm7, %v7156_v63, %v6913_v16  ;;  %7641 = vst.msk [vmem:[%s13786_s16] sm:$0xff] %vm3454_vm13, %v7515_v47  ;;  %v7526_v33 = vadd.f32 %v8454_v24, %v8412_v1  ;;  %v6293_v62 = vpop.permute.xlu1 %6292  ;;  %v7305_v16 = vpop.f32.mrf.mxu0 }
 0x39d   : > { %8476 = vmatmul.mubr.msk.bf16.gmra.mxu1 %vm7443_vm4, %v7189_v25  ;;  %v7517_v48 = vpop.f32.mrf.mxu1  ;;  %v6965_v46 = vsel %vm3454_vm13, %v13701_v28, %v6293_v62 }
 0x39e   : > { %7644 = vst.msk [vmem:[%s13786_s16 + $0x18] sm:$0xff] %vm3454_vm13, %v7526_v33  ;;  %v7518_v29 = vadd.f32 %v7517_v48, %v7292_v4  ;;  %v8416_v25 = vpop.f32.mrf.mxu0 }
 0x39f   : > { %v6371_v12 = vpop.permute.xlu0 %6370 }
 0x3a0   : > { %7642 = vst.msk [vmem:[%s13786_s16 + $0x8] sm:$0xff] %vm3454_vm13, %v7518_v29  ;;  %v6995_v13 = vsel %vm3520_vm15, %v6962_v61, %v6371_v12  ;;  %v7308_v4 = vpop.f32.mrf.mxu0 }
 0x3a2   : > { %v8419_v48 = vpop.f32.mrf.mxu0 }
 0x3a3   : > { %v6451_v36 = vpop.permute.xlu0 %6450 }
 0x3a4   : > { %v6373_v38 = vpop.permute.xlu1 %6372  ;;  %v7027_v53 = vsel %vm3586_vm5, %v6995_v13, %v6451_v36  ;;  %v7321_v29 = vpop.f32.mrf.mxu0 }
 0x3a5   : > { %v6997_v57 = vsel %vm3520_vm15, %v6965_v46, %v6373_v38 }
 0x3a6   : > { %v8420_v62 = vpop.f32.mrf.mxu0 }
 0x3a7   : > { %v6563_v3 = vpop.permute.xlu0 %6562 }
 0x3a8   : > { %v7059_v56 = vsel %vm3652_vm10, %v7027_v53, %v6563_v3 }
 0x3ad   : > { %v6643_v59 = vpop.permute.xlu0 %6642 }
 0x3ae   : > { %v7092_v35 = vsel %vm7062_vm12, %v7059_v56, %v6643_v59 }
 0x3b0   : > { %v6453_v11 = vpop.permute.xlu1 %6452 }
 0x3b1   : > { %v6723_v44 = vpop.permute.xlu0 %6722  ;;  %v7029_v34 = vsel %vm3586_vm5, %v6997_v57, %v6453_v11 }
 0x3b2   : > { %v7125_v43 = vsel %vm7095_vm1, %v7092_v35, %v6723_v44 }
 0x3b4   : > { %v6565_v45 = vpop.permute.xlu1 %6564 }
 0x3b5   : > { %v6835_v6 = vpop.permute.xlu0 %6834  ;;  %v7061_v19 = vsel %vm3652_vm10, %v7029_v34, %v6565_v45  ;;  %v7324_v45 = vpop.f32.mrf.mxu0 }
 0x3b6   : > { %v7158_v8 = vsel %vm7128_vm6, %v7125_v43, %v6835_v6 }
 0x3bb   : > { %v6645_v21 = vpop.permute.xlu1 %6644 }
 0x3bc   : > { %v7094_v30 = vsel %vm7062_vm12, %v7061_v19, %v6645_v21 }
 0x3bf   : > { %v6725_v0 = vpop.permute.xlu1 %6724 }
 0x3c0   : > { %v7127_v28 = vsel %vm7095_vm1, %v7094_v30, %v6725_v0 }
 0x3c3   : > { %v6837_v27 = vpop.permute.xlu1 %6836 }
 0x3c4   : > { %v7160_v54 = vsel %vm7128_vm6, %v7127_v28, %v6837_v27 }
 0x3c5   : > { %v6915_v22 = vpop.permute.xlu0 %6914 }
 0x3c6   : > { %v7191_v17 = vsel %vm7161_vm7, %v7158_v8, %v6915_v22 }
 0x3c7   : > { %8479 = vmatprep.mubr.msk.bf16.mxu1 %vm7443_vm4, %v7191_v17  ;;  %v6917_v1 = vpop.permute.xlu1 %6916 }
 0x3c8   : > { %v7193_v63 = vsel %vm7161_vm7, %v7160_v54, %v6917_v1 }
 0x3c9   : > { %8480 = vmatmul.mubr.msk.bf16.gmra.mxu1 %vm7443_vm4, %v7193_v63 }
 0x3ca   : > { %v8457_v50 = vpop.f32.mrf.mxu1 }
 0x3cb   : > { %v7539_v9 = vadd.f32 %v8457_v50, %v8415_v42 }
 0x3cc   : > { %v7530_v58 = vpop.f32.mrf.mxu1 }
 0x3cd   : > { %7647 = vst.msk [vmem:[%s13786_s16 + $0x30] sm:$0xff] %vm3454_vm13, %v7539_v9  ;;  %v7531_v15 = vadd.f32 %v7530_v58, %v7305_v16 }
 0x3ce   : > { %v8458_v47 = vpop.f32.mrf.mxu1 }
 0x3cf   : > { %7645 = vst.msk [vmem:[%s13786_s16 + $0x20] sm:$0xff] %vm3454_vm13, %v7531_v15  ;;  %v7542_v12 = vadd.f32 %v8458_v47, %v8416_v25 }
 0x3d0   : > { %v7533_v24 = vpop.f32.mrf.mxu1 }
 0x3d1   : > { %7648 = vst.msk [vmem:[%s13786_s16 + $0x38] sm:$0xff] %vm3454_vm13, %v7542_v12  ;;  %v7534_v33 = vadd.f32 %v7533_v24, %v7308_v4 }
 0x3d3   : > { %7646 = vst.msk [vmem:[%s13786_s16 + $0x28] sm:$0xff] %vm3454_vm13, %v7534_v33 }
 0x3fc   : > { %v8461_v36 = vpop.f32.mrf.mxu1 }
 0x3fd   : > { %v7555_v3 = vadd.f32 %v8461_v36, %v8419_v48 }
 0x3fe   : > { %v7546_v38 = vpop.f32.mrf.mxu1 }
 0x3ff   : > { %7651 = vst.msk [vmem:[%s13786_s16 + $0x50] sm:$0xff] %vm3454_vm13, %v7555_v3  ;;  %v7547_v59 = vadd.f32 %v7546_v38, %v7321_v29 }
 0x400   : > { %v8462_v11 = vpop.f32.mrf.mxu1 }
 0x401   : > { %7649 = vst.msk [vmem:[%s13786_s16 + $0x40] sm:$0xff] %vm3454_vm13, %v7547_v59  ;;  %v7558_v44 = vadd.f32 %v8462_v11, %v8420_v62 }
 0x402   : > { %v7549_v21 = vpop.f32.mrf.mxu1 }
 0x403   : > { %7652 = vst.msk [vmem:[%s13786_s16 + $0x58] sm:$0xff] %vm3454_vm13, %v7558_v44  ;;  %v7550_v61 = vadd.f32 %v7549_v21, %v7324_v45 }
 0x405   : > { %7650 = vst.msk [vmem:[%s13786_s16 + $0x48] sm:$0xff] %vm3454_vm13, %v7550_v61 }
 0x413   : > { %v8465_v6 = vpop.f32.mrf.mxu1 }
 0x414   : > { %v7571_v13 = vadd.f32 %v8465_v6, %v13571_v41 }
 0x415   : > { %v7562_v53 = vpop.f32.mrf.mxu1 }
 0x416   : > { %7655 = vst.msk [vmem:[%s13786_s16 + $0x70] sm:$0xff] %vm3454_vm13, %v7571_v13  ;;  %v7563_v56 = vadd.f32 %v7562_v53, %v13597_v37 }
 0x417   : > { %v8466_v0 = vpop.f32.mrf.mxu1 }
 0x418   : > { %7653 = vst.msk [vmem:[%s13786_s16 + $0x60] sm:$0xff] %vm3454_vm13, %v7563_v56  ;;  %v7574_v35 = vadd.f32 %v8466_v0, %v13626_v5 }
 0x419   : > { %v7565_v46 = vpop.f32.mrf.mxu1 }
 0x41a   : > { %7656 = vst.msk [vmem:[%s13786_s16 + $0x78] sm:$0xff] %vm3454_vm13, %v7574_v35  ;;  %v7566_v43 = vadd.f32 %v7565_v46, %v13646_v52 }
 0x41b   : > { %v8469_v57 = vpop.f32.mrf.mxu1 }
 0x41c   : > { %7654 = vst.msk [vmem:[%s13786_s16 + $0x68] sm:$0xff] %vm3454_vm13, %v7566_v43  ;;  %v7587_v41 = vadd.f32 %v8469_v57, %v13661_v18 }
 0x41d   : > { %v7578_v8 = vpop.f32.mrf.mxu1 }
 0x41e   : > { %7659 = vst.msk [vmem:[%s13786_s16 + $0x90] sm:$0xff] %vm3454_vm13, %v7587_v41  ;;  %v7579_v37 = vadd.f32 %v7578_v8, %v13685_v14 }
 0x41f   : > { %v8470_v22 = vpop.f32.mrf.mxu1 }
 0x420   : > { %7657 = vst.msk [vmem:[%s13786_s16 + $0x80] sm:$0xff] %vm3454_vm13, %v7579_v37  ;;  %v7590_v5 = vadd.f32 %v8470_v22, %v13703_v2 }
 0x421   : > { %v7581_v52 = vpop.f32.mrf.mxu1 }
 0x422   : > { %7660 = vst.msk [vmem:[%s13786_s16 + $0x98] sm:$0xff] %vm3454_vm13, %v7590_v5  ;;  %v7582_v34 = vadd.f32 %v7581_v52, %v13711_v26 }
 0x424   : > { %7658 = vst.msk [vmem:[%s13786_s16 + $0x88] sm:$0xff] %vm3454_vm13, %v7582_v34 }
 0x42b   : > { %v8473_v18 = vpop.f32.mrf.mxu1 }
 0x42c   : > { %v7603_v17 = vadd.f32 %v8473_v18, %v13717_v40 }
 0x42d   : > { %v7594_v27 = vpop.f32.mrf.mxu1 }
 0x42e   : > { %7663 = vst.msk [vmem:[%s13786_s16 + $0xb0] sm:$0xff] %vm3454_vm13, %v7603_v17  ;;  %v7595_v14 = vadd.f32 %v7594_v27, %v13719_v49 }
 0x42f   : > { %v8474_v19 = vpop.f32.mrf.mxu1 }
 0x430   : > { %7661 = vst.msk [vmem:[%s13786_s16 + $0xa0] sm:$0xff] %vm3454_vm13, %v7595_v14  ;;  %v7606_v2 = vadd.f32 %v8474_v19, %v13721_v55 }
 0x431   : > { %v7597_v26 = vpop.f32.mrf.mxu1 }
 0x432   : > { %7664 = vst.msk [vmem:[%s13786_s16 + $0xb8] sm:$0xff] %vm3454_vm13, %v7606_v2  ;;  %v7598_v30 = vadd.f32 %v7597_v26, %v13723_v31 }
 0x434   : > { %7662 = vst.msk [vmem:[%s13786_s16 + $0xa8] sm:$0xff] %vm3454_vm13, %v7598_v30 }
 0x45d   : > { %v8477_v40 = vpop.f32.mrf.mxu1 }
 0x45e   : > { %v7619_v28 = vadd.f32 %v8477_v40, %v13725_v39 }
 0x45f   : > { %v7610_v42 = vpop.f32.mrf.mxu1 }
 0x460   : > { %7667 = vst.msk [vmem:[%s13786_s16 + $0xd0] sm:$0xff] %vm3454_vm13, %v7619_v28  ;;  %v7611_v49 = vadd.f32 %v7610_v42, %v13729_v60 }
 0x461   : > { %v8478_v54 = vpop.f32.mrf.mxu1 }
 0x462   : > { %7665 = vst.msk [vmem:[%s13786_s16 + $0xc0] sm:$0xff] %vm3454_vm13, %v7611_v49  ;;  %v7622_v55 = vadd.f32 %v8478_v54, %v13735_v20 }
 0x463   : > { %v7613_v31 = vpop.f32.mrf.mxu1 }
 0x464   : > { %7668 = vst.msk [vmem:[%s13786_s16 + $0xd8] sm:$0xff] %vm3454_vm13, %v7622_v55  ;;  %v7614_v1 = vadd.f32 %v7613_v31, %v13741_v10 }
 0x466   : > { %7666 = vst.msk [vmem:[%s13786_s16 + $0xc8] sm:$0xff] %vm3454_vm13, %v7614_v1 }
 0x489   : > { %v8481_v39 = vpop.f32.mrf.mxu1 }
 0x48a   : > { %v7635_v63 = vadd.f32 %v8481_v39, %v13750_v51 }
 0x48b   : > { %v7626_v16 = vpop.f32.mrf.mxu1 }
 0x48c   : > { %7671 = vst.msk [vmem:[%s13786_s16 + $0xf0] sm:$0xff] %vm3454_vm13, %v7635_v63  ;;  %v7627_v60 = vadd.f32 %v7626_v16, %v13760_v23 }
 0x48d   : > { %v8482_v50 = vpop.f32.mrf.mxu1 }
 0x48e   : > { %7669 = vst.msk [vmem:[%s13786_s16 + $0xe0] sm:$0xff] %vm3454_vm13, %v7627_v60  ;;  %v7638_v20 = vadd.f32 %v8482_v50, %v13770_v7 }
 0x48f   : > { %v7629_v25 = vpop.f32.mrf.mxu1 }
 0x490   : > { %7672 = vst.msk [vmem:[%s13786_s16 + $0xf8] sm:$0xff] %vm3454_vm13, %v7638_v20  ;;  %v7630_v10 = vadd.f32 %v7629_v25, %v13775_v32 }
 0x492   : > { %7670 = vst.msk [vmem:[%s13786_s16 + $0xe8] sm:$0xff] %vm3454_vm13, %v7630_v10 }
 0x493 PF: > { %s17_s24 = sadd.s32 1, %s8610_s24  }
 0x494   : > { %p14_p4 = scmp.ge.s32.totalorder %s17_s24, 4  }
 0x496   :  { %16 = sbr.rel (!%p14_p4) target bundleno = 1 (0x1), region = 84 }

</bundles_post_ra>
